<compile_context>
chip_gen: v6e
topology: v6e:2x2x1
jax: 0.10.0
libtpu: 0.0.40
codegen_flags: <defaults>
</compile_context>

<pallas_src>
import jax
import jax.numpy as jnp
from jax import lax
from jax.experimental import pallas as pl
from jax.experimental.pallas import tpu as pltpu

EPS = 1e-5  # PyTorch BatchNorm2d default


# ----------------------------------- kernel ----------------------------------

def cnn2_kernel(x_ref, dw1_ref, w1e_ref, b1_ref, dw2_ref, w2e_ref, b2_ref,
                fcw_ref, fcb_ref, o_ref):
    # x block layout: (H=10, W=8, Cpad=8, TN) -- batch tile on the 128-lane axis.
    h_in, w_in, c1p, tn = x_ref.shape
    ho1, wo1 = h_in - 2, w_in - 2          # 8, 6
    ho2, wo2 = ho1 - 2, wo1 - 2            # 6, 4
    c2 = dw2_ref.shape[1]                  # 16
    c3 = b2_ref.shape[0]                   # 64

    dw1 = dw1_ref[...]                     # (9, c1p, 1)   taps along sublanes
    dw2 = dw2_ref[...]                     # (9, c2, 1)
    w1e = w1e_ref[...]                     # (wo1*16, wo1*c1p) = (96, 48) block-diag
    w2e = w2e_ref[...]                     # (wo2*64, wo2*c2)  = (256, 64) block-diag
    b1 = b1_ref[...][None]                 # (1, 16, 1)
    b2 = b2_ref[...][None]                 # (1, 64, 1)
    fcw = fcw_ref[...]                     # (6, out, 64)
    fcb = fcb_ref[...]                     # (out, 1)

    taps1 = [dw1[k][None] for k in range(9)]   # each (1, c1p, 1), k = ky*3+kx
    taps2 = [dw2[k][None] for k in range(9)]

    # conv1: depthwise 3x3 (lane-dense VPU) + [1x1 conv + dw-bias + BN1 + ReLU]
    # (pointwise = one block-diagonal MXU matmul per output row, K = wo1*c1p = 48).
    y1 = []
    for h in range(ho1):
        acc = None
        for ky in range(3):
            row = x_ref[h + ky]                              # (w_in, c1p, TN)
            for kx in range(3):
                t = row[kx:kx + wo1] * taps1[ky * 3 + kx]    # (wo1, c1p, TN)
                acc = t if acc is None else acc + t
        z = jnp.dot(w1e, acc.reshape(wo1 * c1p, tn),
                    preferred_element_type=jnp.float32)       # (wo1*16, TN)
        z = z.reshape(wo1, c2, tn) + b1
        y1.append(jnp.maximum(z, 0.0))                        # (wo1, 16, TN)

    # conv2: depthwise 3x3 + [1x1 conv + dw-bias + BN2 + ReLU], K = wo2*c2 = 64.
    y2 = []
    for h in range(ho2):
        acc = None
        for ky in range(3):
            row = y1[h + ky]                                  # (wo1, c2, TN)
            for kx in range(3):
                t = row[kx:kx + wo2] * taps2[ky * 3 + kx]     # (wo2, c2, TN)
                acc = t if acc is None else acc + t
        z = jnp.dot(w2e, acc.reshape(wo2 * c2, tn),
                    preferred_element_type=jnp.float32)       # (wo2*64, TN)
        z = z.reshape(wo2, c3, tn) + b2
        y2.append(jnp.maximum(z, 0.0))                        # (wo2, 64, TN)

    # TODO(synk): Dropout(0.3) treated as inference-mode identity (no RNG mask).

    # 2x2 maxpool + Linear(384, out) as 6 accumulated K=64 MXU dots (no concat).
    acc = None
    for i in range(ho2 // 2):
        for j in range(wo2 // 2):
            p00 = y2[2 * i][2 * j]
            p01 = y2[2 * i][2 * j + 1]
            p10 = y2[2 * i + 1][2 * j]
            p11 = y2[2 * i + 1][2 * j + 1]
            pooled = jnp.maximum(jnp.maximum(p00, p01),
                                 jnp.maximum(p10, p11))        # (64, TN)
            d = jnp.dot(fcw[i * (wo2 // 2) + j], pooled,
                        preferred_element_type=jnp.float32)    # (out, TN)
            acc = d if acc is None else acc + d
    o_ref[...] = acc + fcb                                     # lane-dense store


# --------------------------------- wrapper -----------------------------------

def cnn2_forward(x_nchw, p, tile_n=512):
    """x_nchw: (N, 6, 10, 8) float32 (PyTorch layout). Returns (N, outputSize)."""
    n = x_nchw.shape[0]
    out_size = p['fc_w'].shape[0]

    # Kernel layout: (H, W, C, N) -- batch on lanes (dense), channels on sublanes.
    x = jnp.transpose(x_nchw.astype(jnp.float32), (2, 3, 1, 0))   # (10, 8, 6, N)
    h_in, w_in, c_in, _ = x.shape
    c1p = 8                      # pad C 6->8 so sublane tiles stay aligned (free reshapes)
    wo1, wo2 = w_in - 2, w_in - 4

    # Batch tile: multiple of 128 (lane-dense), no bigger than the padded batch,
    # and capped at ~N/2 for big batches so the "parallel" axis has >= 2 steps
    # (shards over both TensorCores on v7x).
    tile_n = max(128, (int(tile_n) // 128) * 128)
    tile_n = min(tile_n, pl.cdiv(n, 128) * 128)
    if n >= 2 * 128:
        tile_n = min(tile_n, pl.cdiv(pl.cdiv(n, 2), 128) * 128)
    n_pad = pl.cdiv(n, tile_n) * tile_n
    x = jnp.pad(x, ((0, 0), (0, 0), (0, c1p - c_in), (0, n_pad - n)))
    grid = (n_pad // tile_n,)

    # ---------------- fold & repack parameters (wrapper / XLA side) ----------------
    def dw_repack(w, cpad):      # torch depthwise (C,1,3,3) -> (9, cpad, 1), row k=ky*3+kx
        c = w.shape[0]
        w9 = jnp.transpose(w.reshape(c, 9), (1, 0))
        return jnp.pad(w9, ((0, 0), (0, cpad - c)))[:, :, None]

    def bn_fold(g, b, rm, rv):
        s = g / jnp.sqrt(rv + EPS)
        return s, b - rm * s

    def block_diag(w, reps):     # (Cout, Cin) -> (reps*Cout, reps*Cin) block-diagonal
        co, ci = w.shape
        e = jnp.eye(reps, dtype=w.dtype)
        return (e[:, None, :, None] * w[None, :, None, :]).reshape(reps * co, reps * ci)

    # conv1: fold dw bias + BN1 into the 1x1 weights/bias; pad Cin 6->8.
    pw1 = p['pw1_w'].reshape(16, 6)                                   # (Cout, Cin)
    s1, t1 = bn_fold(p['bn1_g'], p['bn1_b'], p['bn1_rm'], p['bn1_rv'])
    w1 = pw1 * s1[:, None]
    b1 = (s1 * (pw1 @ p['dw1_b'] + p['pw1_b']) + t1)[:, None]         # (16, 1)
    w1e = block_diag(jnp.pad(w1, ((0, 0), (0, c1p - 6))), wo1)        # (96, 48)

    # conv2: fold dw bias + BN2 into the 1x1 weights/bias.
    pw2 = p['pw2_w'].reshape(64, 16)
    s2, t2 = bn_fold(p['bn2_g'], p['bn2_b'], p['bn2_rm'], p['bn2_rv'])
    w2 = pw2 * s2[:, None]
    b2 = (s2 * (pw2 @ p['dw2_b'] + p['pw2_b']) + t2)[:, None]         # (64, 1)
    w2e = block_diag(w2, wo2)                                         # (256, 64)

    dw1 = dw_repack(p['dw1_w'], c1p)                                  # (9, 8, 1)
    dw2 = dw_repack(p['dw2_w'], 16)                                   # (9, 16, 1)

    # fc: torch flat index = c*6 + i*2 + j  ->  one (out, 64) slab per pooled (i, j).
    fcw = jnp.transpose(p['fc_w'].reshape(out_size, 64, 3, 2),
                        (2, 3, 0, 1)).reshape(6, out_size, 64)
    fcb = p['fc_b'][:, None]                                          # (out, 1)

    # -------------------------------- pallas_call --------------------------------
    in_specs = [
        pl.BlockSpec((h_in, w_in, c1p, tile_n), lambda i: (0, 0, 0, i)),  # x
        pl.BlockSpec(dw1.shape, lambda i: (0, 0, 0)),
        pl.BlockSpec(w1e.shape, lambda i: (0, 0)),
        pl.BlockSpec(b1.shape, lambda i: (0, 0)),
        pl.BlockSpec(dw2.shape, lambda i: (0, 0, 0)),
        pl.BlockSpec(w2e.shape, lambda i: (0, 0)),
        pl.BlockSpec(b2.shape, lambda i: (0, 0)),
        pl.BlockSpec(fcw.shape, lambda i: (0, 0, 0)),
        pl.BlockSpec(fcb.shape, lambda i: (0, 0)),
    ]
    out = pl.pallas_call(
        cnn2_kernel,
        out_shape=jax.ShapeDtypeStruct((out_size, n_pad), jnp.float32),
        grid=grid,
        in_specs=in_specs,
        out_specs=pl.BlockSpec((out_size, tile_n), lambda i: (0, i)),
        compiler_params=pltpu.CompilerParams(
            dimension_semantics=("parallel",),
            vmem_limit_bytes=48 * 1024 * 1024),
    )(x, dw1, w1e, b1, dw2, w2e, b2, fcw, fcb)

    # (out_size, N_pad) -> (N, out_size); padded batch columns are sliced off.
    return jnp.transpose(out[:, :n], (1, 0))


# --------------------------- pure-JAX reference ------------------------------

def cnn2_reference(x, p):
    dn = ('NCHW', 'OIHW', 'NCHW')
    hp = lax.Precision.HIGHEST

    def bn(y, g, b, rm, rv):
        return ((y - rm[None, :, None, None]) / jnp.sqrt(rv + EPS)[None, :, None, None]
                * g[None, :, None, None] + b[None, :, None, None])

    y = lax.conv_general_dilated(x, p['dw1_w'], (1, 1), 'VALID', dimension_numbers=dn,
                                 feature_group_count=6, precision=hp)
    y = y + p['dw1_b'][None, :, None, None]
    y = lax.conv_general_dilated(y, p['pw1_w'], (1, 1), 'VALID', dimension_numbers=dn,
                                 precision=hp) + p['pw1_b'][None, :, None, None]
    y = jax.nn.relu(bn(y, p['bn1_g'], p['bn1_b'], p['bn1_rm'], p['bn1_rv']))

    y = lax.conv_general_dilated(y, p['dw2_w'], (1, 1), 'VALID', dimension_numbers=dn,
                                 feature_group_count=16, precision=hp)
    y = y + p['dw2_b'][None, :, None, None]
    y = lax.conv_general_dilated(y, p['pw2_w'], (1, 1), 'VALID', dimension_numbers=dn,
                                 precision=hp) + p['pw2_b'][None, :, None, None]
    y = jax.nn.relu(bn(y, p['bn2_g'], p['bn2_b'], p['bn2_rm'], p['bn2_rv']))

    y = lax.reduce_window(y, -jnp.inf, lax.max, (1, 1, 2, 2), (1, 1, 2, 2), 'VALID')
    y = y.reshape(y.shape[0], -1)
    return y @ p['fc_w'].T + p['fc_b']


# ------------------------------ param init -----------------------------------

def init_params(key, out_size=4):
    ks = jax.random.split(key, 18)
    def nrm(k, shape, scale):
        return scale * jax.random.normal(k, shape, jnp.float32)
    return dict(
        dw1_w=nrm(ks[0], (6, 1, 3, 3), 0.2),   dw1_b=nrm(ks[1], (6,), 0.1),
        pw1_w=nrm(ks[2], (16, 6, 1, 1), 0.2),  pw1_b=nrm(ks[3], (16,), 0.1),
        bn1_g=1.0 + 0.1 * jax.random.normal(ks[4], (16,), jnp.float32),
        bn1_b=nrm(ks[5], (16,), 0.1),
        bn1_rm=nrm(ks[6], (16,), 0.1),
        bn1_rv=0.5 + jax.random.uniform(ks[7], (16,), jnp.float32),
        dw2_w=nrm(ks[8], (16, 1, 3, 3), 0.2),  dw2_b=nrm(ks[9], (16,), 0.1),
        pw2_w=nrm(ks[10], (64, 16, 1, 1), 0.15), pw2_b=nrm(ks[11], (64,), 0.1),
        bn2_g=1.0 + 0.1 * jax.random.normal(ks[12], (64,), jnp.float32),
        bn2_b=nrm(ks[13], (64,), 0.1),
        bn2_rm=nrm(ks[14], (64,), 0.1),
        bn2_rv=0.5 + jax.random.uniform(ks[15], (64,), jnp.float32),
        fc_w=nrm(ks[16], (out_size, 384), 0.05), fc_b=nrm(ks[17], (out_size,), 0.05),
    )


if __name__ == "__main__":
    key = jax.random.PRNGKey(0)
    k_x, k_x2, k_p = jax.random.split(key, 3)
    out_size = 4
    params = init_params(k_p, out_size)

    # (H, W) = (10, 8) so the flattened feature count is 384, as fc(384, out) requires.
    x = jax.random.normal(k_x, (16, 6, 10, 8), jnp.float32)
    y = jax.block_until_ready(cnn2_forward(x, params))
    assert y.shape == (16, out_size) and y.dtype == jnp.float32
    y_ref = cnn2_reference(x, params)
    if not jnp.allclose(y, y_ref, rtol=5e-3, atol=5e-3):
        raise SystemExit(
            f"mismatch: max abs diff {float(jnp.max(jnp.abs(y - y_ref)))}")

    # Ragged batch with tile_n=128 exercises the multi-step "parallel" grid and
    # the pad-to-tile path (300 -> 384, grid=(3,)).
    x2 = jax.random.normal(k_x2, (300, 6, 10, 8), jnp.float32)
    y2 = jax.block_until_ready(cnn2_forward(x2, params, tile_n=128))
    y2_ref = cnn2_reference(x2, params)
    if not jnp.allclose(y2, y2_ref, rtol=5e-3, atol=5e-3):
        raise SystemExit(
            f"mismatch (grid): max abs diff {float(jnp.max(jnp.abs(y2 - y2_ref)))}")

    print("KERNEL_OK")
</pallas_src>

<mosaic_0001>
module attributes {stable_mosaic.version = 11 : i64} {
  func.func @cnn2_kernel(%arg0: i32, %arg1: memref<10x8x8x128xf32, #tpu.memory_space<vmem>>, %arg2: memref<9x8x1xf32, #tpu.memory_space<vmem>>, %arg3: memref<96x48xf32, #tpu.memory_space<vmem>>, %arg4: memref<16x1xf32, #tpu.memory_space<vmem>>, %arg5: memref<9x16x1xf32, #tpu.memory_space<vmem>>, %arg6: memref<256x64xf32, #tpu.memory_space<vmem>>, %arg7: memref<64x1xf32, #tpu.memory_space<vmem>>, %arg8: memref<6x4x64xf32, #tpu.memory_space<vmem>>, %arg9: memref<4x1xf32, #tpu.memory_space<vmem>>, %arg10: memref<4x128xf32, #tpu.memory_space<vmem>>) attributes {dimension_semantics = [#tpu.dimension_semantics<parallel>], iteration_bounds = array<i64: 1>, scalar_prefetch = 0 : i64, scratch_operands = 0 : i64, tpu.core_type = #tpu.core_type<tc>, window_params = [{transform_indices = @transform_0, window_bounds = array<i64: 10, 8, 8, 128>}, {pipeline_mode = #tpu.pipeline_mode<synchronous>, transform_indices = @transform_1, window_bounds = array<i64: 9, 8, 1>}, {pipeline_mode = #tpu.pipeline_mode<synchronous>, transform_indices = @transform_2, window_bounds = array<i64: 96, 48>}, {pipeline_mode = #tpu.pipeline_mode<synchronous>, transform_indices = @transform_3, window_bounds = array<i64: 16, 1>}, {pipeline_mode = #tpu.pipeline_mode<synchronous>, transform_indices = @transform_4, window_bounds = array<i64: 9, 16, 1>}, {pipeline_mode = #tpu.pipeline_mode<synchronous>, transform_indices = @transform_5, window_bounds = array<i64: 256, 64>}, {pipeline_mode = #tpu.pipeline_mode<synchronous>, transform_indices = @transform_6, window_bounds = array<i64: 64, 1>}, {pipeline_mode = #tpu.pipeline_mode<synchronous>, transform_indices = @transform_7, window_bounds = array<i64: 6, 4, 64>}, {pipeline_mode = #tpu.pipeline_mode<synchronous>, transform_indices = @transform_8, window_bounds = array<i64: 4, 1>}, {transform_indices = @transform_9, window_bounds = array<i64: 4, 128>}]} {
    %c0 = arith.constant 0 : index
    %c0_0 = arith.constant 0 : index
    %c0_1 = arith.constant 0 : index
    %0 = vector.load %arg2[%c0, %c0_0, %c0_1] : memref<9x8x1xf32, #tpu.memory_space<vmem>>, vector<9x8x1xf32>
    %c0_2 = arith.constant 0 : index
    %c0_3 = arith.constant 0 : index
    %c0_4 = arith.constant 0 : index
    %1 = vector.load %arg5[%c0_2, %c0_3, %c0_4] : memref<9x16x1xf32, #tpu.memory_space<vmem>>, vector<9x16x1xf32>
    %c0_5 = arith.constant 0 : index
    %c0_6 = arith.constant 0 : index
    %2 = vector.load %arg3[%c0_5, %c0_6] : memref<96x48xf32, #tpu.memory_space<vmem>>, vector<96x48xf32>
    %c0_7 = arith.constant 0 : index
    %c0_8 = arith.constant 0 : index
    %3 = vector.load %arg6[%c0_7, %c0_8] : memref<256x64xf32, #tpu.memory_space<vmem>>, vector<256x64xf32>
    %c0_9 = arith.constant 0 : index
    %c0_10 = arith.constant 0 : index
    %4 = vector.load %arg4[%c0_9, %c0_10] : memref<16x1xf32, #tpu.memory_space<vmem>>, vector<16x1xf32>
    %5 = vector.shape_cast %4 : vector<16x1xf32> to vector<1x16x1xf32>
    %c0_11 = arith.constant 0 : index
    %c0_12 = arith.constant 0 : index
    %6 = vector.load %arg7[%c0_11, %c0_12] : memref<64x1xf32, #tpu.memory_space<vmem>>, vector<64x1xf32>
    %7 = vector.shape_cast %6 : vector<64x1xf32> to vector<1x64x1xf32>
    %c0_13 = arith.constant 0 : index
    %c0_14 = arith.constant 0 : index
    %c0_15 = arith.constant 0 : index
    %8 = vector.load %arg8[%c0_13, %c0_14, %c0_15] : memref<6x4x64xf32, #tpu.memory_space<vmem>>, vector<6x4x64xf32>
    %c0_16 = arith.constant 0 : index
    %c0_17 = arith.constant 0 : index
    %9 = vector.load %arg9[%c0_16, %c0_17] : memref<4x1xf32, #tpu.memory_space<vmem>>, vector<4x1xf32>
    %10 = vector.extract_strided_slice %0 {offsets = [0, 0, 0], sizes = [1, 8, 1], strides = [1, 1, 1]} : vector<9x8x1xf32> to vector<1x8x1xf32>
    %11 = vector.shape_cast %10 : vector<1x8x1xf32> to vector<8x1xf32>
    %12 = vector.shape_cast %11 : vector<8x1xf32> to vector<1x8x1xf32>
    %13 = vector.extract_strided_slice %0 {offsets = [1, 0, 0], sizes = [1, 8, 1], strides = [1, 1, 1]} : vector<9x8x1xf32> to vector<1x8x1xf32>
    %14 = vector.shape_cast %13 : vector<1x8x1xf32> to vector<8x1xf32>
    %15 = vector.shape_cast %14 : vector<8x1xf32> to vector<1x8x1xf32>
    %16 = vector.extract_strided_slice %0 {offsets = [2, 0, 0], sizes = [1, 8, 1], strides = [1, 1, 1]} : vector<9x8x1xf32> to vector<1x8x1xf32>
    %17 = vector.shape_cast %16 : vector<1x8x1xf32> to vector<8x1xf32>
    %18 = vector.shape_cast %17 : vector<8x1xf32> to vector<1x8x1xf32>
    %19 = vector.extract_strided_slice %0 {offsets = [3, 0, 0], sizes = [1, 8, 1], strides = [1, 1, 1]} : vector<9x8x1xf32> to vector<1x8x1xf32>
    %20 = vector.shape_cast %19 : vector<1x8x1xf32> to vector<8x1xf32>
    %21 = vector.shape_cast %20 : vector<8x1xf32> to vector<1x8x1xf32>
    %22 = vector.extract_strided_slice %0 {offsets = [4, 0, 0], sizes = [1, 8, 1], strides = [1, 1, 1]} : vector<9x8x1xf32> to vector<1x8x1xf32>
    %23 = vector.shape_cast %22 : vector<1x8x1xf32> to vector<8x1xf32>
    %24 = vector.shape_cast %23 : vector<8x1xf32> to vector<1x8x1xf32>
    %25 = vector.extract_strided_slice %0 {offsets = [5, 0, 0], sizes = [1, 8, 1], strides = [1, 1, 1]} : vector<9x8x1xf32> to vector<1x8x1xf32>
    %26 = vector.shape_cast %25 : vector<1x8x1xf32> to vector<8x1xf32>
    %27 = vector.shape_cast %26 : vector<8x1xf32> to vector<1x8x1xf32>
    %28 = vector.extract_strided_slice %0 {offsets = [6, 0, 0], sizes = [1, 8, 1], strides = [1, 1, 1]} : vector<9x8x1xf32> to vector<1x8x1xf32>
    %29 = vector.shape_cast %28 : vector<1x8x1xf32> to vector<8x1xf32>
    %30 = vector.shape_cast %29 : vector<8x1xf32> to vector<1x8x1xf32>
    %31 = vector.extract_strided_slice %0 {offsets = [7, 0, 0], sizes = [1, 8, 1], strides = [1, 1, 1]} : vector<9x8x1xf32> to vector<1x8x1xf32>
    %32 = vector.shape_cast %31 : vector<1x8x1xf32> to vector<8x1xf32>
    %33 = vector.shape_cast %32 : vector<8x1xf32> to vector<1x8x1xf32>
    %34 = vector.extract_strided_slice %0 {offsets = [8, 0, 0], sizes = [1, 8, 1], strides = [1, 1, 1]} : vector<9x8x1xf32> to vector<1x8x1xf32>
    %35 = vector.shape_cast %34 : vector<1x8x1xf32> to vector<8x1xf32>
    %36 = vector.shape_cast %35 : vector<8x1xf32> to vector<1x8x1xf32>
    %37 = vector.extract_strided_slice %1 {offsets = [0, 0, 0], sizes = [1, 16, 1], strides = [1, 1, 1]} : vector<9x16x1xf32> to vector<1x16x1xf32>
    %38 = vector.shape_cast %37 : vector<1x16x1xf32> to vector<16x1xf32>
    %39 = vector.shape_cast %38 : vector<16x1xf32> to vector<1x16x1xf32>
    %40 = vector.extract_strided_slice %1 {offsets = [1, 0, 0], sizes = [1, 16, 1], strides = [1, 1, 1]} : vector<9x16x1xf32> to vector<1x16x1xf32>
    %41 = vector.shape_cast %40 : vector<1x16x1xf32> to vector<16x1xf32>
    %42 = vector.shape_cast %41 : vector<16x1xf32> to vector<1x16x1xf32>
    %43 = vector.extract_strided_slice %1 {offsets = [2, 0, 0], sizes = [1, 16, 1], strides = [1, 1, 1]} : vector<9x16x1xf32> to vector<1x16x1xf32>
    %44 = vector.shape_cast %43 : vector<1x16x1xf32> to vector<16x1xf32>
    %45 = vector.shape_cast %44 : vector<16x1xf32> to vector<1x16x1xf32>
    %46 = vector.extract_strided_slice %1 {offsets = [3, 0, 0], sizes = [1, 16, 1], strides = [1, 1, 1]} : vector<9x16x1xf32> to vector<1x16x1xf32>
    %47 = vector.shape_cast %46 : vector<1x16x1xf32> to vector<16x1xf32>
    %48 = vector.shape_cast %47 : vector<16x1xf32> to vector<1x16x1xf32>
    %49 = vector.extract_strided_slice %1 {offsets = [4, 0, 0], sizes = [1, 16, 1], strides = [1, 1, 1]} : vector<9x16x1xf32> to vector<1x16x1xf32>
    %50 = vector.shape_cast %49 : vector<1x16x1xf32> to vector<16x1xf32>
    %51 = vector.shape_cast %50 : vector<16x1xf32> to vector<1x16x1xf32>
    %52 = vector.extract_strided_slice %1 {offsets = [5, 0, 0], sizes = [1, 16, 1], strides = [1, 1, 1]} : vector<9x16x1xf32> to vector<1x16x1xf32>
    %53 = vector.shape_cast %52 : vector<1x16x1xf32> to vector<16x1xf32>
    %54 = vector.shape_cast %53 : vector<16x1xf32> to vector<1x16x1xf32>
    %55 = vector.extract_strided_slice %1 {offsets = [6, 0, 0], sizes = [1, 16, 1], strides = [1, 1, 1]} : vector<9x16x1xf32> to vector<1x16x1xf32>
    %56 = vector.shape_cast %55 : vector<1x16x1xf32> to vector<16x1xf32>
    %57 = vector.shape_cast %56 : vector<16x1xf32> to vector<1x16x1xf32>
    %58 = vector.extract_strided_slice %1 {offsets = [7, 0, 0], sizes = [1, 16, 1], strides = [1, 1, 1]} : vector<9x16x1xf32> to vector<1x16x1xf32>
    %59 = vector.shape_cast %58 : vector<1x16x1xf32> to vector<16x1xf32>
    %60 = vector.shape_cast %59 : vector<16x1xf32> to vector<1x16x1xf32>
    %61 = vector.extract_strided_slice %1 {offsets = [8, 0, 0], sizes = [1, 16, 1], strides = [1, 1, 1]} : vector<9x16x1xf32> to vector<1x16x1xf32>
    %62 = vector.shape_cast %61 : vector<1x16x1xf32> to vector<16x1xf32>
    %63 = vector.shape_cast %62 : vector<16x1xf32> to vector<1x16x1xf32>
    %c0_18 = arith.constant 0 : index
    %c0_19 = arith.constant 0 : index
    %c0_20 = arith.constant 0 : index
    %c0_21 = arith.constant 0 : index
    %64 = vector.load %arg1[%c0_18, %c0_19, %c0_20, %c0_21] : memref<10x8x8x128xf32, #tpu.memory_space<vmem>>, vector<1x8x8x128xf32>
    %65 = vector.shape_cast %64 : vector<1x8x8x128xf32> to vector<8x8x128xf32>
    %66 = vector.extract_strided_slice %65 {offsets = [0, 0, 0], sizes = [6, 8, 128], strides = [1, 1, 1]} : vector<8x8x128xf32> to vector<6x8x128xf32>
    %67 = vector.broadcast %12 : vector<1x8x1xf32> to vector<6x8x128xf32>
    %68 = arith.mulf %66, %67 : vector<6x8x128xf32>
    %69 = vector.extract_strided_slice %65 {offsets = [1, 0, 0], sizes = [6, 8, 128], strides = [1, 1, 1]} : vector<8x8x128xf32> to vector<6x8x128xf32>
    %70 = vector.broadcast %15 : vector<1x8x1xf32> to vector<6x8x128xf32>
    %71 = arith.mulf %69, %70 : vector<6x8x128xf32>
    %72 = arith.addf %68, %71 : vector<6x8x128xf32>
    %73 = vector.extract_strided_slice %65 {offsets = [2, 0, 0], sizes = [6, 8, 128], strides = [1, 1, 1]} : vector<8x8x128xf32> to vector<6x8x128xf32>
    %74 = vector.broadcast %18 : vector<1x8x1xf32> to vector<6x8x128xf32>
    %75 = arith.mulf %73, %74 : vector<6x8x128xf32>
    %76 = arith.addf %72, %75 : vector<6x8x128xf32>
    %c1 = arith.constant 1 : index
    %c0_22 = arith.constant 0 : index
    %c0_23 = arith.constant 0 : index
    %c0_24 = arith.constant 0 : index
    %77 = vector.load %arg1[%c1, %c0_22, %c0_23, %c0_24] : memref<10x8x8x128xf32, #tpu.memory_space<vmem>>, vector<1x8x8x128xf32>
    %78 = vector.shape_cast %77 : vector<1x8x8x128xf32> to vector<8x8x128xf32>
    %79 = vector.extract_strided_slice %78 {offsets = [0, 0, 0], sizes = [6, 8, 128], strides = [1, 1, 1]} : vector<8x8x128xf32> to vector<6x8x128xf32>
    %80 = vector.broadcast %21 : vector<1x8x1xf32> to vector<6x8x128xf32>
    %81 = arith.mulf %79, %80 : vector<6x8x128xf32>
    %82 = arith.addf %76, %81 : vector<6x8x128xf32>
    %83 = vector.extract_strided_slice %78 {offsets = [1, 0, 0], sizes = [6, 8, 128], strides = [1, 1, 1]} : vector<8x8x128xf32> to vector<6x8x128xf32>
    %84 = vector.broadcast %24 : vector<1x8x1xf32> to vector<6x8x128xf32>
    %85 = arith.mulf %83, %84 : vector<6x8x128xf32>
    %86 = arith.addf %82, %85 : vector<6x8x128xf32>
    %87 = vector.extract_strided_slice %78 {offsets = [2, 0, 0], sizes = [6, 8, 128], strides = [1, 1, 1]} : vector<8x8x128xf32> to vector<6x8x128xf32>
    %88 = vector.broadcast %27 : vector<1x8x1xf32> to vector<6x8x128xf32>
    %89 = arith.mulf %87, %88 : vector<6x8x128xf32>
    %90 = arith.addf %86, %89 : vector<6x8x128xf32>
    %c2 = arith.constant 2 : index
    %c0_25 = arith.constant 0 : index
    %c0_26 = arith.constant 0 : index
    %c0_27 = arith.constant 0 : index
    %91 = vector.load %arg1[%c2, %c0_25, %c0_26, %c0_27] : memref<10x8x8x128xf32, #tpu.memory_space<vmem>>, vector<1x8x8x128xf32>
    %92 = vector.shape_cast %91 : vector<1x8x8x128xf32> to vector<8x8x128xf32>
    %93 = vector.extract_strided_slice %92 {offsets = [0, 0, 0], sizes = [6, 8, 128], strides = [1, 1, 1]} : vector<8x8x128xf32> to vector<6x8x128xf32>
    %94 = vector.broadcast %30 : vector<1x8x1xf32> to vector<6x8x128xf32>
    %95 = arith.mulf %93, %94 : vector<6x8x128xf32>
    %96 = arith.addf %90, %95 : vector<6x8x128xf32>
    %97 = vector.extract_strided_slice %92 {offsets = [1, 0, 0], sizes = [6, 8, 128], strides = [1, 1, 1]} : vector<8x8x128xf32> to vector<6x8x128xf32>
    %98 = vector.broadcast %33 : vector<1x8x1xf32> to vector<6x8x128xf32>
    %99 = arith.mulf %97, %98 : vector<6x8x128xf32>
    %100 = arith.addf %96, %99 : vector<6x8x128xf32>
    %101 = vector.extract_strided_slice %92 {offsets = [2, 0, 0], sizes = [6, 8, 128], strides = [1, 1, 1]} : vector<8x8x128xf32> to vector<6x8x128xf32>
    %102 = vector.broadcast %36 : vector<1x8x1xf32> to vector<6x8x128xf32>
    %103 = arith.mulf %101, %102 : vector<6x8x128xf32>
    %104 = arith.addf %100, %103 : vector<6x8x128xf32>
    %105 = vector.shape_cast %104 : vector<6x8x128xf32> to vector<48x128xf32>
    %cst = arith.constant dense<0.000000e+00> : vector<96x128xf32>
    %106 = tpu.matmul %2, %105, %cst {dimension_numbers = #tpu.dot_dimension_numbers<[1], [0], [0], [1], [0, 0, 1, 1], [], []>} : vector<96x48xf32>, vector<48x128xf32>, vector<96x128xf32> -> vector<96x128xf32>
    %107 = vector.shape_cast %106 : vector<96x128xf32> to vector<6x16x128xf32>
    %108 = vector.broadcast %5 : vector<1x16x1xf32> to vector<6x16x128xf32>
    %109 = arith.addf %107, %108 : vector<6x16x128xf32>
    %cst_28 = arith.constant 0.000000e+00 : f32
    %110 = vector.broadcast %cst_28 : f32 to vector<6x16x128xf32>
    %111 = arith.maximumf %109, %110 : vector<6x16x128xf32>
    %c1_29 = arith.constant 1 : index
    %c0_30 = arith.constant 0 : index
    %c0_31 = arith.constant 0 : index
    %c0_32 = arith.constant 0 : index
    %112 = vector.load %arg1[%c1_29, %c0_30, %c0_31, %c0_32] : memref<10x8x8x128xf32, #tpu.memory_space<vmem>>, vector<1x8x8x128xf32>
    %113 = vector.shape_cast %112 : vector<1x8x8x128xf32> to vector<8x8x128xf32>
    %114 = vector.extract_strided_slice %113 {offsets = [0, 0, 0], sizes = [6, 8, 128], strides = [1, 1, 1]} : vector<8x8x128xf32> to vector<6x8x128xf32>
    %115 = vector.broadcast %12 : vector<1x8x1xf32> to vector<6x8x128xf32>
    %116 = arith.mulf %114, %115 : vector<6x8x128xf32>
    %117 = vector.extract_strided_slice %113 {offsets = [1, 0, 0], sizes = [6, 8, 128], strides = [1, 1, 1]} : vector<8x8x128xf32> to vector<6x8x128xf32>
    %118 = vector.broadcast %15 : vector<1x8x1xf32> to vector<6x8x128xf32>
    %119 = arith.mulf %117, %118 : vector<6x8x128xf32>
    %120 = arith.addf %116, %119 : vector<6x8x128xf32>
    %121 = vector.extract_strided_slice %113 {offsets = [2, 0, 0], sizes = [6, 8, 128], strides = [1, 1, 1]} : vector<8x8x128xf32> to vector<6x8x128xf32>
    %122 = vector.broadcast %18 : vector<1x8x1xf32> to vector<6x8x128xf32>
    %123 = arith.mulf %121, %122 : vector<6x8x128xf32>
    %124 = arith.addf %120, %123 : vector<6x8x128xf32>
    %c2_33 = arith.constant 2 : index
    %c0_34 = arith.constant 0 : index
    %c0_35 = arith.constant 0 : index
    %c0_36 = arith.constant 0 : index
    %125 = vector.load %arg1[%c2_33, %c0_34, %c0_35, %c0_36] : memref<10x8x8x128xf32, #tpu.memory_space<vmem>>, vector<1x8x8x128xf32>
    %126 = vector.shape_cast %125 : vector<1x8x8x128xf32> to vector<8x8x128xf32>
    %127 = vector.extract_strided_slice %126 {offsets = [0, 0, 0], sizes = [6, 8, 128], strides = [1, 1, 1]} : vector<8x8x128xf32> to vector<6x8x128xf32>
    %128 = vector.broadcast %21 : vector<1x8x1xf32> to vector<6x8x128xf32>
    %129 = arith.mulf %127, %128 : vector<6x8x128xf32>
    %130 = arith.addf %124, %129 : vector<6x8x128xf32>
    %131 = vector.extract_strided_slice %126 {offsets = [1, 0, 0], sizes = [6, 8, 128], strides = [1, 1, 1]} : vector<8x8x128xf32> to vector<6x8x128xf32>
    %132 = vector.broadcast %24 : vector<1x8x1xf32> to vector<6x8x128xf32>
    %133 = arith.mulf %131, %132 : vector<6x8x128xf32>
    %134 = arith.addf %130, %133 : vector<6x8x128xf32>
    %135 = vector.extract_strided_slice %126 {offsets = [2, 0, 0], sizes = [6, 8, 128], strides = [1, 1, 1]} : vector<8x8x128xf32> to vector<6x8x128xf32>
    %136 = vector.broadcast %27 : vector<1x8x1xf32> to vector<6x8x128xf32>
    %137 = arith.mulf %135, %136 : vector<6x8x128xf32>
    %138 = arith.addf %134, %137 : vector<6x8x128xf32>
    %c3 = arith.constant 3 : index
    %c0_37 = arith.constant 0 : index
    %c0_38 = arith.constant 0 : index
    %c0_39 = arith.constant 0 : index
    %139 = vector.load %arg1[%c3, %c0_37, %c0_38, %c0_39] : memref<10x8x8x128xf32, #tpu.memory_space<vmem>>, vector<1x8x8x128xf32>
    %140 = vector.shape_cast %139 : vector<1x8x8x128xf32> to vector<8x8x128xf32>
    %141 = vector.extract_strided_slice %140 {offsets = [0, 0, 0], sizes = [6, 8, 128], strides = [1, 1, 1]} : vector<8x8x128xf32> to vector<6x8x128xf32>
    %142 = vector.broadcast %30 : vector<1x8x1xf32> to vector<6x8x128xf32>
    %143 = arith.mulf %141, %142 : vector<6x8x128xf32>
    %144 = arith.addf %138, %143 : vector<6x8x128xf32>
    %145 = vector.extract_strided_slice %140 {offsets = [1, 0, 0], sizes = [6, 8, 128], strides = [1, 1, 1]} : vector<8x8x128xf32> to vector<6x8x128xf32>
    %146 = vector.broadcast %33 : vector<1x8x1xf32> to vector<6x8x128xf32>
    %147 = arith.mulf %145, %146 : vector<6x8x128xf32>
    %148 = arith.addf %144, %147 : vector<6x8x128xf32>
    %149 = vector.extract_strided_slice %140 {offsets = [2, 0, 0], sizes = [6, 8, 128], strides = [1, 1, 1]} : vector<8x8x128xf32> to vector<6x8x128xf32>
    %150 = vector.broadcast %36 : vector<1x8x1xf32> to vector<6x8x128xf32>
    %151 = arith.mulf %149, %150 : vector<6x8x128xf32>
    %152 = arith.addf %148, %151 : vector<6x8x128xf32>
    %153 = vector.shape_cast %152 : vector<6x8x128xf32> to vector<48x128xf32>
    %cst_40 = arith.constant dense<0.000000e+00> : vector<96x128xf32>
    %154 = tpu.matmul %2, %153, %cst_40 {dimension_numbers = #tpu.dot_dimension_numbers<[1], [0], [0], [1], [0, 0, 1, 1], [], []>} : vector<96x48xf32>, vector<48x128xf32>, vector<96x128xf32> -> vector<96x128xf32>
    %155 = vector.shape_cast %154 : vector<96x128xf32> to vector<6x16x128xf32>
    %156 = vector.broadcast %5 : vector<1x16x1xf32> to vector<6x16x128xf32>
    %157 = arith.addf %155, %156 : vector<6x16x128xf32>
    %cst_41 = arith.constant 0.000000e+00 : f32
    %158 = vector.broadcast %cst_41 : f32 to vector<6x16x128xf32>
    %159 = arith.maximumf %157, %158 : vector<6x16x128xf32>
    %c2_42 = arith.constant 2 : index
    %c0_43 = arith.constant 0 : index
    %c0_44 = arith.constant 0 : index
    %c0_45 = arith.constant 0 : index
    %160 = vector.load %arg1[%c2_42, %c0_43, %c0_44, %c0_45] : memref<10x8x8x128xf32, #tpu.memory_space<vmem>>, vector<1x8x8x128xf32>
    %161 = vector.shape_cast %160 : vector<1x8x8x128xf32> to vector<8x8x128xf32>
    %162 = vector.extract_strided_slice %161 {offsets = [0, 0, 0], sizes = [6, 8, 128], strides = [1, 1, 1]} : vector<8x8x128xf32> to vector<6x8x128xf32>
    %163 = vector.broadcast %12 : vector<1x8x1xf32> to vector<6x8x128xf32>
    %164 = arith.mulf %162, %163 : vector<6x8x128xf32>
    %165 = vector.extract_strided_slice %161 {offsets = [1, 0, 0], sizes = [6, 8, 128], strides = [1, 1, 1]} : vector<8x8x128xf32> to vector<6x8x128xf32>
    %166 = vector.broadcast %15 : vector<1x8x1xf32> to vector<6x8x128xf32>
    %167 = arith.mulf %165, %166 : vector<6x8x128xf32>
    %168 = arith.addf %164, %167 : vector<6x8x128xf32>
    %169 = vector.extract_strided_slice %161 {offsets = [2, 0, 0], sizes = [6, 8, 128], strides = [1, 1, 1]} : vector<8x8x128xf32> to vector<6x8x128xf32>
    %170 = vector.broadcast %18 : vector<1x8x1xf32> to vector<6x8x128xf32>
    %171 = arith.mulf %169, %170 : vector<6x8x128xf32>
    %172 = arith.addf %168, %171 : vector<6x8x128xf32>
    %c3_46 = arith.constant 3 : index
    %c0_47 = arith.constant 0 : index
    %c0_48 = arith.constant 0 : index
    %c0_49 = arith.constant 0 : index
    %173 = vector.load %arg1[%c3_46, %c0_47, %c0_48, %c0_49] : memref<10x8x8x128xf32, #tpu.memory_space<vmem>>, vector<1x8x8x128xf32>
    %174 = vector.shape_cast %173 : vector<1x8x8x128xf32> to vector<8x8x128xf32>
    %175 = vector.extract_strided_slice %174 {offsets = [0, 0, 0], sizes = [6, 8, 128], strides = [1, 1, 1]} : vector<8x8x128xf32> to vector<6x8x128xf32>
    %176 = vector.broadcast %21 : vector<1x8x1xf32> to vector<6x8x128xf32>
    %177 = arith.mulf %175, %176 : vector<6x8x128xf32>
    %178 = arith.addf %172, %177 : vector<6x8x128xf32>
    %179 = vector.extract_strided_slice %174 {offsets = [1, 0, 0], sizes = [6, 8, 128], strides = [1, 1, 1]} : vector<8x8x128xf32> to vector<6x8x128xf32>
    %180 = vector.broadcast %24 : vector<1x8x1xf32> to vector<6x8x128xf32>
    %181 = arith.mulf %179, %180 : vector<6x8x128xf32>
    %182 = arith.addf %178, %181 : vector<6x8x128xf32>
    %183 = vector.extract_strided_slice %174 {offsets = [2, 0, 0], sizes = [6, 8, 128], strides = [1, 1, 1]} : vector<8x8x128xf32> to vector<6x8x128xf32>
    %184 = vector.broadcast %27 : vector<1x8x1xf32> to vector<6x8x128xf32>
    %185 = arith.mulf %183, %184 : vector<6x8x128xf32>
    %186 = arith.addf %182, %185 : vector<6x8x128xf32>
    %c4 = arith.constant 4 : index
    %c0_50 = arith.constant 0 : index
    %c0_51 = arith.constant 0 : index
    %c0_52 = arith.constant 0 : index
    %187 = vector.load %arg1[%c4, %c0_50, %c0_51, %c0_52] : memref<10x8x8x128xf32, #tpu.memory_space<vmem>>, vector<1x8x8x128xf32>
    %188 = vector.shape_cast %187 : vector<1x8x8x128xf32> to vector<8x8x128xf32>
    %189 = vector.extract_strided_slice %188 {offsets = [0, 0, 0], sizes = [6, 8, 128], strides = [1, 1, 1]} : vector<8x8x128xf32> to vector<6x8x128xf32>
    %190 = vector.broadcast %30 : vector<1x8x1xf32> to vector<6x8x128xf32>
    %191 = arith.mulf %189, %190 : vector<6x8x128xf32>
    %192 = arith.addf %186, %191 : vector<6x8x128xf32>
    %193 = vector.extract_strided_slice %188 {offsets = [1, 0, 0], sizes = [6, 8, 128], strides = [1, 1, 1]} : vector<8x8x128xf32> to vector<6x8x128xf32>
    %194 = vector.broadcast %33 : vector<1x8x1xf32> to vector<6x8x128xf32>
    %195 = arith.mulf %193, %194 : vector<6x8x128xf32>
    %196 = arith.addf %192, %195 : vector<6x8x128xf32>
    %197 = vector.extract_strided_slice %188 {offsets = [2, 0, 0], sizes = [6, 8, 128], strides = [1, 1, 1]} : vector<8x8x128xf32> to vector<6x8x128xf32>
    %198 = vector.broadcast %36 : vector<1x8x1xf32> to vector<6x8x128xf32>
    %199 = arith.mulf %197, %198 : vector<6x8x128xf32>
    %200 = arith.addf %196, %199 : vector<6x8x128xf32>
    %201 = vector.shape_cast %200 : vector<6x8x128xf32> to vector<48x128xf32>
    %cst_53 = arith.constant dense<0.000000e+00> : vector<96x128xf32>
    %202 = tpu.matmul %2, %201, %cst_53 {dimension_numbers = #tpu.dot_dimension_numbers<[1], [0], [0], [1], [0, 0, 1, 1], [], []>} : vector<96x48xf32>, vector<48x128xf32>, vector<96x128xf32> -> vector<96x128xf32>
    %203 = vector.shape_cast %202 : vector<96x128xf32> to vector<6x16x128xf32>
    %204 = vector.broadcast %5 : vector<1x16x1xf32> to vector<6x16x128xf32>
    %205 = arith.addf %203, %204 : vector<6x16x128xf32>
    %cst_54 = arith.constant 0.000000e+00 : f32
    %206 = vector.broadcast %cst_54 : f32 to vector<6x16x128xf32>
    %207 = arith.maximumf %205, %206 : vector<6x16x128xf32>
    %c3_55 = arith.constant 3 : index
    %c0_56 = arith.constant 0 : index
    %c0_57 = arith.constant 0 : index
    %c0_58 = arith.constant 0 : index
    %208 = vector.load %arg1[%c3_55, %c0_56, %c0_57, %c0_58] : memref<10x8x8x128xf32, #tpu.memory_space<vmem>>, vector<1x8x8x128xf32>
    %209 = vector.shape_cast %208 : vector<1x8x8x128xf32> to vector<8x8x128xf32>
    %210 = vector.extract_strided_slice %209 {offsets = [0, 0, 0], sizes = [6, 8, 128], strides = [1, 1, 1]} : vector<8x8x128xf32> to vector<6x8x128xf32>
    %211 = vector.broadcast %12 : vector<1x8x1xf32> to vector<6x8x128xf32>
    %212 = arith.mulf %210, %211 : vector<6x8x128xf32>
    %213 = vector.extract_strided_slice %209 {offsets = [1, 0, 0], sizes = [6, 8, 128], strides = [1, 1, 1]} : vector<8x8x128xf32> to vector<6x8x128xf32>
    %214 = vector.broadcast %15 : vector<1x8x1xf32> to vector<6x8x128xf32>
    %215 = arith.mulf %213, %214 : vector<6x8x128xf32>
    %216 = arith.addf %212, %215 : vector<6x8x128xf32>
    %217 = vector.extract_strided_slice %209 {offsets = [2, 0, 0], sizes = [6, 8, 128], strides = [1, 1, 1]} : vector<8x8x128xf32> to vector<6x8x128xf32>
    %218 = vector.broadcast %18 : vector<1x8x1xf32> to vector<6x8x128xf32>
    %219 = arith.mulf %217, %218 : vector<6x8x128xf32>
    %220 = arith.addf %216, %219 : vector<6x8x128xf32>
    %c4_59 = arith.constant 4 : index
    %c0_60 = arith.constant 0 : index
    %c0_61 = arith.constant 0 : index
    %c0_62 = arith.constant 0 : index
    %221 = vector.load %arg1[%c4_59, %c0_60, %c0_61, %c0_62] : memref<10x8x8x128xf32, #tpu.memory_space<vmem>>, vector<1x8x8x128xf32>
    %222 = vector.shape_cast %221 : vector<1x8x8x128xf32> to vector<8x8x128xf32>
    %223 = vector.extract_strided_slice %222 {offsets = [0, 0, 0], sizes = [6, 8, 128], strides = [1, 1, 1]} : vector<8x8x128xf32> to vector<6x8x128xf32>
    %224 = vector.broadcast %21 : vector<1x8x1xf32> to vector<6x8x128xf32>
    %225 = arith.mulf %223, %224 : vector<6x8x128xf32>
    %226 = arith.addf %220, %225 : vector<6x8x128xf32>
    %227 = vector.extract_strided_slice %222 {offsets = [1, 0, 0], sizes = [6, 8, 128], strides = [1, 1, 1]} : vector<8x8x128xf32> to vector<6x8x128xf32>
    %228 = vector.broadcast %24 : vector<1x8x1xf32> to vector<6x8x128xf32>
    %229 = arith.mulf %227, %228 : vector<6x8x128xf32>
    %230 = arith.addf %226, %229 : vector<6x8x128xf32>
    %231 = vector.extract_strided_slice %222 {offsets = [2, 0, 0], sizes = [6, 8, 128], strides = [1, 1, 1]} : vector<8x8x128xf32> to vector<6x8x128xf32>
    %232 = vector.broadcast %27 : vector<1x8x1xf32> to vector<6x8x128xf32>
    %233 = arith.mulf %231, %232 : vector<6x8x128xf32>
    %234 = arith.addf %230, %233 : vector<6x8x128xf32>
    %c5 = arith.constant 5 : index
    %c0_63 = arith.constant 0 : index
    %c0_64 = arith.constant 0 : index
    %c0_65 = arith.constant 0 : index
    %235 = vector.load %arg1[%c5, %c0_63, %c0_64, %c0_65] : memref<10x8x8x128xf32, #tpu.memory_space<vmem>>, vector<1x8x8x128xf32>
    %236 = vector.shape_cast %235 : vector<1x8x8x128xf32> to vector<8x8x128xf32>
    %237 = vector.extract_strided_slice %236 {offsets = [0, 0, 0], sizes = [6, 8, 128], strides = [1, 1, 1]} : vector<8x8x128xf32> to vector<6x8x128xf32>
    %238 = vector.broadcast %30 : vector<1x8x1xf32> to vector<6x8x128xf32>
    %239 = arith.mulf %237, %238 : vector<6x8x128xf32>
    %240 = arith.addf %234, %239 : vector<6x8x128xf32>
    %241 = vector.extract_strided_slice %236 {offsets = [1, 0, 0], sizes = [6, 8, 128], strides = [1, 1, 1]} : vector<8x8x128xf32> to vector<6x8x128xf32>
    %242 = vector.broadcast %33 : vector<1x8x1xf32> to vector<6x8x128xf32>
    %243 = arith.mulf %241, %242 : vector<6x8x128xf32>
    %244 = arith.addf %240, %243 : vector<6x8x128xf32>
    %245 = vector.extract_strided_slice %236 {offsets = [2, 0, 0], sizes = [6, 8, 128], strides = [1, 1, 1]} : vector<8x8x128xf32> to vector<6x8x128xf32>
    %246 = vector.broadcast %36 : vector<1x8x1xf32> to vector<6x8x128xf32>
    %247 = arith.mulf %245, %246 : vector<6x8x128xf32>
    %248 = arith.addf %244, %247 : vector<6x8x128xf32>
    %249 = vector.shape_cast %248 : vector<6x8x128xf32> to vector<48x128xf32>
    %cst_66 = arith.constant dense<0.000000e+00> : vector<96x128xf32>
    %250 = tpu.matmul %2, %249, %cst_66 {dimension_numbers = #tpu.dot_dimension_numbers<[1], [0], [0], [1], [0, 0, 1, 1], [], []>} : vector<96x48xf32>, vector<48x128xf32>, vector<96x128xf32> -> vector<96x128xf32>
    %251 = vector.shape_cast %250 : vector<96x128xf32> to vector<6x16x128xf32>
    %252 = vector.broadcast %5 : vector<1x16x1xf32> to vector<6x16x128xf32>
    %253 = arith.addf %251, %252 : vector<6x16x128xf32>
    %cst_67 = arith.constant 0.000000e+00 : f32
    %254 = vector.broadcast %cst_67 : f32 to vector<6x16x128xf32>
    %255 = arith.maximumf %253, %254 : vector<6x16x128xf32>
    %c4_68 = arith.constant 4 : index
    %c0_69 = arith.constant 0 : index
    %c0_70 = arith.constant 0 : index
    %c0_71 = arith.constant 0 : index
    %256 = vector.load %arg1[%c4_68, %c0_69, %c0_70, %c0_71] : memref<10x8x8x128xf32, #tpu.memory_space<vmem>>, vector<1x8x8x128xf32>
    %257 = vector.shape_cast %256 : vector<1x8x8x128xf32> to vector<8x8x128xf32>
    %258 = vector.extract_strided_slice %257 {offsets = [0, 0, 0], sizes = [6, 8, 128], strides = [1, 1, 1]} : vector<8x8x128xf32> to vector<6x8x128xf32>
    %259 = vector.broadcast %12 : vector<1x8x1xf32> to vector<6x8x128xf32>
    %260 = arith.mulf %258, %259 : vector<6x8x128xf32>
    %261 = vector.extract_strided_slice %257 {offsets = [1, 0, 0], sizes = [6, 8, 128], strides = [1, 1, 1]} : vector<8x8x128xf32> to vector<6x8x128xf32>
    %262 = vector.broadcast %15 : vector<1x8x1xf32> to vector<6x8x128xf32>
    %263 = arith.mulf %261, %262 : vector<6x8x128xf32>
    %264 = arith.addf %260, %263 : vector<6x8x128xf32>
    %265 = vector.extract_strided_slice %257 {offsets = [2, 0, 0], sizes = [6, 8, 128], strides = [1, 1, 1]} : vector<8x8x128xf32> to vector<6x8x128xf32>
    %266 = vector.broadcast %18 : vector<1x8x1xf32> to vector<6x8x128xf32>
    %267 = arith.mulf %265, %266 : vector<6x8x128xf32>
    %268 = arith.addf %264, %267 : vector<6x8x128xf32>
    %c5_72 = arith.constant 5 : index
    %c0_73 = arith.constant 0 : index
    %c0_74 = arith.constant 0 : index
    %c0_75 = arith.constant 0 : index
    %269 = vector.load %arg1[%c5_72, %c0_73, %c0_74, %c0_75] : memref<10x8x8x128xf32, #tpu.memory_space<vmem>>, vector<1x8x8x128xf32>
    %270 = vector.shape_cast %269 : vector<1x8x8x128xf32> to vector<8x8x128xf32>
    %271 = vector.extract_strided_slice %270 {offsets = [0, 0, 0], sizes = [6, 8, 128], strides = [1, 1, 1]} : vector<8x8x128xf32> to vector<6x8x128xf32>
    %272 = vector.broadcast %21 : vector<1x8x1xf32> to vector<6x8x128xf32>
    %273 = arith.mulf %271, %272 : vector<6x8x128xf32>
    %274 = arith.addf %268, %273 : vector<6x8x128xf32>
    %275 = vector.extract_strided_slice %270 {offsets = [1, 0, 0], sizes = [6, 8, 128], strides = [1, 1, 1]} : vector<8x8x128xf32> to vector<6x8x128xf32>
    %276 = vector.broadcast %24 : vector<1x8x1xf32> to vector<6x8x128xf32>
    %277 = arith.mulf %275, %276 : vector<6x8x128xf32>
    %278 = arith.addf %274, %277 : vector<6x8x128xf32>
    %279 = vector.extract_strided_slice %270 {offsets = [2, 0, 0], sizes = [6, 8, 128], strides = [1, 1, 1]} : vector<8x8x128xf32> to vector<6x8x128xf32>
    %280 = vector.broadcast %27 : vector<1x8x1xf32> to vector<6x8x128xf32>
    %281 = arith.mulf %279, %280 : vector<6x8x128xf32>
    %282 = arith.addf %278, %281 : vector<6x8x128xf32>
    %c6 = arith.constant 6 : index
    %c0_76 = arith.constant 0 : index
    %c0_77 = arith.constant 0 : index
    %c0_78 = arith.constant 0 : index
    %283 = vector.load %arg1[%c6, %c0_76, %c0_77, %c0_78] : memref<10x8x8x128xf32, #tpu.memory_space<vmem>>, vector<1x8x8x128xf32>
    %284 = vector.shape_cast %283 : vector<1x8x8x128xf32> to vector<8x8x128xf32>
    %285 = vector.extract_strided_slice %284 {offsets = [0, 0, 0], sizes = [6, 8, 128], strides = [1, 1, 1]} : vector<8x8x128xf32> to vector<6x8x128xf32>
    %286 = vector.broadcast %30 : vector<1x8x1xf32> to vector<6x8x128xf32>
    %287 = arith.mulf %285, %286 : vector<6x8x128xf32>
    %288 = arith.addf %282, %287 : vector<6x8x128xf32>
    %289 = vector.extract_strided_slice %284 {offsets = [1, 0, 0], sizes = [6, 8, 128], strides = [1, 1, 1]} : vector<8x8x128xf32> to vector<6x8x128xf32>
    %290 = vector.broadcast %33 : vector<1x8x1xf32> to vector<6x8x128xf32>
    %291 = arith.mulf %289, %290 : vector<6x8x128xf32>
    %292 = arith.addf %288, %291 : vector<6x8x128xf32>
    %293 = vector.extract_strided_slice %284 {offsets = [2, 0, 0], sizes = [6, 8, 128], strides = [1, 1, 1]} : vector<8x8x128xf32> to vector<6x8x128xf32>
    %294 = vector.broadcast %36 : vector<1x8x1xf32> to vector<6x8x128xf32>
    %295 = arith.mulf %293, %294 : vector<6x8x128xf32>
    %296 = arith.addf %292, %295 : vector<6x8x128xf32>
    %297 = vector.shape_cast %296 : vector<6x8x128xf32> to vector<48x128xf32>
    %cst_79 = arith.constant dense<0.000000e+00> : vector<96x128xf32>
    %298 = tpu.matmul %2, %297, %cst_79 {dimension_numbers = #tpu.dot_dimension_numbers<[1], [0], [0], [1], [0, 0, 1, 1], [], []>} : vector<96x48xf32>, vector<48x128xf32>, vector<96x128xf32> -> vector<96x128xf32>
    %299 = vector.shape_cast %298 : vector<96x128xf32> to vector<6x16x128xf32>
    %300 = vector.broadcast %5 : vector<1x16x1xf32> to vector<6x16x128xf32>
    %301 = arith.addf %299, %300 : vector<6x16x128xf32>
    %cst_80 = arith.constant 0.000000e+00 : f32
    %302 = vector.broadcast %cst_80 : f32 to vector<6x16x128xf32>
    %303 = arith.maximumf %301, %302 : vector<6x16x128xf32>
    %c5_81 = arith.constant 5 : index
    %c0_82 = arith.constant 0 : index
    %c0_83 = arith.constant 0 : index
    %c0_84 = arith.constant 0 : index
    %304 = vector.load %arg1[%c5_81, %c0_82, %c0_83, %c0_84] : memref<10x8x8x128xf32, #tpu.memory_space<vmem>>, vector<1x8x8x128xf32>
    %305 = vector.shape_cast %304 : vector<1x8x8x128xf32> to vector<8x8x128xf32>
    %306 = vector.extract_strided_slice %305 {offsets = [0, 0, 0], sizes = [6, 8, 128], strides = [1, 1, 1]} : vector<8x8x128xf32> to vector<6x8x128xf32>
    %307 = vector.broadcast %12 : vector<1x8x1xf32> to vector<6x8x128xf32>
    %308 = arith.mulf %306, %307 : vector<6x8x128xf32>
    %309 = vector.extract_strided_slice %305 {offsets = [1, 0, 0], sizes = [6, 8, 128], strides = [1, 1, 1]} : vector<8x8x128xf32> to vector<6x8x128xf32>
    %310 = vector.broadcast %15 : vector<1x8x1xf32> to vector<6x8x128xf32>
    %311 = arith.mulf %309, %310 : vector<6x8x128xf32>
    %312 = arith.addf %308, %311 : vector<6x8x128xf32>
    %313 = vector.extract_strided_slice %305 {offsets = [2, 0, 0], sizes = [6, 8, 128], strides = [1, 1, 1]} : vector<8x8x128xf32> to vector<6x8x128xf32>
    %314 = vector.broadcast %18 : vector<1x8x1xf32> to vector<6x8x128xf32>
    %315 = arith.mulf %313, %314 : vector<6x8x128xf32>
    %316 = arith.addf %312, %315 : vector<6x8x128xf32>
    %c6_85 = arith.constant 6 : index
    %c0_86 = arith.constant 0 : index
    %c0_87 = arith.constant 0 : index
    %c0_88 = arith.constant 0 : index
    %317 = vector.load %arg1[%c6_85, %c0_86, %c0_87, %c0_88] : memref<10x8x8x128xf32, #tpu.memory_space<vmem>>, vector<1x8x8x128xf32>
    %318 = vector.shape_cast %317 : vector<1x8x8x128xf32> to vector<8x8x128xf32>
    %319 = vector.extract_strided_slice %318 {offsets = [0, 0, 0], sizes = [6, 8, 128], strides = [1, 1, 1]} : vector<8x8x128xf32> to vector<6x8x128xf32>
    %320 = vector.broadcast %21 : vector<1x8x1xf32> to vector<6x8x128xf32>
    %321 = arith.mulf %319, %320 : vector<6x8x128xf32>
    %322 = arith.addf %316, %321 : vector<6x8x128xf32>
    %323 = vector.extract_strided_slice %318 {offsets = [1, 0, 0], sizes = [6, 8, 128], strides = [1, 1, 1]} : vector<8x8x128xf32> to vector<6x8x128xf32>
    %324 = vector.broadcast %24 : vector<1x8x1xf32> to vector<6x8x128xf32>
    %325 = arith.mulf %323, %324 : vector<6x8x128xf32>
    %326 = arith.addf %322, %325 : vector<6x8x128xf32>
    %327 = vector.extract_strided_slice %318 {offsets = [2, 0, 0], sizes = [6, 8, 128], strides = [1, 1, 1]} : vector<8x8x128xf32> to vector<6x8x128xf32>
    %328 = vector.broadcast %27 : vector<1x8x1xf32> to vector<6x8x128xf32>
    %329 = arith.mulf %327, %328 : vector<6x8x128xf32>
    %330 = arith.addf %326, %329 : vector<6x8x128xf32>
    %c7 = arith.constant 7 : index
    %c0_89 = arith.constant 0 : index
    %c0_90 = arith.constant 0 : index
    %c0_91 = arith.constant 0 : index
    %331 = vector.load %arg1[%c7, %c0_89, %c0_90, %c0_91] : memref<10x8x8x128xf32, #tpu.memory_space<vmem>>, vector<1x8x8x128xf32>
    %332 = vector.shape_cast %331 : vector<1x8x8x128xf32> to vector<8x8x128xf32>
    %333 = vector.extract_strided_slice %332 {offsets = [0, 0, 0], sizes = [6, 8, 128], strides = [1, 1, 1]} : vector<8x8x128xf32> to vector<6x8x128xf32>
    %334 = vector.broadcast %30 : vector<1x8x1xf32> to vector<6x8x128xf32>
    %335 = arith.mulf %333, %334 : vector<6x8x128xf32>
    %336 = arith.addf %330, %335 : vector<6x8x128xf32>
    %337 = vector.extract_strided_slice %332 {offsets = [1, 0, 0], sizes = [6, 8, 128], strides = [1, 1, 1]} : vector<8x8x128xf32> to vector<6x8x128xf32>
    %338 = vector.broadcast %33 : vector<1x8x1xf32> to vector<6x8x128xf32>
    %339 = arith.mulf %337, %338 : vector<6x8x128xf32>
    %340 = arith.addf %336, %339 : vector<6x8x128xf32>
    %341 = vector.extract_strided_slice %332 {offsets = [2, 0, 0], sizes = [6, 8, 128], strides = [1, 1, 1]} : vector<8x8x128xf32> to vector<6x8x128xf32>
    %342 = vector.broadcast %36 : vector<1x8x1xf32> to vector<6x8x128xf32>
    %343 = arith.mulf %341, %342 : vector<6x8x128xf32>
    %344 = arith.addf %340, %343 : vector<6x8x128xf32>
    %345 = vector.shape_cast %344 : vector<6x8x128xf32> to vector<48x128xf32>
    %cst_92 = arith.constant dense<0.000000e+00> : vector<96x128xf32>
    %346 = tpu.matmul %2, %345, %cst_92 {dimension_numbers = #tpu.dot_dimension_numbers<[1], [0], [0], [1], [0, 0, 1, 1], [], []>} : vector<96x48xf32>, vector<48x128xf32>, vector<96x128xf32> -> vector<96x128xf32>
    %347 = vector.shape_cast %346 : vector<96x128xf32> to vector<6x16x128xf32>
    %348 = vector.broadcast %5 : vector<1x16x1xf32> to vector<6x16x128xf32>
    %349 = arith.addf %347, %348 : vector<6x16x128xf32>
    %cst_93 = arith.constant 0.000000e+00 : f32
    %350 = vector.broadcast %cst_93 : f32 to vector<6x16x128xf32>
    %351 = arith.maximumf %349, %350 : vector<6x16x128xf32>
    %c6_94 = arith.constant 6 : index
    %c0_95 = arith.constant 0 : index
    %c0_96 = arith.constant 0 : index
    %c0_97 = arith.constant 0 : index
    %352 = vector.load %arg1[%c6_94, %c0_95, %c0_96, %c0_97] : memref<10x8x8x128xf32, #tpu.memory_space<vmem>>, vector<1x8x8x128xf32>
    %353 = vector.shape_cast %352 : vector<1x8x8x128xf32> to vector<8x8x128xf32>
    %354 = vector.extract_strided_slice %353 {offsets = [0, 0, 0], sizes = [6, 8, 128], strides = [1, 1, 1]} : vector<8x8x128xf32> to vector<6x8x128xf32>
    %355 = vector.broadcast %12 : vector<1x8x1xf32> to vector<6x8x128xf32>
    %356 = arith.mulf %354, %355 : vector<6x8x128xf32>
    %357 = vector.extract_strided_slice %353 {offsets = [1, 0, 0], sizes = [6, 8, 128], strides = [1, 1, 1]} : vector<8x8x128xf32> to vector<6x8x128xf32>
    %358 = vector.broadcast %15 : vector<1x8x1xf32> to vector<6x8x128xf32>
    %359 = arith.mulf %357, %358 : vector<6x8x128xf32>
    %360 = arith.addf %356, %359 : vector<6x8x128xf32>
    %361 = vector.extract_strided_slice %353 {offsets = [2, 0, 0], sizes = [6, 8, 128], strides = [1, 1, 1]} : vector<8x8x128xf32> to vector<6x8x128xf32>
    %362 = vector.broadcast %18 : vector<1x8x1xf32> to vector<6x8x128xf32>
    %363 = arith.mulf %361, %362 : vector<6x8x128xf32>
    %364 = arith.addf %360, %363 : vector<6x8x128xf32>
    %c7_98 = arith.constant 7 : index
    %c0_99 = arith.constant 0 : index
    %c0_100 = arith.constant 0 : index
    %c0_101 = arith.constant 0 : index
    %365 = vector.load %arg1[%c7_98, %c0_99, %c0_100, %c0_101] : memref<10x8x8x128xf32, #tpu.memory_space<vmem>>, vector<1x8x8x128xf32>
    %366 = vector.shape_cast %365 : vector<1x8x8x128xf32> to vector<8x8x128xf32>
    %367 = vector.extract_strided_slice %366 {offsets = [0, 0, 0], sizes = [6, 8, 128], strides = [1, 1, 1]} : vector<8x8x128xf32> to vector<6x8x128xf32>
    %368 = vector.broadcast %21 : vector<1x8x1xf32> to vector<6x8x128xf32>
    %369 = arith.mulf %367, %368 : vector<6x8x128xf32>
    %370 = arith.addf %364, %369 : vector<6x8x128xf32>
    %371 = vector.extract_strided_slice %366 {offsets = [1, 0, 0], sizes = [6, 8, 128], strides = [1, 1, 1]} : vector<8x8x128xf32> to vector<6x8x128xf32>
    %372 = vector.broadcast %24 : vector<1x8x1xf32> to vector<6x8x128xf32>
    %373 = arith.mulf %371, %372 : vector<6x8x128xf32>
    %374 = arith.addf %370, %373 : vector<6x8x128xf32>
    %375 = vector.extract_strided_slice %366 {offsets = [2, 0, 0], sizes = [6, 8, 128], strides = [1, 1, 1]} : vector<8x8x128xf32> to vector<6x8x128xf32>
    %376 = vector.broadcast %27 : vector<1x8x1xf32> to vector<6x8x128xf32>
    %377 = arith.mulf %375, %376 : vector<6x8x128xf32>
    %378 = arith.addf %374, %377 : vector<6x8x128xf32>
    %c8 = arith.constant 8 : index
    %c0_102 = arith.constant 0 : index
    %c0_103 = arith.constant 0 : index
    %c0_104 = arith.constant 0 : index
    %379 = vector.load %arg1[%c8, %c0_102, %c0_103, %c0_104] : memref<10x8x8x128xf32, #tpu.memory_space<vmem>>, vector<1x8x8x128xf32>
    %380 = vector.shape_cast %379 : vector<1x8x8x128xf32> to vector<8x8x128xf32>
    %381 = vector.extract_strided_slice %380 {offsets = [0, 0, 0], sizes = [6, 8, 128], strides = [1, 1, 1]} : vector<8x8x128xf32> to vector<6x8x128xf32>
    %382 = vector.broadcast %30 : vector<1x8x1xf32> to vector<6x8x128xf32>
    %383 = arith.mulf %381, %382 : vector<6x8x128xf32>
    %384 = arith.addf %378, %383 : vector<6x8x128xf32>
    %385 = vector.extract_strided_slice %380 {offsets = [1, 0, 0], sizes = [6, 8, 128], strides = [1, 1, 1]} : vector<8x8x128xf32> to vector<6x8x128xf32>
    %386 = vector.broadcast %33 : vector<1x8x1xf32> to vector<6x8x128xf32>
    %387 = arith.mulf %385, %386 : vector<6x8x128xf32>
    %388 = arith.addf %384, %387 : vector<6x8x128xf32>
    %389 = vector.extract_strided_slice %380 {offsets = [2, 0, 0], sizes = [6, 8, 128], strides = [1, 1, 1]} : vector<8x8x128xf32> to vector<6x8x128xf32>
    %390 = vector.broadcast %36 : vector<1x8x1xf32> to vector<6x8x128xf32>
    %391 = arith.mulf %389, %390 : vector<6x8x128xf32>
    %392 = arith.addf %388, %391 : vector<6x8x128xf32>
    %393 = vector.shape_cast %392 : vector<6x8x128xf32> to vector<48x128xf32>
    %cst_105 = arith.constant dense<0.000000e+00> : vector<96x128xf32>
    %394 = tpu.matmul %2, %393, %cst_105 {dimension_numbers = #tpu.dot_dimension_numbers<[1], [0], [0], [1], [0, 0, 1, 1], [], []>} : vector<96x48xf32>, vector<48x128xf32>, vector<96x128xf32> -> vector<96x128xf32>
    %395 = vector.shape_cast %394 : vector<96x128xf32> to vector<6x16x128xf32>
    %396 = vector.broadcast %5 : vector<1x16x1xf32> to vector<6x16x128xf32>
    %397 = arith.addf %395, %396 : vector<6x16x128xf32>
    %cst_106 = arith.constant 0.000000e+00 : f32
    %398 = vector.broadcast %cst_106 : f32 to vector<6x16x128xf32>
    %399 = arith.maximumf %397, %398 : vector<6x16x128xf32>
    %c7_107 = arith.constant 7 : index
    %c0_108 = arith.constant 0 : index
    %c0_109 = arith.constant 0 : index
    %c0_110 = arith.constant 0 : index
    %400 = vector.load %arg1[%c7_107, %c0_108, %c0_109, %c0_110] : memref<10x8x8x128xf32, #tpu.memory_space<vmem>>, vector<1x8x8x128xf32>
    %401 = vector.shape_cast %400 : vector<1x8x8x128xf32> to vector<8x8x128xf32>
    %402 = vector.extract_strided_slice %401 {offsets = [0, 0, 0], sizes = [6, 8, 128], strides = [1, 1, 1]} : vector<8x8x128xf32> to vector<6x8x128xf32>
    %403 = vector.broadcast %12 : vector<1x8x1xf32> to vector<6x8x128xf32>
    %404 = arith.mulf %402, %403 : vector<6x8x128xf32>
    %405 = vector.extract_strided_slice %401 {offsets = [1, 0, 0], sizes = [6, 8, 128], strides = [1, 1, 1]} : vector<8x8x128xf32> to vector<6x8x128xf32>
    %406 = vector.broadcast %15 : vector<1x8x1xf32> to vector<6x8x128xf32>
    %407 = arith.mulf %405, %406 : vector<6x8x128xf32>
    %408 = arith.addf %404, %407 : vector<6x8x128xf32>
    %409 = vector.extract_strided_slice %401 {offsets = [2, 0, 0], sizes = [6, 8, 128], strides = [1, 1, 1]} : vector<8x8x128xf32> to vector<6x8x128xf32>
    %410 = vector.broadcast %18 : vector<1x8x1xf32> to vector<6x8x128xf32>
    %411 = arith.mulf %409, %410 : vector<6x8x128xf32>
    %412 = arith.addf %408, %411 : vector<6x8x128xf32>
    %c8_111 = arith.constant 8 : index
    %c0_112 = arith.constant 0 : index
    %c0_113 = arith.constant 0 : index
    %c0_114 = arith.constant 0 : index
    %413 = vector.load %arg1[%c8_111, %c0_112, %c0_113, %c0_114] : memref<10x8x8x128xf32, #tpu.memory_space<vmem>>, vector<1x8x8x128xf32>
    %414 = vector.shape_cast %413 : vector<1x8x8x128xf32> to vector<8x8x128xf32>
    %415 = vector.extract_strided_slice %414 {offsets = [0, 0, 0], sizes = [6, 8, 128], strides = [1, 1, 1]} : vector<8x8x128xf32> to vector<6x8x128xf32>
    %416 = vector.broadcast %21 : vector<1x8x1xf32> to vector<6x8x128xf32>
    %417 = arith.mulf %415, %416 : vector<6x8x128xf32>
    %418 = arith.addf %412, %417 : vector<6x8x128xf32>
    %419 = vector.extract_strided_slice %414 {offsets = [1, 0, 0], sizes = [6, 8, 128], strides = [1, 1, 1]} : vector<8x8x128xf32> to vector<6x8x128xf32>
    %420 = vector.broadcast %24 : vector<1x8x1xf32> to vector<6x8x128xf32>
    %421 = arith.mulf %419, %420 : vector<6x8x128xf32>
    %422 = arith.addf %418, %421 : vector<6x8x128xf32>
    %423 = vector.extract_strided_slice %414 {offsets = [2, 0, 0], sizes = [6, 8, 128], strides = [1, 1, 1]} : vector<8x8x128xf32> to vector<6x8x128xf32>
    %424 = vector.broadcast %27 : vector<1x8x1xf32> to vector<6x8x128xf32>
    %425 = arith.mulf %423, %424 : vector<6x8x128xf32>
    %426 = arith.addf %422, %425 : vector<6x8x128xf32>
    %c9 = arith.constant 9 : index
    %c0_115 = arith.constant 0 : index
    %c0_116 = arith.constant 0 : index
    %c0_117 = arith.constant 0 : index
    %427 = vector.load %arg1[%c9, %c0_115, %c0_116, %c0_117] : memref<10x8x8x128xf32, #tpu.memory_space<vmem>>, vector<1x8x8x128xf32>
    %428 = vector.shape_cast %427 : vector<1x8x8x128xf32> to vector<8x8x128xf32>
    %429 = vector.extract_strided_slice %428 {offsets = [0, 0, 0], sizes = [6, 8, 128], strides = [1, 1, 1]} : vector<8x8x128xf32> to vector<6x8x128xf32>
    %430 = vector.broadcast %30 : vector<1x8x1xf32> to vector<6x8x128xf32>
    %431 = arith.mulf %429, %430 : vector<6x8x128xf32>
    %432 = arith.addf %426, %431 : vector<6x8x128xf32>
    %433 = vector.extract_strided_slice %428 {offsets = [1, 0, 0], sizes = [6, 8, 128], strides = [1, 1, 1]} : vector<8x8x128xf32> to vector<6x8x128xf32>
    %434 = vector.broadcast %33 : vector<1x8x1xf32> to vector<6x8x128xf32>
    %435 = arith.mulf %433, %434 : vector<6x8x128xf32>
    %436 = arith.addf %432, %435 : vector<6x8x128xf32>
    %437 = vector.extract_strided_slice %428 {offsets = [2, 0, 0], sizes = [6, 8, 128], strides = [1, 1, 1]} : vector<8x8x128xf32> to vector<6x8x128xf32>
    %438 = vector.broadcast %36 : vector<1x8x1xf32> to vector<6x8x128xf32>
    %439 = arith.mulf %437, %438 : vector<6x8x128xf32>
    %440 = arith.addf %436, %439 : vector<6x8x128xf32>
    %441 = vector.shape_cast %440 : vector<6x8x128xf32> to vector<48x128xf32>
    %cst_118 = arith.constant dense<0.000000e+00> : vector<96x128xf32>
    %442 = tpu.matmul %2, %441, %cst_118 {dimension_numbers = #tpu.dot_dimension_numbers<[1], [0], [0], [1], [0, 0, 1, 1], [], []>} : vector<96x48xf32>, vector<48x128xf32>, vector<96x128xf32> -> vector<96x128xf32>
    %443 = vector.shape_cast %442 : vector<96x128xf32> to vector<6x16x128xf32>
    %444 = vector.broadcast %5 : vector<1x16x1xf32> to vector<6x16x128xf32>
    %445 = arith.addf %443, %444 : vector<6x16x128xf32>
    %cst_119 = arith.constant 0.000000e+00 : f32
    %446 = vector.broadcast %cst_119 : f32 to vector<6x16x128xf32>
    %447 = arith.maximumf %445, %446 : vector<6x16x128xf32>
    %448 = vector.extract_strided_slice %111 {offsets = [0, 0, 0], sizes = [4, 16, 128], strides = [1, 1, 1]} : vector<6x16x128xf32> to vector<4x16x128xf32>
    %449 = vector.broadcast %39 : vector<1x16x1xf32> to vector<4x16x128xf32>
    %450 = arith.mulf %448, %449 : vector<4x16x128xf32>
    %451 = vector.extract_strided_slice %111 {offsets = [1, 0, 0], sizes = [4, 16, 128], strides = [1, 1, 1]} : vector<6x16x128xf32> to vector<4x16x128xf32>
    %452 = vector.broadcast %42 : vector<1x16x1xf32> to vector<4x16x128xf32>
    %453 = arith.mulf %451, %452 : vector<4x16x128xf32>
    %454 = arith.addf %450, %453 : vector<4x16x128xf32>
    %455 = vector.extract_strided_slice %111 {offsets = [2, 0, 0], sizes = [4, 16, 128], strides = [1, 1, 1]} : vector<6x16x128xf32> to vector<4x16x128xf32>
    %456 = vector.broadcast %45 : vector<1x16x1xf32> to vector<4x16x128xf32>
    %457 = arith.mulf %455, %456 : vector<4x16x128xf32>
    %458 = arith.addf %454, %457 : vector<4x16x128xf32>
    %459 = vector.extract_strided_slice %159 {offsets = [0, 0, 0], sizes = [4, 16, 128], strides = [1, 1, 1]} : vector<6x16x128xf32> to vector<4x16x128xf32>
    %460 = vector.broadcast %48 : vector<1x16x1xf32> to vector<4x16x128xf32>
    %461 = arith.mulf %459, %460 : vector<4x16x128xf32>
    %462 = arith.addf %458, %461 : vector<4x16x128xf32>
    %463 = vector.extract_strided_slice %159 {offsets = [1, 0, 0], sizes = [4, 16, 128], strides = [1, 1, 1]} : vector<6x16x128xf32> to vector<4x16x128xf32>
    %464 = vector.broadcast %51 : vector<1x16x1xf32> to vector<4x16x128xf32>
    %465 = arith.mulf %463, %464 : vector<4x16x128xf32>
    %466 = arith.addf %462, %465 : vector<4x16x128xf32>
    %467 = vector.extract_strided_slice %159 {offsets = [2, 0, 0], sizes = [4, 16, 128], strides = [1, 1, 1]} : vector<6x16x128xf32> to vector<4x16x128xf32>
    %468 = vector.broadcast %54 : vector<1x16x1xf32> to vector<4x16x128xf32>
    %469 = arith.mulf %467, %468 : vector<4x16x128xf32>
    %470 = arith.addf %466, %469 : vector<4x16x128xf32>
    %471 = vector.extract_strided_slice %207 {offsets = [0, 0, 0], sizes = [4, 16, 128], strides = [1, 1, 1]} : vector<6x16x128xf32> to vector<4x16x128xf32>
    %472 = vector.broadcast %57 : vector<1x16x1xf32> to vector<4x16x128xf32>
    %473 = arith.mulf %471, %472 : vector<4x16x128xf32>
    %474 = arith.addf %470, %473 : vector<4x16x128xf32>
    %475 = vector.extract_strided_slice %207 {offsets = [1, 0, 0], sizes = [4, 16, 128], strides = [1, 1, 1]} : vector<6x16x128xf32> to vector<4x16x128xf32>
    %476 = vector.broadcast %60 : vector<1x16x1xf32> to vector<4x16x128xf32>
    %477 = arith.mulf %475, %476 : vector<4x16x128xf32>
    %478 = arith.addf %474, %477 : vector<4x16x128xf32>
    %479 = vector.extract_strided_slice %207 {offsets = [2, 0, 0], sizes = [4, 16, 128], strides = [1, 1, 1]} : vector<6x16x128xf32> to vector<4x16x128xf32>
    %480 = vector.broadcast %63 : vector<1x16x1xf32> to vector<4x16x128xf32>
    %481 = arith.mulf %479, %480 : vector<4x16x128xf32>
    %482 = arith.addf %478, %481 : vector<4x16x128xf32>
    %483 = vector.shape_cast %482 : vector<4x16x128xf32> to vector<64x128xf32>
    %cst_120 = arith.constant dense<0.000000e+00> : vector<256x128xf32>
    %484 = tpu.matmul %3, %483, %cst_120 {dimension_numbers = #tpu.dot_dimension_numbers<[1], [0], [0], [1], [0, 0, 1, 1], [], []>} : vector<256x64xf32>, vector<64x128xf32>, vector<256x128xf32> -> vector<256x128xf32>
    %485 = vector.shape_cast %484 : vector<256x128xf32> to vector<4x64x128xf32>
    %486 = vector.broadcast %7 : vector<1x64x1xf32> to vector<4x64x128xf32>
    %487 = arith.addf %485, %486 : vector<4x64x128xf32>
    %cst_121 = arith.constant 0.000000e+00 : f32
    %488 = vector.broadcast %cst_121 : f32 to vector<4x64x128xf32>
    %489 = arith.maximumf %487, %488 : vector<4x64x128xf32>
    %490 = vector.extract_strided_slice %159 {offsets = [0, 0, 0], sizes = [4, 16, 128], strides = [1, 1, 1]} : vector<6x16x128xf32> to vector<4x16x128xf32>
    %491 = vector.broadcast %39 : vector<1x16x1xf32> to vector<4x16x128xf32>
    %492 = arith.mulf %490, %491 : vector<4x16x128xf32>
    %493 = vector.extract_strided_slice %159 {offsets = [1, 0, 0], sizes = [4, 16, 128], strides = [1, 1, 1]} : vector<6x16x128xf32> to vector<4x16x128xf32>
    %494 = vector.broadcast %42 : vector<1x16x1xf32> to vector<4x16x128xf32>
    %495 = arith.mulf %493, %494 : vector<4x16x128xf32>
    %496 = arith.addf %492, %495 : vector<4x16x128xf32>
    %497 = vector.extract_strided_slice %159 {offsets = [2, 0, 0], sizes = [4, 16, 128], strides = [1, 1, 1]} : vector<6x16x128xf32> to vector<4x16x128xf32>
    %498 = vector.broadcast %45 : vector<1x16x1xf32> to vector<4x16x128xf32>
    %499 = arith.mulf %497, %498 : vector<4x16x128xf32>
    %500 = arith.addf %496, %499 : vector<4x16x128xf32>
    %501 = vector.extract_strided_slice %207 {offsets = [0, 0, 0], sizes = [4, 16, 128], strides = [1, 1, 1]} : vector<6x16x128xf32> to vector<4x16x128xf32>
    %502 = vector.broadcast %48 : vector<1x16x1xf32> to vector<4x16x128xf32>
    %503 = arith.mulf %501, %502 : vector<4x16x128xf32>
    %504 = arith.addf %500, %503 : vector<4x16x128xf32>
    %505 = vector.extract_strided_slice %207 {offsets = [1, 0, 0], sizes = [4, 16, 128], strides = [1, 1, 1]} : vector<6x16x128xf32> to vector<4x16x128xf32>
    %506 = vector.broadcast %51 : vector<1x16x1xf32> to vector<4x16x128xf32>
    %507 = arith.mulf %505, %506 : vector<4x16x128xf32>
    %508 = arith.addf %504, %507 : vector<4x16x128xf32>
    %509 = vector.extract_strided_slice %207 {offsets = [2, 0, 0], sizes = [4, 16, 128], strides = [1, 1, 1]} : vector<6x16x128xf32> to vector<4x16x128xf32>
    %510 = vector.broadcast %54 : vector<1x16x1xf32> to vector<4x16x128xf32>
    %511 = arith.mulf %509, %510 : vector<4x16x128xf32>
    %512 = arith.addf %508, %511 : vector<4x16x128xf32>
    %513 = vector.extract_strided_slice %255 {offsets = [0, 0, 0], sizes = [4, 16, 128], strides = [1, 1, 1]} : vector<6x16x128xf32> to vector<4x16x128xf32>
    %514 = vector.broadcast %57 : vector<1x16x1xf32> to vector<4x16x128xf32>
    %515 = arith.mulf %513, %514 : vector<4x16x128xf32>
    %516 = arith.addf %512, %515 : vector<4x16x128xf32>
    %517 = vector.extract_strided_slice %255 {offsets = [1, 0, 0], sizes = [4, 16, 128], strides = [1, 1, 1]} : vector<6x16x128xf32> to vector<4x16x128xf32>
    %518 = vector.broadcast %60 : vector<1x16x1xf32> to vector<4x16x128xf32>
    %519 = arith.mulf %517, %518 : vector<4x16x128xf32>
    %520 = arith.addf %516, %519 : vector<4x16x128xf32>
    %521 = vector.extract_strided_slice %255 {offsets = [2, 0, 0], sizes = [4, 16, 128], strides = [1, 1, 1]} : vector<6x16x128xf32> to vector<4x16x128xf32>
    %522 = vector.broadcast %63 : vector<1x16x1xf32> to vector<4x16x128xf32>
    %523 = arith.mulf %521, %522 : vector<4x16x128xf32>
    %524 = arith.addf %520, %523 : vector<4x16x128xf32>
    %525 = vector.shape_cast %524 : vector<4x16x128xf32> to vector<64x128xf32>
    %cst_122 = arith.constant dense<0.000000e+00> : vector<256x128xf32>
    %526 = tpu.matmul %3, %525, %cst_122 {dimension_numbers = #tpu.dot_dimension_numbers<[1], [0], [0], [1], [0, 0, 1, 1], [], []>} : vector<256x64xf32>, vector<64x128xf32>, vector<256x128xf32> -> vector<256x128xf32>
    %527 = vector.shape_cast %526 : vector<256x128xf32> to vector<4x64x128xf32>
    %528 = vector.broadcast %7 : vector<1x64x1xf32> to vector<4x64x128xf32>
    %529 = arith.addf %527, %528 : vector<4x64x128xf32>
    %cst_123 = arith.constant 0.000000e+00 : f32
    %530 = vector.broadcast %cst_123 : f32 to vector<4x64x128xf32>
    %531 = arith.maximumf %529, %530 : vector<4x64x128xf32>
    %532 = vector.extract_strided_slice %207 {offsets = [0, 0, 0], sizes = [4, 16, 128], strides = [1, 1, 1]} : vector<6x16x128xf32> to vector<4x16x128xf32>
    %533 = vector.broadcast %39 : vector<1x16x1xf32> to vector<4x16x128xf32>
    %534 = arith.mulf %532, %533 : vector<4x16x128xf32>
    %535 = vector.extract_strided_slice %207 {offsets = [1, 0, 0], sizes = [4, 16, 128], strides = [1, 1, 1]} : vector<6x16x128xf32> to vector<4x16x128xf32>
    %536 = vector.broadcast %42 : vector<1x16x1xf32> to vector<4x16x128xf32>
    %537 = arith.mulf %535, %536 : vector<4x16x128xf32>
    %538 = arith.addf %534, %537 : vector<4x16x128xf32>
    %539 = vector.extract_strided_slice %207 {offsets = [2, 0, 0], sizes = [4, 16, 128], strides = [1, 1, 1]} : vector<6x16x128xf32> to vector<4x16x128xf32>
    %540 = vector.broadcast %45 : vector<1x16x1xf32> to vector<4x16x128xf32>
    %541 = arith.mulf %539, %540 : vector<4x16x128xf32>
    %542 = arith.addf %538, %541 : vector<4x16x128xf32>
    %543 = vector.extract_strided_slice %255 {offsets = [0, 0, 0], sizes = [4, 16, 128], strides = [1, 1, 1]} : vector<6x16x128xf32> to vector<4x16x128xf32>
    %544 = vector.broadcast %48 : vector<1x16x1xf32> to vector<4x16x128xf32>
    %545 = arith.mulf %543, %544 : vector<4x16x128xf32>
    %546 = arith.addf %542, %545 : vector<4x16x128xf32>
    %547 = vector.extract_strided_slice %255 {offsets = [1, 0, 0], sizes = [4, 16, 128], strides = [1, 1, 1]} : vector<6x16x128xf32> to vector<4x16x128xf32>
    %548 = vector.broadcast %51 : vector<1x16x1xf32> to vector<4x16x128xf32>
    %549 = arith.mulf %547, %548 : vector<4x16x128xf32>
    %550 = arith.addf %546, %549 : vector<4x16x128xf32>
    %551 = vector.extract_strided_slice %255 {offsets = [2, 0, 0], sizes = [4, 16, 128], strides = [1, 1, 1]} : vector<6x16x128xf32> to vector<4x16x128xf32>
    %552 = vector.broadcast %54 : vector<1x16x1xf32> to vector<4x16x128xf32>
    %553 = arith.mulf %551, %552 : vector<4x16x128xf32>
    %554 = arith.addf %550, %553 : vector<4x16x128xf32>
    %555 = vector.extract_strided_slice %303 {offsets = [0, 0, 0], sizes = [4, 16, 128], strides = [1, 1, 1]} : vector<6x16x128xf32> to vector<4x16x128xf32>
    %556 = vector.broadcast %57 : vector<1x16x1xf32> to vector<4x16x128xf32>
    %557 = arith.mulf %555, %556 : vector<4x16x128xf32>
    %558 = arith.addf %554, %557 : vector<4x16x128xf32>
    %559 = vector.extract_strided_slice %303 {offsets = [1, 0, 0], sizes = [4, 16, 128], strides = [1, 1, 1]} : vector<6x16x128xf32> to vector<4x16x128xf32>
    %560 = vector.broadcast %60 : vector<1x16x1xf32> to vector<4x16x128xf32>
    %561 = arith.mulf %559, %560 : vector<4x16x128xf32>
    %562 = arith.addf %558, %561 : vector<4x16x128xf32>
    %563 = vector.extract_strided_slice %303 {offsets = [2, 0, 0], sizes = [4, 16, 128], strides = [1, 1, 1]} : vector<6x16x128xf32> to vector<4x16x128xf32>
    %564 = vector.broadcast %63 : vector<1x16x1xf32> to vector<4x16x128xf32>
    %565 = arith.mulf %563, %564 : vector<4x16x128xf32>
    %566 = arith.addf %562, %565 : vector<4x16x128xf32>
    %567 = vector.shape_cast %566 : vector<4x16x128xf32> to vector<64x128xf32>
    %cst_124 = arith.constant dense<0.000000e+00> : vector<256x128xf32>
    %568 = tpu.matmul %3, %567, %cst_124 {dimension_numbers = #tpu.dot_dimension_numbers<[1], [0], [0], [1], [0, 0, 1, 1], [], []>} : vector<256x64xf32>, vector<64x128xf32>, vector<256x128xf32> -> vector<256x128xf32>
    %569 = vector.shape_cast %568 : vector<256x128xf32> to vector<4x64x128xf32>
    %570 = vector.broadcast %7 : vector<1x64x1xf32> to vector<4x64x128xf32>
    %571 = arith.addf %569, %570 : vector<4x64x128xf32>
    %cst_125 = arith.constant 0.000000e+00 : f32
    %572 = vector.broadcast %cst_125 : f32 to vector<4x64x128xf32>
    %573 = arith.maximumf %571, %572 : vector<4x64x128xf32>
    %574 = vector.extract_strided_slice %255 {offsets = [0, 0, 0], sizes = [4, 16, 128], strides = [1, 1, 1]} : vector<6x16x128xf32> to vector<4x16x128xf32>
    %575 = vector.broadcast %39 : vector<1x16x1xf32> to vector<4x16x128xf32>
    %576 = arith.mulf %574, %575 : vector<4x16x128xf32>
    %577 = vector.extract_strided_slice %255 {offsets = [1, 0, 0], sizes = [4, 16, 128], strides = [1, 1, 1]} : vector<6x16x128xf32> to vector<4x16x128xf32>
    %578 = vector.broadcast %42 : vector<1x16x1xf32> to vector<4x16x128xf32>
    %579 = arith.mulf %577, %578 : vector<4x16x128xf32>
    %580 = arith.addf %576, %579 : vector<4x16x128xf32>
    %581 = vector.extract_strided_slice %255 {offsets = [2, 0, 0], sizes = [4, 16, 128], strides = [1, 1, 1]} : vector<6x16x128xf32> to vector<4x16x128xf32>
    %582 = vector.broadcast %45 : vector<1x16x1xf32> to vector<4x16x128xf32>
    %583 = arith.mulf %581, %582 : vector<4x16x128xf32>
    %584 = arith.addf %580, %583 : vector<4x16x128xf32>
    %585 = vector.extract_strided_slice %303 {offsets = [0, 0, 0], sizes = [4, 16, 128], strides = [1, 1, 1]} : vector<6x16x128xf32> to vector<4x16x128xf32>
    %586 = vector.broadcast %48 : vector<1x16x1xf32> to vector<4x16x128xf32>
    %587 = arith.mulf %585, %586 : vector<4x16x128xf32>
    %588 = arith.addf %584, %587 : vector<4x16x128xf32>
    %589 = vector.extract_strided_slice %303 {offsets = [1, 0, 0], sizes = [4, 16, 128], strides = [1, 1, 1]} : vector<6x16x128xf32> to vector<4x16x128xf32>
    %590 = vector.broadcast %51 : vector<1x16x1xf32> to vector<4x16x128xf32>
    %591 = arith.mulf %589, %590 : vector<4x16x128xf32>
    %592 = arith.addf %588, %591 : vector<4x16x128xf32>
    %593 = vector.extract_strided_slice %303 {offsets = [2, 0, 0], sizes = [4, 16, 128], strides = [1, 1, 1]} : vector<6x16x128xf32> to vector<4x16x128xf32>
    %594 = vector.broadcast %54 : vector<1x16x1xf32> to vector<4x16x128xf32>
    %595 = arith.mulf %593, %594 : vector<4x16x128xf32>
    %596 = arith.addf %592, %595 : vector<4x16x128xf32>
    %597 = vector.extract_strided_slice %351 {offsets = [0, 0, 0], sizes = [4, 16, 128], strides = [1, 1, 1]} : vector<6x16x128xf32> to vector<4x16x128xf32>
    %598 = vector.broadcast %57 : vector<1x16x1xf32> to vector<4x16x128xf32>
    %599 = arith.mulf %597, %598 : vector<4x16x128xf32>
    %600 = arith.addf %596, %599 : vector<4x16x128xf32>
    %601 = vector.extract_strided_slice %351 {offsets = [1, 0, 0], sizes = [4, 16, 128], strides = [1, 1, 1]} : vector<6x16x128xf32> to vector<4x16x128xf32>
    %602 = vector.broadcast %60 : vector<1x16x1xf32> to vector<4x16x128xf32>
    %603 = arith.mulf %601, %602 : vector<4x16x128xf32>
    %604 = arith.addf %600, %603 : vector<4x16x128xf32>
    %605 = vector.extract_strided_slice %351 {offsets = [2, 0, 0], sizes = [4, 16, 128], strides = [1, 1, 1]} : vector<6x16x128xf32> to vector<4x16x128xf32>
    %606 = vector.broadcast %63 : vector<1x16x1xf32> to vector<4x16x128xf32>
    %607 = arith.mulf %605, %606 : vector<4x16x128xf32>
    %608 = arith.addf %604, %607 : vector<4x16x128xf32>
    %609 = vector.shape_cast %608 : vector<4x16x128xf32> to vector<64x128xf32>
    %cst_126 = arith.constant dense<0.000000e+00> : vector<256x128xf32>
    %610 = tpu.matmul %3, %609, %cst_126 {dimension_numbers = #tpu.dot_dimension_numbers<[1], [0], [0], [1], [0, 0, 1, 1], [], []>} : vector<256x64xf32>, vector<64x128xf32>, vector<256x128xf32> -> vector<256x128xf32>
    %611 = vector.shape_cast %610 : vector<256x128xf32> to vector<4x64x128xf32>
    %612 = vector.broadcast %7 : vector<1x64x1xf32> to vector<4x64x128xf32>
    %613 = arith.addf %611, %612 : vector<4x64x128xf32>
    %cst_127 = arith.constant 0.000000e+00 : f32
    %614 = vector.broadcast %cst_127 : f32 to vector<4x64x128xf32>
    %615 = arith.maximumf %613, %614 : vector<4x64x128xf32>
    %616 = vector.extract_strided_slice %303 {offsets = [0, 0, 0], sizes = [4, 16, 128], strides = [1, 1, 1]} : vector<6x16x128xf32> to vector<4x16x128xf32>
    %617 = vector.broadcast %39 : vector<1x16x1xf32> to vector<4x16x128xf32>
    %618 = arith.mulf %616, %617 : vector<4x16x128xf32>
    %619 = vector.extract_strided_slice %303 {offsets = [1, 0, 0], sizes = [4, 16, 128], strides = [1, 1, 1]} : vector<6x16x128xf32> to vector<4x16x128xf32>
    %620 = vector.broadcast %42 : vector<1x16x1xf32> to vector<4x16x128xf32>
    %621 = arith.mulf %619, %620 : vector<4x16x128xf32>
    %622 = arith.addf %618, %621 : vector<4x16x128xf32>
    %623 = vector.extract_strided_slice %303 {offsets = [2, 0, 0], sizes = [4, 16, 128], strides = [1, 1, 1]} : vector<6x16x128xf32> to vector<4x16x128xf32>
    %624 = vector.broadcast %45 : vector<1x16x1xf32> to vector<4x16x128xf32>
    %625 = arith.mulf %623, %624 : vector<4x16x128xf32>
    %626 = arith.addf %622, %625 : vector<4x16x128xf32>
    %627 = vector.extract_strided_slice %351 {offsets = [0, 0, 0], sizes = [4, 16, 128], strides = [1, 1, 1]} : vector<6x16x128xf32> to vector<4x16x128xf32>
    %628 = vector.broadcast %48 : vector<1x16x1xf32> to vector<4x16x128xf32>
    %629 = arith.mulf %627, %628 : vector<4x16x128xf32>
    %630 = arith.addf %626, %629 : vector<4x16x128xf32>
    %631 = vector.extract_strided_slice %351 {offsets = [1, 0, 0], sizes = [4, 16, 128], strides = [1, 1, 1]} : vector<6x16x128xf32> to vector<4x16x128xf32>
    %632 = vector.broadcast %51 : vector<1x16x1xf32> to vector<4x16x128xf32>
    %633 = arith.mulf %631, %632 : vector<4x16x128xf32>
    %634 = arith.addf %630, %633 : vector<4x16x128xf32>
    %635 = vector.extract_strided_slice %351 {offsets = [2, 0, 0], sizes = [4, 16, 128], strides = [1, 1, 1]} : vector<6x16x128xf32> to vector<4x16x128xf32>
    %636 = vector.broadcast %54 : vector<1x16x1xf32> to vector<4x16x128xf32>
    %637 = arith.mulf %635, %636 : vector<4x16x128xf32>
    %638 = arith.addf %634, %637 : vector<4x16x128xf32>
    %639 = vector.extract_strided_slice %399 {offsets = [0, 0, 0], sizes = [4, 16, 128], strides = [1, 1, 1]} : vector<6x16x128xf32> to vector<4x16x128xf32>
    %640 = vector.broadcast %57 : vector<1x16x1xf32> to vector<4x16x128xf32>
    %641 = arith.mulf %639, %640 : vector<4x16x128xf32>
    %642 = arith.addf %638, %641 : vector<4x16x128xf32>
    %643 = vector.extract_strided_slice %399 {offsets = [1, 0, 0], sizes = [4, 16, 128], strides = [1, 1, 1]} : vector<6x16x128xf32> to vector<4x16x128xf32>
    %644 = vector.broadcast %60 : vector<1x16x1xf32> to vector<4x16x128xf32>
    %645 = arith.mulf %643, %644 : vector<4x16x128xf32>
    %646 = arith.addf %642, %645 : vector<4x16x128xf32>
    %647 = vector.extract_strided_slice %399 {offsets = [2, 0, 0], sizes = [4, 16, 128], strides = [1, 1, 1]} : vector<6x16x128xf32> to vector<4x16x128xf32>
    %648 = vector.broadcast %63 : vector<1x16x1xf32> to vector<4x16x128xf32>
    %649 = arith.mulf %647, %648 : vector<4x16x128xf32>
    %650 = arith.addf %646, %649 : vector<4x16x128xf32>
    %651 = vector.shape_cast %650 : vector<4x16x128xf32> to vector<64x128xf32>
    %cst_128 = arith.constant dense<0.000000e+00> : vector<256x128xf32>
    %652 = tpu.matmul %3, %651, %cst_128 {dimension_numbers = #tpu.dot_dimension_numbers<[1], [0], [0], [1], [0, 0, 1, 1], [], []>} : vector<256x64xf32>, vector<64x128xf32>, vector<256x128xf32> -> vector<256x128xf32>
    %653 = vector.shape_cast %652 : vector<256x128xf32> to vector<4x64x128xf32>
    %654 = vector.broadcast %7 : vector<1x64x1xf32> to vector<4x64x128xf32>
    %655 = arith.addf %653, %654 : vector<4x64x128xf32>
    %cst_129 = arith.constant 0.000000e+00 : f32
    %656 = vector.broadcast %cst_129 : f32 to vector<4x64x128xf32>
    %657 = arith.maximumf %655, %656 : vector<4x64x128xf32>
    %658 = vector.extract_strided_slice %351 {offsets = [0, 0, 0], sizes = [4, 16, 128], strides = [1, 1, 1]} : vector<6x16x128xf32> to vector<4x16x128xf32>
    %659 = vector.broadcast %39 : vector<1x16x1xf32> to vector<4x16x128xf32>
    %660 = arith.mulf %658, %659 : vector<4x16x128xf32>
    %661 = vector.extract_strided_slice %351 {offsets = [1, 0, 0], sizes = [4, 16, 128], strides = [1, 1, 1]} : vector<6x16x128xf32> to vector<4x16x128xf32>
    %662 = vector.broadcast %42 : vector<1x16x1xf32> to vector<4x16x128xf32>
    %663 = arith.mulf %661, %662 : vector<4x16x128xf32>
    %664 = arith.addf %660, %663 : vector<4x16x128xf32>
    %665 = vector.extract_strided_slice %351 {offsets = [2, 0, 0], sizes = [4, 16, 128], strides = [1, 1, 1]} : vector<6x16x128xf32> to vector<4x16x128xf32>
    %666 = vector.broadcast %45 : vector<1x16x1xf32> to vector<4x16x128xf32>
    %667 = arith.mulf %665, %666 : vector<4x16x128xf32>
    %668 = arith.addf %664, %667 : vector<4x16x128xf32>
    %669 = vector.extract_strided_slice %399 {offsets = [0, 0, 0], sizes = [4, 16, 128], strides = [1, 1, 1]} : vector<6x16x128xf32> to vector<4x16x128xf32>
    %670 = vector.broadcast %48 : vector<1x16x1xf32> to vector<4x16x128xf32>
    %671 = arith.mulf %669, %670 : vector<4x16x128xf32>
    %672 = arith.addf %668, %671 : vector<4x16x128xf32>
    %673 = vector.extract_strided_slice %399 {offsets = [1, 0, 0], sizes = [4, 16, 128], strides = [1, 1, 1]} : vector<6x16x128xf32> to vector<4x16x128xf32>
    %674 = vector.broadcast %51 : vector<1x16x1xf32> to vector<4x16x128xf32>
    %675 = arith.mulf %673, %674 : vector<4x16x128xf32>
    %676 = arith.addf %672, %675 : vector<4x16x128xf32>
    %677 = vector.extract_strided_slice %399 {offsets = [2, 0, 0], sizes = [4, 16, 128], strides = [1, 1, 1]} : vector<6x16x128xf32> to vector<4x16x128xf32>
    %678 = vector.broadcast %54 : vector<1x16x1xf32> to vector<4x16x128xf32>
    %679 = arith.mulf %677, %678 : vector<4x16x128xf32>
    %680 = arith.addf %676, %679 : vector<4x16x128xf32>
    %681 = vector.extract_strided_slice %447 {offsets = [0, 0, 0], sizes = [4, 16, 128], strides = [1, 1, 1]} : vector<6x16x128xf32> to vector<4x16x128xf32>
    %682 = vector.broadcast %57 : vector<1x16x1xf32> to vector<4x16x128xf32>
    %683 = arith.mulf %681, %682 : vector<4x16x128xf32>
    %684 = arith.addf %680, %683 : vector<4x16x128xf32>
    %685 = vector.extract_strided_slice %447 {offsets = [1, 0, 0], sizes = [4, 16, 128], strides = [1, 1, 1]} : vector<6x16x128xf32> to vector<4x16x128xf32>
    %686 = vector.broadcast %60 : vector<1x16x1xf32> to vector<4x16x128xf32>
    %687 = arith.mulf %685, %686 : vector<4x16x128xf32>
    %688 = arith.addf %684, %687 : vector<4x16x128xf32>
    %689 = vector.extract_strided_slice %447 {offsets = [2, 0, 0], sizes = [4, 16, 128], strides = [1, 1, 1]} : vector<6x16x128xf32> to vector<4x16x128xf32>
    %690 = vector.broadcast %63 : vector<1x16x1xf32> to vector<4x16x128xf32>
    %691 = arith.mulf %689, %690 : vector<4x16x128xf32>
    %692 = arith.addf %688, %691 : vector<4x16x128xf32>
    %693 = vector.shape_cast %692 : vector<4x16x128xf32> to vector<64x128xf32>
    %cst_130 = arith.constant dense<0.000000e+00> : vector<256x128xf32>
    %694 = tpu.matmul %3, %693, %cst_130 {dimension_numbers = #tpu.dot_dimension_numbers<[1], [0], [0], [1], [0, 0, 1, 1], [], []>} : vector<256x64xf32>, vector<64x128xf32>, vector<256x128xf32> -> vector<256x128xf32>
    %695 = vector.shape_cast %694 : vector<256x128xf32> to vector<4x64x128xf32>
    %696 = vector.broadcast %7 : vector<1x64x1xf32> to vector<4x64x128xf32>
    %697 = arith.addf %695, %696 : vector<4x64x128xf32>
    %cst_131 = arith.constant 0.000000e+00 : f32
    %698 = vector.broadcast %cst_131 : f32 to vector<4x64x128xf32>
    %699 = arith.maximumf %697, %698 : vector<4x64x128xf32>
    %700 = vector.extract_strided_slice %489 {offsets = [0, 0, 0], sizes = [1, 64, 128], strides = [1, 1, 1]} : vector<4x64x128xf32> to vector<1x64x128xf32>
    %701 = vector.shape_cast %700 : vector<1x64x128xf32> to vector<64x128xf32>
    %702 = vector.extract_strided_slice %489 {offsets = [1, 0, 0], sizes = [1, 64, 128], strides = [1, 1, 1]} : vector<4x64x128xf32> to vector<1x64x128xf32>
    %703 = vector.shape_cast %702 : vector<1x64x128xf32> to vector<64x128xf32>
    %704 = vector.extract_strided_slice %531 {offsets = [0, 0, 0], sizes = [1, 64, 128], strides = [1, 1, 1]} : vector<4x64x128xf32> to vector<1x64x128xf32>
    %705 = vector.shape_cast %704 : vector<1x64x128xf32> to vector<64x128xf32>
    %706 = vector.extract_strided_slice %531 {offsets = [1, 0, 0], sizes = [1, 64, 128], strides = [1, 1, 1]} : vector<4x64x128xf32> to vector<1x64x128xf32>
    %707 = vector.shape_cast %706 : vector<1x64x128xf32> to vector<64x128xf32>
    %708 = arith.maximumf %701, %703 : vector<64x128xf32>
    %709 = arith.maximumf %705, %707 : vector<64x128xf32>
    %710 = arith.maximumf %708, %709 : vector<64x128xf32>
    %711 = vector.extract_strided_slice %8 {offsets = [0, 0, 0], sizes = [1, 4, 64], strides = [1, 1, 1]} : vector<6x4x64xf32> to vector<1x4x64xf32>
    %712 = vector.shape_cast %711 : vector<1x4x64xf32> to vector<4x64xf32>
    %cst_132 = arith.constant dense<0.000000e+00> : vector<4x128xf32>
    %713 = tpu.matmul %712, %710, %cst_132 {dimension_numbers = #tpu.dot_dimension_numbers<[1], [0], [0], [1], [0, 0, 1, 1], [], []>} : vector<4x64xf32>, vector<64x128xf32>, vector<4x128xf32> -> vector<4x128xf32>
    %714 = vector.extract_strided_slice %489 {offsets = [2, 0, 0], sizes = [1, 64, 128], strides = [1, 1, 1]} : vector<4x64x128xf32> to vector<1x64x128xf32>
    %715 = vector.shape_cast %714 : vector<1x64x128xf32> to vector<64x128xf32>
    %716 = vector.extract_strided_slice %489 {offsets = [3, 0, 0], sizes = [1, 64, 128], strides = [1, 1, 1]} : vector<4x64x128xf32> to vector<1x64x128xf32>
    %717 = vector.shape_cast %716 : vector<1x64x128xf32> to vector<64x128xf32>
    %718 = vector.extract_strided_slice %531 {offsets = [2, 0, 0], sizes = [1, 64, 128], strides = [1, 1, 1]} : vector<4x64x128xf32> to vector<1x64x128xf32>
    %719 = vector.shape_cast %718 : vector<1x64x128xf32> to vector<64x128xf32>
    %720 = vector.extract_strided_slice %531 {offsets = [3, 0, 0], sizes = [1, 64, 128], strides = [1, 1, 1]} : vector<4x64x128xf32> to vector<1x64x128xf32>
    %721 = vector.shape_cast %720 : vector<1x64x128xf32> to vector<64x128xf32>
    %722 = arith.maximumf %715, %717 : vector<64x128xf32>
    %723 = arith.maximumf %719, %721 : vector<64x128xf32>
    %724 = arith.maximumf %722, %723 : vector<64x128xf32>
    %725 = vector.extract_strided_slice %8 {offsets = [1, 0, 0], sizes = [1, 4, 64], strides = [1, 1, 1]} : vector<6x4x64xf32> to vector<1x4x64xf32>
    %726 = vector.shape_cast %725 : vector<1x4x64xf32> to vector<4x64xf32>
    %cst_133 = arith.constant dense<0.000000e+00> : vector<4x128xf32>
    %727 = tpu.matmul %726, %724, %cst_133 {dimension_numbers = #tpu.dot_dimension_numbers<[1], [0], [0], [1], [0, 0, 1, 1], [], []>} : vector<4x64xf32>, vector<64x128xf32>, vector<4x128xf32> -> vector<4x128xf32>
    %728 = arith.addf %713, %727 : vector<4x128xf32>
    %729 = vector.extract_strided_slice %573 {offsets = [0, 0, 0], sizes = [1, 64, 128], strides = [1, 1, 1]} : vector<4x64x128xf32> to vector<1x64x128xf32>
    %730 = vector.shape_cast %729 : vector<1x64x128xf32> to vector<64x128xf32>
    %731 = vector.extract_strided_slice %573 {offsets = [1, 0, 0], sizes = [1, 64, 128], strides = [1, 1, 1]} : vector<4x64x128xf32> to vector<1x64x128xf32>
    %732 = vector.shape_cast %731 : vector<1x64x128xf32> to vector<64x128xf32>
    %733 = vector.extract_strided_slice %615 {offsets = [0, 0, 0], sizes = [1, 64, 128], strides = [1, 1, 1]} : vector<4x64x128xf32> to vector<1x64x128xf32>
    %734 = vector.shape_cast %733 : vector<1x64x128xf32> to vector<64x128xf32>
    %735 = vector.extract_strided_slice %615 {offsets = [1, 0, 0], sizes = [1, 64, 128], strides = [1, 1, 1]} : vector<4x64x128xf32> to vector<1x64x128xf32>
    %736 = vector.shape_cast %735 : vector<1x64x128xf32> to vector<64x128xf32>
    %737 = arith.maximumf %730, %732 : vector<64x128xf32>
    %738 = arith.maximumf %734, %736 : vector<64x128xf32>
    %739 = arith.maximumf %737, %738 : vector<64x128xf32>
    %740 = vector.extract_strided_slice %8 {offsets = [2, 0, 0], sizes = [1, 4, 64], strides = [1, 1, 1]} : vector<6x4x64xf32> to vector<1x4x64xf32>
    %741 = vector.shape_cast %740 : vector<1x4x64xf32> to vector<4x64xf32>
    %cst_134 = arith.constant dense<0.000000e+00> : vector<4x128xf32>
    %742 = tpu.matmul %741, %739, %cst_134 {dimension_numbers = #tpu.dot_dimension_numbers<[1], [0], [0], [1], [0, 0, 1, 1], [], []>} : vector<4x64xf32>, vector<64x128xf32>, vector<4x128xf32> -> vector<4x128xf32>
    %743 = arith.addf %728, %742 : vector<4x128xf32>
    %744 = vector.extract_strided_slice %573 {offsets = [2, 0, 0], sizes = [1, 64, 128], strides = [1, 1, 1]} : vector<4x64x128xf32> to vector<1x64x128xf32>
    %745 = vector.shape_cast %744 : vector<1x64x128xf32> to vector<64x128xf32>
    %746 = vector.extract_strided_slice %573 {offsets = [3, 0, 0], sizes = [1, 64, 128], strides = [1, 1, 1]} : vector<4x64x128xf32> to vector<1x64x128xf32>
    %747 = vector.shape_cast %746 : vector<1x64x128xf32> to vector<64x128xf32>
    %748 = vector.extract_strided_slice %615 {offsets = [2, 0, 0], sizes = [1, 64, 128], strides = [1, 1, 1]} : vector<4x64x128xf32> to vector<1x64x128xf32>
    %749 = vector.shape_cast %748 : vector<1x64x128xf32> to vector<64x128xf32>
    %750 = vector.extract_strided_slice %615 {offsets = [3, 0, 0], sizes = [1, 64, 128], strides = [1, 1, 1]} : vector<4x64x128xf32> to vector<1x64x128xf32>
    %751 = vector.shape_cast %750 : vector<1x64x128xf32> to vector<64x128xf32>
    %752 = arith.maximumf %745, %747 : vector<64x128xf32>
    %753 = arith.maximumf %749, %751 : vector<64x128xf32>
    %754 = arith.maximumf %752, %753 : vector<64x128xf32>
    %755 = vector.extract_strided_slice %8 {offsets = [3, 0, 0], sizes = [1, 4, 64], strides = [1, 1, 1]} : vector<6x4x64xf32> to vector<1x4x64xf32>
    %756 = vector.shape_cast %755 : vector<1x4x64xf32> to vector<4x64xf32>
    %cst_135 = arith.constant dense<0.000000e+00> : vector<4x128xf32>
    %757 = tpu.matmul %756, %754, %cst_135 {dimension_numbers = #tpu.dot_dimension_numbers<[1], [0], [0], [1], [0, 0, 1, 1], [], []>} : vector<4x64xf32>, vector<64x128xf32>, vector<4x128xf32> -> vector<4x128xf32>
    %758 = arith.addf %743, %757 : vector<4x128xf32>
    %759 = vector.extract_strided_slice %657 {offsets = [0, 0, 0], sizes = [1, 64, 128], strides = [1, 1, 1]} : vector<4x64x128xf32> to vector<1x64x128xf32>
    %760 = vector.shape_cast %759 : vector<1x64x128xf32> to vector<64x128xf32>
    %761 = vector.extract_strided_slice %657 {offsets = [1, 0, 0], sizes = [1, 64, 128], strides = [1, 1, 1]} : vector<4x64x128xf32> to vector<1x64x128xf32>
    %762 = vector.shape_cast %761 : vector<1x64x128xf32> to vector<64x128xf32>
    %763 = vector.extract_strided_slice %699 {offsets = [0, 0, 0], sizes = [1, 64, 128], strides = [1, 1, 1]} : vector<4x64x128xf32> to vector<1x64x128xf32>
    %764 = vector.shape_cast %763 : vector<1x64x128xf32> to vector<64x128xf32>
    %765 = vector.extract_strided_slice %699 {offsets = [1, 0, 0], sizes = [1, 64, 128], strides = [1, 1, 1]} : vector<4x64x128xf32> to vector<1x64x128xf32>
    %766 = vector.shape_cast %765 : vector<1x64x128xf32> to vector<64x128xf32>
    %767 = arith.maximumf %760, %762 : vector<64x128xf32>
    %768 = arith.maximumf %764, %766 : vector<64x128xf32>
    %769 = arith.maximumf %767, %768 : vector<64x128xf32>
    %770 = vector.extract_strided_slice %8 {offsets = [4, 0, 0], sizes = [1, 4, 64], strides = [1, 1, 1]} : vector<6x4x64xf32> to vector<1x4x64xf32>
    %771 = vector.shape_cast %770 : vector<1x4x64xf32> to vector<4x64xf32>
    %cst_136 = arith.constant dense<0.000000e+00> : vector<4x128xf32>
    %772 = tpu.matmul %771, %769, %cst_136 {dimension_numbers = #tpu.dot_dimension_numbers<[1], [0], [0], [1], [0, 0, 1, 1], [], []>} : vector<4x64xf32>, vector<64x128xf32>, vector<4x128xf32> -> vector<4x128xf32>
    %773 = arith.addf %758, %772 : vector<4x128xf32>
    %774 = vector.extract_strided_slice %657 {offsets = [2, 0, 0], sizes = [1, 64, 128], strides = [1, 1, 1]} : vector<4x64x128xf32> to vector<1x64x128xf32>
    %775 = vector.shape_cast %774 : vector<1x64x128xf32> to vector<64x128xf32>
    %776 = vector.extract_strided_slice %657 {offsets = [3, 0, 0], sizes = [1, 64, 128], strides = [1, 1, 1]} : vector<4x64x128xf32> to vector<1x64x128xf32>
    %777 = vector.shape_cast %776 : vector<1x64x128xf32> to vector<64x128xf32>
    %778 = vector.extract_strided_slice %699 {offsets = [2, 0, 0], sizes = [1, 64, 128], strides = [1, 1, 1]} : vector<4x64x128xf32> to vector<1x64x128xf32>
    %779 = vector.shape_cast %778 : vector<1x64x128xf32> to vector<64x128xf32>
    %780 = vector.extract_strided_slice %699 {offsets = [3, 0, 0], sizes = [1, 64, 128], strides = [1, 1, 1]} : vector<4x64x128xf32> to vector<1x64x128xf32>
    %781 = vector.shape_cast %780 : vector<1x64x128xf32> to vector<64x128xf32>
    %782 = arith.maximumf %775, %777 : vector<64x128xf32>
    %783 = arith.maximumf %779, %781 : vector<64x128xf32>
    %784 = arith.maximumf %782, %783 : vector<64x128xf32>
    %785 = vector.extract_strided_slice %8 {offsets = [5, 0, 0], sizes = [1, 4, 64], strides = [1, 1, 1]} : vector<6x4x64xf32> to vector<1x4x64xf32>
    %786 = vector.shape_cast %785 : vector<1x4x64xf32> to vector<4x64xf32>
    %cst_137 = arith.constant dense<0.000000e+00> : vector<4x128xf32>
    %787 = tpu.matmul %786, %784, %cst_137 {dimension_numbers = #tpu.dot_dimension_numbers<[1], [0], [0], [1], [0, 0, 1, 1], [], []>} : vector<4x64xf32>, vector<64x128xf32>, vector<4x128xf32> -> vector<4x128xf32>
    %788 = arith.addf %773, %787 : vector<4x128xf32>
    %789 = vector.broadcast %9 : vector<4x1xf32> to vector<4x128xf32>
    %790 = arith.addf %788, %789 : vector<4x128xf32>
    %c0_138 = arith.constant 0 : index
    %c0_139 = arith.constant 0 : index
    %791 = vector.load %arg10[%c0_138, %c0_139] : memref<4x128xf32, #tpu.memory_space<vmem>>, vector<4x128xf32>
    tpu.vector_store %arg10[%c0_138, %c0_139], %790 {strides = array<i32>} : memref<4x128xf32, #tpu.memory_space<vmem>>, vector<4x128xf32>,
    return
  }
  func.func @transform_0(%arg0: i32) -> (i32, i32, i32, i32) {
    %c0_i32 = arith.constant 0 : i32
    %c0_i32_0 = arith.constant 0 : i32
    %c0_i32_1 = arith.constant 0 : i32
    %c0_i32_2 = arith.constant 0 : i32
    return %c0_i32, %c0_i32_0, %c0_i32_1, %arg0 : i32, i32, i32, i32
  }
  func.func @transform_1(%arg0: i32) -> (i32, i32, i32) {
    %c0_i32 = arith.constant 0 : i32
    %c0_i32_0 = arith.constant 0 : i32
    %c0_i32_1 = arith.constant 0 : i32
    %c0_i32_2 = arith.constant 0 : i32
    return %c0_i32, %c0_i32_0, %c0_i32_1 : i32, i32, i32
  }
  func.func @transform_2(%arg0: i32) -> (i32, i32) {
    %c0_i32 = arith.constant 0 : i32
    %c0_i32_0 = arith.constant 0 : i32
    %c0_i32_1 = arith.constant 0 : i32
    return %c0_i32, %c0_i32_0 : i32, i32
  }
  func.func @transform_3(%arg0: i32) -> (i32, i32) {
    %c0_i32 = arith.constant 0 : i32
    %c0_i32_0 = arith.constant 0 : i32
    %c0_i32_1 = arith.constant 0 : i32
    return %c0_i32, %c0_i32_0 : i32, i32
  }
  func.func @transform_4(%arg0: i32) -> (i32, i32, i32) {
    %c0_i32 = arith.constant 0 : i32
    %c0_i32_0 = arith.constant 0 : i32
    %c0_i32_1 = arith.constant 0 : i32
    %c0_i32_2 = arith.constant 0 : i32
    return %c0_i32, %c0_i32_0, %c0_i32_1 : i32, i32, i32
  }
  func.func @transform_5(%arg0: i32) -> (i32, i32) {
    %c0_i32 = arith.constant 0 : i32
    %c0_i32_0 = arith.constant 0 : i32
    %c0_i32_1 = arith.constant 0 : i32
    return %c0_i32, %c0_i32_0 : i32, i32
  }
  func.func @transform_6(%arg0: i32) -> (i32, i32) {
    %c0_i32 = arith.constant 0 : i32
    %c0_i32_0 = arith.constant 0 : i32
    %c0_i32_1 = arith.constant 0 : i32
    return %c0_i32, %c0_i32_0 : i32, i32
  }
  func.func @transform_7(%arg0: i32) -> (i32, i32, i32) {
    %c0_i32 = arith.constant 0 : i32
    %c0_i32_0 = arith.constant 0 : i32
    %c0_i32_1 = arith.constant 0 : i32
    %c0_i32_2 = arith.constant 0 : i32
    return %c0_i32, %c0_i32_0, %c0_i32_1 : i32, i32, i32
  }
  func.func @transform_8(%arg0: i32) -> (i32, i32) {
    %c0_i32 = arith.constant 0 : i32
    %c0_i32_0 = arith.constant 0 : i32
    %c0_i32_1 = arith.constant 0 : i32
    return %c0_i32, %c0_i32_0 : i32, i32
  }
  func.func @transform_9(%arg0: i32) -> (i32, i32) {
    %c0_i32 = arith.constant 0 : i32
    %c0_i32_0 = arith.constant 0 : i32
    return %c0_i32, %arg0 : i32, i32
  }
}

</mosaic_0001>

<bundles_post_ra>
// kernel: tpu_custom_call.1
= control target key start
LH: loop header
LB: loop body
LE: loop exit
PB: predicated region body
PF: predicated region fallthrough
CT: control target
= control target key end

     0   :  { %v7310_v2 = vmov 0   ;;  %s11813_s0 = inlined_call_operand.vmem [shape: f32[10,8,8,128], index: 0, kind: input, shape index: {}]   ;;  %s11814_s1 = inlined_call_operand.vmem [shape: f32[9,8,1], index: 1, kind: input, shape index: {}]   ;;  %s11815_s2 = inlined_call_operand.vmem [shape: f32[96,48], index: 2, kind: input, shape index: {}]   ;;  %s11816_s3 = inlined_call_operand.vmem [shape: f32[16,1], index: 3, kind: input, shape index: {}]   ;;  %s11817_s4 = inlined_call_operand.vmem [shape: f32[9,16,1], index: 4, kind: input, shape index: {}]   ;;  %s11818_s5 = inlined_call_operand.vmem [shape: f32[256,64], index: 5, kind: input, shape index: {}]   ;;  %s11819_s6 = inlined_call_operand.vmem [shape: f32[64,1], index: 6, kind: input, shape index: {}]   ;;  %s11820_s7 = inlined_call_operand.vmem [shape: f32[6,4,64], index: 7, kind: input, shape index: {}]   ;;  %s11821_s8 = inlined_call_operand.vmem [shape: f32[4,1], index: 8, kind: input, shape index: {}]   ;;  %s11822_s9 = inlined_call_operand.hbm [shape: f32[4,128], index: 9, kind: output, shape index: {}]  }
   0x1   :  { %v35_v0 = vld [vmem:[%s11814_s1 + $0x10] sm:$0xff]  ;;  %v33_v1 = vld [vmem:[%s11814_s1] sm:$0xff]  ;;  %7241 = vset.pattern.permute.xlu1 %v7310_v2  ;;  %7240 = vset.pattern.permute.xlu0 %v7310_v2  ;;  %v36_v3 = vld [vmem:[%s11814_s1 + $0x18] sm:$0xff] }
   0x2   :  { %159 = vperm.xlu1 %7241, %v35_v0   ;;  %131 = vperm.xlu0 %7240, %v33_v1   ;;  %v34_v4 = vld [vmem:[%s11814_s1 + $0x8] sm:$0xff]  ;;  %v37_v6 = vld [vmem:[%s11814_s1 + $0x20] sm:$0xff]  ;;  %v40_v7 = vld [vmem:[%s11814_s1 + $0x38] sm:$0xff] }
   0x3   :  { %v38_v5 = vld [vmem:[%s11814_s1 + $0x28] sm:$0xff]  ;;  %v39_v8 = vld [vmem:[%s11814_s1 + $0x30] sm:$0xff]  ;;  %v41_v10 = vld [vmem:[%s11814_s1 + $0x40] sm:$0xff] }
   0x4   :  { %v105_v9 = vld [vmem:[%s11816_s3 + $0x8] sm:$0xff]  ;;  %v104_v12 = vld [vmem:[%s11816_s3] sm:$0xff] }
   0x5   :  { %v43_v11 = vld [vmem:[%s11817_s4 + $0x8] sm:$0xff] }
   0x6   :  { %185 = vperm.xlu1 %7241, %v36_v3   ;;  %142 = vperm.xlu0 %7240, %v34_v4  }
   0xa   :  { %219 = vperm.xlu1 %7241, %v38_v5   ;;  %202 = vperm.xlu0 %7240, %v37_v6  }
   0xe   :  { %262 = vperm.xlu1 %7241, %v40_v7   ;;  %245 = vperm.xlu0 %7240, %v39_v8  }
  0x12   :  { %463 = vperm.xlu1 %7241, %v105_v9   ;;  %279 = vperm.xlu0 %7240, %v41_v10  }
  0x13   :  { %14 = vsyncpa [#allocation3], 0  ;;  %v42_v13 = vld [vmem:[%s11817_s4] sm:$0xff]  ;;  %v45_v14 = vld [vmem:[%s11817_s4 + $0x18] sm:$0xff]  ;;  %vm294_vm0 = vcmask 392192   ;;  %vm2536_vm1 = vcmask 523264  }
  0x14   :  { %v47_v15 = vld [vmem:[%s11817_s4 + $0x28] sm:$0xff]  ;;  %v44_v16 = vld [vmem:[%s11817_s4 + $0x10] sm:$0xff]  ;;  %v49_v17 = vld [vmem:[%s11817_s4 + $0x38] sm:$0xff]  ;;  %vm7312_vm2 = vmmov 0  }
  0x15   :  { %v46_v18 = vld [vmem:[%s11817_s4 + $0x20] sm:$0xff]  ;;  %v51_v19 = vld [vmem:[%s11817_s4 + $0x48] sm:$0xff]  ;;  %v48_v20 = vld [vmem:[%s11817_s4 + $0x30] sm:$0xff] }
  0x16   :  { %2317 = vperm.xlu1 %7241, %v43_v11   ;;  %458 = vperm.xlu0 %7240, %v104_v12   ;;  %v53_v21 = vld [vmem:[%s11817_s4 + $0x58] sm:$0xff]  ;;  %v50_v22 = vld [vmem:[%s11817_s4 + $0x40] sm:$0xff]  ;;  %v55_v23 = vld [vmem:[%s11817_s4 + $0x68] sm:$0xff] }
  0x17   :  { %v52_v24 = vld [vmem:[%s11817_s4 + $0x50] sm:$0xff]  ;;  %v57_v25 = vld [vmem:[%s11817_s4 + $0x78] sm:$0xff]  ;;  %v54_v26 = vld [vmem:[%s11817_s4 + $0x60] sm:$0xff] }
  0x18   :  { %v59_v27 = vld [vmem:[%s11817_s4 + $0x88] sm:$0xff]  ;;  %v56_v28 = vld [vmem:[%s11817_s4 + $0x70] sm:$0xff]  ;;  %v113_v29 = vld [vmem:[%s11819_s6 + $0x38] sm:$0xff] }
  0x19   :  { %v58_v30 = vld [vmem:[%s11817_s4 + $0x80] sm:$0xff]  ;;  %v111_v31 = vld [vmem:[%s11819_s6 + $0x28] sm:$0xff]  ;;  %v112_v32 = vld [vmem:[%s11819_s6 + $0x30] sm:$0xff] }
  0x1a   :  { %2312 = vperm.xlu1 %7241, %v42_v13   ;;  %2335 = vperm.xlu0 %7240, %v45_v14   ;;  %v109_v33 = vld [vmem:[%s11819_s6 + $0x18] sm:$0xff]  ;;  %v110_v34 = vld [vmem:[%s11819_s6 + $0x20] sm:$0xff]  ;;  %v107_v36 = vld [vmem:[%s11819_s6 + $0x8] sm:$0xff] }
  0x1b   :  { %v60_v35 = vld [vmem:[%s11815_s2] sm:$0xff]  ;;  %v108_v37 = vld [vmem:[%s11819_s6 + $0x10] sm:$0xff]  ;;  %v126_v40 = vld [vmem:[%s11813_s0 + $0x28] sm:$0xff] }
  0x1c   :  { %6510 = vmatprep.mubr.msk.f32.mxu0 %vm294_vm0, %v60_v35  ;;  %6540 = vmatprep.mubr.msk.f32.mxu1 %vm294_vm0, %v60_v35  ;;  %v120_v38 = vld [vmem:[%s11821_s8] sm:$0xf]  ;;  %v127_v43 = vld [vmem:[%s11813_s0 + $0x30] sm:$0xff]  ;;  %v128_v44 = vld [vmem:[%s11813_s0 + $0x38] sm:$0xff] }
  0x1d   :  { %v106_v39 = vld [vmem:[%s11819_s6] sm:$0xff]  ;;  %v7499_v45 = vld [vmem:[%s11813_s0 + $0x68] sm:$0xff]  ;;  %v5701_v46 = vld [vmem:[%s11813_s0 + $0x78] sm:$0xff] }
  0x1e   :  { %2361 = vperm.xlu1 %7241, %v47_v15   ;;  %2330 = vperm.xlu0 %7240, %v44_v16   ;;  %v7507_v47 = vld [vmem:[%s11813_s0 + $0xa8] sm:$0xff]  ;;  %v7512_v48 = vld [vmem:[%s11813_s0 + $0xb8] sm:$0xff]  ;;  %v7527_v51 = vld [vmem:[%s11813_s0 + $0x20] sm:$0xff] }
  0x1f   :  { %v7517_v49 = vld [vmem:[%s11813_s0 + $0xe8] sm:$0xff]  ;;  %v7522_v50 = vld [vmem:[%s11813_s0 + $0xf8] sm:$0xff]  ;;  %v7534_v54 = vld [vmem:[%s11813_s0 + $0x70] sm:$0xff] }
  0x20   :  { %v7539_v55 = vld [vmem:[%s11813_s0 + $0xb0] sm:$0xff]  ;;  %v7544_v56 = vld [vmem:[%s11813_s0 + $0x60] sm:$0xff]  ;;  %v7560_v63 = vld [vmem:[%s11813_s0 + $0x18] sm:$0xff] }
  0x21   :  { %v7574_v4 = vld [vmem:[%s11813_s0 + $0x58] sm:$0xff]  ;;  %v7583_v7 = vld [vmem:[%s11813_s0 + $0xf0] sm:$0xff] }
  0x22   :  { %2387 = vperm.xlu1 %7241, %v49_v17   ;;  %2356 = vperm.xlu0 %7240, %v46_v18  }
  0x26   :  { %2413 = vperm.xlu1 %7241, %v51_v19   ;;  %2382 = vperm.xlu0 %7240, %v48_v20  }
  0x2a   :  { %2439 = vperm.xlu1 %7241, %v53_v21   ;;  %2408 = vperm.xlu0 %7240, %v50_v22  }
  0x2e   :  { %2465 = vperm.xlu1 %7241, %v55_v23   ;;  %2434 = vperm.xlu0 %7240, %v52_v24  }
  0x32   :  { %2491 = vperm.xlu1 %7241, %v57_v25   ;;  %2460 = vperm.xlu0 %7240, %v54_v26  }
  0x36   :  { %2517 = vperm.xlu1 %7241, %v59_v27   ;;  %2486 = vperm.xlu0 %7240, %v56_v28   ;;  %v7625_v28 = vld [vmem:[%s11813_s0 + $0x128] sm:$0xff] }
  0x3a   :  { %2895 = vperm.xlu1 %7241, %v113_v29   ;;  %2512 = vperm.xlu0 %7240, %v58_v30  }
  0x3e   :  { %2885 = vperm.xlu1 %7241, %v111_v31   ;;  %2890 = vperm.xlu0 %7240, %v112_v32  }
  0x42   :  { %2875 = vperm.xlu1 %7241, %v109_v33   ;;  %2880 = vperm.xlu0 %7240, %v110_v34  }
  0x46   :  { %2865 = vperm.xlu1 %7241, %v107_v36   ;;  %2870 = vperm.xlu0 %7240, %v108_v37   ;;  %v7642_v37 = vld [vmem:[%s11813_s0 + $0xa0] sm:$0xff] }
  0x4a   :  { %5675 = vperm.xlu1 %7241, %v120_v38   ;;  %2860 = vperm.xlu0 %7240, %v106_v39  }
  0x7d   :  { %v7486_v41 = vpop.permute.xlu1 %159  ;;  %v7488_v42 = vpop.permute.xlu0 %131 }
  0x7e   :  { %v139_v52 = vmul.f32 %v7488_v42, %v126_v40  ;;  %v167_v53 = vmul.f32 %v7486_v41, %v128_v44  ;;  %v513_v59 = vmul.f32 %v5701_v46, %v7486_v41  ;;  %v755_v60 = vmul.f32 %v7507_v47, %v7488_v42 }
  0x7f   :  { %v773_v61 = vmul.f32 %v7512_v48, %v7486_v41  ;;  %v495_v62 = vmul.f32 %v7499_v45, %v7488_v42  ;;  %v1015_v1 = vmul.f32 %v7517_v49, %v7488_v42  ;;  %v7567_v2 = vmul.f32 %v7522_v50, %v7486_v41 }
  0x80   :  { %v138_v3 = vmul.f32 %v7488_v42, %v7527_v51  ;;  %v166_v8 = vmul.f32 %v7486_v41, %v127_v43  ;;  %v494_v9 = vmul.f32 %v7544_v56, %v7488_v42  ;;  %v512_v12 = vmul.f32 %v7534_v54, %v7486_v41 }
  0x81   :  { %v7546_v57 = vpop.permute.xlu1 %185  ;;  %v7548_v58 = vpop.permute.xlu0 %142  ;;  %v7593_v13 = vmul.f32 %v7488_v42, %v7560_v63  ;;  %v7602_v18 = vmul.f32 %v7486_v41, %v126_v40  ;;  %v7606_v19 = vmul.f32 %v7574_v4, %v7488_v42  ;;  %v7614_v23 = vmul.f32 %v7499_v45, %v7486_v41 }
  0x82   :  { %v150_v0 = vmul.f32 %v7548_v58, %v127_v43  ;;  %v761_v5 = vmul.f32 %v7539_v55, %v7548_v58  ;;  %v501_v6 = vmul.f32 %v7534_v54, %v7548_v58  ;;  %v149_v11 = vmul.f32 %v7548_v58, %v126_v40 }
  0x83   :  { %v500_v17 = vmul.f32 %v7499_v45, %v7548_v58  ;;  %v193_v21 = vmul.f32 %v7499_v45, %v7546_v57  ;;  %v1021_v22 = vmul.f32 %v7583_v7, %v7548_v58  ;;  %v7618_v25 = vmul.f32 %v7517_v49, %v7546_v57 }
  0x84   :  { %v156_v10 = vadd.f32 %v150_v0, %v139_v52  ;;  %v507_v16 = vadd.f32 %v501_v6, %v495_v62  ;;  %v767_v24 = vadd.f32 %v761_v5, %v755_v60  ;;  %v525_v27 = vmul.f32 %v7507_v47, %v7546_v57 }
  0x85   :  { %v7595_v14 = vpop.permute.xlu1 %219  ;;  %v7597_v15 = vpop.permute.xlu0 %202  ;;  %v7631_v31 = vmul.f32 %v7625_v28, %v7546_v57  ;;  %v155_v32 = vadd.f32 %v149_v11, %v138_v3  ;;  %v192_v36 = vmul.f32 %v7544_v56, %v7546_v57  ;;  %v506_v38 = vadd.f32 %v500_v17, %v494_v9 }
  0x86   :  { %v173_v20 = vadd.f32 %v167_v53, %v156_v10  ;;  %v519_v26 = vadd.f32 %v513_v59, %v507_v16  ;;  %v210_v30 = vmul.f32 %v7534_v54, %v7597_v15  ;;  %v537_v35 = vmul.f32 %v7539_v55, %v7597_v15 }
  0x87   :  { %v227_v40 = vmul.f32 %v5701_v46, %v7595_v14  ;;  %v1027_v43 = vadd.f32 %v1021_v22, %v1015_v1  ;;  %v524_v44 = vmul.f32 %v7642_v37, %v7546_v57  ;;  %v549_v53 = vmul.f32 %v7512_v48, %v7595_v14 }
  0x88   :  { %v199_v29 = vadd.f32 %v193_v21, %v173_v20  ;;  %v531_v34 = vadd.f32 %v525_v27, %v519_v26  ;;  %v779_v59 = vadd.f32 %v773_v61, %v767_v24  ;;  %v172_v62 = vadd.f32 %v166_v8, %v155_v32 }
  0x89   :  { %v7633_v33 = vpop.permute.xlu0 %245  ;;  %v7647_v52 = vpop.permute.xlu1 %262  ;;  %v209_v5 = vmul.f32 %v7499_v45, %v7597_v15  ;;  %v518_v46 = vadd.f32 %v512_v12, %v506_v38  ;;  %v226_v61 = vmul.f32 %v7534_v54, %v7595_v14  ;;  %v536_v22 = vmul.f32 %v7507_v47, %v7597_v15  ;;  %v7686_v38 = vld [vmem:[%s11813_s0 + $0xe0] sm:$0xff] }
  0x8a   :  { %v216_v39 = vadd.f32 %v210_v30, %v199_v29  ;;  %v543_v60 = vadd.f32 %v537_v35, %v531_v34  ;;  %v253_v3 = vmul.f32 %v7507_v47, %v7633_v33  ;;  %v570_v9 = vmul.f32 %v7517_v49, %v7633_v33 }
  0x8b   :  { %v198_v10 = vadd.f32 %v192_v36, %v172_v62  ;;  %v270_v8 = vmul.f32 %v7539_v55, %v7647_v52  ;;  %v582_v16 = vmul.f32 %v7583_v7, %v7647_v52  ;;  %v252_v12 = vmul.f32 %v7642_v37, %v7633_v33 }
  0x8c   :  { %v233_v0 = vadd.f32 %v227_v40, %v216_v39  ;;  %v555_v6 = vadd.f32 %v549_v53, %v543_v60  ;;  %v530_v21 = vadd.f32 %v524_v44, %v518_v46  ;;  %v548_v26 = vmul.f32 %v7539_v55, %v7595_v14 }
  0x8d   :  { %v7655_v1 = vpop.permute.xlu0 %279  ;;  %v215_v20 = vadd.f32 %v209_v5, %v198_v10  ;;  %v148_v27 = vmul.f32 %v7548_v58, %v7527_v51  ;;  %v7679_v36 = vmul.f32 %v7522_v50, %v7595_v14  ;;  %v569_v60 = vmul.f32 %v7686_v38, %v7633_v33 }
  0x8e   :  { %v259_v11 = vadd.f32 %v253_v3, %v233_v0  ;;  %v576_v17 = vadd.f32 %v570_v9, %v555_v6  ;;  %v287_v54 = vmul.f32 %v7512_v48, %v7655_v1  ;;  %v594_v30 = vmul.f32 %v7522_v50, %v7655_v1 }
  0x8f   :  { %v232_v32 = vadd.f32 %v226_v61, %v215_v20  ;;  %v542_v34 = vadd.f32 %v536_v22, %v530_v21  ;;  %v269_v48 = vmul.f32 %v7507_v47, %v7647_v52  ;;  %v154_v39 = vadd.f32 %v148_v27, %v7593_v13  ;;  %v7709_v61 = vld [vmem:[%s11813_s0 + $0x10] sm:$0xff] }
  0x90   :  { %v276_v24 = vadd.f32 %v270_v8, %v259_v11  ;;  %v588_v29 = vadd.f32 %v582_v16, %v576_v17  ;;  %v286_v50 = vmul.f32 %v7539_v55, %v7655_v1  ;;  %v191_v0 = vmul.f32 %v7574_v4, %v7546_v57 }
  0x91   :  { %v258_v44 = vadd.f32 %v252_v12, %v232_v32  ;;  %v554_v53 = vadd.f32 %v548_v26, %v542_v34  ;;  %v171_v62 = vadd.f32 %v7602_v18, %v154_v39  ;;  %v499_v3 = vmul.f32 %v7544_v56, %v7548_v58 }
  0x92   :  { %v293_v35 = vadd.f32 %v287_v54, %v276_v24  ;;  %v600_v40 = vadd.f32 %v594_v30, %v588_v29  ;;  %v581_v46 = vmul.f32 %v7517_v49, %v7647_v52  ;;  %v7701_v6 = vadd.f32 %v7567_v2, %v1027_v43  ;;  %v7719_v43 = vld [vmem:[%s11813_s0 + $0x98] sm:$0xff] }
  0x93   :  { %v275_v13 = vadd.f32 %v269_v48, %v258_v44  ;;  %v575_v5 = vadd.f32 %v569_v60, %v554_v53  ;;  %v197_v9 = vadd.f32 %v191_v0, %v171_v62  ;;  %v208_v18 = vmul.f32 %v7544_v56, %v7597_v15  ;;  %v7750_v48 = vld [vmem:[%s11813_s0 + $0xd8] sm:$0xff] }
  0x94   :  { %6498 = vmatprep.subr.mxu0 %v293_v35  ;;  %6528 = vmatprep.subr.mxu1 %v600_v40  ;;  %v505_v10 = vadd.f32 %v499_v3, %v7606_v19  ;;  %v7712_v11 = vadd.f32 %v7618_v25, %v779_v59  ;;  %v593_v2 = vmul.f32 %v7583_v7, %v7655_v1 }
  0x95   :  { %6499 = vmatpush3.msra.mxu0 %v293_v35  ;;  %6529 = vmatpush3.msra.mxu1 %v600_v40  ;;  %v292_v8 = vadd.f32 %v286_v50, %v275_v13  ;;  %v587_v16 = vadd.f32 %v581_v46, %v575_v5  ;;  %v214_v12 = vadd.f32 %v208_v18, %v197_v9  ;;  %v122_v13 = vld [vmem:[%s11813_s0 + $0x8] sm:$0xff] }
  0x96   :  { %v225_v19 = vmul.f32 %v7499_v45, %v7595_v14  ;;  %v517_v17 = vadd.f32 %v7614_v23, %v505_v10  ;;  %v523_v25 = vmul.f32 %v7719_v43, %v7546_v57  ;;  %v251_v20 = vmul.f32 %v7719_v43, %v7633_v33  ;;  %v7735_v45 = vld [vmem:[%s11813_s0 + $0x50] sm:$0xff] }
  0x97   :  { %6500 = vmatprep.subr.mxu0 %v292_v8  ;;  %v599_v59 = vadd.f32 %v593_v2, %v587_v16  ;;  %v136_v21 = vmul.f32 %v7488_v42, %v7709_v61  ;;  %v147_v22 = vmul.f32 %v7548_v58, %v7560_v63  ;;  %v268_v24 = vmul.f32 %v7642_v37, %v7647_v52  ;;  %v7776_v10 = vld [vmem:[%s11813_s0 + $0x90] sm:$0xff] }
  0x98   :  { %6501 = vmatpush3.msra.mxu0 %v292_v8  ;;  %v231_v23 = vadd.f32 %v225_v19, %v214_v12  ;;  %v529_v54 = vadd.f32 %v523_v25, %v517_v17  ;;  %v535_v26 = vmul.f32 %v7642_v37, %v7597_v15  ;;  %v285_v27 = vmul.f32 %v7507_v47, %v7655_v1 }
  0x99   :  { %6530 = vmatprep.subr.mxu1 %v599_v59  ;;  %v547_v29 = vmul.f32 %v7507_v47, %v7595_v14  ;;  %v153_v30 = vadd.f32 %v147_v22, %v136_v21  ;;  %v164_v32 = vmul.f32 %v7486_v41, %v7527_v51  ;;  %v492_v39 = vmul.f32 %v7735_v45, %v7488_v42 }
  0x9a   :  { %6531 = vmatpush3.msra.mxu1 %v599_v59  ;;  %v257_v34 = vadd.f32 %v251_v20, %v231_v23  ;;  %v541_v35 = vadd.f32 %v535_v26, %v529_v54  ;;  %v498_v40 = vmul.f32 %v7574_v4, %v7548_v58  ;;  %v568_v44 = vmul.f32 %v7750_v48, %v7633_v33  ;;  %v7792_v23 = vld [vmem:[%s11813_s0 + $0x48] sm:$0xff] }
  0x9b   :  { %v580_v51 = vmul.f32 %v7686_v38, %v7647_v52  ;;  %v170_v53 = vadd.f32 %v164_v32, %v153_v30  ;;  %v190_v60 = vmul.f32 %v7735_v45, %v7546_v57  ;;  %v510_v3 = vmul.f32 %v7544_v56, %v7486_v41 }
  0x9c   :  { %v274_v50 = vadd.f32 %v268_v24, %v257_v34  ;;  %v553_v62 = vadd.f32 %v547_v29, %v541_v35  ;;  %v504_v0 = vadd.f32 %v498_v40, %v492_v39  ;;  %v592_v5 = vmul.f32 %v7517_v49, %v7655_v1  ;;  %v7805_v39 = vld [vmem:[%s11813_s0 + $0xd0] sm:$0xff] }
  0x9d   :  { %v196_v46 = vadd.f32 %v190_v60, %v170_v53  ;;  %v207_v9 = vmul.f32 %v7574_v4, %v7597_v15  ;;  %v224_v18 = vmul.f32 %v7544_v56, %v7595_v14  ;;  %v522_v12 = vmul.f32 %v7776_v10, %v7546_v57 }
  0x9e   :  { %v291_v8 = vadd.f32 %v285_v27, %v274_v50  ;;  %v574_v16 = vadd.f32 %v568_v44, %v553_v62  ;;  %v516_v2 = vadd.f32 %v510_v3, %v504_v0  ;;  %v250_v17 = vmul.f32 %v7776_v10, %v7633_v33 }
  0x9f   :  { %v213_v19 = vadd.f32 %v207_v9, %v196_v46  ;;  %v135_v25 = vmul.f32 %v7488_v42, %v122_v13  ;;  %v146_v56 = vmul.f32 %v7548_v58, %v7709_v61  ;;  %v267_v20 = vmul.f32 %v7719_v43, %v7647_v52 }
  0xa0   :  { %6502 = vmatprep.subr.mxu0 %v291_v8  ;;  %v586_v59 = vadd.f32 %v580_v51, %v574_v16  ;;  %v528_v21 = vadd.f32 %v522_v12, %v516_v2  ;;  %v534_v22 = vmul.f32 %v7719_v43, %v7597_v15  ;;  %v284_v54 = vmul.f32 %v7642_v37, %v7655_v1  ;;  %v121_v51 = vld [vmem:[%s11813_s0] sm:$0xff] }
  0xa1   :  { %6503 = vmatpush3.msra.mxu0 %v291_v8  ;;  %v230_v24 = vadd.f32 %v224_v18, %v213_v19  ;;  %v152_v26 = vadd.f32 %v146_v56, %v135_v25  ;;  %v163_v27 = vmul.f32 %v7486_v41, %v7560_v63  ;;  %v546_v32 = vmul.f32 %v7642_v37, %v7595_v14 }
  0xa2   :  { %v598_v29 = vadd.f32 %v592_v5, %v586_v59  ;;  %v540_v30 = vadd.f32 %v534_v22, %v528_v21  ;;  %v189_v34 = vmul.f32 %v7792_v23, %v7546_v57  ;;  %v491_v44 = vmul.f32 %v7792_v23, %v7488_v42  ;;  %v7823_v5 = vld [vmem:[%s11813_s0 + $0x88] sm:$0xff] }
  0xa3   :  { %v256_v35 = vadd.f32 %v250_v17, %v230_v24  ;;  %v169_v40 = vadd.f32 %v163_v27, %v152_v26  ;;  %v497_v63 = vmul.f32 %v7735_v45, %v7548_v58  ;;  %v567_v60 = vmul.f32 %v7805_v39, %v7633_v33 }
  0xa4   :  { %6532 = vmatprep.subr.mxu1 %v598_v29  ;;  %v552_v53 = vadd.f32 %v546_v32, %v540_v30  ;;  %v579_v50 = vmul.f32 %v7750_v48, %v7647_v52  ;;  %v206_v62 = vmul.f32 %v7735_v45, %v7597_v15  ;;  %v509_v9 = vmul.f32 %v7574_v4, %v7486_v41 }
  0xa5   :  { %6533 = vmatpush3.msra.mxu1 %v598_v29  ;;  %v273_v0 = vadd.f32 %v267_v20, %v256_v35  ;;  %v195_v3 = vadd.f32 %v189_v34, %v169_v40  ;;  %v503_v46 = vadd.f32 %v497_v63, %v491_v44  ;;  %v223_v8 = vmul.f32 %v7574_v4, %v7595_v14 }
  0xa6   :  { %v573_v18 = vadd.f32 %v567_v60, %v552_v53  ;;  %v521_v16 = vmul.f32 %v7823_v5, %v7546_v57  ;;  %v134_v2 = vmul.f32 %v7488_v42, %v121_v51  ;;  %v145_v25 = vmul.f32 %v7548_v58, %v122_v13  ;;  %v5694_v13 = vld [vmem:[%s11813_s0 + $0x40] sm:$0xff] }
  0xa7   :  { %v290_v12 = vadd.f32 %v284_v54, %v273_v0  ;;  %v212_v19 = vadd.f32 %v206_v62, %v195_v3  ;;  %v515_v17 = vadd.f32 %v509_v9, %v503_v46  ;;  %v591_v59 = vmul.f32 %v7686_v38, %v7655_v1  ;;  %v5702_v3 = vld [vmem:[%s11813_s0 + $0x80] sm:$0xff] }
  0xa8   :  { %v585_v56 = vadd.f32 %v579_v50, %v573_v18  ;;  %v249_v20 = vmul.f32 %v7823_v5, %v7633_v33  ;;  %v533_v4 = vmul.f32 %v7776_v10, %v7597_v15  ;;  %v151_v24 = vadd.f32 %v145_v25, %v134_v2 }
  0xa9   :  { %6504 = vmatprep.subr.mxu0 %v290_v12  ;;  %v229_v21 = vadd.f32 %v223_v8, %v212_v19  ;;  %v527_v22 = vadd.f32 %v521_v16, %v515_v17  ;;  %v162_v54 = vmul.f32 %v7486_v41, %v7709_v61  ;;  %v7846_v26 = vadd.f32 %v7631_v31, %v7701_v6  ;;  %v7855_v61 = vld [vmem:[%s11813_s0 + $0xc8] sm:$0xff] }
  0xaa   :  { %v597_v27 = vadd.f32 %v591_v59, %v585_v56  ;;  %6505 = vmatpush3.msra.mxu0 %v290_v12  ;;  %v266_v29 = vmul.f32 %v7776_v10, %v7647_v52  ;;  %v545_v30 = vmul.f32 %v7719_v43, %v7595_v14  ;;  %v188_v40 = vmul.f32 %v5694_v13, %v7546_v57 }
  0xab   :  { %v255_v32 = vadd.f32 %v249_v20, %v229_v21  ;;  %v539_v34 = vadd.f32 %v533_v4, %v527_v22  ;;  %v168_v35 = vadd.f32 %v162_v54, %v151_v24  ;;  %v283_v31 = vmul.f32 %v7719_v43, %v7655_v1 }
  0xac   :  { %6534 = vmatprep.subr.mxu1 %v597_v27  ;;  %v566_v6 = vmul.f32 %v7855_v61, %v7633_v33  ;;  %v490_v44 = vmul.f32 %v5694_v13, %v7488_v42  ;;  %v496_v63 = vmul.f32 %v7792_v23, %v7548_v58  ;;  %v205_v50 = vmul.f32 %v7792_v23, %v7597_v15 }
  0xad   :  { %6535 = vmatpush3.msra.mxu1 %v597_v27  ;;  %v272_v51 = vadd.f32 %v266_v29, %v255_v32  ;;  %v551_v53 = vadd.f32 %v545_v30, %v539_v34  ;;  %v194_v60 = vadd.f32 %v188_v40, %v168_v35  ;;  %v578_v62 = vmul.f32 %v7805_v39, %v7647_v52  ;;  %v5722_v29 = vld [vmem:[%s11813_s0 + $0xc0] sm:$0xff]  ;;  %v7905_v40 = vld [vmem:[%s11813_s0 + $0x130] sm:$0xff] }
  0xae   :  { %v222_v0 = vmul.f32 %v7735_v45, %v7595_v14  ;;  %v502_v46 = vadd.f32 %v496_v63, %v490_v44  ;;  %v508_v9 = vmul.f32 %v7735_v45, %v7486_v41  ;;  %v756_v23 = vmul.f32 %v7823_v5, %v7548_v58 }
  0xaf   :  { %v289_v18 = vadd.f32 %v283_v31, %v272_v51  ;;  %v572_v8 = vadd.f32 %v566_v6, %v551_v53  ;;  %v211_v16 = vadd.f32 %v205_v50, %v194_v60  ;;  %v590_v2 = vmul.f32 %v7750_v48, %v7655_v1  ;;  %v5749_v60 = vld [vmem:[%s11813_s0 + $0x138] sm:$0xff] }
  0xb0   :  { %v248_v12 = vmul.f32 %v5702_v3, %v7633_v33  ;;  %v520_v19 = vmul.f32 %v5702_v3, %v7546_v57  ;;  %v514_v17 = vadd.f32 %v508_v9, %v502_v46  ;;  %v265_v45 = vmul.f32 %v7823_v5, %v7647_v52 }
  0xb1   :  { %6506 = vmatprep.subr.mxu0 %v289_v18  ;;  %v584_v25 = vadd.f32 %v578_v62, %v572_v8  ;;  %v228_v56 = vadd.f32 %v222_v0, %v211_v16  ;;  %v750_v59 = vmul.f32 %v5702_v3, %v7488_v42  ;;  %v282_v20 = vmul.f32 %v7776_v10, %v7655_v1 }
  0xb2   :  { %6507 = vmatpush3.msra.mxu0 %v289_v18  ;;  %v526_v4 = vadd.f32 %v520_v19, %v514_v17  ;;  %v532_v21 = vmul.f32 %v7823_v5, %v7597_v15  ;;  %v797_v22 = vmul.f32 %v7583_v7, %v7597_v15  ;;  %v544_v27 = vmul.f32 %v7776_v10, %v7595_v14  ;;  %v7947_v17 = vld [vmem:[%s11815_s2 + $0x10] sm:$0xff] }
  0xb3   :  { %v596_v24 = vadd.f32 %v590_v2, %v584_v25  ;;  %v254_v54 = vadd.f32 %v248_v12, %v228_v56  ;;  %v7891_v13 = vadd.f32 %v756_v23, %v750_v59  ;;  %v565_v32 = vmul.f32 %v5722_v29, %v7633_v33  ;;  %v7937_v23 = vld [vmem:[%s11813_s0 + $0x168] sm:$0xff] }
  0xb4   :  { %v538_v30 = vadd.f32 %v532_v21, %v526_v4  ;;  %v577_v34 = vmul.f32 %v7855_v61, %v7647_v52  ;;  %v803_v35 = vadd.f32 %v797_v22, %v7712_v11  ;;  %v589_v6 = vmul.f32 %v7805_v39, %v7655_v1 }
  0xb5   :  { %6536 = vmatprep.subr.mxu1 %v596_v24  ;;  %v271_v31 = vadd.f32 %v265_v45, %v254_v54  ;;  %v7910_v44 = vmul.f32 %v5722_v29, %v7546_v57  ;;  %v1057_v63 = vmul.f32 %v7905_v40, %v7597_v15  ;;  %v1016_v11 = vmul.f32 %v7855_v61, %v7548_v58  ;;  %v7952_v45 = vld [vmem:[%s11813_s0 + $0x170] sm:$0xff] }
  0xb6   :  { %6537 = vmatpush3.msra.mxu1 %v596_v24  ;;  %v550_v51 = vadd.f32 %v544_v27, %v538_v30  ;;  %v815_v53 = vadd.f32 %v7679_v36, %v803_v35  ;;  %v830_v50 = vmul.f32 %v7625_v28, %v7633_v33  ;;  %v1069_v0 = vmul.f32 %v5749_v60, %v7595_v14  ;;  %v7930_v36 = vld [vmem:[%s11815_s2 + $0x8] sm:$0xff] }
  0xb7   :  { %v288_v62 = vadd.f32 %v282_v20, %v271_v31  ;;  %v1281_v3 = vmul.f32 %v7905_v40, %v7548_v58  ;;  %v1063_v46 = vadd.f32 %v1057_v63, %v7846_v26  ;;  %v1010_v18 = vmul.f32 %v5722_v29, %v7488_v42  ;;  %v5769_v29 = vld [vmem:[%s11813_s0 + $0x178] sm:$0xff] }
  0xb8   :  { %v571_v9 = vadd.f32 %v565_v32, %v550_v51  ;;  %v836_v8 = vadd.f32 %v830_v50, %v815_v53  ;;  %v842_v16 = vmul.f32 %v7905_v40, %v7647_v52  ;;  %v854_v26 = vmul.f32 %v5749_v60, %v7655_v1 }
  0xb9   :  { %6508 = vmatprep.subr.mxu0 %v288_v62  ;;  %v1275_v2 = vmul.f32 %v7625_v28, %v7488_v42  ;;  %v1075_v12 = vadd.f32 %v1069_v0, %v1063_v46  ;;  %v1090_v19 = vmul.f32 %v7937_v23, %v7633_v33  ;;  %v754_v59 = vmul.f32 %v7642_v37, %v7488_v42  ;;  %v7995_v46 = vld [vmem:[%s11815_s2 + $0x18] sm:$0xff] }
  0xba   :  { %v583_v25 = vadd.f32 %v577_v34, %v571_v9  ;;  %6509 = vmatpush3.msra.mxu0 %v288_v62  ;;  %v848_v56 = vadd.f32 %v842_v16, %v836_v8  ;;  %v760_v20 = vmul.f32 %v7507_v47, %v7548_v58  ;;  %v7958_v4 = vadd.f32 %v1016_v11, %v1010_v18  ;;  %v8005_v8 = vld [vmem:[%s11813_s0 + $0x120] sm:$0xff] }
  0xbb   :  { %6511 = vmatmul.mubr.msk.f32.vlgmr.msra.gmra.mxu0 %vm294_vm0, %v7930_v36  ;;  %v1287_v21 = vadd.f32 %v1281_v3, %v1275_v2  ;;  %v1096_v22 = vadd.f32 %v1090_v19, %v1075_v12  ;;  %v1102_v24 = vmul.f32 %v7952_v45, %v7647_v52  ;;  %v772_v32 = vmul.f32 %v7539_v55, %v7486_v41 }
  0xbc   :  { %v595_v54 = vadd.f32 %v589_v6, %v583_v25  ;;  %v860_v27 = vadd.f32 %v854_v26, %v848_v56  ;;  %v766_v30 = vadd.f32 %v760_v20, %v754_v59  ;;  %6513 = vmatprep.mubr.msk.f32.mxu0 %vm294_vm0, %v7947_v17  ;;  %v1293_v34 = vmul.f32 %v5749_v60, %v7486_v41  ;;  %v8018_v25 = vld [vmem:[%s11815_s2 + $0x20] sm:$0xff] }
  0xbd   :  { %v1108_v35 = vadd.f32 %v1102_v24, %v1096_v22  ;;  %v1114_v31 = vmul.f32 %v5769_v29, %v7655_v1  ;;  %v1541_v6 = vmul.f32 %v7952_v45, %v7548_v58  ;;  %v1535_v63 = vmul.f32 %v7937_v23, %v7488_v42 }
  0xbe   :  { %6538 = vmatprep.subr.mxu1 %v595_v54  ;;  %6558 = vmatprep.subr.mxu0 %v860_v27  ;;  %v778_v51 = vadd.f32 %v772_v32, %v766_v30  ;;  %v784_v55 = vmul.f32 %v7686_v38, %v7546_v57  ;;  %v1014_v53 = vmul.f32 %v7686_v38, %v7488_v42  ;;  %v8046_v32 = vld [vmem:[%s11813_s0 + $0x160] sm:$0xff] }
  0xbf   :  { %6539 = vmatpush3.msra.mxu1 %v595_v54  ;;  %v1120_v11 = vadd.f32 %v1114_v31, %v1108_v35  ;;  %6559 = vmatpush3.msra.mxu0 %v860_v27  ;;  %v1020_v60 = vmul.f32 %v7517_v49, %v7548_v58  ;;  %v7985_v50 = vadd.f32 %v1293_v34, %v1287_v21  ;;  %v8039_v27 = vld [vmem:[%s11815_s2 + $0x28] sm:$0xff] }
  0xc0   :  { %6541 = vmatmul.mubr.msk.f32.vlgmr.msra.gmra.mxu1 %vm294_vm0, %v7930_v36  ;;  %v7988_v62 = vmul.f32 %v5769_v29, %v7595_v14  ;;  %v790_v0 = vadd.f32 %v784_v55, %v778_v51  ;;  %v796_v3 = vmul.f32 %v7517_v49, %v7597_v15  ;;  %v7997_v9 = vadd.f32 %v1541_v6, %v1535_v63 }
  0xc1   :  { %6588 = vmatprep.subr.mxu1 %v1120_v11  ;;  %v8000_v18 = vmul.f32 %v5769_v29, %v7486_v41  ;;  %v1026_v16 = vadd.f32 %v1020_v60, %v1014_v53  ;;  %v1032_v26 = vmul.f32 %v7583_v7, %v7486_v41  ;;  %v808_v12 = vmul.f32 %v7583_v7, %v7595_v14 }
  0xc2   :  { %6589 = vmatpush3.msra.mxu1 %v1120_v11  ;;  %v802_v2 = vadd.f32 %v796_v3, %v790_v0  ;;  %v829_v19 = vmul.f32 %v8005_v8, %v7633_v33  ;;  %6543 = vmatprep.mubr.msk.f32.mxu1 %vm294_vm0, %v7947_v17  ;;  %v1044_v59 = vmul.f32 %v8005_v8, %v7546_v57 }
  0xc3   :  { %v1038_v56 = vadd.f32 %v1032_v26, %v1026_v16  ;;  %6514 = vmatmul.mubr.msk.f32.gmra.mxu0 %vm294_vm0, %v7995_v46  ;;  %v753_v7 = vmul.f32 %v7719_v43, %v7488_v42  ;;  %v759_v20 = vmul.f32 %v7642_v37, %v7548_v58  ;;  %v841_v22 = vmul.f32 %v7625_v28, %v7647_v52  ;;  %v8076_v16 = vld [vmem:[%s11813_s0 + $0x118] sm:$0xff] }
  0xc4   :  { %v814_v21 = vadd.f32 %v808_v12, %v802_v2  ;;  %v853_v24 = vmul.f32 %v7905_v40, %v7655_v1  ;;  %v1056_v54 = vmul.f32 %v7625_v28, %v7597_v15  ;;  %6544 = vmatmul.mubr.msk.f32.gmra.mxu1 %vm294_vm0, %v7995_v46  ;;  %v1068_v30 = vmul.f32 %v7905_v40, %v7595_v14  ;;  %v8085_v12 = vld [vmem:[%s11815_s2 + $0x38] sm:$0xff] }
  0xc5   :  { %v1050_v29 = vadd.f32 %v1044_v59, %v1038_v56  ;;  %v765_v34 = vadd.f32 %v759_v20, %v753_v7  ;;  %v771_v35 = vmul.f32 %v7507_v47, %v7486_v41  ;;  %6516 = vmatprep.mubr.msk.f32.mxu0 %vm294_vm0, %v8018_v25  ;;  %v1089_v6 = vmul.f32 %v8046_v32, %v7633_v33  ;;  %v8063_v47 = vld [vmem:[%s11815_s2 + $0x30] sm:$0xff] }
  0xc6   :  { %v835_v31 = vadd.f32 %v829_v19, %v814_v21  ;;  %v1013_v63 = vmul.f32 %v7750_v48, %v7488_v42  ;;  %v1019_v51 = vmul.f32 %v7686_v38, %v7548_v58  ;;  %6546 = vmatprep.mubr.msk.f32.mxu1 %vm294_vm0, %v8018_v25  ;;  %v1101_v11 = vmul.f32 %v7937_v23, %v7647_v52 }
  0xc7   :  { %v1062_v55 = vadd.f32 %v1056_v54, %v1050_v29  ;;  %v777_v53 = vadd.f32 %v771_v35, %v765_v34  ;;  %v783_v60 = vmul.f32 %v7750_v48, %v7546_v57  ;;  %6517 = vmatmul.mubr.msk.f32.gmra.mxu0 %vm294_vm0, %v8039_v27  ;;  %v1113_v3 = vmul.f32 %v7952_v45, %v7655_v1 }
  0xc8   :  { %v847_v0 = vadd.f32 %v841_v22, %v835_v31  ;;  %v1025_v26 = vadd.f32 %v1019_v51, %v1013_v63  ;;  %v1031_v2 = vmul.f32 %v7517_v49, %v7486_v41  ;;  %6547 = vmatmul.mubr.msk.f32.gmra.mxu1 %vm294_vm0, %v8039_v27  ;;  %v795_v59 = vmul.f32 %v7686_v38, %v7597_v15 }
  0xc9   :  { %v1074_v19 = vadd.f32 %v1068_v30, %v1062_v55  ;;  %v789_v56 = vadd.f32 %v783_v60, %v777_v53  ;;  %v1043_v7 = vmul.f32 %v8076_v16, %v7546_v57  ;;  %6519 = vmatprep.mubr.msk.f32.mxu0 %vm294_vm0, %v8063_v47  ;;  %v752_v22 = vmul.f32 %v7776_v10, %v7488_v42 }
  0xca   :  { %v859_v20 = vadd.f32 %v853_v24, %v847_v0  ;;  %v1037_v21 = vadd.f32 %v1031_v2, %v1025_v26  ;;  %v758_v54 = vmul.f32 %v7719_v43, %v7548_v58  ;;  %6549 = vmatprep.mubr.msk.f32.mxu1 %vm294_vm0, %v8063_v47  ;;  %v807_v34 = vmul.f32 %v7517_v49, %v7595_v14 }
  0xcb   :  { %v1095_v29 = vadd.f32 %v1089_v6, %v1074_v19  ;;  %v801_v30 = vadd.f32 %v795_v59, %v789_v56  ;;  %v828_v35 = vmul.f32 %v8076_v16, %v7633_v33  ;;  %6520 = vmatmul.mubr.msk.f32.gmra.mxu0 %vm294_vm0, %v8085_v12  ;;  %v1055_v31 = vmul.f32 %v8005_v8, %v7597_v15  ;;  %v8112_v6 = vld [vmem:[%s11815_s2 + $0x40] sm:$0xff]  ;;  %v8127_v56 = vld [vmem:[%s11813_s0 + $0x158] sm:$0xff] }
  0xcc   :  { %6560 = vmatprep.subr.mxu0 %v859_v20  ;;  %v1049_v24 = vadd.f32 %v1043_v7, %v1037_v21  ;;  %v764_v63 = vadd.f32 %v758_v54, %v752_v22  ;;  %v770_v51 = vmul.f32 %v7642_v37, %v7486_v41  ;;  %v840_v53 = vmul.f32 %v8005_v8, %v7647_v52  ;;  %v8144_v22 = vld [vmem:[%s11815_s2 + $0x48] sm:$0xff] }
  0xcd   :  { %v1107_v49 = vadd.f32 %v1101_v11, %v1095_v29  ;;  %6561 = vmatpush3.msra.mxu0 %v859_v20  ;;  %v813_v55 = vadd.f32 %v807_v34, %v801_v30  ;;  %v852_v60 = vmul.f32 %v7625_v28, %v7655_v1  ;;  %v1067_v26 = vmul.f32 %v7625_v28, %v7595_v14  ;;  %v8151_v30 = vld [vmem:[%s11813_s0 + $0x110] sm:$0xff] }
  0xce   :  { %v1061_v0 = vadd.f32 %v1055_v31, %v1049_v24  ;;  %v776_v2 = vadd.f32 %v770_v51, %v764_v63  ;;  %v782_v37 = vmul.f32 %v7805_v39, %v7546_v57  ;;  %6550 = vmatmul.mubr.msk.f32.gmra.mxu1 %vm294_vm0, %v8085_v12  ;;  %v1012_v59 = vmul.f32 %v7805_v39, %v7488_v42 }
  0xcf   :  { %v1119_v11 = vadd.f32 %v1113_v3, %v1107_v49  ;;  %v834_v19 = vadd.f32 %v828_v35, %v813_v55  ;;  %v1018_v28 = vmul.f32 %v7750_v48, %v7548_v58  ;;  %6522 = vmatprep.mubr.msk.f32.mxu0 %vm294_vm0, %v8112_v6  ;;  %v1088_v20 = vmul.f32 %v8127_v56, %v7633_v33 }
  0xd0   :  { %v1073_v7 = vadd.f32 %v1067_v26, %v1061_v0  ;;  %v788_v3 = vadd.f32 %v782_v37, %v776_v2  ;;  %v794_v21 = vmul.f32 %v7750_v48, %v7597_v15  ;;  %6552 = vmatprep.mubr.msk.f32.mxu1 %vm294_vm0, %v8112_v6  ;;  %v1100_v29 = vmul.f32 %v8046_v32, %v7647_v52 }
  0xd1   :  { %6590 = vmatprep.subr.mxu1 %v1119_v11  ;;  %v846_v54 = vadd.f32 %v840_v53, %v834_v19  ;;  %v1024_v34 = vadd.f32 %v1018_v28, %v1012_v59  ;;  %v1030_v35 = vmul.f32 %v7686_v38, %v7486_v41  ;;  %v806_v63 = vmul.f32 %v7686_v38, %v7595_v14 }
  0xd2   :  { %6591 = vmatpush3.msra.mxu1 %v1119_v11  ;;  %v1094_v24 = vadd.f32 %v1088_v20, %v1073_v7  ;;  %v800_v31 = vadd.f32 %v794_v21, %v788_v3  ;;  %v1042_v51 = vmul.f32 %v8151_v30, %v7546_v57  ;;  %v751_v53 = vmul.f32 %v7823_v5, %v7488_v42  ;;  %v8174_v5 = vld [vmem:[%s11815_s2 + $0x50] sm:$0xff] }
  0xd3   :  { %v858_v49 = vadd.f32 %v852_v60, %v846_v54  ;;  %v1036_v55 = vadd.f32 %v1030_v35, %v1024_v34  ;;  %v757_v0 = vmul.f32 %v7776_v10, %v7548_v58  ;;  %6523 = vmatmul.mubr.msk.f32.gmra.mxu0 %vm294_vm0, %v8144_v22  ;;  %v1112_v2 = vmul.f32 %v7937_v23, %v7655_v1 }
  0xd4   :  { %v1106_v26 = vadd.f32 %v1100_v29, %v1094_v24  ;;  %v812_v37 = vadd.f32 %v806_v63, %v800_v31  ;;  %v827_v38 = vmul.f32 %v8151_v30, %v7633_v33  ;;  %6553 = vmatmul.mubr.msk.f32.gmra.mxu1 %vm294_vm0, %v8144_v22  ;;  %v1054_v11 = vmul.f32 %v8076_v16, %v7597_v15  ;;  %v8206_v31 = vld [vmem:[%s11815_s2 + $0x58] sm:$0xff] }
  0xd5   :  { %6562 = vmatprep.subr.mxu0 %v858_v49  ;;  %v1048_v60 = vadd.f32 %v1042_v51, %v1036_v55  ;;  %v763_v19 = vadd.f32 %v757_v0, %v751_v53  ;;  %v769_v59 = vmul.f32 %v7719_v43, %v7486_v41  ;;  %v8182_v28 = vadd.f32 %v8000_v18, %v7997_v9  ;;  %v8197_v18 = vld [vmem:[%s11813_s0 + $0x150] sm:$0xff] }
  0xd6   :  { %v1118_v7 = vadd.f32 %v1112_v2, %v1106_v26  ;;  %6563 = vmatpush3.msra.mxu0 %v858_v49  ;;  %v833_v20 = vadd.f32 %v827_v38, %v812_v37  ;;  %v839_v3 = vmul.f32 %v8076_v16, %v7647_v52  ;;  %v1066_v54 = vmul.f32 %v8005_v8, %v7595_v14 }
  0xd7   :  { %v1060_v21 = vadd.f32 %v1054_v11, %v1048_v60  ;;  %v775_v29 = vadd.f32 %v769_v59, %v763_v19  ;;  %v781_v34 = vmul.f32 %v7855_v61, %v7546_v57  ;;  %6525 = vmatprep.mubr.msk.f32.mxu0 %vm294_vm0, %v8174_v5  ;;  %v851_v9 = vmul.f32 %v8005_v8, %v7655_v1  ;;  %v8223_v11 = vld [vmem:[%s11813_s0 + $0x108] sm:$0xff] }
  0xd8   :  { %6592 = vmatprep.subr.mxu1 %v1118_v7  ;;  %v845_v43 = vadd.f32 %v839_v3, %v833_v20  ;;  %v1011_v35 = vmul.f32 %v7855_v61, %v7488_v42  ;;  %v1017_v24 = vmul.f32 %v7805_v39, %v7548_v58  ;;  %v1087_v51 = vmul.f32 %v8197_v18, %v7633_v33 }
  0xd9   :  { %6593 = vmatpush3.msra.mxu1 %v1118_v7  ;;  %v1072_v63 = vadd.f32 %v1066_v54, %v1060_v21  ;;  %v787_v49 = vadd.f32 %v781_v34, %v775_v29  ;;  %v793_v55 = vmul.f32 %v7805_v39, %v7597_v15  ;;  %v1099_v0 = vmul.f32 %v8127_v56, %v7647_v52 }
  0xda   :  { %v857_v53 = vadd.f32 %v851_v9, %v845_v43  ;;  %v1023_v26 = vadd.f32 %v1017_v24, %v1011_v35  ;;  %v1029_v2 = vmul.f32 %v7750_v48, %v7486_v41  ;;  %6555 = vmatprep.mubr.msk.f32.mxu1 %vm294_vm0, %v8174_v5  ;;  %v805_v60 = vmul.f32 %v7750_v48, %v7595_v14 }
  0xdb   :  { %v1093_v37 = vadd.f32 %v1087_v51, %v1072_v63  ;;  %v799_v38 = vadd.f32 %v793_v55, %v787_v49  ;;  %v768_v19 = vmul.f32 %v7776_v10, %v7486_v41  ;;  %6526 = vmatmul.mubr.msk.f32.gmra.mxu0 %vm294_vm0, %v8206_v31  ;;  %v1111_v59 = vmul.f32 %v8046_v32, %v7655_v1  ;;  %v8249_v63 = vld [vmem:[%s11813_s0 + $0x148] sm:$0xff]  ;;  %v8257_v49 = vld [vmem:[%s11815_s2] sm:$0xff] }
  0xdc   :  { %6564 = vmatprep.subr.mxu0 %v857_v53  ;;  %v826_v7 = vmul.f32 %v8223_v11, %v7633_v33  ;;  %v1035_v20 = vadd.f32 %v1029_v2, %v1023_v26  ;;  %v1041_v48 = vmul.f32 %v8223_v11, %v7546_v57  ;;  %v838_v10 = vmul.f32 %v8151_v30, %v7647_v52 }
  0xdd   :  { %v1105_v3 = vadd.f32 %v1099_v0, %v1093_v37  ;;  %6565 = vmatpush3.msra.mxu0 %v857_v53  ;;  %v811_v21 = vadd.f32 %v805_v60, %v799_v38  ;;  %v774_v54 = vadd.f32 %v768_v19, %v7891_v13  ;;  %v850_v29 = vmul.f32 %v8076_v16, %v7655_v1  ;;  %v5742_v38 = vld [vmem:[%s11813_s0 + $0x100] sm:$0xff] }
  0xde   :  { %v1047_v34 = vadd.f32 %v1041_v48, %v1035_v20  ;;  %v1053_v43 = vmul.f32 %v8151_v30, %v7597_v15  ;;  %v1065_v9 = vmul.f32 %v8076_v16, %v7595_v14  ;;  %6556 = vmatmul.mubr.msk.f32.gmra.mxu1 %vm294_vm0, %v8206_v31  ;;  %v792_v51 = vmul.f32 %v7855_v61, %v7597_v15 }
  0xdf   :  { %v1117_v35 = vadd.f32 %v1111_v59, %v1105_v3  ;;  %v832_v24 = vadd.f32 %v826_v7, %v811_v21  ;;  %v786_v13 = vadd.f32 %v7910_v44, %v774_v54  ;;  %6570 = vmatprep.mubr.msk.f32.mxu0 %vm294_vm0, %v8257_v49  ;;  %v1086_v53 = vmul.f32 %v8249_v63, %v7633_v33 }
  0xe0   :  { %v1059_v55 = vadd.f32 %v1053_v43, %v1047_v34  ;;  %v1098_v0 = vmul.f32 %v8197_v18, %v7647_v52  ;;  %v1028_v44 = vmul.f32 %v7805_v39, %v7486_v41  ;;  %6600 = vmatprep.mubr.msk.f32.mxu1 %vm294_vm0, %v8257_v49  ;;  %v1110_v26 = vmul.f32 %v8127_v56, %v7655_v1 }
  0xe1   :  { %6594 = vmatprep.subr.mxu1 %v1117_v35  ;;  %v844_v61 = vadd.f32 %v838_v10, %v832_v24  ;;  %v798_v2 = vadd.f32 %v792_v51, %v786_v13  ;;  %v804_v37 = vmul.f32 %v7805_v39, %v7595_v14  ;;  %v825_v19 = vmul.f32 %v5742_v38, %v7633_v33  ;;  %v5762_v13 = vld [vmem:[%s11813_s0 + $0x140] sm:$0xff] }
  0xe2   :  { %6595 = vmatpush3.msra.mxu1 %v1117_v35  ;;  %v1071_v60 = vadd.f32 %v1065_v9, %v1059_v55  ;;  %v1040_v59 = vmul.f32 %v5742_v38, %v7546_v57  ;;  %v1034_v7 = vadd.f32 %v1028_v44, %v7958_v4  ;;  %v837_v3 = vmul.f32 %v8223_v11, %v7647_v52 }
  0xe3   :  { %v856_v20 = vadd.f32 %v850_v29, %v844_v61  ;;  %v810_v48 = vadd.f32 %v804_v37, %v798_v2  ;;  %v1276_v39 = vmul.f32 %v8223_v11, %v7548_v58  ;;  %v1052_v54 = vmul.f32 %v8223_v11, %v7597_v15 }
  0xe4   :  { %v1092_v21 = vadd.f32 %v1086_v53, %v1071_v60  ;;  %v1046_v10 = vadd.f32 %v1040_v59, %v1034_v7  ;;  %v1305_v34 = vmul.f32 %v7937_v23, %v7546_v57  ;;  %v849_v4 = vmul.f32 %v8151_v30, %v7655_v1  ;;  %v8301_v53 = vld [vmem:[%s11813_s0 + $0x1b0] sm:$0xff] }
  0xe5   :  { %6566 = vmatprep.subr.mxu0 %v856_v20  ;;  %v831_v43 = vadd.f32 %v825_v19, %v810_v48  ;;  %v1270_v29 = vmul.f32 %v5742_v38, %v7488_v42  ;;  %v1064_v9 = vmul.f32 %v8151_v30, %v7595_v14  ;;  %v1317_v55 = vmul.f32 %v7952_v45, %v7597_v15  ;;  %v8313_v19 = vld [vmem:[%s11813_s0 + $0x1a8] sm:$0xff] }
  0xe6   :  { %v1104_v35 = vadd.f32 %v1098_v0, %v1092_v21  ;;  %6567 = vmatpush3.msra.mxu0 %v856_v20  ;;  %v1058_v24 = vadd.f32 %v1052_v54, %v1046_v10  ;;  %v1311_v51 = vadd.f32 %v1305_v34, %v7985_v50  ;;  %v1085_v0 = vmul.f32 %v5762_v13, %v7633_v33 }
  0xe7   :  { %v843_v44 = vadd.f32 %v837_v3, %v831_v43  ;;  %v8303_v61 = vadd.f32 %v1276_v39, %v1270_v29  ;;  %v1097_v2 = vmul.f32 %v8249_v63, %v7647_v52  ;;  %v1109_v50 = vmul.f32 %v8197_v18, %v7655_v1 }
  0xe8   :  { %v1116_v37 = vadd.f32 %v1110_v26, %v1104_v35  ;;  %v1070_v38 = vadd.f32 %v1064_v9, %v1058_v24  ;;  %v1323_v60 = vadd.f32 %v1317_v55, %v1311_v51  ;;  %v8316_v7 = vmul.f32 %v5762_v13, %v7546_v57 }
  0xe9   :  { %v855_v59 = vadd.f32 %v849_v4, %v843_v44  ;;  %v1801_v20 = vmul.f32 %v8301_v53, %v7548_v58  ;;  %v1565_v26 = vmul.f32 %v8313_v19, %v7546_v57  ;;  %v1536_v3 = vmul.f32 %v8249_v63, %v7548_v58  ;;  %v8345_v44 = vld [vmem:[%s11813_s0 + $0x1e8] sm:$0xff] }
  0xea   :  { %6596 = vmatprep.subr.mxu1 %v1116_v37  ;;  %v1091_v48 = vadd.f32 %v1085_v0, %v1070_v38  ;;  %v1335_v39 = vadd.f32 %v7988_v62, %v1323_v60  ;;  %v1350_v21 = vmul.f32 %v8313_v19, %v7633_v33  ;;  %v1795_v10 = vmul.f32 %v8313_v19, %v7488_v42  ;;  %v5789_v62 = vld [vmem:[%s11813_s0 + $0x1b8] sm:$0xff] }
  0xeb   :  { %6597 = vmatpush3.msra.mxu1 %v1116_v37  ;;  %6568 = vmatprep.subr.mxu0 %v855_v59  ;;  %v1571_v54 = vadd.f32 %v1565_v26, %v8182_v28  ;;  %v1577_v34 = vmul.f32 %v8301_v53, %v7597_v15  ;;  %v1530_v4 = vmul.f32 %v5762_v13, %v7488_v42 }
  0xec   :  { %v1103_v43 = vadd.f32 %v1097_v2, %v1091_v48  ;;  %6569 = vmatpush3.msra.mxu0 %v855_v59  ;;  %v1356_v29 = vadd.f32 %v1350_v21, %v1335_v39  ;;  %v1362_v9 = vmul.f32 %v8301_v53, %v7647_v52  ;;  %v1374_v35 = vmul.f32 %v5789_v62, %v7655_v1  ;;  %v7243_v2 = vld [vmem:[%s11813_s0 + $0x128] sm:$0xff]  ;;  %v8361_v59 = vld [vmem:[%s11813_s0 + $0x1f0] sm:$0xff]  ;;  %v5809_v48 = vld [vmem:[%s11813_s0 + $0x1f8] sm:$0xff] }
  0xed   :  { %v1589_v24 = vmul.f32 %v5789_v62, %v7595_v14  ;;  %v1807_v28 = vadd.f32 %v1801_v20, %v1795_v10  ;;  %v1583_v51 = vadd.f32 %v1577_v34, %v1571_v54  ;;  %6571 = vmatmul.mubr.msk.f32.vlgmr.msra.gmra.mxu0 %vm294_vm0, %v7930_v36  ;;  %v1274_v0 = vmul.f32 %v8005_v8, %v7488_v42 }
  0xee   :  { %v1115_v55 = vadd.f32 %v1109_v50, %v1103_v43  ;;  %v1368_v13 = vadd.f32 %v1362_v9, %v1356_v29  ;;  %v1280_v37 = vmul.f32 %v7243_v2, %v7548_v58  ;;  %6573 = vmatprep.mubr.msk.f32.mxu0 %vm294_vm0, %v7947_v17  ;;  %v8355_v38 = vadd.f32 %v1536_v3, %v1530_v4 }
  0xef   :  { %v1813_v50 = vmul.f32 %v5789_v62, %v7486_v41  ;;  %v1595_v60 = vadd.f32 %v1589_v24, %v1583_v51  ;;  %v1610_v20 = vmul.f32 %v8345_v44, %v7633_v33  ;;  %v1622_v3 = vmul.f32 %v8361_v59, %v7647_v52 }
  0xf0   :  { %6598 = vmatprep.subr.mxu1 %v1115_v55  ;;  %v1380_v26 = vadd.f32 %v1374_v35, %v1368_v13  ;;  %v1286_v39 = vadd.f32 %v1280_v37, %v1274_v0  ;;  %v1292_v21 = vmul.f32 %v7905_v40, %v7486_v41  ;;  %v1634_v34 = vmul.f32 %v5809_v48, %v7655_v1  ;;  %v8404_v13 = vld [vmem:[%s11813_s0 + $0x1a0] sm:$0xff] }
  0xf1   :  { %6599 = vmatpush3.msra.mxu1 %v1115_v55  ;;  %v8372_v10 = vadd.f32 %v1813_v50, %v1807_v28  ;;  %v1616_v54 = vadd.f32 %v1610_v20, %v1595_v60  ;;  %v8376_v43 = vmul.f32 %v5809_v48, %v7595_v14  ;;  %v8380_v4 = vmul.f32 %v8345_v44, %v7488_v42 }
  0xf2   :  { %6618 = vmatprep.subr.mxu0 %v1380_v26  ;;  %6601 = vmatmul.mubr.msk.f32.vlgmr.msra.gmra.mxu1 %vm294_vm0, %v7930_v36  ;;  %v1298_v62 = vadd.f32 %v1292_v21, %v1286_v39  ;;  %v1304_v40 = vmul.f32 %v8046_v32, %v7546_v57  ;;  %v8388_v9 = vmul.f32 %v8361_v59, %v7548_v58 }
  0xf3   :  { %v1628_v29 = vadd.f32 %v1622_v3, %v1616_v54  ;;  %6619 = vmatpush3.msra.mxu0 %v1380_v26  ;;  %v1534_v35 = vmul.f32 %v8046_v32, %v7488_v42  ;;  %v1540_v24 = vmul.f32 %v7937_v23, %v7548_v58  ;;  %v8395_v28 = vmul.f32 %v5809_v48, %v7486_v41 }
  0xf4   :  { %v1310_v36 = vadd.f32 %v1304_v40, %v1298_v62  ;;  %v1316_v51 = vmul.f32 %v7937_v23, %v7597_v15  ;;  %v1328_v55 = vmul.f32 %v7952_v45, %v7595_v14  ;;  %6603 = vmatprep.mubr.msk.f32.mxu1 %vm294_vm0, %v7947_v17  ;;  %v1349_v37 = vmul.f32 %v8404_v13, %v7633_v33 }
  0xf5   :  { %v1640_v0 = vadd.f32 %v1634_v34, %v1628_v29  ;;  %v1546_v50 = vadd.f32 %v1540_v24, %v1534_v35  ;;  %v1552_v60 = vmul.f32 %v7952_v45, %v7486_v41  ;;  %6574 = vmatmul.mubr.msk.f32.gmra.mxu0 %vm294_vm0, %v7995_v46  ;;  %v1361_v26 = vmul.f32 %v8313_v19, %v7647_v52 }
  0xf6   :  { %v1322_v20 = vadd.f32 %v1316_v51, %v1310_v36  ;;  %v1273_v48 = vmul.f32 %v8076_v16, %v7488_v42  ;;  %v1279_v17 = vmul.f32 %v8005_v8, %v7548_v58  ;;  %6604 = vmatmul.mubr.msk.f32.gmra.mxu1 %vm294_vm0, %v7995_v46  ;;  %v1373_v45 = vmul.f32 %v8301_v53, %v7655_v1  ;;  %v8433_v46 = vld [vmem:[%s11813_s0 + $0x1e0] sm:$0xff] }
  0xf7   :  { %6648 = vmatprep.subr.mxu1 %v1640_v0  ;;  %v1558_v3 = vadd.f32 %v1552_v60, %v1546_v50  ;;  %v1564_v39 = vmul.f32 %v8404_v13, %v7546_v57  ;;  %v1576_v21 = vmul.f32 %v8313_v19, %v7597_v15  ;;  %v1588_v34 = vmul.f32 %v8301_v53, %v7595_v14 }
  0xf8   :  { %6649 = vmatpush3.msra.mxu1 %v1640_v0  ;;  %v1334_v54 = vadd.f32 %v1328_v55, %v1322_v20  ;;  %v1285_v62 = vadd.f32 %v1279_v17, %v1273_v48  ;;  %v1291_v40 = vmul.f32 %v7243_v2, %v7486_v41  ;;  %v1609_v35 = vmul.f32 %v8433_v46, %v7633_v33 }
  0xf9   :  { %v1570_v29 = vadd.f32 %v1564_v39, %v1558_v3  ;;  %v1533_v24 = vmul.f32 %v8127_v56, %v7488_v42  ;;  %v1539_v36 = vmul.f32 %v8046_v32, %v7548_v58  ;;  %6576 = vmatprep.mubr.msk.f32.mxu0 %vm294_vm0, %v8018_v25  ;;  %v1621_v55 = vmul.f32 %v8345_v44, %v7647_v52 }
  0xfa   :  { %v1355_v51 = vadd.f32 %v1349_v37, %v1334_v54  ;;  %v1297_v0 = vadd.f32 %v1291_v40, %v1285_v62  ;;  %v1303_v2 = vmul.f32 %v8127_v56, %v7546_v57  ;;  %6606 = vmatprep.mubr.msk.f32.mxu1 %vm294_vm0, %v8018_v25  ;;  %v1633_v60 = vmul.f32 %v8361_v59, %v7655_v1  ;;  %v8463_v25 = vld [vmem:[%s11813_s0 + $0x198] sm:$0xff] }
  0xfb   :  { %v1582_v50 = vadd.f32 %v1576_v21, %v1570_v29  ;;  %v1545_v20 = vadd.f32 %v1539_v36, %v1533_v24  ;;  %v1551_v48 = vmul.f32 %v7937_v23, %v7486_v41  ;;  %6577 = vmatmul.mubr.msk.f32.gmra.mxu0 %vm294_vm0, %v8039_v27  ;;  %v1315_v3 = vmul.f32 %v8046_v32, %v7597_v15 }
  0xfc   :  { %v1367_v37 = vadd.f32 %v1361_v26, %v1355_v51  ;;  %v1309_v17 = vadd.f32 %v1303_v2, %v1297_v0  ;;  %v1327_v39 = vmul.f32 %v7937_v23, %v7595_v14  ;;  %6607 = vmatmul.mubr.msk.f32.gmra.mxu1 %vm294_vm0, %v8039_v27  ;;  %v1348_v54 = vmul.f32 %v8463_v25, %v7633_v33 }
  0xfd   :  { %v1594_v21 = vadd.f32 %v1588_v34, %v1582_v50  ;;  %v1557_v26 = vadd.f32 %v1551_v48, %v1545_v20  ;;  %v1563_v62 = vmul.f32 %v8463_v25, %v7546_v57  ;;  %6579 = vmatprep.mubr.msk.f32.mxu0 %vm294_vm0, %v8063_v47  ;;  %v1272_v29 = vmul.f32 %v8151_v30, %v7488_v42 }
  0xfe   :  { %v1379_v23 = vadd.f32 %v1373_v45, %v1367_v37  ;;  %v1321_v40 = vadd.f32 %v1315_v3, %v1309_v17  ;;  %v1278_v24 = vmul.f32 %v8076_v16, %v7548_v58  ;;  %6609 = vmatprep.mubr.msk.f32.mxu1 %vm294_vm0, %v8063_v47  ;;  %v1360_v34 = vmul.f32 %v8404_v13, %v7647_v52  ;;  %v8496_v17 = vld [vmem:[%s11813_s0 + $0x1d8] sm:$0xff] }
  0xff   :  { %v1615_v27 = vadd.f32 %v1609_v35, %v1594_v21  ;;  %v1569_v36 = vadd.f32 %v1563_v62, %v1557_v26  ;;  %v1575_v51 = vmul.f32 %v8404_v13, %v7597_v15  ;;  %6580 = vmatmul.mubr.msk.f32.gmra.mxu0 %vm294_vm0, %v8085_v12  ;;  %v1372_v0 = vmul.f32 %v8313_v19, %v7655_v1 }
 0x100   :  { %6620 = vmatprep.subr.mxu0 %v1379_v23  ;;  %v1333_v45 = vadd.f32 %v1327_v39, %v1321_v40  ;;  %v1284_v2 = vadd.f32 %v1278_v24, %v1272_v29  ;;  %v1290_v47 = vmul.f32 %v8005_v8, %v7486_v41  ;;  %v1587_v20 = vmul.f32 %v8313_v19, %v7595_v14 }
 0x101   :  { %v1627_v35 = vadd.f32 %v1621_v55, %v1615_v27  ;;  %6621 = vmatpush3.msra.mxu0 %v1379_v23  ;;  %v1581_v50 = vadd.f32 %v1575_v51, %v1569_v36  ;;  %v1302_v48 = vmul.f32 %v8197_v18, %v7546_v57  ;;  %v1532_v39 = vmul.f32 %v8197_v18, %v7488_v42 }
 0x102   :  { %v1354_v37 = vadd.f32 %v1348_v54, %v1333_v45  ;;  %v1296_v3 = vadd.f32 %v1290_v47, %v1284_v2  ;;  %v1538_v8 = vmul.f32 %v8127_v56, %v7548_v58  ;;  %6610 = vmatmul.mubr.msk.f32.gmra.mxu1 %vm294_vm0, %v8085_v12  ;;  %v1608_v54 = vmul.f32 %v8496_v17, %v7633_v33 }
 0x103   :  { %v1639_v55 = vadd.f32 %v1633_v60, %v1627_v35  ;;  %v1593_v21 = vadd.f32 %v1587_v20, %v1581_v50  ;;  %v1314_v26 = vmul.f32 %v8127_v56, %v7597_v15  ;;  %6582 = vmatprep.mubr.msk.f32.mxu0 %vm294_vm0, %v8112_v6  ;;  %v1550_v29 = vmul.f32 %v8046_v32, %v7486_v41 }
 0x104   :  { %v1366_v62 = vadd.f32 %v1360_v34, %v1354_v37  ;;  %v1308_v23 = vadd.f32 %v1302_v48, %v1296_v3  ;;  %v1544_v40 = vadd.f32 %v1538_v8, %v1532_v39  ;;  %6612 = vmatprep.mubr.msk.f32.mxu1 %vm294_vm0, %v8112_v6  ;;  %v2067_v12 = vadd.f32 %v8388_v9, %v8380_v4  ;;  %v8523_v34 = vld [vmem:[%s11813_s0 + $0x190] sm:$0xff] }
 0x105   :  { %6650 = vmatprep.subr.mxu1 %v1639_v55  ;;  %v1614_v60 = vadd.f32 %v1608_v54, %v1593_v21  ;;  %v1620_v24 = vmul.f32 %v8433_v46, %v7647_v52  ;;  %v1326_v27 = vmul.f32 %v8046_v32, %v7595_v14  ;;  %v1562_v4 = vmul.f32 %v8523_v34, %v7546_v57 }
 0x106   :  { %6651 = vmatpush3.msra.mxu1 %v1639_v55  ;;  %v1378_v36 = vadd.f32 %v1372_v0, %v1366_v62  ;;  %v1320_v51 = vadd.f32 %v1314_v26, %v1308_v23  ;;  %v1556_v6 = vadd.f32 %v1550_v29, %v1544_v40  ;;  %v1632_v45 = vmul.f32 %v8345_v44, %v7655_v1 }
 0x107   :  { %v1626_v9 = vadd.f32 %v1620_v24, %v1614_v60  ;;  %v1271_v2 = vmul.f32 %v8223_v11, %v7488_v42  ;;  %v1277_v32 = vmul.f32 %v8151_v30, %v7548_v58  ;;  %6583 = vmatmul.mubr.msk.f32.gmra.mxu0 %vm294_vm0, %v8144_v22  ;;  %v1347_v47 = vmul.f32 %v8523_v34, %v7633_v33 }
 0x108   :  { %6622 = vmatprep.subr.mxu0 %v1378_v36  ;;  %v1332_v0 = vadd.f32 %v1326_v27, %v1320_v51  ;;  %v1568_v35 = vadd.f32 %v1562_v4, %v1556_v6  ;;  %v1574_v50 = vmul.f32 %v8463_v25, %v7597_v15  ;;  %v8540_v20 = vadd.f32 %v8395_v28, %v2067_v12  ;;  %v8553_v28 = vld [vmem:[%s11813_s0 + $0x1d0] sm:$0xff]  ;;  %v8578_v4 = vld [vmem:[%s11813_s0 + $0x188] sm:$0xff] }
 0x109   :  { %v1638_v48 = vadd.f32 %v1632_v45, %v1626_v9  ;;  %6623 = vmatpush3.msra.mxu0 %v1378_v36  ;;  %v1283_v11 = vadd.f32 %v1277_v32, %v1271_v2  ;;  %v1289_v37 = vmul.f32 %v8076_v16, %v7486_v41  ;;  %v1359_v39 = vmul.f32 %v8463_v25, %v7647_v52 }
 0x10a   :  { %v1353_v3 = vadd.f32 %v1347_v47, %v1332_v0  ;;  %v1580_v8 = vadd.f32 %v1574_v50, %v1568_v35  ;;  %v1586_v55 = vmul.f32 %v8404_v13, %v7595_v14  ;;  %6613 = vmatmul.mubr.msk.f32.gmra.mxu1 %vm294_vm0, %v8144_v22  ;;  %v1301_v16 = vmul.f32 %v8249_v63, %v7546_v57 }
 0x10b   :  { %6652 = vmatprep.subr.mxu1 %v1638_v48  ;;  %v1295_v21 = vadd.f32 %v1289_v37, %v1283_v11  ;;  %v1531_v54 = vmul.f32 %v8249_v63, %v7488_v42  ;;  %v1537_v26 = vmul.f32 %v8197_v18, %v7548_v58  ;;  %v1371_v22 = vmul.f32 %v8404_v13, %v7655_v1 }
 0x10c   :  { %6653 = vmatpush3.msra.mxu1 %v1638_v48  ;;  %v1365_v62 = vadd.f32 %v1359_v39, %v1353_v3  ;;  %v1592_v23 = vadd.f32 %v1586_v55, %v1580_v8  ;;  %v1607_v40 = vmul.f32 %v8553_v28, %v7633_v33  ;;  %v1313_v12 = vmul.f32 %v8197_v18, %v7597_v15 }
 0x10d   :  { %v1307_v29 = vadd.f32 %v1301_v16, %v1295_v21  ;;  %v1543_v60 = vadd.f32 %v1537_v26, %v1531_v54  ;;  %v1549_v24 = vmul.f32 %v8127_v56, %v7486_v41  ;;  %6585 = vmatprep.mubr.msk.f32.mxu0 %vm294_vm0, %v8174_v5  ;;  %v1619_v51 = vmul.f32 %v8496_v17, %v7647_v52  ;;  %v8608_v21 = vld [vmem:[%s11813_s0 + $0x1c8] sm:$0xff]  ;;  %v5782_v16 = vld [vmem:[%s11813_s0 + $0x180] sm:$0xff] }
 0x10e   :  { %v1377_v27 = vadd.f32 %v1371_v22, %v1365_v62  ;;  %v1613_v36 = vadd.f32 %v1607_v40, %v1592_v23  ;;  %v1325_v6 = vmul.f32 %v8127_v56, %v7595_v14  ;;  %6615 = vmatprep.mubr.msk.f32.mxu1 %vm294_vm0, %v8174_v5  ;;  %v1561_v2 = vmul.f32 %v8578_v4, %v7546_v57 }
 0x10f   :  { %v1319_v9 = vadd.f32 %v1313_v12, %v1307_v29  ;;  %v1555_v45 = vadd.f32 %v1549_v24, %v1543_v60  ;;  %v1288_v32 = vmul.f32 %v8151_v30, %v7486_v41  ;;  %6586 = vmatmul.mubr.msk.f32.gmra.mxu0 %vm294_vm0, %v8206_v31  ;;  %v1631_v0 = vmul.f32 %v8433_v46, %v7655_v1 }
 0x110   :  { %6624 = vmatprep.subr.mxu0 %v1377_v27  ;;  %v1625_v56 = vadd.f32 %v1619_v51, %v1613_v36  ;;  %v1346_v47 = vmul.f32 %v8578_v4, %v7633_v33  ;;  %v1358_v5 = vmul.f32 %v8523_v34, %v7647_v52  ;;  %v1573_v30 = vmul.f32 %v8523_v34, %v7597_v15 }
 0x111   :  { %6625 = vmatpush3.msra.mxu0 %v1377_v27  ;;  %v1331_v35 = vadd.f32 %v1325_v6, %v1319_v9  ;;  %v1567_v50 = vadd.f32 %v1561_v2, %v1555_v45  ;;  %v1294_v48 = vadd.f32 %v1288_v32, %v8303_v61  ;;  %v1370_v37 = vmul.f32 %v8463_v25, %v7655_v1  ;;  %v8645_v2 = vld [vmem:[%s11813_s0 + $0x228] sm:$0xff] }
 0x112   :  { %v1637_v11 = vadd.f32 %v1631_v0, %v1625_v56  ;;  %v1585_v3 = vmul.f32 %v8463_v25, %v7595_v14  ;;  %v1312_v39 = vmul.f32 %v8249_v63, %v7597_v15  ;;  %6616 = vmatmul.mubr.msk.f32.gmra.mxu1 %vm294_vm0, %v8206_v31  ;;  %v1548_v54 = vmul.f32 %v8197_v18, %v7486_v41 }
 0x113   :  { %v1352_v8 = vadd.f32 %v1346_v47, %v1331_v35  ;;  %v1579_v55 = vadd.f32 %v1573_v30, %v1567_v50  ;;  %v1306_v61 = vadd.f32 %v8316_v7, %v1294_v48  ;;  %6630 = vmatprep.mubr.msk.f32.mxu0 %vm294_vm0, %v8257_v49  ;;  %v1606_v31 = vmul.f32 %v8608_v21, %v7633_v33  ;;  %v5802_v47 = vld [vmem:[%s11813_s0 + $0x1c0] sm:$0xff]  ;;  %v8661_v48 = vld [vmem:[%s11813_s0 + $0x230] sm:$0xff] }
 0x114   :  { %6654 = vmatprep.subr.mxu1 %v1637_v11  ;;  %v1618_v63 = vmul.f32 %v8553_v28, %v7647_v52  ;;  %v1324_v7 = vmul.f32 %v8197_v18, %v7595_v14  ;;  %v1560_v26 = vmul.f32 %v5782_v16, %v7546_v57  ;;  %v1554_v40 = vadd.f32 %v1548_v54, %v8355_v38 }
 0x115   :  { %6655 = vmatpush3.msra.mxu1 %v1637_v11  ;;  %v1364_v62 = vadd.f32 %v1358_v5, %v1352_v8  ;;  %v1591_v22 = vadd.f32 %v1585_v3, %v1579_v55  ;;  %v1318_v23 = vadd.f32 %v1312_v39, %v1306_v61  ;;  %v1630_v29 = vmul.f32 %v8496_v17, %v7655_v1 }
 0x116   :  { %v1345_v12 = vmul.f32 %v5782_v16, %v7633_v33  ;;  %v1796_v60 = vmul.f32 %v8578_v4, %v7548_v58  ;;  %v1572_v24 = vmul.f32 %v8578_v4, %v7597_v15  ;;  %6660 = vmatprep.mubr.msk.f32.mxu1 %vm294_vm0, %v8257_v49  ;;  %v1566_v51 = vadd.f32 %v1560_v26, %v1554_v40 }
 0x117   :  { %v1376_v18 = vadd.f32 %v1370_v37, %v1364_v62  ;;  %v1612_v27 = vadd.f32 %v1606_v31, %v1591_v22  ;;  %v1330_v36 = vadd.f32 %v1324_v7, %v1318_v23  ;;  %v1357_v38 = vmul.f32 %v8578_v4, %v7647_v52  ;;  %v8684_v22 = vld [vmem:[%s11813_s0 + $0x268] sm:$0xff] }
 0x118   :  { %v1369_v6 = vmul.f32 %v8523_v34, %v7655_v1  ;;  %v1790_v9 = vmul.f32 %v5782_v16, %v7488_v42  ;;  %v1825_v45 = vmul.f32 %v8345_v44, %v7546_v57  ;;  %v1578_v56 = vadd.f32 %v1572_v24, %v1566_v51  ;;  %v5829_v16 = vld [vmem:[%s11813_s0 + $0x238] sm:$0xff] }
 0x119   :  { %6626 = vmatprep.subr.mxu0 %v1376_v18  ;;  %v1624_v49 = vadd.f32 %v1618_v63, %v1612_v27  ;;  %v1351_v32 = vadd.f32 %v1345_v12, %v1330_v36  ;;  %v1584_v0 = vmul.f32 %v8523_v34, %v7595_v14  ;;  %v1605_v35 = vmul.f32 %v5802_v47, %v7633_v33 }
 0x11a   :  { %6627 = vmatpush3.msra.mxu0 %v1376_v18  ;;  %v8652_v5 = vadd.f32 %v1796_v60, %v1790_v9  ;;  %v1831_v50 = vadd.f32 %v1825_v45, %v8372_v10  ;;  %v1837_v30 = vmul.f32 %v8361_v59, %v7597_v15  ;;  %v2085_v39 = vmul.f32 %v8645_v2, %v7546_v57  ;;  %v8697_v18 = vld [vmem:[%s11813_s0 + $0x270] sm:$0xff]  ;;  %v8706_v9 = vld [vmem:[%s11815_s2 + $0x8] sm:$0xff] }
 0x11b   :  { %v1636_v11 = vadd.f32 %v1630_v29, %v1624_v49  ;;  %v1363_v37 = vadd.f32 %v1357_v38, %v1351_v32  ;;  %v1590_v3 = vadd.f32 %v1584_v0, %v1578_v56  ;;  %v1617_v8 = vmul.f32 %v8608_v21, %v7647_v52 }
 0x11c   :  { %v1629_v10 = vmul.f32 %v8553_v28, %v7655_v1  ;;  %v8670_v55 = vmul.f32 %v5802_v47, %v7546_v57  ;;  %v1843_v61 = vadd.f32 %v1837_v30, %v1831_v50  ;;  %v2091_v63 = vadd.f32 %v2085_v39, %v8540_v20 }
 0x11d   :  { %6656 = vmatprep.subr.mxu1 %v1636_v11  ;;  %v1375_v54 = vadd.f32 %v1369_v6, %v1363_v37  ;;  %v1611_v31 = vadd.f32 %v1605_v35, %v1590_v3  ;;  %v2097_v7 = vmul.f32 %v8661_v48, %v7597_v15  ;;  %v1870_v62 = vmul.f32 %v8645_v2, %v7633_v33  ;;  %v8722_v35 = vld [vmem:[%s11815_s2 + $0x10] sm:$0xff]  ;;  %v8736_v3 = vld [vmem:[%s11813_s0 + $0x220] sm:$0xff] }
 0x11e   :  { %6657 = vmatpush3.msra.mxu1 %v1636_v11  ;;  %v1855_v26 = vadd.f32 %v8376_v43, %v1843_v61  ;;  %v1794_v23 = vmul.f32 %v8404_v13, %v7488_v42  ;;  %v1800_v20 = vmul.f32 %v8313_v19, %v7548_v58  ;;  %v1882_v29 = vmul.f32 %v8661_v48, %v7647_v52 }
 0x11f   :  { %6628 = vmatprep.subr.mxu0 %v1375_v54  ;;  %v1623_v40 = vadd.f32 %v1617_v8, %v1611_v31  ;;  %v2109_v43 = vmul.f32 %v5829_v16, %v7595_v14  ;;  %v2103_v12 = vadd.f32 %v2097_v7, %v2091_v63  ;;  %v1894_v24 = vmul.f32 %v5829_v16, %v7655_v1 }
 0x120   :  { %6629 = vmatpush3.msra.mxu0 %v1375_v54  ;;  %v1876_v60 = vadd.f32 %v1870_v62, %v1855_v26  ;;  %v1806_v27 = vadd.f32 %v1800_v20, %v1794_v23  ;;  %v1812_v36 = vmul.f32 %v8301_v53, %v7486_v41  ;;  %v2130_v6 = vmul.f32 %v8684_v22, %v7633_v33  ;;  %v5849_v53 = vld [vmem:[%s11813_s0 + $0x278] sm:$0xff] }
 0x121   :  { %v1635_v51 = vadd.f32 %v1629_v10, %v1623_v40  ;;  %v2115_v38 = vadd.f32 %v2109_v43, %v2103_v12  ;;  %6631 = vmatmul.mubr.msk.f32.vlgmr.msra.gmra.mxu0 %vm294_vm0, %v8706_v9  ;;  %v1824_v45 = vmul.f32 %v8433_v46, %v7546_v57  ;;  %v2054_v56 = vmul.f32 %v8433_v46, %v7488_v42 }
 0x122   :  { %v1888_v49 = vadd.f32 %v1882_v29, %v1876_v60  ;;  %v1818_v32 = vadd.f32 %v1812_v36, %v1806_v27  ;;  %v2060_v0 = vmul.f32 %v8345_v44, %v7548_v58  ;;  %6633 = vmatprep.mubr.msk.f32.mxu0 %vm294_vm0, %v8722_v35  ;;  %v8727_v50 = vmul.f32 %v5802_v47, %v7488_v42  ;;  %v8766_v60 = vld [vmem:[%s11813_s0 + $0x260] sm:$0xff] }
 0x123   :  { %6658 = vmatprep.subr.mxu1 %v1635_v51  ;;  %v2136_v30 = vadd.f32 %v2130_v6, %v2115_v38  ;;  %v2142_v11 = vmul.f32 %v8697_v18, %v7647_v52  ;;  %v1836_v37 = vmul.f32 %v8345_v44, %v7597_v15  ;;  %v2072_v47 = vmul.f32 %v8361_v59, %v7486_v41 }
 0x124   :  { %6659 = vmatpush3.msra.mxu1 %v1635_v51  ;;  %v1900_v39 = vadd.f32 %v1894_v24, %v1888_v49  ;;  %v1830_v8 = vadd.f32 %v1824_v45, %v1818_v32  ;;  %v2066_v10 = vadd.f32 %v2060_v0, %v2054_v56  ;;  %v8742_v61 = vmul.f32 %v8608_v21, %v7548_v58  ;;  %v8771_v24 = vld [vmem:[%s11815_s2 + $0x18] sm:$0xff] }
 0x125   :  { %v2148_v16 = vadd.f32 %v2142_v11, %v2136_v30  ;;  %v2154_v54 = vmul.f32 %v5849_v53, %v7655_v1  ;;  %6661 = vmatmul.mubr.msk.f32.vlgmr.msra.gmra.mxu1 %vm294_vm0, %v8706_v9  ;;  %v1848_v31 = vmul.f32 %v8361_v59, %v7595_v14  ;;  %v2084_v26 = vmul.f32 %v8736_v3, %v7546_v57 }
 0x126   :  { %6678 = vmatprep.subr.mxu0 %v1900_v39  ;;  %v1842_v63 = vadd.f32 %v1836_v37, %v1830_v8  ;;  %v2078_v7 = vadd.f32 %v2072_v47, %v2066_v10  ;;  %6663 = vmatprep.mubr.msk.f32.mxu1 %vm294_vm0, %v8722_v35  ;;  %v1869_v23 = vmul.f32 %v8736_v3, %v7633_v33  ;;  %v8803_v8 = vld [vmem:[%s11815_s2 + $0x20] sm:$0xff] }
 0x127   :  { %v2160_v62 = vadd.f32 %v2154_v54, %v2148_v16  ;;  %6679 = vmatpush3.msra.mxu0 %v1900_v39  ;;  %v1793_v20 = vmul.f32 %v8463_v25, %v7488_v42  ;;  %v1799_v59 = vmul.f32 %v8404_v13, %v7548_v58  ;;  %v1881_v29 = vmul.f32 %v8645_v2, %v7647_v52 }
 0x128   :  { %v1854_v40 = vadd.f32 %v1848_v31, %v1842_v63  ;;  %v2090_v43 = vadd.f32 %v2084_v26, %v2078_v7  ;;  %v2096_v12 = vmul.f32 %v8645_v2, %v7597_v15  ;;  %6634 = vmatmul.mubr.msk.f32.gmra.mxu0 %vm294_vm0, %v8771_v24  ;;  %v1893_v27 = vmul.f32 %v8661_v48, %v7655_v1 }
 0x129   :  { %6708 = vmatprep.subr.mxu1 %v2160_v62  ;;  %v2108_v36 = vmul.f32 %v8661_v48, %v7595_v14  ;;  %v1805_v51 = vadd.f32 %v1799_v59, %v1793_v20  ;;  %v1811_v38 = vmul.f32 %v8313_v19, %v7486_v41  ;;  %v2053_v49 = vmul.f32 %v8496_v17, %v7488_v42  ;;  %v8794_v19 = vld [vmem:[%s11813_s0 + $0x218] sm:$0xff] }
 0x12a   :  { %6709 = vmatpush3.msra.mxu1 %v2160_v62  ;;  %v1875_v6 = vadd.f32 %v1869_v23, %v1854_v40  ;;  %v2102_v45 = vadd.f32 %v2096_v12, %v2090_v43  ;;  %v2059_v53 = vmul.f32 %v8433_v46, %v7548_v58  ;;  %v2129_v32 = vmul.f32 %v8766_v60, %v7633_v33 }
 0x12b   :  { %v2141_v56 = vmul.f32 %v8684_v22, %v7647_v52  ;;  %v1817_v48 = vadd.f32 %v1811_v38, %v1805_v51  ;;  %v1823_v0 = vmul.f32 %v8496_v17, %v7546_v57  ;;  %6664 = vmatmul.mubr.msk.f32.gmra.mxu1 %vm294_vm0, %v8771_v24  ;;  %v2071_v39 = vmul.f32 %v8345_v44, %v7486_v41 }
 0x12c   :  { %v1887_v30 = vadd.f32 %v1881_v29, %v1875_v6  ;;  %v2114_v11 = vadd.f32 %v2108_v36, %v2102_v45  ;;  %v2065_v37 = vadd.f32 %v2059_v53, %v2053_v49  ;;  %6636 = vmatprep.mubr.msk.f32.mxu0 %vm294_vm0, %v8803_v8  ;;  %v2153_v10 = vmul.f32 %v8697_v18, %v7655_v1  ;;  %v8820_v18 = vld [vmem:[%s11815_s2 + $0x28] sm:$0xff]  ;;  %v8841_v36 = vld [vmem:[%s11813_s0 + $0x258] sm:$0xff] }
 0x12d   :  { %v1829_v47 = vadd.f32 %v1823_v0, %v1817_v48  ;;  %v1835_v16 = vmul.f32 %v8433_v46, %v7597_v15  ;;  %v1847_v54 = vmul.f32 %v8345_v44, %v7595_v14  ;;  %6666 = vmatprep.mubr.msk.f32.mxu1 %vm294_vm0, %v8803_v8  ;;  %v2083_v26 = vmul.f32 %v8794_v19, %v7546_v57 }
 0x12e   :  { %v1899_v31 = vadd.f32 %v1893_v27, %v1887_v30  ;;  %v2135_v63 = vadd.f32 %v2129_v32, %v2114_v11  ;;  %v2077_v7 = vadd.f32 %v2071_v39, %v2065_v37  ;;  %6637 = vmatmul.mubr.msk.f32.gmra.mxu0 %vm294_vm0, %v8820_v18  ;;  %v1868_v44 = vmul.f32 %v8794_v19, %v7633_v33  ;;  %v8852_v32 = vld [vmem:[%s11815_s2 + $0x30] sm:$0xff] }
 0x12f   :  { %v1841_v62 = vadd.f32 %v1835_v16, %v1829_v47  ;;  %v1792_v23 = vmul.f32 %v8523_v34, %v7488_v42  ;;  %v1798_v20 = vmul.f32 %v8463_v25, %v7548_v58  ;;  %6667 = vmatmul.mubr.msk.f32.gmra.mxu1 %vm294_vm0, %v8820_v18  ;;  %v1880_v40 = vmul.f32 %v8736_v3, %v7647_v52 }
 0x130   :  { %6680 = vmatprep.subr.mxu0 %v1899_v31  ;;  %v2147_v59 = vadd.f32 %v2141_v56, %v2135_v63  ;;  %v2089_v29 = vadd.f32 %v2083_v26, %v2077_v7  ;;  %v2095_v43 = vmul.f32 %v8736_v3, %v7597_v15  ;;  %v1892_v27 = vmul.f32 %v8645_v2, %v7655_v1 }
 0x131   :  { %6681 = vmatpush3.msra.mxu0 %v1899_v31  ;;  %v1853_v12 = vadd.f32 %v1847_v54, %v1841_v62  ;;  %v1804_v51 = vadd.f32 %v1798_v20, %v1792_v23  ;;  %v1810_v38 = vmul.f32 %v8404_v13, %v7486_v41  ;;  %v2107_v49 = vmul.f32 %v8645_v2, %v7595_v14  ;;  %v8859_v13 = vld [vmem:[%s11813_s0 + $0x210] sm:$0xff]  ;;  %v8884_v62 = vld [vmem:[%s11815_s2 + $0x38] sm:$0xff] }
 0x132   :  { %v2159_v6 = vadd.f32 %v2153_v10, %v2147_v59  ;;  %v2101_v45 = vadd.f32 %v2095_v43, %v2089_v29  ;;  %v1822_v53 = vmul.f32 %v8553_v28, %v7546_v57  ;;  %6639 = vmatprep.mubr.msk.f32.mxu0 %vm294_vm0, %v8852_v32  ;;  %v2052_v2 = vmul.f32 %v8553_v28, %v7488_v42  ;;  %v8901_v43 = vld [vmem:[%s11815_s2 + $0x40] sm:$0xff] }
 0x133   :  { %v1874_v56 = vadd.f32 %v1868_v44, %v1853_v12  ;;  %v1816_v48 = vadd.f32 %v1810_v38, %v1804_v51  ;;  %v2058_v0 = vmul.f32 %v8496_v17, %v7548_v58  ;;  %6669 = vmatprep.mubr.msk.f32.mxu1 %vm294_vm0, %v8852_v32  ;;  %v2128_v11 = vmul.f32 %v8841_v36, %v7633_v33 }
 0x134   :  { %6710 = vmatprep.subr.mxu1 %v2159_v6  ;;  %v2113_v30 = vadd.f32 %v2107_v49, %v2101_v45  ;;  %v2140_v37 = vmul.f32 %v8766_v60, %v7647_v52  ;;  %v1834_v39 = vmul.f32 %v8496_v17, %v7597_v15  ;;  %v2070_v54 = vmul.f32 %v8433_v46, %v7486_v41 }
 0x135   :  { %6711 = vmatpush3.msra.mxu1 %v2159_v6  ;;  %v1886_v10 = vadd.f32 %v1880_v40, %v1874_v56  ;;  %v1828_v47 = vadd.f32 %v1822_v53, %v1816_v48  ;;  %v2064_v16 = vadd.f32 %v2058_v0, %v2052_v2  ;;  %v1846_v63 = vmul.f32 %v8433_v46, %v7595_v14 }
 0x136   :  { %v2134_v31 = vadd.f32 %v2128_v11, %v2113_v30  ;;  %v2082_v7 = vmul.f32 %v8859_v13, %v7546_v57  ;;  %v1791_v26 = vmul.f32 %v8578_v4, %v7488_v42  ;;  %6640 = vmatmul.mubr.msk.f32.gmra.mxu0 %vm294_vm0, %v8884_v62  ;;  %v1797_v46 = vmul.f32 %v8523_v34, %v7548_v58 }
 0x137   :  { %v1898_v44 = vadd.f32 %v1892_v27, %v1886_v10  ;;  %v1840_v23 = vadd.f32 %v1834_v39, %v1828_v47  ;;  %v2076_v20 = vadd.f32 %v2070_v54, %v2064_v16  ;;  %6670 = vmatmul.mubr.msk.f32.gmra.mxu1 %vm294_vm0, %v8884_v62  ;;  %v2152_v4 = vmul.f32 %v8684_v22, %v7655_v1  ;;  %v8908_v22 = vld [vmem:[%s11813_s0 + $0x250] sm:$0xff]  ;;  %v8946_v54 = vld [vmem:[%s11815_s2 + $0x48] sm:$0xff] }
 0x138   :  { %v2146_v59 = vadd.f32 %v2140_v37, %v2134_v31  ;;  %v1867_v40 = vmul.f32 %v8859_v13, %v7633_v33  ;;  %v2094_v29 = vmul.f32 %v8794_v19, %v7597_v15  ;;  %6642 = vmatprep.mubr.msk.f32.mxu0 %vm294_vm0, %v8901_v43  ;;  %v1803_v51 = vadd.f32 %v1797_v46, %v1791_v26  ;;  %v8963_v46 = vld [vmem:[%s11815_s2 + $0x50] sm:$0xff] }
 0x139   :  { %6682 = vmatprep.subr.mxu0 %v1898_v44  ;;  %v1852_v12 = vadd.f32 %v1846_v63, %v1840_v23  ;;  %v2088_v27 = vadd.f32 %v2082_v7, %v2076_v20  ;;  %v1809_v38 = vmul.f32 %v8463_v25, %v7486_v41  ;;  %v2062_v6 = vadd.f32 %v8742_v61, %v8727_v50 }
 0x13a   :  { %v2158_v45 = vadd.f32 %v2152_v4, %v2146_v59  ;;  %6683 = vmatpush3.msra.mxu0 %v1898_v44  ;;  %v1879_v49 = vmul.f32 %v8794_v19, %v7647_v52  ;;  %v2106_v53 = vmul.f32 %v8736_v3, %v7595_v14  ;;  %v1821_v0 = vmul.f32 %v8608_v21, %v7546_v57 }
 0x13b   :  { %v1873_v56 = vadd.f32 %v1867_v40, %v1852_v12  ;;  %v2100_v48 = vadd.f32 %v2094_v29, %v2088_v27  ;;  %v1815_v2 = vadd.f32 %v1809_v38, %v1803_v51  ;;  %6672 = vmatprep.mubr.msk.f32.mxu1 %vm294_vm0, %v8901_v43  ;;  %v1891_v25 = vmul.f32 %v8736_v3, %v7655_v1  ;;  %v8935_v3 = vld [vmem:[%s11813_s0 + $0x208] sm:$0xff]  ;;  %v5822_v40 = vld [vmem:[%s11813_s0 + $0x200] sm:$0xff] }
 0x13c   :  { %6712 = vmatprep.subr.mxu1 %v2158_v45  ;;  %v2127_v50 = vmul.f32 %v8908_v22, %v7633_v33  ;;  %v2051_v61 = vmul.f32 %v8608_v21, %v7488_v42  ;;  %v2057_v30 = vmul.f32 %v8553_v28, %v7548_v58  ;;  %v1833_v10 = vmul.f32 %v8553_v28, %v7597_v15  ;;  %v5843_v51 = vld [vmem:[%s11813_s0 + $0x248] sm:$0xff] }
 0x13d   :  { %6713 = vmatpush3.msra.mxu1 %v2158_v45  ;;  %v1885_v11 = vadd.f32 %v1879_v49, %v1873_v56  ;;  %v2112_v37 = vadd.f32 %v2106_v53, %v2100_v48  ;;  %v1827_v39 = vadd.f32 %v1821_v0, %v1815_v2  ;;  %v2139_v47 = vmul.f32 %v8841_v36, %v7647_v52 }
 0x13e   :  { %v1845_v42 = vmul.f32 %v8496_v17, %v7595_v14  ;;  %v2063_v16 = vadd.f32 %v2057_v30, %v2051_v61  ;;  %v2069_v58 = vmul.f32 %v8496_v17, %v7486_v41  ;;  %6643 = vmatmul.mubr.msk.f32.gmra.mxu0 %vm294_vm0, %v8946_v54  ;;  %v1808_v26 = vmul.f32 %v8523_v34, %v7486_v41  ;;  %v7255_v61 = vld [vmem:[%s11815_s2] sm:$0xff] }
 0x13f   :  { %v1897_v31 = vadd.f32 %v1891_v25, %v1885_v11  ;;  %v2133_v63 = vadd.f32 %v2127_v50, %v2112_v37  ;;  %v1839_v7 = vadd.f32 %v1833_v10, %v1827_v39  ;;  %6673 = vmatmul.mubr.msk.f32.gmra.mxu1 %vm294_vm0, %v8946_v54  ;;  %v2151_v17 = vmul.f32 %v8766_v60, %v7655_v1 }
 0x140   :  { %v1866_v44 = vmul.f32 %v8935_v3, %v7633_v33  ;;  %v2075_v23 = vadd.f32 %v2069_v58, %v2063_v16  ;;  %v2081_v20 = vmul.f32 %v8935_v3, %v7546_v57  ;;  %6645 = vmatprep.mubr.msk.f32.mxu0 %vm294_vm0, %v8963_v46  ;;  %v1878_v60 = vmul.f32 %v8859_v13, %v7647_v52 }
 0x141   :  { %6684 = vmatprep.subr.mxu0 %v1897_v31  ;;  %v2145_v34 = vadd.f32 %v2139_v47, %v2133_v63  ;;  %v1851_v59 = vadd.f32 %v1845_v42, %v1839_v7  ;;  %v1814_v4 = vadd.f32 %v1808_v26, %v8652_v5  ;;  %v1890_v29 = vmul.f32 %v8794_v19, %v7655_v1 }
 0x142   :  { %6685 = vmatpush3.msra.mxu0 %v1897_v31  ;;  %v2087_v12 = vadd.f32 %v2081_v20, %v2075_v23  ;;  %v2093_v27 = vmul.f32 %v8859_v13, %v7597_v15  ;;  %v2068_v38 = vmul.f32 %v8553_v28, %v7486_v41  ;;  %v1832_v53 = vmul.f32 %v8608_v21, %v7597_v15  ;;  %v8993_v41 = vld [vmem:[%s11815_s2 + $0x58] sm:$0xff] }
 0x143   :  { %v2157_v5 = vadd.f32 %v2151_v17, %v2145_v34  ;;  %v1872_v45 = vadd.f32 %v1866_v44, %v1851_v59  ;;  %v1826_v49 = vadd.f32 %v8670_v55, %v1814_v4  ;;  %6675 = vmatprep.mubr.msk.f32.mxu1 %vm294_vm0, %v8963_v46  ;;  %v2105_v48 = vmul.f32 %v8794_v19, %v7595_v14 }
 0x144   :  { %v2099_v56 = vadd.f32 %v2093_v27, %v2087_v12  ;;  %v2080_v2 = vmul.f32 %v5822_v40, %v7546_v57  ;;  %v2074_v0 = vadd.f32 %v2068_v38, %v2062_v6  ;;  %6646 = vmatmul.mubr.msk.f32.gmra.mxu0 %vm294_vm0, %v8993_v41  ;;  %v2126_v55 = vmul.f32 %v5843_v51, %v7633_v33 }
 0x145   :  { %6714 = vmatprep.subr.mxu1 %v2157_v5  ;;  %v1884_v21 = vadd.f32 %v1878_v60, %v1872_v45  ;;  %v1838_v25 = vadd.f32 %v1832_v53, %v1826_v49  ;;  %v1844_v50 = vmul.f32 %v8553_v28, %v7595_v14  ;;  %v2092_v6 = vmul.f32 %v8935_v3, %v7597_v15  ;;  %v5842_v28 = vld [vmem:[%s11813_s0 + $0x240] sm:$0xff] }
 0x146   :  { %6715 = vmatpush3.msra.mxu1 %v2157_v5  ;;  %v2111_v19 = vadd.f32 %v2105_v48, %v2099_v56  ;;  %v2086_v57 = vadd.f32 %v2080_v2, %v2074_v0  ;;  %6690 = vmatprep.mubr.msk.f32.mxu0 %vm294_vm0, %v7255_v61  ;;  %v1865_v37 = vmul.f32 %v5822_v40, %v7633_v33 }
 0x147   :  { %v1896_v30 = vadd.f32 %v1890_v29, %v1884_v21  ;;  %v1850_v11 = vadd.f32 %v1844_v50, %v1838_v25  ;;  %6676 = vmatmul.mubr.msk.f32.gmra.mxu1 %vm294_vm0, %v8993_v41  ;;  %v2138_v15 = vmul.f32 %v8908_v22, %v7647_v52  ;;  %v2104_v47 = vmul.f32 %v8859_v13, %v7595_v14 }
 0x148   :  { %v2132_v39 = vadd.f32 %v2126_v55, %v2111_v19  ;;  %v2098_v10 = vadd.f32 %v2092_v6, %v2086_v57  ;;  %6720 = vmatprep.mubr.msk.f32.mxu1 %vm294_vm0, %v7255_v61  ;;  %v1877_v16 = vmul.f32 %v8935_v3, %v7647_v52  ;;  %v2150_v31 = vmul.f32 %v8841_v36, %v7655_v1 }
 0x149   :  { %6686 = vmatprep.subr.mxu0 %v1896_v30  ;;  %v1871_v42 = vadd.f32 %v1865_v37, %v1850_v11  ;;  %v2125_v7 = vmul.f32 %v5842_v28, %v7633_v33  ;;  %v1889_v17 = vmul.f32 %v8859_v13, %v7655_v1  ;;  %v2137_v23 = vmul.f32 %v5843_v51, %v7647_v52  ;;  %v9071_v33 = vpop.permute.xlu1 %463  ;;  %v9073_v52 = vpop.permute.xlu0 %458 }
 0x14a   :  { %v2144_v58 = vadd.f32 %v2138_v15, %v2132_v39  ;;  %6687 = vmatpush3.msra.mxu0 %v1896_v30  ;;  %v2110_v63 = vadd.f32 %v2104_v47, %v2098_v10  ;;  %v2149_v3 = vmul.f32 %v8908_v22, %v7655_v1 }
 0x14b   :  { %v1883_v26 = vadd.f32 %v1877_v16, %v1871_v42 }
 0x14c   :  { %v2156_v14 = vadd.f32 %v2150_v31, %v2144_v58  ;;  %v2131_v44 = vadd.f32 %v2125_v7, %v2110_v63 }
 0x14d   :  { %v1895_v20 = vadd.f32 %v1889_v17, %v1883_v26  ;;  %v9075_v1 = vpop.permute.xlu1 %2317 }
 0x14e   :  { %6716 = vmatprep.subr.mxu1 %v2156_v14  ;;  %v2143_v34 = vadd.f32 %v2137_v23, %v2131_v44  ;;  %11964 = vst [vmem:[#allocation5_spill] sm:$0xff] %v9075_v1 }
 0x14f   :  { %6717 = vmatpush3.msra.mxu1 %v2156_v14  ;;  %6688 = vmatprep.subr.mxu0 %v1895_v20 }
 0x150   :  { %v2155_v36 = vadd.f32 %v2149_v3, %v2143_v34  ;;  %6689 = vmatpush3.msra.mxu0 %v1895_v20 }
 0x151   :  { %6691 = vmatmul.mubr.msk.f32.vlgmr.msra.gmra.mxu0 %vm294_vm0, %v8706_v9 }
 0x152   :  { %6718 = vmatprep.subr.mxu1 %v2155_v36  ;;  %6693 = vmatprep.mubr.msk.f32.mxu0 %vm294_vm0, %v8722_v35 }
 0x153   :  { %6719 = vmatpush3.msra.mxu1 %v2155_v36 }
 0x154   :  { %6721 = vmatmul.mubr.msk.f32.vlgmr.msra.gmra.mxu1 %vm294_vm0, %v8706_v9 }
 0x155   :  { %6723 = vmatprep.mubr.msk.f32.mxu1 %vm294_vm0, %v8722_v35  ;;  %6694 = vmatmul.mubr.msk.f32.gmra.mxu0 %vm294_vm0, %v8771_v24  ;;  %v9077_v35 = vpop.permute.xlu0 %2335 }
 0x156   :  { %6696 = vmatprep.mubr.msk.f32.mxu0 %vm294_vm0, %v8803_v8  ;;  %11965 = vst [vmem:[#allocation6_spill] sm:$0xff] %v9077_v35 }
 0x158   :  { %6724 = vmatmul.mubr.msk.f32.gmra.mxu1 %vm294_vm0, %v8771_v24  ;;  %v9079_v24 = vpop.permute.xlu1 %2312 }
 0x159   :  { %6726 = vmatprep.mubr.msk.f32.mxu1 %vm294_vm0, %v8803_v8  ;;  %6697 = vmatmul.mubr.msk.f32.gmra.mxu0 %vm294_vm0, %v8820_v18  ;;  %11966 = vst [vmem:[#allocation7_spill] sm:$0xff] %v9079_v24 }
 0x15a   :  { %6699 = vmatprep.mubr.msk.f32.mxu0 %vm294_vm0, %v8852_v32 }
 0x15c   :  { %6727 = vmatmul.mubr.msk.f32.gmra.mxu1 %vm294_vm0, %v8820_v18  ;;  %v9083_v22 = vpop.permute.xlu1 %2361 }
 0x15d   :  { %6729 = vmatprep.mubr.msk.f32.mxu1 %vm294_vm0, %v8852_v32  ;;  %6700 = vmatmul.mubr.msk.f32.gmra.mxu0 %vm294_vm0, %v8884_v62  ;;  %v9081_v32 = vpop.permute.xlu0 %2330  ;;  %11968 = vst [vmem:[#allocation9_spill] sm:$0xff] %v9083_v22 }
 0x15e   :  { %6702 = vmatprep.mubr.msk.f32.mxu0 %vm294_vm0, %v8901_v43  ;;  %11967 = vst [vmem:[#allocation8_spill] sm:$0xff] %v9081_v32 }
 0x160   :  { %6730 = vmatmul.mubr.msk.f32.gmra.mxu1 %vm294_vm0, %v8884_v62 }
 0x161   :  { %6732 = vmatprep.mubr.msk.f32.mxu1 %vm294_vm0, %v8901_v43  ;;  %6703 = vmatmul.mubr.msk.f32.gmra.mxu0 %vm294_vm0, %v8946_v54  ;;  %v9091_v51 = vpop.permute.xlu0 %2356 }
 0x162   :  { %6705 = vmatprep.mubr.msk.f32.mxu0 %vm294_vm0, %v8963_v46 }
 0x164   :  { %6733 = vmatmul.mubr.msk.f32.gmra.mxu1 %vm294_vm0, %v8946_v54 }
 0x165   :  { %6735 = vmatprep.mubr.msk.f32.mxu1 %vm294_vm0, %v8963_v46  ;;  %6706 = vmatmul.mubr.msk.f32.gmra.mxu0 %vm294_vm0, %v8993_v41  ;;  %v9100_v30 = vpop.permute.xlu0 %2382 }
 0x166   :  { %11970 = vst [vmem:[#allocation11_spill] sm:$0xff] %v9100_v30 }
 0x168   :  { %6736 = vmatmul.mubr.msk.f32.gmra.mxu1 %vm294_vm0, %v8993_v41  ;;  %v9096_v41 = vpop.permute.xlu1 %2387 }
 0x169   :  { %11969 = vst [vmem:[#allocation10_spill] sm:$0xff] %v9096_v41 }
 0x16c   :  { %v9112_v17 = vpop.permute.xlu1 %2413 }
 0x16d   :  { %11971 = vst [vmem:[#allocation12_spill] sm:$0xff] %v9112_v17 }
 0x17b   :  { %v6512_v9 = vpop.f32.mrf.mxu0 }
 0x17c   :  { %v467_v54 = vadd.f32 %v6512_v9, %v9071_v33 }
 0x17d   :  { %v397_v8 = vpop.f32.mrf.mxu0 }
 0x17e   :  { %v466_v59 = vadd.f32 %v9073_v52, %v397_v8  ;;  %v479_v45 = vmax.f32 %v467_v54, 0.0 }
 0x180   :  { %v6542_v18 = vpop.f32.mrf.mxu1  ;;  %v478_v56 = vmax.f32 %v466_v59, 0.0  ;;  %v2321_v6 = vmul.f32 %v9075_v1, %v479_v45 }
 0x181   :  { %v727_v40 = vadd.f32 %v6542_v18, %v9071_v33 }
 0x182   :  { %v667_v13 = vpop.f32.mrf.mxu1  ;;  %v2320_v11 = vmul.f32 %v9079_v24, %v478_v56 }
 0x183   :  { %v6515_v62 = vpop.f32.mrf.mxu0  ;;  %v726_v38 = vadd.f32 %v667_v13, %v9073_v52  ;;  %v739_v21 = vmax.f32 %v727_v40, 0.0 }
 0x184   :  { %v6545_v43 = vpop.f32.mrf.mxu1  ;;  %v469_v60 = vadd.f32 %v6515_v62, %v9071_v33 }
 0x185   :  { %v407_v46 = vpop.f32.mrf.mxu0  ;;  %v729_v29 = vadd.f32 %v6545_v43, %v9071_v33  ;;  %v738_v19 = vmax.f32 %v726_v38, 0.0  ;;  %v2391_v10 = vmul.f32 %v9096_v41, %v739_v21  ;;  %v2963_v47 = vmul.f32 %v9075_v1, %v739_v21 }
 0x186   :  { %v677_v4 = vpop.f32.mrf.mxu1  ;;  %v468_v12 = vadd.f32 %v9073_v52, %v407_v46  ;;  %v481_v48 = vmax.f32 %v469_v60, 0.0  ;;  %v9128_v46 = vpop.permute.xlu0 %2408 }
 0x187   :  { %v6518_v27 = vpop.f32.mrf.mxu0  ;;  %v728_v2 = vadd.f32 %v677_v4, %v9073_v52  ;;  %v741_v55 = vmax.f32 %v729_v29, 0.0  ;;  %v2390_v31 = vmul.f32 %v9100_v30, %v738_v19  ;;  %v2962_v63 = vmul.f32 %v9079_v24, %v738_v19  ;;  %11972 = vst [vmem:[#allocation13_spill] sm:$0xff] %v9128_v46 }
 0x188   :  { %v6548_v5 = vpop.f32.mrf.mxu1  ;;  %v471_v49 = vadd.f32 %v6518_v27, %v9071_v33  ;;  %v480_v25 = vmax.f32 %v468_v12, 0.0  ;;  %v2339_v37 = vmul.f32 %v9077_v35, %v481_v48  ;;  %v2323_v7 = vmul.f32 %v9075_v1, %v481_v48 }
 0x189   :  { %v417_v53 = vpop.f32.mrf.mxu0  ;;  %v740_v28 = vmax.f32 %v728_v2, 0.0  ;;  %v2971_v42 = vmul.f32 %v9077_v35, %v741_v55  ;;  %v2393_v14 = vmul.f32 %v9096_v41, %v741_v55  ;;  %v731_v23 = vadd.f32 %v6548_v5, %v9071_v33 }
 0x18a   :  { %v687_v0 = vpop.f32.mrf.mxu1  ;;  %v470_v57 = vadd.f32 %v9073_v52, %v417_v53  ;;  %v483_v61 = vmax.f32 %v471_v49, 0.0  ;;  %v2338_v16 = vmul.f32 %v9081_v32, %v480_v25  ;;  %v2347_v34 = vadd.f32 %v2339_v37, %v2321_v6 }
 0x18b   :  { %v6521_v50 = vpop.f32.mrf.mxu0  ;;  %v9118_v3 = vmul.f32 %v9112_v17, %v741_v55  ;;  %v9121_v36 = vmul.f32 %v9075_v1, %v741_v55  ;;  %v2970_v9 = vmul.f32 %v9081_v32, %v740_v28  ;;  %v9124_v18 = vadd.f32 %v2971_v42, %v2963_v47 }
 0x18c   :  { %v473_v39 = vadd.f32 %v6521_v50, %v9071_v33  ;;  %v482_v26 = vmax.f32 %v470_v57, 0.0  ;;  %v2365_v44 = vmul.f32 %v9083_v22, %v483_v61  ;;  %v2322_v13 = vmul.f32 %v9079_v24, %v480_v25 }
 0x18d   :  { %v427_v58 = vpop.f32.mrf.mxu0  ;;  %v2346_v62 = vadd.f32 %v2338_v16, %v2320_v11  ;;  %v2341_v43 = vmul.f32 %v9077_v35, %v483_v61  ;;  %v9131_v59 = vmul.f32 %v9100_v30, %v740_v28  ;;  %v9137_v29 = vmul.f32 %v9128_v46, %v740_v28 }
 0x18e   :  { %v6551_v15 = vpop.f32.mrf.mxu1  ;;  %v485_v20 = vmax.f32 %v473_v39, 0.0  ;;  %v2364_v60 = vmul.f32 %v9091_v51, %v482_v26  ;;  %v472_v4 = vadd.f32 %v9073_v52, %v427_v58  ;;  %v2373_v12 = vadd.f32 %v2365_v44, %v2347_v34 }
 0x18f   :  { %v9139_v27 = vmax.f32 %v731_v23, 0.0  ;;  %v9143_v45 = vmul.f32 %v9079_v24, %v740_v28  ;;  %v9145_v49 = vadd.f32 %v2970_v9, %v2962_v63  ;;  %v2325_v53 = vmul.f32 %v9075_v1, %v483_v61 }
 0x190   :  { %v697_v8 = vpop.f32.mrf.mxu1  ;;  %v2367_v38 = vmul.f32 %v9083_v22, %v485_v20  ;;  %v730_v56 = vadd.f32 %v687_v0, %v9073_v52  ;;  %v2349_v2 = vadd.f32 %v2341_v43, %v2323_v7  ;;  %v2340_v21 = vmul.f32 %v9081_v32, %v482_v26 }
 0x191   :  { %v733_v55 = vadd.f32 %v6551_v15, %v9071_v33  ;;  %v2372_v50 = vadd.f32 %v2364_v60, %v2346_v62  ;;  %v2343_v19 = vmul.f32 %v9077_v35, %v485_v20  ;;  %v484_v57 = vmax.f32 %v472_v4, 0.0 }
 0x192   :  { %v9153_v11 = vadd.f32 %v2391_v10, %v2373_v12  ;;  %v9157_v61 = vmul.f32 %v9077_v35, %v9139_v27  ;;  %v2324_v0 = vmul.f32 %v9079_v24, %v482_v26  ;;  %v2375_v37 = vadd.f32 %v2367_v38, %v2349_v2 }
 0x193   :  { %v6524_v54 = vpop.f32.mrf.mxu0  ;;  %v9160_v28 = vmax.f32 %v730_v56, 0.0  ;;  %v2419_v39 = vmul.f32 %v9112_v17, %v9139_v27  ;;  %v732_v15 = vadd.f32 %v697_v8, %v9073_v52  ;;  %v2348_v16 = vadd.f32 %v2340_v21, %v2322_v13 }
 0x194   :  { %v475_v40 = vadd.f32 %v6524_v54, %v9071_v33  ;;  %v6554_v48 = vpop.f32.mrf.mxu1  ;;  %v9165_v58 = vmax.f32 %v733_v55, 0.0  ;;  %v9169_v44 = vadd.f32 %v2390_v31, %v2372_v50  ;;  %v2327_v26 = vmul.f32 %v9075_v1, %v485_v20 }
 0x195   :  { %v437_v5 = vpop.f32.mrf.mxu0  ;;  %v735_v63 = vadd.f32 %v6554_v48, %v9071_v33  ;;  %v2342_v23 = vmul.f32 %v9081_v32, %v484_v57  ;;  %v2351_v34 = vadd.f32 %v2343_v19, %v2325_v53  ;;  %v2401_v9 = vadd.f32 %v2393_v14, %v2375_v37 }
 0x196   :  { %v487_v25 = vmax.f32 %v475_v40, 0.0  ;;  %v474_v6 = vadd.f32 %v9073_v52, %v437_v5  ;;  %v707_v42 = vpop.f32.mrf.mxu1  ;;  %v2366_v8 = vmul.f32 %v9091_v51, %v484_v57  ;;  %v9176_v43 = vmax.f32 %v732_v15, 0.0 }
 0x197   :  { %v2395_v54 = vmul.f32 %v9096_v41, %v9139_v27  ;;  %v734_v60 = vadd.f32 %v707_v42, %v9073_v52  ;;  %v747_v40 = vmax.f32 %v735_v63, 0.0  ;;  %v2975_v14 = vmul.f32 %v9077_v35, %v9165_v58 }
 0x198   :  { %v486_v47 = vmax.f32 %v474_v6, 0.0  ;;  %v2369_v10 = vmul.f32 %v9083_v22, %v487_v25  ;;  %v2345_v62 = vmul.f32 %v9077_v35, %v487_v25  ;;  %v2326_v5 = vmul.f32 %v9079_v24, %v484_v57 }
 0x199   :  { %v2421_v53 = vmul.f32 %v9112_v17, %v9165_v58  ;;  %v2967_v56 = vmul.f32 %v9075_v1, %v9139_v27  ;;  %v2350_v48 = vadd.f32 %v2342_v23, %v2324_v0  ;;  %v9189_v2 = vadd.f32 %v2419_v39, %v2401_v9 }
 0x19a   :  { %v2368_v31 = vmul.f32 %v9091_v51, %v486_v47  ;;  %v2377_v4 = vadd.f32 %v2369_v10, %v2351_v34  ;;  %v2374_v21 = vadd.f32 %v2366_v8, %v2348_v16  ;;  %v2353_v55 = vadd.f32 %v2345_v62, %v2327_v26  ;;  %v9208_v8 = vpop.permute.xlu1 %2439 }
 0x19b   :  { %v6527_v7 = vpop.f32.mrf.mxu0  ;;  %v746_v19 = vmax.f32 %v734_v60, 0.0  ;;  %v2983_v42 = vadd.f32 %v2975_v14, %v2967_v56  ;;  %v2991_v10 = vmul.f32 %v9083_v22, %v747_v40  ;;  %v2394_v0 = vmul.f32 %v9100_v30, %v9160_v28 }
 0x19c   :  { %v477_v13 = vadd.f32 %v6527_v7, %v9071_v33  ;;  %v2376_v50 = vadd.f32 %v2368_v31, %v2350_v48  ;;  %v2403_v15 = vadd.f32 %v2395_v54, %v2377_v4  ;;  %v2344_v39 = vmul.f32 %v9081_v32, %v486_v47  ;;  %v9217_v4 = vpop.permute.xlu0 %2434 }
 0x19d   :  { %v447_v38 = vpop.f32.mrf.mxu0  ;;  %v2974_v16 = vmul.f32 %v9081_v32, %v9176_v43  ;;  %v9201_v26 = vadd.f32 %v9131_v59, %v2374_v21  ;;  %v2966_v23 = vmul.f32 %v9079_v24, %v9160_v28  ;;  %v2397_v34 = vmul.f32 %v9096_v41, %v9165_v58  ;;  %11973 = vst [vmem:[#allocation14_spill] sm:$0xff] %v9217_v4 }
 0x19e   :  { %v6557_v20 = vpop.f32.mrf.mxu1  ;;  %v489_v12 = vmax.f32 %v477_v13, 0.0  ;;  %v476_v37 = vadd.f32 %v9073_v52, %v447_v38  ;;  %v2402_v62 = vadd.f32 %v2394_v0, %v2376_v50  ;;  %v2990_v47 = vmul.f32 %v9091_v51, %v746_v19 }
 0x19f   :  { %v737_v6 = vadd.f32 %v6557_v20, %v9071_v33  ;;  %v2429_v31 = vadd.f32 %v2421_v53, %v2403_v15  ;;  %v2447_v59 = vmul.f32 %v9208_v8, %v747_v40  ;;  %v9213_v60 = vadd.f32 %v2991_v10, %v2983_v42  ;;  %v72_v42 = vld [vmem:[%s11818_s5] sm:$0xff] }
 0x1a0   :  { %v2371_v25 = vmul.f32 %v9083_v22, %v489_v12  ;;  %v717_v57 = vpop.f32.mrf.mxu1  ;;  %v488_v7 = vmax.f32 %v476_v37, 0.0  ;;  %v2420_v20 = vmul.f32 %v9128_v46, %v9176_v43  ;;  %v2352_v14 = vadd.f32 %v2344_v39, %v2326_v5  ;;  %6754 = vmatprep.mubr.msk.f32.mxu0 %vm2536_vm1, %v72_v42  ;;  %6818 = vmatprep.mubr.msk.f32.mxu1 %vm2536_vm1, %v72_v42 }
 0x1a1   :  { %v736_v9 = vadd.f32 %v717_v57, %v9073_v52  ;;  %v749_v13 = vmax.f32 %v737_v6, 0.0  ;;  %v2982_v12 = vadd.f32 %v2974_v16, %v2966_v23  ;;  %v2977_v56 = vmul.f32 %v9077_v35, %v747_v40 }
 0x1a2   :  { %v2379_v63 = vadd.f32 %v2371_v25, %v2353_v55  ;;  %v2370_v54 = vmul.f32 %v9091_v51, %v488_v7  ;;  %v2446_v48 = vmul.f32 %v9217_v4, %v746_v19  ;;  %v2423_v21 = vmul.f32 %v9112_v17, %v747_v40 }
 0x1a3   :  { %v2969_v53 = vmul.f32 %v9075_v1, %v9165_v58  ;;  %v748_v55 = vmax.f32 %v736_v9, 0.0  ;;  %v2428_v25 = vadd.f32 %v2420_v20, %v2402_v62  ;;  %v9224_v50 = vadd.f32 %v2990_v47, %v2982_v12 }
 0x1a4   :  { %v2405_v38 = vadd.f32 %v2397_v34, %v2379_v63  ;;  %v2993_v6 = vmul.f32 %v9083_v22, %v749_v13  ;;  %v2378_v37 = vadd.f32 %v2370_v54, %v2352_v14  ;;  %v2449_v5 = vmul.f32 %v9208_v8, %v749_v13 }
 0x1a5   :  { %11974 = vst [vmem:[#allocation15_spill] sm:$0xff] %v9224_v50  ;;  %v2396_v57 = vmul.f32 %v9100_v30, %v9176_v43  ;;  %v2976_v15 = vmul.f32 %v9081_v32, %v746_v19  ;;  %v2425_v40 = vadd.f32 %v9118_v3, %v9153_v11  ;;  %v2985_v0 = vadd.f32 %v2977_v56, %v2969_v53 }
 0x1a6   :  { %v2431_v10 = vadd.f32 %v2423_v21, %v2405_v38  ;;  %v2987_v39 = vmul.f32 %v9083_v22, %v9139_v27  ;;  %v2986_v16 = vmul.f32 %v9091_v51, %v9160_v28  ;;  %v2968_v63 = vmul.f32 %v9079_v24, %v9176_v43 }
 0x1a7   :  { %v2992_v7 = vmul.f32 %v9091_v51, %v748_v55  ;;  %v2443_v3 = vmul.f32 %v9208_v8, %v9139_v27  ;;  %v9245_v11 = vadd.f32 %v2993_v6, %v2985_v0  ;;  %v2404_v34 = vadd.f32 %v2396_v57, %v2378_v37  ;;  %v9275_v57 = vpop.permute.xlu1 %2465 }
 0x1a8   :  { %v2422_v9 = vmul.f32 %v9128_v46, %v746_v19  ;;  %v2448_v47 = vmul.f32 %v9217_v4, %v748_v55  ;;  %v2984_v13 = vadd.f32 %v2976_v15, %v2968_v63  ;;  %v9251_v14 = vadd.f32 %v2447_v59, %v2429_v31 }
 0x1a9   :  { %v2451_v54 = vadd.f32 %v2443_v3, %v2425_v40  ;;  %v9254_v27 = vadd.f32 %v2449_v5, %v2431_v10  ;;  %v2995_v12 = vadd.f32 %v2987_v39, %v9124_v18  ;;  %v2994_v19 = vadd.f32 %v2986_v16, %v9145_v49 }
 0x1aa   :  { %v9259_v56 = vadd.f32 %v2992_v7, %v2984_v13  ;;  %v9261_v53 = vadd.f32 %v2446_v48, %v2428_v25  ;;  %v2418_v55 = vmul.f32 %v9128_v46, %v9160_v28  ;;  %v2430_v31 = vadd.f32 %v2422_v9, %v2404_v34 }
 0x1ab   :  { %v2445_v6 = vmul.f32 %v9208_v8, %v9165_v58  ;;  %v2424_v18 = vadd.f32 %v9137_v29, %v9169_v44  ;;  %v2972_v37 = vmul.f32 %v9081_v32, %v9160_v28  ;;  %v2444_v25 = vmul.f32 %v9217_v4, %v9176_v43 }
 0x1ac   :  { %v2426_v48 = vadd.f32 %v2418_v55, %v9201_v26  ;;  %v2442_v40 = vmul.f32 %v9217_v4, %v9160_v28  ;;  %v2981_v29 = vadd.f32 %v9157_v61, %v9121_v36  ;;  %v2989_v44 = vmul.f32 %v9083_v22, %v9165_v58  ;;  %v9291_v28 = vpop.permute.xlu0 %2460 }
 0x1ad   :  { %v6572_v23 = vpop.f32.mrf.mxu0  ;;  %v2988_v42 = vmul.f32 %v9091_v51, %v9176_v43  ;;  %v9289_v16 = vadd.f32 %v2445_v6, %v9189_v2  ;;  %11975 = vst [vmem:[#allocation16_spill] sm:$0xff] %v9291_v28  ;;  %v9293_v63 = vadd.f32 %v2448_v47, %v2430_v31  ;;  %v2980_v43 = vadd.f32 %v2972_v37, %v9143_v45 }
 0x1ae   :  { %v987_v62 = vadd.f32 %v6572_v23, %v9071_v33  ;;  %v2450_v58 = vadd.f32 %v2442_v40, %v2424_v18  ;;  %v9299_v9 = vadd.f32 %v2444_v25, %v2426_v48  ;;  %v9303_v47 = vadd.f32 %v2989_v44, %v2981_v29 }
 0x1af   :  { %v927_v20 = vpop.f32.mrf.mxu0 }
 0x1b0   :  { %v986_v38 = vadd.f32 %v927_v20, %v9073_v52  ;;  %v999_v21 = vmax.f32 %v987_v62, 0.0  ;;  %11977 = vst [vmem:[#allocation18_spill] sm:$0xff] %v9303_v47  ;;  %v9305_v20 = vadd.f32 %v2988_v42, %v2980_v43  ;;  %v9350_v43 = vpop.permute.xlu1 %2491 }
 0x1b1   :  { %11991 = vst [vmem:[#allocation32_spill] sm:$0xff] %v9350_v43 }
 0x1b2   :  { %v6602_v59 = vpop.f32.mrf.mxu1  ;;  %v998_v5 = vmax.f32 %v986_v38, 0.0  ;;  %v2469_v26 = vmul.f32 %v9275_v57, %v999_v21  ;;  %v3003_v10 = vmul.f32 %v9096_v41, %v999_v21  ;;  %11978 = vst [vmem:[#allocation19_spill] sm:$0xff] %v9305_v20  ;;  %v3388_v45 = vmul.f32 %v9075_v1, %v999_v21 }
 0x1b3   :  { %v1247_v49 = vadd.f32 %v6602_v59, %v9071_v33 }
 0x1b4   :  { %v1187_v15 = vpop.f32.mrf.mxu1  ;;  %v2468_v23 = vmul.f32 %v9291_v28, %v998_v5  ;;  %v3002_v3 = vmul.f32 %v9100_v30, %v998_v5  ;;  %v9307_v38 = vadd.f32 %v2469_v26, %v2451_v54  ;;  %v9309_v55 = vadd.f32 %v3003_v10, %v2995_v12 }
 0x1b5   :  { %v1246_v0 = vadd.f32 %v1187_v15, %v9073_v52  ;;  %v6575_v39 = vpop.f32.mrf.mxu0  ;;  %v1259_v7 = vmax.f32 %v1247_v49, 0.0  ;;  %v9314_v59 = vmul.f32 %v9079_v24, %v998_v5 }
 0x1b6   :  { %v989_v36 = vadd.f32 %v6575_v39, %v9071_v33  ;;  %v6605_v61 = vpop.f32.mrf.mxu1  ;;  %11979 = vst [vmem:[#allocation20_spill] sm:$0xff] %v9309_v55  ;;  %v9324_v12 = vadd.f32 %v3002_v3, %v2994_v19  ;;  %v9326_v48 = vadd.f32 %v2468_v23, %v2450_v58 }
 0x1b7   :  { %v937_v34 = vpop.f32.mrf.mxu0  ;;  %v1258_v2 = vmax.f32 %v1246_v0, 0.0  ;;  %v1249_v31 = vadd.f32 %v6605_v61, %v9071_v33  ;;  %11980 = vst [vmem:[#allocation21_spill] sm:$0xff] %v9314_v59  ;;  %v9321_v49 = vmul.f32 %v9275_v57, %v1259_v7  ;;  %v3428_v54 = vmul.f32 %v9096_v41, %v1259_v7 }
 0x1b8   :  { %v9301_v62 = vmax.f32 %v989_v36, 0.0  ;;  %v1197_v13 = vpop.f32.mrf.mxu1  ;;  %v988_v18 = vadd.f32 %v937_v34, %v9073_v52  ;;  %11982 = vst [vmem:[#allocation23_spill] sm:$0xff] %v9324_v12  ;;  %11983 = vst [vmem:[#allocation24_spill] sm:$0xff] %v9326_v48  ;;  %v3813_v5 = vmul.f32 %v9075_v1, %v1259_v7 }
 0x1b9   :  { %v1248_v37 = vadd.f32 %v1197_v13, %v9073_v52  ;;  %11981 = vst [vmem:[#allocation22_spill] sm:$0xff] %v9321_v49  ;;  %v9330_v25 = vmul.f32 %v9291_v28, %v1258_v2  ;;  %v9334_v44 = vmul.f32 %v9100_v30, %v1258_v2  ;;  %v3812_v42 = vmul.f32 %v9079_v24, %v1258_v2 }
 0x1ba   :  { %11976 = vst [vmem:[#allocation17_spill] sm:$0xff] %v9301_v62  ;;  %v3396_v6 = vmul.f32 %v9077_v35, %v9301_v62  ;;  %v9337_v26 = vmax.f32 %v1249_v31, 0.0  ;;  %v9342_v0 = vmul.f32 %v9075_v1, %v9301_v62  ;;  %v9344_v39 = vmax.f32 %v988_v18, 0.0 }
 0x1bb   :  { %v6578_v21 = vpop.f32.mrf.mxu0  ;;  %11984 = vst [vmem:[#allocation25_spill] sm:$0xff] %v9330_v25  ;;  %11985 = vst [vmem:[#allocation26_spill] sm:$0xff] %v9334_v44  ;;  %v9346_v36 = vmax.f32 %v1248_v37, 0.0  ;;  %v2471_v2 = vmul.f32 %v9275_v57, %v9301_v62  ;;  %v2495_v31 = vmul.f32 %v9350_v43, %v9301_v62 }
 0x1bc   :  { %v991_v15 = vadd.f32 %v6578_v21, %v9071_v33  ;;  %v6608_v40 = vpop.f32.mrf.mxu1  ;;  %v3404_v29 = vadd.f32 %v3396_v6, %v3388_v45  ;;  %11986 = vst [vmem:[#allocation27_spill] sm:$0xff] %v9337_v26  ;;  %11987 = vst [vmem:[#allocation28_spill] sm:$0xff] %v9342_v0  ;;  %v9365_v6 = vmul.f32 %v9096_v41, %v9301_v62 }
 0x1bd   :  { %v1251_v19 = vadd.f32 %v6608_v40, %v9071_v33  ;;  %v947_v10 = vpop.f32.mrf.mxu0  ;;  %11988 = vst [vmem:[#allocation29_spill] sm:$0xff] %v9344_v39  ;;  %11989 = vst [vmem:[#allocation30_spill] sm:$0xff] %v9346_v36  ;;  %v9369_v18 = vmul.f32 %v9075_v1, %v9337_v26  ;;  %v3821_v40 = vmul.f32 %v9077_v35, %v9337_v26 }
 0x1be   :  { %v9348_v61 = vmax.f32 %v991_v15, 0.0  ;;  %v1207_v58 = vpop.f32.mrf.mxu1  ;;  %v990_v23 = vadd.f32 %v947_v10, %v9073_v52  ;;  %11993 = vst [vmem:[#allocation34_spill] sm:$0xff] %v9365_v6  ;;  %v3444_v15 = vmul.f32 %v9112_v17, %v9337_v26  ;;  %v3820_v44 = vmul.f32 %v9081_v32, %v9346_v36 }
 0x1bf   :  { %v9352_v7 = vmax.f32 %v1251_v19, 0.0  ;;  %v1250_v3 = vadd.f32 %v1207_v58, %v9073_v52  ;;  %v6581_v34 = vpop.f32.mrf.mxu0  ;;  %11994 = vst [vmem:[#allocation35_spill] sm:$0xff] %v9369_v18 }
 0x1c0   :  { %11990 = vst [vmem:[#allocation31_spill] sm:$0xff] %v9348_v61  ;;  %v993_v13 = vadd.f32 %v6581_v34, %v9071_v33  ;;  %v3412_v45 = vmul.f32 %v9083_v22, %v9348_v61  ;;  %v9382_v59 = vmax.f32 %v990_v23, 0.0  ;;  %v2473_v0 = vmul.f32 %v9275_v57, %v9348_v61 }
 0x1c1   :  { %11992 = vst [vmem:[#allocation33_spill] sm:$0xff] %v9352_v7  ;;  %v9371_v37 = vmax.f32 %v1250_v3, 0.0  ;;  %v957_v21 = vpop.f32.mrf.mxu0  ;;  %v3837_v18 = vmul.f32 %v9083_v22, %v9352_v7 }
 0x1c2   :  { %v9377_v19 = vmax.f32 %v993_v13, 0.0  ;;  %v6611_v10 = vpop.f32.mrf.mxu1  ;;  %v992_v58 = vadd.f32 %v957_v21, %v9073_v52  ;;  %v3420_v34 = vadd.f32 %v3412_v45, %v3404_v29  ;;  %11997 = vst [vmem:[#allocation38_spill] sm:$0xff] %v9382_v59  ;;  %v2479_v21 = vadd.f32 %v2471_v2, %v9289_v16 }
 0x1c3   :  { %11995 = vst [vmem:[#allocation36_spill] sm:$0xff] %v9371_v37  ;;  %v1253_v3 = vadd.f32 %v6611_v10, %v9071_v33  ;;  %v9394_v29 = vmul.f32 %v9291_v28, %v9344_v39  ;;  %v3829_v10 = vadd.f32 %v3821_v40, %v3813_v5  ;;  %v3836_v49 = vmul.f32 %v9091_v51, %v9371_v37 }
 0x1c4   :  { %11996 = vst [vmem:[#allocation37_spill] sm:$0xff] %v9377_v19  ;;  %v9389_v25 = vmax.f32 %v992_v58, 0.0  ;;  %v1217_v13 = vpop.f32.mrf.mxu1  ;;  %v3436_v12 = vadd.f32 %v3428_v54, %v3420_v34  ;;  %v3009_v45 = vmul.f32 %v9096_v41, %v9377_v19  ;;  %v3460_v54 = vmul.f32 %v9208_v8, %v9352_v7 }
 0x1c5   :  { %v1252_v23 = vadd.f32 %v1217_v13, %v9073_v52  ;;  %v9401_v36 = vmax.f32 %v1253_v3, 0.0  ;;  %v3828_v58 = vadd.f32 %v3820_v44, %v3812_v42  ;;  %v9406_v16 = vadd.f32 %v2495_v31, %v9307_v38 }
 0x1c6   :  { %11998 = vst [vmem:[#allocation39_spill] sm:$0xff] %v9389_v25  ;;  %v9408_v34 = vadd.f32 %v3837_v18, %v3829_v10  ;;  %v2481_v13 = vadd.f32 %v2473_v0, %v9251_v14  ;;  %v2472_v5 = vmul.f32 %v9291_v28, %v9382_v59  ;;  %v2497_v40 = vmul.f32 %v9350_v43, %v9348_v61 }
 0x1c7   :  { %11999 = vst [vmem:[#allocation40_spill] sm:$0xff] %v9401_v36  ;;  %12000 = vst [vmem:[#allocation41_spill] sm:$0xff] %v9406_v16  ;;  %v6584_v2 = vpop.f32.mrf.mxu0  ;;  %v3008_v55 = vmul.f32 %v9100_v30, %v9389_v25  ;;  %v3452_v44 = vadd.f32 %v3444_v15, %v3436_v12  ;;  %v2475_v38 = vmul.f32 %v9275_v57, %v9377_v19  ;;  %v9420_v42 = vmax.f32 %v1252_v23, 0.0 }
 0x1c8   :  { %12001 = vst [vmem:[#allocation42_spill] sm:$0xff] %v9408_v34  ;;  %v995_v3 = vadd.f32 %v6584_v2, %v9071_v33  ;;  %v3017_v14 = vadd.f32 %v3009_v45, %v9245_v11  ;;  %v3394_v0 = vmul.f32 %v9075_v1, %v9377_v19  ;;  %v9425_v18 = vadd.f32 %v3836_v49, %v3828_v58  ;;  %v9443_v58 = vpop.permute.xlu0 %2486 }
 0x1c9   :  { %12002 = vst [vmem:[#allocation43_spill] sm:$0xff] %v9420_v42  ;;  %v967_v31 = vpop.f32.mrf.mxu0  ;;  %v9432_v12 = vmul.f32 %v9096_v41, %v9401_v36  ;;  %v3393_v15 = vmul.f32 %v9079_v24, %v9389_v25  ;;  %v3819_v11 = vmul.f32 %v9075_v1, %v9401_v36  ;;  %v2474_v49 = vmul.f32 %v9291_v28, %v9389_v25 }
 0x1ca   :  { %12003 = vst [vmem:[#allocation44_spill] sm:$0xff] %v9425_v18  ;;  %v9427_v10 = vmax.f32 %v995_v3, 0.0  ;;  %v6614_v2 = vpop.f32.mrf.mxu1  ;;  %v994_v62 = vadd.f32 %v967_v31, %v9073_v52  ;;  %v2499_v45 = vmul.f32 %v9350_v43, %v9377_v19  ;;  %v3016_v20 = vadd.f32 %v3008_v55, %v9259_v56 }
 0x1cb   :  { %v1255_v23 = vadd.f32 %v6614_v2, %v9071_v33  ;;  %v9448_v26 = vadd.f32 %v3460_v54, %v3452_v44  ;;  %v2483_v2 = vadd.f32 %v2475_v38, %v9254_v27  ;;  %v3433_v47 = vmul.f32 %v9100_v30, %v9420_v42 }
 0x1cc   :  { %12004 = vst [vmem:[#allocation45_spill] sm:$0xff] %v9427_v10  ;;  %v9445_v3 = vmax.f32 %v994_v62, 0.0  ;;  %v1227_v31 = vpop.f32.mrf.mxu1  ;;  %v3025_v6 = vmul.f32 %v9112_v17, %v9427_v10  ;;  %v2498_v34 = vmul.f32 %v9443_v58, %v9389_v25  ;;  %v3402_v56 = vmul.f32 %v9077_v35, %v9427_v10 }
 0x1cd   :  { %12006 = vst [vmem:[#allocation47_spill] sm:$0xff] %v9448_v26  ;;  %v9451_v18 = vmax.f32 %v1255_v23, 0.0  ;;  %v1254_v62 = vadd.f32 %v1227_v31, %v9073_v52  ;;  %v9464_v55 = vmul.f32 %v9079_v24, %v9420_v42  ;;  %v2480_v27 = vadd.f32 %v2472_v5, %v9261_v53  ;;  %v9472_v31 = vpop.permute.xlu1 %2517 }
 0x1ce   :  { %12005 = vst [vmem:[#allocation46_spill] sm:$0xff] %v9445_v3  ;;  %v3024_v44 = vmul.f32 %v9128_v46, %v9445_v3  ;;  %v2501_v38 = vmul.f32 %v9350_v43, %v9427_v10  ;;  %v2482_v23 = vadd.f32 %v2474_v49, %v9293_v63  ;;  %v2507_v48 = vadd.f32 %v2499_v45, %v2481_v13 }
 0x1cf   :  { %12007 = vst [vmem:[#allocation48_spill] sm:$0xff] %v9451_v18  ;;  %v6587_v54 = vpop.f32.mrf.mxu0  ;;  %v3401_v24 = vmul.f32 %v9081_v32, %v9445_v3  ;;  %v3057_v53 = vmul.f32 %v9275_v57, %v9401_v36  ;;  %v9479_v5 = vadd.f32 %v2497_v40, %v2479_v21  ;;  %v3033_v1 = vadd.f32 %v3025_v6, %v3017_v14 }
 0x1d0   :  { %v997_v26 = vadd.f32 %v6587_v54, %v9071_v33  ;;  %v3827_v37 = vmul.f32 %v9077_v35, %v9451_v18  ;;  %v2525_v63 = vmul.f32 %v9472_v31, %v9427_v10  ;;  %v2506_v13 = vadd.f32 %v2498_v34, %v2480_v27 }
 0x1d1   :  { %v977_v50 = vpop.f32.mrf.mxu0  ;;  %v9485_v49 = vmax.f32 %v1254_v62, 0.0  ;;  %v3410_v54 = vadd.f32 %v3402_v56, %v3394_v0  ;;  %v9491_v6 = vmul.f32 %v9112_v17, %v9451_v18  ;;  %v3032_v21 = vadd.f32 %v3024_v44, %v3016_v20  ;;  %v9501_v56 = vpop.permute.xlu0 %2512 }
 0x1d2   :  { %v1009_v45 = vmax.f32 %v997_v26, 0.0  ;;  %v6617_v39 = vpop.f32.mrf.mxu1  ;;  %v996_v30 = vadd.f32 %v977_v50, %v9073_v52  ;;  %v2509_v40 = vadd.f32 %v2501_v38, %v2483_v2  ;;  %v3409_v62 = vadd.f32 %v3401_v24, %v3393_v15 }
 0x1d3   :  { %12008 = vst [vmem:[#allocation49_spill] sm:$0xff] %v9485_v49  ;;  %v1257_v16 = vadd.f32 %v6617_v39, %v9071_v33  ;;  %v9496_v0 = vadd.f32 %v3827_v37, %v3819_v11  ;;  %v2500_v39 = vmul.f32 %v9443_v58, %v9445_v3  ;;  %v3449_v24 = vmul.f32 %v9128_v46, %v9485_v49 }
 0x1d4   :  { %v2527_v14 = vmul.f32 %v9472_v31, %v1009_v45  ;;  %v3041_v35 = vmul.f32 %v9208_v8, %v1009_v45  ;;  %v1008_v34 = vmax.f32 %v996_v30, 0.0  ;;  %v1237_v27 = vpop.f32.mrf.mxu1  ;;  %v3418_v26 = vmul.f32 %v9083_v22, %v1009_v45 }
 0x1d5   :  { %12009 = vst [vmem:[#allocation50_spill] sm:$0xff] %v9496_v0  ;;  %v1256_v50 = vadd.f32 %v1237_v27, %v9073_v52  ;;  %v9507_v30 = vmax.f32 %v1257_v16, 0.0  ;;  %v3826_v37 = vmul.f32 %v9081_v32, %v9485_v49  ;;  %v2524_v11 = vmul.f32 %v9501_v56, %v9445_v3 }
 0x1d6   :  { %v3049_v20 = vadd.f32 %v3041_v35, %v3033_v1  ;;  %v3040_v2 = vmul.f32 %v9217_v4, %v1008_v34  ;;  %v3417_v44 = vmul.f32 %v9091_v51, %v1008_v34  ;;  %v2535_v27 = vadd.f32 %v2527_v14, %v2509_v40 }
 0x1d7   :  { %v1268_v15 = vmax.f32 %v1256_v50, 0.0  ;;  %v2533_v1 = vadd.f32 %v2525_v63, %v2507_v48  ;;  %v3426_v35 = vadd.f32 %v3418_v26, %v3410_v54  ;;  %v2508_v0 = vadd.f32 %v2500_v39, %v2482_v23 }
 0x1d8   :  { %v3048_v38 = vadd.f32 %v3040_v2, %v3032_v21  ;;  %v3425_v45 = vadd.f32 %v3417_v44, %v3409_v62  ;;  %v2526_v36 = vmul.f32 %v9501_v56, %v1008_v34  ;;  %v3073_v46 = vmul.f32 %v9350_v43, %v9451_v18  ;;  %6738 = vmatprep.subr.mxu0 %v2535_v27 }
 0x1d9   :  { %v3065_v50 = vadd.f32 %v3057_v53, %v3049_v20  ;;  %v2523_v32 = vmul.f32 %v9472_v31, %v9377_v19  ;;  %v3056_v3 = vmul.f32 %v9291_v28, %v9420_v42  ;;  %v3089_v21 = vmul.f32 %v9472_v31, %v9507_v30  ;;  %6739 = vmatpush3.msra.mxu0 %v2535_v27 }
 0x1da   :  { %v3441_v16 = vadd.f32 %v3433_v47, %v3425_v45  ;;  %v3465_v48 = vmul.f32 %v9217_v4, %v1268_v15  ;;  %v2534_v23 = vadd.f32 %v2526_v36, %v2508_v0  ;;  %v2532_v63 = vadd.f32 %v2524_v11, %v2506_v13 }
 0x1db   :  { %v3081_v40 = vadd.f32 %v3073_v46, %v3065_v50  ;;  %v3064_v14 = vadd.f32 %v3056_v3, %v3048_v38  ;;  %v3072_v47 = vmul.f32 %v9443_v58, %v9485_v49  ;;  %v3442_v53 = vadd.f32 %v9432_v12, %v3426_v35 }
 0x1dc   :  { %v3457_v54 = vadd.f32 %v3449_v24, %v3441_v16  ;;  %6740 = vmatprep.subr.mxu0 %v2534_v23  ;;  %v3088_v34 = vmul.f32 %v9501_v56, %v1268_v15  ;;  %v2496_v62 = vmul.f32 %v9443_v58, %v9382_v59  ;;  %v3007_v26 = vmul.f32 %v9096_v41, %v9348_v61 }
 0x1dd   :  { %6741 = vmatpush3.msra.mxu0 %v2534_v23  ;;  %v3097_v36 = vadd.f32 %v3089_v21, %v3081_v40  ;;  %v3080_v46 = vadd.f32 %v3072_v47, %v3064_v14  ;;  %v3023_v3 = vmul.f32 %v9112_v17, %v9377_v19  ;;  %v2478_v12 = vadd.f32 %v9394_v29, %v9299_v9  ;;  %v12011_v23 = vld [vmem:[#allocation40_spill] sm:$0xff]  ;;  %v12013_v14 = vld [vmem:[#allocation11_spill] sm:$0xff] }
 0x1de   :  { %v9531_v39 = vadd.f32 %v3465_v48, %v3457_v54  ;;  %6742 = vmatprep.subr.mxu0 %v2533_v1  ;;  %v2522_v13 = vmul.f32 %v9501_v56, %v9389_v25  ;;  %v3015_v0 = vadd.f32 %v3007_v26, %v9213_v60  ;;  %v3039_v20 = vmul.f32 %v9208_v8, %v9427_v10  ;;  %v12012_v54 = vld [vmem:[#allocation41_spill] sm:$0xff] }
 0x1df   :  { %v3843_v2 = vmul.f32 %v9083_v22, %v9507_v30  ;;  %6743 = vmatpush3.msra.mxu0 %v2533_v1  ;;  %6802 = vmatprep.subr.mxu1 %v3097_v36  ;;  %v2531_v44 = vadd.f32 %v2523_v32, %v9479_v5  ;;  %v3096_v24 = vadd.f32 %v3088_v34, %v3080_v46  ;;  %v12016_v46 = vld [vmem:[#allocation13_spill] sm:$0xff] }
 0x1e0   :  { %12010 = vst [vmem:[#allocation51_spill] sm:$0xff] %v9531_v39  ;;  %6744 = vmatprep.subr.mxu0 %v2532_v63  ;;  %6803 = vmatpush3.msra.mxu1 %v3097_v36  ;;  %v2504_v9 = vadd.f32 %v2496_v62, %v2478_v12  ;;  %v3031_v29 = vadd.f32 %v3023_v3, %v3015_v0  ;;  %v12017_v12 = vld [vmem:[#allocation29_spill] sm:$0xff]  ;;  %v12045_v39 = vld [vmem:[#allocation20_spill] sm:$0xff] }
 0x1e1   :  { %v6632_v11 = vpop.f32.mrf.mxu0  ;;  %v2521_v38 = vmul.f32 %v9472_v31, %v9348_v61  ;;  %v3458_v60 = vadd.f32 %v9491_v6, %v3442_v53  ;;  %v3842_v45 = vmul.f32 %v9091_v51, %v1268_v15  ;;  %6745 = vmatpush3.msra.mxu0 %v2532_v63  ;;  %6804 = vmatprep.subr.mxu1 %v3096_v24 }
 0x1e2   :  { %v1507_v27 = vadd.f32 %v6632_v11, %v9071_v33  ;;  %6746 = vmatprep.subr.mxu0 %v2531_v44  ;;  %6805 = vmatpush3.msra.mxu1 %v3096_v24  ;;  %v2530_v32 = vadd.f32 %v2522_v13, %v2504_v9  ;;  %v3047_v5 = vadd.f32 %v3039_v20, %v3031_v29  ;;  %v12018_v9 = vld [vmem:[#allocation15_spill] sm:$0xff] }
 0x1e3   :  { %v1447_v1 = vpop.f32.mrf.mxu0  ;;  %v3055_v35 = vmul.f32 %v9275_v57, %v9352_v7  ;;  %v3466_v16 = vmul.f32 %v9208_v8, %v9507_v30  ;;  %v3834_v50 = vadd.f32 %v3826_v37, %v9464_v55  ;;  %6747 = vmatpush3.msra.mxu0 %v2531_v44  ;;  %v3071_v63 = vmul.f32 %v9350_v43, %v12011_v23  ;;  %v12015_v30 = vld [vmem:[#allocation50_spill] sm:$0xff] }
 0x1e4   :  { %v1519_v6 = vmax.f32 %v1507_v27, 0.0  ;;  %v1506_v15 = vadd.f32 %v1447_v1, %v9073_v52  ;;  %6748 = vmatprep.subr.mxu0 %v2530_v32  ;;  %v2529_v40 = vadd.f32 %v2521_v38, %v12012_v54  ;;  %v3006_v47 = vmul.f32 %v12013_v14, %v9382_v59  ;;  %v12019_v38 = vld [vmem:[#allocation46_spill] sm:$0xff]  ;;  %v12021_v1 = vld [vmem:[#allocation5_spill] sm:$0xff] }
 0x1e5   :  { %v6662_v21 = vpop.f32.mrf.mxu1  ;;  %v3063_v48 = vadd.f32 %v3055_v35, %v3047_v5  ;;  %v9561_v53 = vadd.f32 %v3466_v16, %v3458_v60  ;;  %v9564_v34 = vadd.f32 %v3843_v2, %v12015_v30  ;;  %v9566_v55 = vadd.f32 %v3842_v45, %v3834_v50  ;;  %6749 = vmatpush3.msra.mxu0 %v2530_v32  ;;  %v12020_v45 = vld [vmem:[#allocation36_spill] sm:$0xff]  ;;  %v12025_v30 = vld [vmem:[#allocation42_spill] sm:$0xff] }
 0x1e6   :  { %v1767_v37 = vadd.f32 %v6662_v21, %v9071_v33  ;;  %v3476_v62 = vmul.f32 %v9275_v57, %v1519_v6  ;;  %6750 = vmatprep.subr.mxu0 %v2529_v40  ;;  %v3022_v3 = vmul.f32 %v12016_v46, %v9389_v25  ;;  %v2494_v13 = vmul.f32 %v9443_v58, %v12017_v12 }
 0x1e7   :  { %12014 = vst [vmem:[#allocation41_spill] sm:$0xff] %v9561_v53  ;;  %v1707_v26 = vpop.f32.mrf.mxu1  ;;  %v3079_v36 = vadd.f32 %v3071_v63, %v3063_v48  ;;  %v3853_v0 = vmul.f32 %v9096_v41, %v1519_v6  ;;  %v1518_v20 = vmax.f32 %v1506_v15, 0.0  ;;  %v3087_v24 = vmul.f32 %v9472_v31, %v9451_v18  ;;  %6751 = vmatpush3.msra.mxu0 %v2529_v40  ;;  %v12022_v15 = vld [vmem:[#allocation47_spill] sm:$0xff]  ;;  %v12024_v40 = vld [vmem:[#allocation24_spill] sm:$0xff] }
 0x1e8   :  { %v1766_v2 = vadd.f32 %v1707_v26, %v9073_v52  ;;  %v6635_v44 = vpop.f32.mrf.mxu0  ;;  %v1779_v11 = vmax.f32 %v1767_v37, 0.0  ;;  %v3014_v29 = vadd.f32 %v3006_v47, %v12018_v9  ;;  %v3038_v60 = vmul.f32 %v9217_v4, %v12019_v38 }
 0x1e9   :  { %v3054_v27 = vmul.f32 %v9291_v28, %v12020_v45  ;;  %v9584_v32 = vmul.f32 %v12021_v1, %v1519_v6  ;;  %v1509_v5 = vadd.f32 %v6635_v44, %v9071_v33  ;;  %v3070_v16 = vmul.f32 %v9443_v58, %v9420_v42 }
 0x1ea   :  { %v1457_v35 = vpop.f32.mrf.mxu0  ;;  %v3086_v50 = vmul.f32 %v9501_v56, %v9485_v49  ;;  %v9592_v21 = vadd.f32 %v3476_v62, %v12022_v15  ;;  %v3095_v63 = vadd.f32 %v3087_v24, %v3079_v36  ;;  %v3030_v54 = vadd.f32 %v3022_v3, %v3014_v29  ;;  %v12029_v49 = vld [vmem:[#allocation7_spill] sm:$0xff]  ;;  %v12032_v29 = vld [vmem:[#allocation34_spill] sm:$0xff] }
 0x1eb   :  { %v6665_v48 = vpop.f32.mrf.mxu1  ;;  %v2502_v47 = vadd.f32 %v2494_v13, %v12024_v40  ;;  %v9596_v6 = vadd.f32 %v3853_v0, %v12025_v30  ;;  %v9599_v37 = vmul.f32 %v9291_v28, %v1518_v20  ;;  %v3852_v26 = vmul.f32 %v12013_v14, %v1518_v20 }
 0x1ec   :  { %12023 = vst [vmem:[#allocation50_spill] sm:$0xff] %v9592_v21  ;;  %v1778_v44 = vmax.f32 %v1766_v2, 0.0  ;;  %v9603_v9 = vmul.f32 %v9275_v57, %v1779_v11  ;;  %v9606_v62 = vmul.f32 %v12029_v49, %v1518_v20  ;;  %6806 = vmatprep.subr.mxu1 %v3095_v63  ;;  %v3046_v36 = vadd.f32 %v3038_v60, %v3030_v54  ;;  %v12031_v2 = vld [vmem:[#allocation18_spill] sm:$0xff] }
 0x1ed   :  { %12026 = vst [vmem:[#allocation13_spill] sm:$0xff] %v9596_v6  ;;  %12027 = vst [vmem:[#allocation15_spill] sm:$0xff] %v9599_v37  ;;  %v1717_v15 = vpop.f32.mrf.mxu1  ;;  %v2520_v3 = vmul.f32 %v9501_v56, %v9382_v59  ;;  %v9611_v13 = vmul.f32 %v9096_v41, %v1779_v11  ;;  %v9613_v0 = vmax.f32 %v1509_v5, 0.0  ;;  %6807 = vmatpush3.msra.mxu1 %v3095_v63  ;;  %v12033_v5 = vld [vmem:[#allocation44_spill] sm:$0xff] }
 0x1ee   :  { %12028 = vst [vmem:[#allocation36_spill] sm:$0xff] %v9603_v9  ;;  %v6638_v24 = vpop.f32.mrf.mxu0  ;;  %v3013_v40 = vadd.f32 %v12032_v29, %v12031_v2  ;;  %v3021_v20 = vmul.f32 %v9112_v17, %v9348_v61  ;;  %v1508_v30 = vadd.f32 %v1457_v35, %v9073_v52  ;;  %v3062_v60 = vadd.f32 %v3054_v27, %v3046_v36  ;;  %v9634_v35 = vld [vmem:[%s11818_s5 + $0x8] sm:$0xff] }
 0x1ef   :  { %12030 = vst [vmem:[#allocation47_spill] sm:$0xff] %v9613_v0  ;;  %v6668_v9 = vpop.f32.mrf.mxu1  ;;  %v2528_v54 = vadd.f32 %v2520_v3, %v2502_v47  ;;  %v3037_v6 = vmul.f32 %v9208_v8, %v9377_v19  ;;  %v9623_v37 = vmul.f32 %v12021_v1, %v1779_v11  ;;  %v9626_v21 = vadd.f32 %v3852_v26, %v12033_v5  ;;  %v9646_v26 = vld [vmem:[%s11818_s5 + $0x10] sm:$0xff] }
 0x1f0   :  { %v9629_v63 = vmul.f32 %v9291_v28, %v1778_v44  ;;  %v3029_v2 = vadd.f32 %v3021_v20, %v3013_v40  ;;  %v9637_v27 = vmul.f32 %v12013_v14, %v1778_v44  ;;  %v9640_v47 = vmul.f32 %v12029_v49, %v1778_v44  ;;  %v1467_v40 = vpop.f32.mrf.mxu0  ;;  %v12038_v5 = vld [vmem:[#allocation27_spill] sm:$0xff] }
 0x1f1   :  { %12034 = vst [vmem:[#allocation24_spill] sm:$0xff] %v9626_v21  ;;  %v1511_v11 = vadd.f32 %v6638_v24, %v9071_v33  ;;  %v3078_v36 = vadd.f32 %v3070_v16, %v3062_v60  ;;  %6752 = vmatprep.subr.mxu0 %v2528_v54  ;;  %v9650_v3 = vmul.f32 %v12021_v1, %v9613_v0  ;;  %v9655_v24 = vmax.f32 %v1508_v30, 0.0  ;;  %v1727_v16 = vpop.f32.mrf.mxu1 }
 0x1f2   :  { %12035 = vst [vmem:[#allocation42_spill] sm:$0xff] %v9629_v63  ;;  %12036 = vst [vmem:[#allocation18_spill] sm:$0xff] %v9640_v47  ;;  %v1769_v29 = vadd.f32 %v6665_v48, %v9071_v33  ;;  %v3045_v20 = vadd.f32 %v3037_v6, %v3029_v2  ;;  %v3053_v44 = vmul.f32 %v9275_v57, %v12038_v5  ;;  %6753 = vmatpush3.msra.mxu0 %v2528_v54 }
 0x1f3   :  { %12037 = vst [vmem:[#allocation34_spill] sm:$0xff] %v9650_v3  ;;  %12039 = vst [vmem:[#allocation44_spill] sm:$0xff] %v9655_v24  ;;  %v3094_v60 = vadd.f32 %v3086_v50, %v3078_v36  ;;  %6755 = vmatmul.mubr.msk.f32.vlgmr.msra.gmra.mxu0 %vm2536_vm1, %v9634_v35  ;;  %v3004_v63 = vmul.f32 %v12013_v14, %v12017_v12  ;;  %v3020_v3 = vmul.f32 %v12016_v46, %v9382_v59  ;;  %v9672_v50 = vld [vmem:[%s11818_s5 + $0x18] sm:$0xff] }
 0x1f4   :  { %v1768_v48 = vadd.f32 %v1717_v15, %v9073_v52  ;;  %v1771_v6 = vadd.f32 %v6668_v9, %v9071_v33  ;;  %v3061_v2 = vadd.f32 %v3053_v44, %v3045_v20  ;;  %v3069_v30 = vmul.f32 %v9350_v43, %v9352_v7  ;;  %6757 = vmatprep.mubr.msk.f32.mxu0 %vm2536_vm1, %v9646_v26  ;;  %v12042_v36 = vld [vmem:[#allocation19_spill] sm:$0xff]  ;;  %v12043_v15 = vld [vmem:[#allocation17_spill] sm:$0xff] }
 0x1f5   :  { %12040 = vst [vmem:[#allocation52_spill] sm:$0xff] %v9672_v50  ;;  %v9674_v54 = vmax.f32 %v1511_v11, 0.0  ;;  %6808 = vmatprep.subr.mxu1 %v3094_v60  ;;  %v3012_v21 = vadd.f32 %v3004_v63, %v12042_v36  ;;  %v3036_v9 = vmul.f32 %v9217_v4, %v9389_v25  ;;  %v3019_v20 = vmul.f32 %v9112_v17, %v12043_v15  ;;  %v9684_v44 = vld [vmem:[%s11818_s5 + $0x20] sm:$0xff] }
 0x1f6   :  { %12044 = vst [vmem:[#allocation19_spill] sm:$0xff] %v9684_v44  ;;  %v1510_v38 = vadd.f32 %v1467_v40, %v9073_v52  ;;  %v6641_v18 = vpop.f32.mrf.mxu0  ;;  %6809 = vmatpush3.msra.mxu1 %v3094_v60  ;;  %v3077_v11 = vadd.f32 %v3069_v30, %v3061_v2  ;;  %v3085_v10 = vmul.f32 %v9472_v31, %v12011_v23  ;;  %v9696_v40 = vmax.f32 %v1769_v29, 0.0  ;;  %v12048_v23 = vld [vmem:[#allocation6_spill] sm:$0xff] }
 0x1f7   :  { %12041 = vst [vmem:[#allocation53_spill] sm:$0xff] %v9674_v54  ;;  %v3035_v63 = vmul.f32 %v9208_v8, %v9348_v61  ;;  %v1770_v36 = vadd.f32 %v1727_v16, %v9073_v52  ;;  %v1513_v15 = vadd.f32 %v6641_v18, %v9071_v33  ;;  %v6671_v25 = vpop.f32.mrf.mxu1  ;;  %v3028_v19 = vadd.f32 %v3020_v3, %v3012_v21  ;;  %v9707_v18 = vld [vmem:[%s11818_s5 + $0x28] sm:$0xff] }
 0x1f8   :  { %v3027_v53 = vadd.f32 %v3019_v20, %v12045_v39  ;;  %6758 = vmatmul.mubr.msk.f32.gmra.mxu0 %vm2536_vm1, %v9672_v50  ;;  %12046 = vst [vmem:[#allocation17_spill] sm:$0xff] %v9696_v40  ;;  %v9698_v60 = vmax.f32 %v1768_v48, 0.0  ;;  %v1477_v2 = vpop.f32.mrf.mxu0  ;;  %v3093_v30 = vadd.f32 %v3085_v10, %v3077_v11  ;;  %v4246_v61 = vmul.f32 %v12048_v23, %v9613_v0  ;;  %v12051_v29 = vld [vmem:[#allocation30_spill] sm:$0xff] }
 0x1f9   :  { %6760 = vmatprep.mubr.msk.f32.mxu0 %vm2536_vm1, %v9684_v44  ;;  %12049 = vst [vmem:[#allocation54_spill] sm:$0xff] %v9707_v18  ;;  %v9709_v39 = vmax.f32 %v1771_v6, 0.0  ;;  %v1737_v21 = vpop.f32.mrf.mxu1  ;;  %v3044_v3 = vadd.f32 %v3036_v9, %v3028_v19  ;;  %v3052_v16 = vmul.f32 %v9291_v28, %v12051_v29  ;;  %v9716_v10 = vld [vmem:[%s11818_s5 + $0x30] sm:$0xff]  ;;  %v9718_v20 = vmax.f32 %v1510_v38, 0.0 }
 0x1fa   :  { %12047 = vst [vmem:[#allocation20_spill] sm:$0xff] %v9698_v60  ;;  %v3043_v48 = vadd.f32 %v3035_v63, %v3027_v53  ;;  %12052 = vst [vmem:[#allocation56_spill] sm:$0xff] %v9716_v10  ;;  %v1773_v11 = vadd.f32 %v6671_v25, %v9071_v33  ;;  %v1512_v0 = vadd.f32 %v1477_v2, %v9073_v52  ;;  %6810 = vmatprep.subr.mxu1 %v3093_v30  ;;  %v12055_v38 = vld [vmem:[#allocation22_spill] sm:$0xff] }
 0x1fb   :  { %12050 = vst [vmem:[#allocation55_spill] sm:$0xff] %v9709_v39  ;;  %12053 = vst [vmem:[#allocation57_spill] sm:$0xff] %v9718_v20  ;;  %v4262_v6 = vmul.f32 %v9083_v22, %v9674_v54  ;;  %v9724_v19 = vmax.f32 %v1770_v36, 0.0  ;;  %v9726_v9 = vmax.f32 %v1513_v15, 0.0  ;;  %6811 = vmatpush3.msra.mxu1 %v3093_v30  ;;  %v3060_v53 = vadd.f32 %v3052_v16, %v3044_v3  ;;  %v9742_v15 = vld [vmem:[%s11818_s5 + $0x38] sm:$0xff] }
 0x1fc   :  { %v3068_v63 = vmul.f32 %v9443_v58, %v12020_v45  ;;  %6761 = vmatmul.mubr.msk.f32.gmra.mxu0 %vm2536_vm1, %v9707_v18  ;;  %v1772_v25 = vadd.f32 %v1737_v21, %v9073_v52  ;;  %v3059_v2 = vadd.f32 %v12055_v38, %v3043_v48  ;;  %v3067_v44 = vmul.f32 %v9350_v43, %v12038_v5 }
 0x1fd   :  { %12054 = vst [vmem:[#allocation58_spill] sm:$0xff] %v9724_v19  ;;  %v4254_v36 = vadd.f32 %v4246_v61, %v9584_v32  ;;  %6763 = vmatprep.mubr.msk.f32.mxu0 %vm2536_vm1, %v9716_v10  ;;  %12056 = vst [vmem:[#allocation22_spill] sm:$0xff] %v9742_v15  ;;  %v3084_v3 = vmul.f32 %v9501_v56, %v9420_v42  ;;  %v3083_v21 = vmul.f32 %v9472_v31, %v9352_v7  ;;  %v9753_v61 = vld [vmem:[%s11818_s5 + $0x40] sm:$0xff] }
 0x1fe   :  { %v3076_v30 = vadd.f32 %v3068_v63, %v3060_v53  ;;  %v4294_v16 = vmul.f32 %v9112_v17, %v9696_v40  ;;  %12057 = vst [vmem:[#allocation59_spill] sm:$0xff] %v9753_v61  ;;  %v9755_v32 = vmax.f32 %v1773_v11, 0.0  ;;  %v9757_v48 = vmax.f32 %v1512_v0, 0.0  ;;  %v6644_v38 = vpop.f32.mrf.mxu0 }
 0x1ff   :  { %v3075_v53 = vadd.f32 %v3067_v44, %v3059_v2  ;;  %v4270_v63 = vadd.f32 %v4262_v6, %v4254_v36  ;;  %v1515_v5 = vadd.f32 %v6644_v38, %v9071_v33  ;;  %v6674_v42 = vpop.f32.mrf.mxu1  ;;  %v3859_v54 = vmul.f32 %v9096_v41, %v9726_v9  ;;  %v9778_v2 = vld [vmem:[%s11818_s5 + $0x48] sm:$0xff]  ;;  %v9787_v38 = vld [vmem:[%s11818_s5 + $0x50] sm:$0xff] }
 0x200   :  { %12058 = vst [vmem:[#allocation60_spill] sm:$0xff] %v9757_v48  ;;  %v3092_v7 = vadd.f32 %v3084_v3, %v3076_v30  ;;  %v4310_v10 = vmul.f32 %v9208_v8, %v9709_v39  ;;  %6764 = vmatmul.mubr.msk.f32.gmra.mxu0 %vm2536_vm1, %v9742_v15  ;;  %v9766_v11 = vmax.f32 %v1772_v25, 0.0  ;;  %v1775_v0 = vadd.f32 %v6674_v42, %v9071_v33  ;;  %v1487_v18 = vpop.f32.mrf.mxu0 }
 0x201   :  { %v4244_v44 = vmul.f32 %v12021_v1, %v9726_v9  ;;  %v4671_v6 = vmul.f32 %v12048_v23, %v9696_v40  ;;  %6766 = vmatprep.mubr.msk.f32.mxu0 %vm2536_vm1, %v9753_v61  ;;  %12060 = vst [vmem:[#allocation62_spill] sm:$0xff] %v9778_v2  ;;  %v9780_v36 = vmax.f32 %v1515_v5, 0.0  ;;  %v1514_v25 = vadd.f32 %v1487_v18, %v9073_v52  ;;  %v1747_v42 = vpop.f32.mrf.mxu1 }
 0x202   :  { %12059 = vst [vmem:[#allocation61_spill] sm:$0xff] %v9766_v11  ;;  %6812 = vmatprep.subr.mxu1 %v3092_v7  ;;  %v3091_v30 = vadd.f32 %v3083_v21, %v3075_v53  ;;  %v4286_v3 = vadd.f32 %v9611_v13, %v4270_v63  ;;  %12062 = vst [vmem:[#allocation64_spill] sm:$0xff] %v9787_v38  ;;  %v9791_v61 = vmul.f32 %v9096_v41, %v9755_v32 }
 0x203   :  { %12061 = vst [vmem:[#allocation63_spill] sm:$0xff] %v9780_v36  ;;  %v4669_v5 = vmul.f32 %v12021_v1, %v9755_v32  ;;  %v3858_v18 = vmul.f32 %v12013_v14, %v9757_v48  ;;  %6813 = vmatpush3.msra.mxu1 %v3092_v7  ;;  %v4687_v21 = vmul.f32 %v9083_v22, %v9709_v39  ;;  %v9799_v13 = vmax.f32 %v1775_v0, 0.0 }
 0x204   :  { %v1774_v53 = vadd.f32 %v1747_v42, %v9073_v52  ;;  %v3867_v63 = vadd.f32 %v3859_v54, %v9564_v34  ;;  %v4243_v15 = vmul.f32 %v12029_v49, %v9757_v48  ;;  %6814 = vmatprep.subr.mxu1 %v3091_v30  ;;  %6767 = vmatmul.mubr.msk.f32.gmra.mxu0 %vm2536_vm1, %v9778_v2  ;;  %v9807_v28 = vmax.f32 %v1514_v25, 0.0  ;;  %v6647_v50 = vpop.f32.mrf.mxu0  ;;  %v9821_v54 = vld [vmem:[%s11818_s5 + $0x58] sm:$0xff] }
 0x205   :  { %12063 = vst [vmem:[#allocation65_spill] sm:$0xff] %v9799_v13  ;;  %v9811_v7 = vmul.f32 %v12013_v14, %v9766_v11  ;;  %v4679_v0 = vadd.f32 %v4671_v6, %v9623_v37  ;;  %6815 = vmatpush3.msra.mxu1 %v3091_v30  ;;  %v3018_v34 = vmul.f32 %v12016_v46, %v12017_v12  ;;  %12065 = vst [vmem:[#allocation67_spill] sm:$0xff] %v9821_v54  ;;  %v9831_v30 = vld [vmem:[%s11818_s5 + $0x60] sm:$0xff] }
 0x206   :  { %12064 = vst [vmem:[#allocation66_spill] sm:$0xff] %v9807_v28  ;;  %6769 = vmatprep.mubr.msk.f32.mxu0 %vm2536_vm1, %v9787_v38  ;;  %v1517_v25 = vadd.f32 %v6647_v50, %v9071_v33  ;;  %v4252_v42 = vmul.f32 %v12048_v23, %v9780_v36  ;;  %v4668_v37 = vmul.f32 %v12029_v49, %v9766_v11  ;;  %12066 = vst [vmem:[#allocation68_spill] sm:$0xff] %v9831_v30  ;;  %v1497_v38 = vpop.f32.mrf.mxu0 }
 0x207   :  { %v4302_v6 = vadd.f32 %v4294_v16, %v4286_v3  ;;  %v3875_v12 = vmul.f32 %v9112_v17, %v9780_v36  ;;  %v3866_v2 = vadd.f32 %v3858_v18, %v9566_v55  ;;  %v9836_v48 = vadd.f32 %v4687_v21, %v4679_v0  ;;  %v6677_v16 = vpop.f32.mrf.mxu1  ;;  %v12069_v18 = vld [vmem:[#allocation8_spill] sm:$0xff] }
 0x208   :  { %v3034_v50 = vmul.f32 %v9217_v4, %v9382_v59  ;;  %v9840_v14 = vmax.f32 %v1774_v53, 0.0  ;;  %v1529_v11 = vmax.f32 %v1517_v25, 0.0  ;;  %v4677_v3 = vmul.f32 %v12048_v23, %v9799_v13  ;;  %6770 = vmatmul.mubr.msk.f32.gmra.mxu0 %vm2536_vm1, %v9821_v54  ;;  %v12070_v53 = vld [vmem:[#allocation23_spill] sm:$0xff] }
 0x209   :  { %12067 = vst [vmem:[#allocation69_spill] sm:$0xff] %v9836_v48  ;;  %v1516_v49 = vadd.f32 %v1497_v38, %v9073_v52  ;;  %v1777_v47 = vadd.f32 %v6677_v16, %v9071_v33  ;;  %v4300_v55 = vmul.f32 %v9112_v17, %v9799_v13  ;;  %v4251_v21 = vmul.f32 %v12069_v18, %v9807_v28  ;;  %v9858_v38 = vld [vmem:[%s11818_s5 + $0x68] sm:$0xff]  ;;  %v1757_v59 = vpop.f32.mrf.mxu1 }
 0x20a   :  { %12068 = vst [vmem:[#allocation70_spill] sm:$0xff] %v9840_v14  ;;  %v3026_v0 = vadd.f32 %v3018_v34, %v12070_v53  ;;  %6772 = vmatprep.mubr.msk.f32.mxu0 %vm2536_vm1, %v9831_v30  ;;  %v4260_v25 = vadd.f32 %v4252_v42, %v4244_v44  ;;  %v4268_v54 = vmul.f32 %v9083_v22, %v1529_v11  ;;  %v9868_v34 = vld [vmem:[%s11818_s5 + $0x70] sm:$0xff] }
 0x20b   :  { %v9861_v16 = vmax.f32 %v1516_v49, 0.0  ;;  %v9863_v13 = vadd.f32 %v4310_v10, %v4302_v6  ;;  %12071 = vst [vmem:[#allocation8_spill] sm:$0xff] %v9868_v34  ;;  %v3883_v53 = vadd.f32 %v3875_v12, %v3867_v63  ;;  %v1789_v30 = vmax.f32 %v1777_v47, 0.0  ;;  %v9888_v47 = vld [vmem:[%s11818_s5 + $0x78] sm:$0xff]  ;;  %v12074_v63 = vld [vmem:[#allocation25_spill] sm:$0xff] }
 0x20c   :  { %v1776_v17 = vadd.f32 %v1757_v59, %v9073_v52  ;;  %v3042_v48 = vadd.f32 %v3034_v50, %v3026_v0  ;;  %v4276_v41 = vadd.f32 %v4268_v54, %v4260_v25  ;;  %v4685_v43 = vadd.f32 %v4677_v3, %v4669_v5  ;;  %6773 = vmatmul.mubr.msk.f32.gmra.mxu0 %vm2536_vm1, %v9858_v38  ;;  %v9899_v6 = vld [vmem:[%s11818_s5 + $0x80] sm:$0xff] }
 0x20d   :  { %v3874_v44 = vmul.f32 %v12016_v46, %v9807_v28  ;;  %v4267_v49 = vmul.f32 %v9091_v51, %v9861_v16  ;;  %v4259_v10 = vadd.f32 %v4251_v21, %v4243_v15  ;;  %v4299_v12 = vmul.f32 %v12016_v46, %v9840_v14  ;;  %6775 = vmatprep.mubr.msk.f32.mxu0 %vm2536_vm1, %v9868_v34 }
 0x20e   :  { %v9877_v42 = vmax.f32 %v1776_v17, 0.0  ;;  %v4676_v59 = vmul.f32 %v12069_v18, %v9840_v14  ;;  %12073 = vst [vmem:[#allocation71_spill] sm:$0xff] %v9888_v47  ;;  %v3891_v5 = vmul.f32 %v9208_v8, %v1529_v11  ;;  %v3058_v15 = vadd.f32 %v12074_v63, %v3042_v48  ;;  %12075 = vst [vmem:[#allocation25_spill] sm:$0xff] %v9899_v6 }
 0x20f   :  { %v3066_v17 = vmul.f32 %v9443_v58, %v12051_v29  ;;  %v3082_v54 = vmul.f32 %v9501_v56, %v12020_v45  ;;  %v4292_v50 = vadd.f32 %v9791_v61, %v4276_v41  ;;  %v4693_v3 = vmul.f32 %v9083_v22, %v1789_v30 }
 0x210   :  { %12072 = vst [vmem:[#allocation23_spill] sm:$0xff] %v9877_v42  ;;  %v3890_v21 = vmul.f32 %v9217_v4, %v9861_v16  ;;  %v4245_v48 = vmul.f32 %v12069_v18, %v9655_v24  ;;  %v4275_v0 = vadd.f32 %v4267_v49, %v4259_v10  ;;  %v4692_v25 = vmul.f32 %v9091_v51, %v9877_v42 }
 0x211   :  { %v3074_v63 = vadd.f32 %v3066_v17, %v3058_v15  ;;  %v4261_v29 = vmul.f32 %v9091_v51, %v9718_v20  ;;  %6776 = vmatmul.mubr.msk.f32.gmra.mxu0 %vm2536_vm1, %v9888_v47  ;;  %v9914_v41 = vmul.f32 %v9472_v31, %v1529_v11  ;;  %v3882_v61 = vadd.f32 %v3874_v44, %v3866_v2  ;;  %v6692_v17 = vpop.f32.mrf.mxu0  ;;  %v9928_v11 = vld [vmem:[%s11818_s5 + $0x88] sm:$0xff] }
 0x212   :  { %v4684_v14 = vadd.f32 %v4676_v59, %v4668_v37  ;;  %v4253_v34 = vadd.f32 %v4245_v48, %v9606_v62  ;;  %6778 = vmatprep.mubr.msk.f32.mxu0 %vm2536_vm1, %v9899_v6  ;;  %v9919_v49 = vadd.f32 %v3891_v5, %v3883_v53  ;;  %v9922_v10 = vmul.f32 %v9472_v31, %v1789_v30 }
 0x213   :  { %v4316_v15 = vmul.f32 %v9208_v8, %v1789_v30  ;;  %v3090_v24 = vadd.f32 %v3082_v54, %v3074_v63  ;;  %12077 = vst [vmem:[#allocation73_spill] sm:$0xff] %v9928_v11  ;;  %v4308_v2 = vadd.f32 %v4300_v55, %v4292_v50  ;;  %v9930_v37 = vadd.f32 %v3890_v21, %v3882_v61  ;;  %v1967_v54 = vpop.f32.mrf.mxu0  ;;  %v9943_v55 = vld [vmem:[%s11818_s5 + $0x90] sm:$0xff] }
 0x214   :  { %12076 = vst [vmem:[#allocation72_spill] sm:$0xff] %v9922_v10  ;;  %v2027_v62 = vadd.f32 %v6692_v17, %v9071_v33  ;;  %v4269_v44 = vadd.f32 %v4261_v29, %v4253_v34  ;;  %v9933_v53 = vadd.f32 %v4693_v3, %v4685_v43  ;;  %v4291_v59 = vadd.f32 %v9811_v7, %v4275_v0  ;;  %v6722_v50 = vpop.f32.mrf.mxu1 }
 0x215   :  { %12078 = vst [vmem:[#allocation74_spill] sm:$0xff] %v9930_v37  ;;  %v4315_v30 = vmul.f32 %v9217_v4, %v9877_v42  ;;  %v9938_v5 = vadd.f32 %v4692_v25, %v4684_v14  ;;  %6816 = vmatprep.subr.mxu1 %v3090_v24  ;;  %12081 = vst [vmem:[#allocation77_spill] sm:$0xff] %v9943_v55  ;;  %v2026_v21 = vadd.f32 %v1967_v54, %v9073_v52 }
 0x216   :  { %12079 = vst [vmem:[#allocation75_spill] sm:$0xff] %v9933_v53  ;;  %v4285_v43 = vadd.f32 %v9637_v27, %v4269_v44  ;;  %v4293_v29 = vmul.f32 %v12016_v46, %v9698_v60  ;;  %6817 = vmatpush3.msra.mxu1 %v3090_v24  ;;  %6779 = vmatmul.mubr.msk.f32.gmra.mxu0 %vm2536_vm1, %v9928_v11  ;;  %v2039_v14 = vmax.f32 %v2027_v62, 0.0  ;;  %v6695_v27 = vpop.f32.mrf.mxu0  ;;  %v9961_v24 = vld [vmem:[%s11818_s5 + $0x98] sm:$0xff]  ;;  %v2227_v25 = vpop.f32.mrf.mxu1 }
 0x217   :  { %12080 = vst [vmem:[#allocation76_spill] sm:$0xff] %v9938_v5  ;;  %v2287_v7 = vadd.f32 %v6722_v50, %v9071_v33  ;;  %v4309_v34 = vmul.f32 %v9217_v4, %v9724_v19  ;;  %v4670_v3 = vmul.f32 %v12069_v18, %v9698_v60  ;;  %6819 = vmatmul.mubr.msk.f32.vlgmr.msra.gmra.mxu1 %vm2536_vm1, %v9634_v35  ;;  %12082 = vst [vmem:[#allocation78_spill] sm:$0xff] %v9961_v24  ;;  %v9976_v35 = vld [vmem:[%s11818_s5 + $0xa0] sm:$0xff] }
 0x218   :  { %v9963_v48 = vadd.f32 %v4316_v15, %v4308_v2  ;;  %v2038_v0 = vmax.f32 %v2026_v21, 0.0  ;;  %v4673_v63 = vmul.f32 %v12048_v23, %v9709_v39  ;;  %v3482_v61 = vmul.f32 %v9275_v57, %v9726_v9  ;;  %6821 = vmatprep.mubr.msk.f32.mxu1 %vm2536_vm1, %v9646_v26  ;;  %6781 = vmatprep.mubr.msk.f32.mxu0 %vm2536_vm1, %v9943_v55  ;;  %v6725_v50 = vpop.f32.mrf.mxu1  ;;  %v12085_v21 = vld [vmem:[#allocation32_spill] sm:$0xff]  ;;  %v1977_v5 = vpop.f32.mrf.mxu0  ;;  %v12090_v55 = vld [vmem:[#allocation11_spill] sm:$0xff] }
 0x219   :  { %12084 = vst [vmem:[#allocation80_spill] sm:$0xff] %v9976_v35  ;;  %v4307_v15 = vadd.f32 %v4299_v12, %v4291_v59  ;;  %v4686_v17 = vmul.f32 %v9091_v51, %v9724_v19  ;;  %v2286_v2 = vadd.f32 %v2227_v25, %v9073_v52  ;;  %v2029_v62 = vadd.f32 %v6695_v27, %v9071_v33  ;;  %v12086_v59 = vld [vmem:[#allocation10_spill] sm:$0xff]  ;;  %v12088_v53 = vld [vmem:[#allocation52_spill] sm:$0xff] }
 0x21a   :  { %12083 = vst [vmem:[#allocation79_spill] sm:$0xff] %v9963_v48  ;;  %v4301_v44 = vadd.f32 %v4293_v29, %v4285_v43  ;;  %v4665_v26 = vmul.f32 %v12021_v1, %v9696_v40  ;;  %v4689_v54 = vmul.f32 %v9083_v22, %v9755_v32  ;;  %v3498_v48 = vmul.f32 %v12085_v21, %v9780_v36  ;;  %v12087_v43 = vld [vmem:[#allocation18_spill] sm:$0xff]  ;;  %v12089_v39 = vld [vmem:[#allocation16_spill] sm:$0xff]  ;;  %v2237_v6 = vpop.f32.mrf.mxu1 }
 0x21b   :  { %6782 = vmatmul.mubr.msk.f32.gmra.mxu0 %vm2536_vm1, %v9961_v24  ;;  %v4326_v12 = vmul.f32 %v9275_v57, %v2039_v14  ;;  %v4703_v25 = vmul.f32 %v12086_v59, %v2039_v14  ;;  %v2299_v27 = vmax.f32 %v2287_v7, 0.0  ;;  %v4678_v29 = vadd.f32 %v4670_v3, %v12087_v43  ;;  %6822 = vmatmul.mubr.msk.f32.gmra.mxu1 %vm2536_vm1, %v12088_v53  ;;  %v10000_v40 = vld [vmem:[%s11818_s5 + $0xa8] sm:$0xff]  ;;  %v12092_v3 = vld [vmem:[#allocation19_spill] sm:$0xff] }
 0x21c   :  { %6784 = vmatprep.mubr.msk.f32.mxu0 %vm2536_vm1, %v9976_v35  ;;  %v4325_v24 = vmul.f32 %v12089_v39, %v2038_v0  ;;  %v4702_v42 = vmul.f32 %v12090_v55, %v2038_v0  ;;  %v4681_v11 = vadd.f32 %v4673_v63, %v4665_v26  ;;  %v12091_v14 = vld [vmem:[#allocation41_spill] sm:$0xff]  ;;  %6824 = vmatprep.mubr.msk.f32.mxu1 %vm2536_vm1, %v12092_v3  ;;  %v2298_v43 = vmax.f32 %v2286_v2, 0.0  ;;  %v10017_v0 = vld [vmem:[%s11818_s5 + $0xb0] sm:$0xff]  ;;  %v6728_v2 = vpop.f32.mrf.mxu1 }
 0x21d   :  { %v3490_v7 = vadd.f32 %v3482_v61, %v12091_v14  ;;  %v10007_v53 = vadd.f32 %v4315_v30, %v4307_v15  ;;  %v10009_v35 = vmax.f32 %v2029_v62, 0.0  ;;  %v2028_v37 = vadd.f32 %v1977_v5, %v9073_v52  ;;  %v12096_v63 = vld [vmem:[#allocation69_spill] sm:$0xff]  ;;  %v12098_v5 = vld [vmem:[#allocation54_spill] sm:$0xff]  ;;  %v12101_v62 = vld [vmem:[#allocation56_spill] sm:$0xff] }
 0x21e   :  { %v4317_v47 = vadd.f32 %v4309_v34, %v4301_v44  ;;  %v4694_v10 = vadd.f32 %v4686_v17, %v4678_v29  ;;  %v4697_v20 = vadd.f32 %v4689_v54, %v4681_v11  ;;  %v10020_v30 = vadd.f32 %v4326_v12, %v9863_v13  ;;  %v12110_v29 = vld [vmem:[#allocation61_spill] sm:$0xff] }
 0x21f   :  { %12093 = vst [vmem:[#allocation32_spill] sm:$0xff] %v10007_v53  ;;  %12094 = vst [vmem:[#allocation10_spill] sm:$0xff] %v10009_v35  ;;  %v3506_v4 = vadd.f32 %v3498_v48, %v3490_v7  ;;  %6785 = vmatmul.mubr.msk.f32.gmra.mxu0 %vm2536_vm1, %v10000_v40  ;;  %v4711_v61 = vadd.f32 %v4703_v25, %v12096_v63  ;;  %v10024_v15 = vmul.f32 %v9275_v57, %v2299_v27  ;;  %v10066_v25 = vld [vmem:[%s11818_s5 + $0xc0] sm:$0xff] }
 0x220   :  { %12095 = vst [vmem:[#allocation18_spill] sm:$0xff] %v10020_v30  ;;  %v4672_v11 = vmul.f32 %v12069_v18, %v9724_v19  ;;  %6825 = vmatmul.mubr.msk.f32.gmra.mxu1 %vm2536_vm1, %v12098_v5  ;;  %v10030_v34 = vadd.f32 %v4325_v24, %v4317_v47  ;;  %v4710_v48 = vadd.f32 %v4702_v42, %v4694_v10  ;;  %v10043_v54 = vmax.f32 %v2028_v37, 0.0  ;;  %v12104_v47 = vld [vmem:[#allocation7_spill] sm:$0xff]  ;;  %v12108_v37 = vld [vmem:[#allocation60_spill] sm:$0xff] }
 0x221   :  { %12097 = vst [vmem:[#allocation52_spill] sm:$0xff] %v10024_v15  ;;  %v10033_v17 = vadd.f32 %v6725_v50, %v9071_v33  ;;  %v3522_v13 = vadd.f32 %v9914_v41, %v3506_v4  ;;  %6827 = vmatprep.mubr.msk.f32.mxu1 %vm2536_vm1, %v12101_v62  ;;  %v10039_v44 = vmul.f32 %v12089_v39, %v2298_v43  ;;  %v10052_v4 = vld [vmem:[%s11818_s5 + $0xb8] sm:$0xff]  ;;  %12109 = vst [vmem:[#allocation56_spill] sm:$0xff] %v10066_v25 }
 0x222   :  { %12099 = vst [vmem:[#allocation16_spill] sm:$0xff] %v10030_v34  ;;  %v4705_v26 = vmul.f32 %v12086_v59, %v10009_v35  ;;  %12103 = vst [vmem:[#allocation19_spill] sm:$0xff] %v10043_v54  ;;  %v4664_v42 = vmul.f32 %v12104_v47, %v9698_v60  ;;  %6787 = vmatprep.mubr.msk.f32.mxu0 %vm2536_vm1, %v10017_v0  ;;  %v12106_v41 = vld [vmem:[#allocation12_spill] sm:$0xff]  ;;  %v10057_v24 = vadd.f32 %v2237_v6, %v9073_v52  ;;  %v12111_v43 = vld [vmem:[#allocation51_spill] sm:$0xff]  ;;  %v6698_v34 = vpop.f32.mrf.mxu0 }
 0x223   :  { %12100 = vst [vmem:[#allocation11_spill] sm:$0xff] %v10033_v17  ;;  %12102 = vst [vmem:[#allocation41_spill] sm:$0xff] %v10039_v44  ;;  %v4719_v10 = vmul.f32 %v12106_v41, %v10009_v35  ;;  %6866 = vmatprep.subr.mxu0 %v3522_v13  ;;  %v3481_v50 = vmul.f32 %v12089_v39, %v12108_v37  ;;  %v3497_v12 = vmul.f32 %v9443_v58, %v9807_v28  ;;  %v12112_v5 = vld [vmem:[#allocation31_spill] sm:$0xff]  ;;  %v12113_v44 = vld [vmem:[#allocation37_spill] sm:$0xff] }
 0x224   :  { %12105 = vst [vmem:[#allocation69_spill] sm:$0xff] %v10052_v4  ;;  %12107 = vst [vmem:[#allocation54_spill] sm:$0xff] %v10057_v24  ;;  %v4680_v27 = vadd.f32 %v4672_v11, %v4664_v42  ;;  %v4688_v14 = vmul.f32 %v9091_v51, %v12110_v29  ;;  %6867 = vmatpush3.msra.mxu0 %v3522_v13  ;;  %v3513_v6 = vmul.f32 %v9501_v56, %v9861_v16  ;;  %v12114_v11 = vld [vmem:[#allocation22_spill] sm:$0xff] }
 0x225   :  { %v2291_v7 = vadd.f32 %v6728_v2, %v9071_v33  ;;  %v3489_v63 = vadd.f32 %v3481_v50, %v12111_v43  ;;  %v3392_v62 = vmul.f32 %v12021_v1, %v12112_v5  ;;  %v3400_v15 = vmul.f32 %v12048_v23, %v12113_v44  ;;  %6828 = vmatmul.mubr.msk.f32.gmra.mxu1 %vm2536_vm1, %v12114_v11  ;;  %v12115_v2 = vld [vmem:[#allocation45_spill] sm:$0xff]  ;;  %v12116_v50 = vld [vmem:[#allocation59_spill] sm:$0xff] }
 0x226   :  { %6788 = vmatmul.mubr.msk.f32.gmra.mxu0 %vm2536_vm1, %v10052_v4  ;;  %v4704_v16 = vmul.f32 %v12090_v55, %v10043_v54  ;;  %v4718_v13 = vmul.f32 %v12016_v46, %v10043_v54  ;;  %v3416_v42 = vmul.f32 %v9083_v22, %v12115_v2  ;;  %6830 = vmatprep.mubr.msk.f32.mxu1 %vm2536_vm1, %v12116_v50  ;;  %v12121_v50 = vmax.f32 %v10033_v17, 0.0  ;;  %v12140_v17 = vld [vmem:[#allocation67_spill] sm:$0xff] }
 0x227   :  { %6790 = vmatprep.mubr.msk.f32.mxu0 %vm2536_vm1, %v10066_v25  ;;  %v10095_v43 = vmul.f32 %v9275_v57, %v10009_v35  ;;  %v3505_v3 = vadd.f32 %v3497_v12, %v3489_v63  ;;  %v3408_v30 = vadd.f32 %v3400_v15, %v3392_v62  ;;  %v10098_v53 = vadd.f32 %v4705_v26, %v4697_v20  ;;  %v12124_v12 = vld [vmem:[#allocation62_spill] sm:$0xff] }
 0x228   :  { %v10100_v60 = vadd.f32 %v4719_v10, %v4711_v61  ;;  %v4696_v2 = vadd.f32 %v4688_v14, %v4680_v27  ;;  %v10102_v19 = vmax.f32 %v2291_v7, 0.0  ;;  %v10107_v25 = vmul.f32 %v9275_v57, %v12121_v50  ;;  %v2247_v10 = vpop.f32.mrf.mxu1  ;;  %v12128_v27 = vld [vmem:[#allocation64_spill] sm:$0xff] }
 0x229   :  { %12117 = vst [vmem:[#allocation7_spill] sm:$0xff] %v10095_v43  ;;  %12118 = vst [vmem:[#allocation12_spill] sm:$0xff] %v10098_v53  ;;  %v3521_v4 = vadd.f32 %v3513_v6, %v3505_v3  ;;  %v3424_v35 = vadd.f32 %v3416_v42, %v3408_v30  ;;  %v12123_v43 = vld [vmem:[#allocation33_spill] sm:$0xff]  ;;  %6831 = vmatmul.mubr.msk.f32.gmra.mxu1 %vm2536_vm1, %v12124_v12  ;;  %v10115_v20 = vmul.f32 %v12089_v39, %v10043_v54  ;;  %v1987_v42 = vpop.f32.mrf.mxu0  ;;  %v12137_v12 = vld [vmem:[#allocation46_spill] sm:$0xff] }
 0x22a   :  { %12119 = vst [vmem:[#allocation60_spill] sm:$0xff] %v10100_v60  ;;  %12120 = vst [vmem:[#allocation51_spill] sm:$0xff] %v10102_v19  ;;  %v3432_v11 = vmul.f32 %v12086_v59, %v12123_v43  ;;  %v10117_v61 = vadd.f32 %v4704_v16, %v4696_v2  ;;  %v10119_v15 = vadd.f32 %v4718_v13, %v4710_v48  ;;  %6833 = vmatprep.mubr.msk.f32.mxu1 %vm2536_vm1, %v12128_v27  ;;  %v10127_v30 = vld [vmem:[%s11818_s5 + $0xc8] sm:$0xff]  ;;  %v12132_v48 = vld [vmem:[#allocation40_spill] sm:$0xff] }
 0x22b   :  { %12122 = vst [vmem:[#allocation31_spill] sm:$0xff] %v10107_v25  ;;  %12125 = vst [vmem:[#allocation37_spill] sm:$0xff] %v10115_v20  ;;  %v2031_v26 = vadd.f32 %v6698_v34, %v9071_v33  ;;  %v12130_v14 = vmax.f32 %v10057_v24, 0.0  ;;  %6868 = vmatprep.subr.mxu0 %v3521_v4  ;;  %v3448_v3 = vmul.f32 %v12106_v41, %v12132_v48  ;;  %v12133_v34 = vld [vmem:[#allocation39_spill] sm:$0xff]  ;;  %v12135_v16 = vld [vmem:[#allocation48_spill] sm:$0xff]  ;;  %6791 = vmatmul.mubr.msk.f32.gmra.mxu0 %vm2536_vm1, %v10127_v30 }
 0x22c   :  { %12126 = vst [vmem:[#allocation22_spill] sm:$0xff] %v10117_v61  ;;  %12127 = vst [vmem:[#allocation45_spill] sm:$0xff] %v10119_v15  ;;  %v3440_v7 = vadd.f32 %v3432_v11, %v3424_v35  ;;  %v3399_v63 = vmul.f32 %v12069_v18, %v12133_v34  ;;  %v10140_v62 = vmul.f32 %v9275_v57, %v10102_v19  ;;  %6869 = vmatpush3.msra.mxu0 %v3521_v4  ;;  %v12136_v2 = vld [vmem:[#allocation38_spill] sm:$0xff]  ;;  %v12142_v25 = vld [vmem:[#allocation68_spill] sm:$0xff] }
 0x22d   :  { %12129 = vst [vmem:[#allocation59_spill] sm:$0xff] %v10127_v30  ;;  %v10132_v6 = vmul.f32 %v12089_v39, %v12130_v14  ;;  %v3464_v13 = vmul.f32 %v9208_v8, %v12135_v16  ;;  %v3391_v50 = vmul.f32 %v12104_v47, %v12136_v2  ;;  %v3415_v35 = vmul.f32 %v9091_v51, %v12137_v12  ;;  %v10151_v11 = vld [vmem:[%s11818_s5 + $0xd0] sm:$0xff]  ;;  %v12139_v14 = vld [vmem:[#allocation53_spill] sm:$0xff] }
 0x22e   :  { %12134 = vst [vmem:[#allocation62_spill] sm:$0xff] %v10140_v62  ;;  %12138 = vst [vmem:[#allocation64_spill] sm:$0xff] %v10151_v11  ;;  %v3456_v27 = vadd.f32 %v3448_v3, %v3440_v7  ;;  %v3480_v24 = vmul.f32 %v9275_v57, %v12139_v14  ;;  %v2290_v4 = vadd.f32 %v2247_v10, %v9073_v52  ;;  %6834 = vmatmul.mubr.msk.f32.gmra.mxu1 %vm2536_vm1, %v12140_v17  ;;  %v6731_v3 = vpop.f32.mrf.mxu1  ;;  %v6701_v62 = vpop.f32.mrf.mxu0  ;;  %v10192_v61 = vld [vmem:[%s11818_s5 + $0xe0] sm:$0xff] }
 0x22f   :  { %12131 = vst [vmem:[#allocation33_spill] sm:$0xff] %v10132_v6  ;;  %v10162_v12 = vmul.f32 %v12085_v21, %v10102_v19  ;;  %v3496_v15 = vmul.f32 %v12085_v21, %v9726_v9  ;;  %v3407_v6 = vadd.f32 %v3399_v63, %v3391_v50  ;;  %v3907_v7 = vmul.f32 %v9275_v57, %v9755_v32  ;;  %v10182_v63 = vld [vmem:[%s11818_s5 + $0xd8] sm:$0xff] }
 0x230   :  { %6836 = vmatprep.mubr.msk.f32.mxu1 %vm2536_vm1, %v12142_v25  ;;  %v3472_v10 = vadd.f32 %v3464_v13, %v3456_v27  ;;  %v3512_v17 = vmul.f32 %v9472_v31, %v9780_v36  ;;  %v10173_v60 = vadd.f32 %v1987_v42, %v9073_v52  ;;  %v3431_v19 = vmul.f32 %v12090_v55, %v12020_v45  ;;  %v12145_v25 = vld [vmem:[#allocation43_spill] sm:$0xff] }
 0x231   :  { %12141 = vst [vmem:[#allocation40_spill] sm:$0xff] %v10162_v12  ;;  %6793 = vmatprep.mubr.msk.f32.mxu0 %vm2536_vm1, %v10151_v11  ;;  %12144 = vst [vmem:[#allocation48_spill] sm:$0xff] %v10182_v63  ;;  %v3423_v50 = vadd.f32 %v3415_v35, %v3407_v6  ;;  %v3447_v13 = vmul.f32 %v12016_v46, %v12145_v25  ;;  %v3915_v27 = vadd.f32 %v3907_v7, %v9919_v49  ;;  %v12146_v12 = vld [vmem:[#allocation65_spill] sm:$0xff]  ;;  %v12150_v11 = vld [vmem:[#allocation8_spill] sm:$0xff] }
 0x232   :  { %12143 = vst [vmem:[#allocation39_spill] sm:$0xff] %v10173_v60  ;;  %v3923_v42 = vmul.f32 %v12085_v21, %v12146_v12  ;;  %12147 = vst [vmem:[#allocation38_spill] sm:$0xff] %v10192_v61  ;;  %v3488_v53 = vadd.f32 %v3480_v24, %v3472_v10  ;;  %v10194_v54 = vmax.f32 %v2290_v4, 0.0  ;;  %v2293_v20 = vadd.f32 %v6731_v3, %v9071_v33  ;;  %v12151_v4 = vld [vmem:[#allocation49_spill] sm:$0xff]  ;;  %v12152_v3 = vld [vmem:[#allocation14_spill] sm:$0xff] }
 0x233   :  { %v3398_v6 = vmul.f32 %v12048_v23, %v12112_v5  ;;  %6837 = vmatmul.mubr.msk.f32.gmra.mxu1 %vm2536_vm1, %v9858_v38  ;;  %v10201_v49 = vmax.f32 %v2031_v26, 0.0  ;;  %v3439_v35 = vadd.f32 %v3431_v19, %v3423_v50  ;;  %v3414_v60 = vmul.f32 %v9083_v22, %v12113_v44  ;;  %6794 = vmatmul.mubr.msk.f32.gmra.mxu0 %vm2536_vm1, %v10182_v63  ;;  %v12153_v10 = vld [vmem:[#allocation57_spill] sm:$0xff] }
 0x234   :  { %12148 = vst [vmem:[#allocation46_spill] sm:$0xff] %v10194_v54  ;;  %v3931_v7 = vadd.f32 %v3923_v42, %v3915_v27  ;;  %6839 = vmatprep.mubr.msk.f32.mxu1 %vm2536_vm1, %v12150_v11  ;;  %v3504_v24 = vadd.f32 %v3496_v15, %v3488_v53  ;;  %v3463_v5 = vmul.f32 %v12152_v3, %v12151_v4  ;;  %v12154_v11 = vld [vmem:[#allocation72_spill] sm:$0xff] }
 0x235   :  { %12149 = vst [vmem:[#allocation53_spill] sm:$0xff] %v10201_v49  ;;  %v3479_v38 = vmul.f32 %v12089_v39, %v12153_v10  ;;  %v2033_v26 = vadd.f32 %v6701_v62, %v9071_v33  ;;  %6796 = vmatprep.mubr.msk.f32.mxu0 %vm2536_vm1, %v10192_v61  ;;  %v3455_v19 = vadd.f32 %v3447_v13, %v3439_v35  ;;  %v12155_v27 = vld [vmem:[#allocation28_spill] sm:$0xff]  ;;  %v12157_v62 = vld [vmem:[#allocation27_spill] sm:$0xff]  ;;  %v2257_v61 = vpop.f32.mrf.mxu1 }
 0x236   :  { %v3495_v44 = vmul.f32 %v9443_v58, %v12108_v37  ;;  %v3947_v50 = vadd.f32 %v12154_v11, %v3931_v7  ;;  %v3406_v42 = vadd.f32 %v3398_v6, %v12155_v27  ;;  %v3520_v53 = vadd.f32 %v3512_v17, %v3504_v24  ;;  %v12158_v13 = vld [vmem:[#allocation71_spill] sm:$0xff] }
 0x237   :  { %v10222_v15 = vmul.f32 %v12089_v39, %v10194_v54  ;;  %v3511_v49 = vmul.f32 %v9501_v56, %v9807_v28  ;;  %v3430_v63 = vmul.f32 %v12086_v59, %v12157_v62  ;;  %6840 = vmatmul.mubr.msk.f32.gmra.mxu1 %vm2536_vm1, %v12158_v13  ;;  %v3471_v35 = vadd.f32 %v3463_v5, %v3455_v19  ;;  %v12161_v27 = vld [vmem:[#allocation47_spill] sm:$0xff]  ;;  %v12164_v54 = vld [vmem:[#allocation74_spill] sm:$0xff] }
 0x238   :  { %6930 = vmatprep.subr.mxu1 %v3947_v50  ;;  %v10230_v7 = vmax.f32 %v2293_v20, 0.0  ;;  %v3422_v6 = vadd.f32 %v3414_v60, %v3406_v42  ;;  %v3446_v17 = vmul.f32 %v12106_v41, %v12123_v43  ;;  %6870 = vmatprep.subr.mxu0 %v3520_v53  ;;  %v10234_v24 = vmax.f32 %v2033_v26, 0.0  ;;  %v10245_v60 = vld [vmem:[%s11818_s5 + $0xe8] sm:$0xff]  ;;  %v1997_v42 = vpop.f32.mrf.mxu0 }
 0x239   :  { %12156 = vst [vmem:[#allocation67_spill] sm:$0xff] %v10222_v15  ;;  %6931 = vmatpush3.msra.mxu1 %v3947_v50  ;;  %v3462_v11 = vmul.f32 %v9208_v8, %v12132_v48  ;;  %v3478_v62 = vmul.f32 %v9275_v57, %v12161_v27  ;;  %v3906_v5 = vmul.f32 %v12089_v39, %v12110_v29  ;;  %12162 = vst [vmem:[#allocation8_spill] sm:$0xff] %v10245_v60  ;;  %v12163_v26 = vld [vmem:[#allocation70_spill] sm:$0xff] }
 0x23a   :  { %12159 = vst [vmem:[#allocation68_spill] sm:$0xff] %v10230_v7  ;;  %12160 = vst [vmem:[#allocation43_spill] sm:$0xff] %v10234_v24  ;;  %6871 = vmatpush3.msra.mxu0 %v3520_v53  ;;  %v3487_v20 = vadd.f32 %v3479_v38, %v3471_v35  ;;  %v3438_v19 = vadd.f32 %v3430_v63, %v3422_v6  ;;  %v3922_v50 = vmul.f32 %v9443_v58, %v12163_v26  ;;  %v12165_v24 = vld [vmem:[#allocation29_spill] sm:$0xff]  ;;  %v10262_v63 = vld [vmem:[%s11818_s5 + $0xf0] sm:$0xff] }
 0x23b   :  { %v2292_v13 = vadd.f32 %v2257_v61, %v9073_v52  ;;  %v3914_v15 = vadd.f32 %v3906_v5, %v12164_v54  ;;  %v3389_v30 = vmul.f32 %v12104_v47, %v12165_v24  ;;  %v3397_v29 = vmul.f32 %v12069_v18, %v12136_v2  ;;  %v12166_v53 = vld [vmem:[#allocation25_spill] sm:$0xff]  ;;  %12167 = vst [vmem:[#allocation49_spill] sm:$0xff] %v10262_v63  ;;  %v12171_v5 = vld [vmem:[#allocation23_spill] sm:$0xff] }
 0x23c   :  { %v3413_v28 = vmul.f32 %v9091_v51, %v12133_v34  ;;  %6842 = vmatprep.mubr.msk.f32.mxu1 %vm2536_vm1, %v12166_v53  ;;  %v3503_v61 = vadd.f32 %v3495_v44, %v3487_v20  ;;  %v10266_v54 = vmul.f32 %v9275_v57, %v10230_v7  ;;  %v3454_v38 = vadd.f32 %v3446_v17, %v3438_v19  ;;  %v12170_v6 = vld [vmem:[#allocation73_spill] sm:$0xff] }
 0x23d   :  { %v10268_v35 = vmax.f32 %v2292_v13, 0.0  ;;  %6843 = vmatmul.mubr.msk.f32.gmra.mxu1 %vm2536_vm1, %v12170_v6  ;;  %6797 = vmatmul.mubr.msk.f32.gmra.mxu0 %vm2536_vm1, %v10245_v60  ;;  %v3930_v34 = vadd.f32 %v3922_v50, %v3914_v15  ;;  %v3938_v53 = vmul.f32 %v9501_v56, %v12171_v5  ;;  %v2032_v26 = vadd.f32 %v1997_v42, %v9073_v52  ;;  %v12172_v20 = vld [vmem:[#allocation77_spill] sm:$0xff]  ;;  %v6704_v5 = vpop.f32.mrf.mxu0 }
 0x23e   :  { %12168 = vst [vmem:[#allocation14_spill] sm:$0xff] %v10266_v54  ;;  %v3405_v44 = vadd.f32 %v3397_v29, %v3389_v30  ;;  %6845 = vmatprep.mubr.msk.f32.mxu1 %vm2536_vm1, %v12172_v20  ;;  %v3519_v54 = vadd.f32 %v3511_v49, %v3503_v61  ;;  %v10281_v17 = vmul.f32 %v12085_v21, %v10230_v7  ;;  %v12174_v30 = vld [vmem:[#allocation30_spill] sm:$0xff] }
 0x23f   :  { %12169 = vst [vmem:[#allocation57_spill] sm:$0xff] %v10268_v35  ;;  %v3470_v19 = vadd.f32 %v3462_v11, %v3454_v38  ;;  %v3494_v13 = vmul.f32 %v12085_v21, %v12139_v14  ;;  %6799 = vmatprep.mubr.msk.f32.mxu0 %vm2536_vm1, %v10262_v63  ;;  %v3510_v15 = vmul.f32 %v9472_v31, %v9726_v9  ;;  %v10299_v6 = vmax.f32 %v2032_v26, 0.0  ;;  %v12179_v7 = vld [vmem:[#allocation78_spill] sm:$0xff] }
 0x240   :  { %12173 = vst [vmem:[#allocation72_spill] sm:$0xff] %v10281_v17  ;;  %v3946_v50 = vadd.f32 %v3938_v53, %v3930_v34  ;;  %v3421_v29 = vadd.f32 %v3413_v28, %v3405_v44  ;;  %v3429_v42 = vmul.f32 %v12090_v55, %v12174_v30  ;;  %6872 = vmatprep.subr.mxu0 %v3519_v54  ;;  %v12177_v44 = vld [vmem:[#allocation44_spill] sm:$0xff] }
 0x241   :  { %v3486_v49 = vadd.f32 %v3478_v62, %v3470_v19  ;;  %v10293_v61 = vmul.f32 %v12089_v39, %v10268_v35  ;;  %v3445_v11 = vmul.f32 %v12016_v46, %v12020_v45  ;;  %v3461_v38 = vmul.f32 %v12152_v3, %v12145_v25  ;;  %6873 = vmatpush3.msra.mxu0 %v3519_v54  ;;  %v6734_v54 = vpop.f32.mrf.mxu1 }
 0x242   :  { %6932 = vmatprep.subr.mxu1 %v3946_v50  ;;  %12176 = vst [vmem:[#allocation27_spill] sm:$0xff] %v10299_v6  ;;  %v3437_v28 = vadd.f32 %v3429_v42, %v3421_v29  ;;  %v3817_v34 = vmul.f32 %v12021_v1, %v12123_v43  ;;  %v3825_v62 = vmul.f32 %v12048_v23, %v12132_v48  ;;  %v10314_v29 = vld [vmem:[%s11818_s5 + $0xf8] sm:$0xff] }
 0x243   :  { %12175 = vst [vmem:[#allocation28_spill] sm:$0xff] %v10293_v61  ;;  %v3502_v53 = vadd.f32 %v3494_v13, %v3486_v49  ;;  %6933 = vmatpush3.msra.mxu1 %v3946_v50  ;;  %v3477_v20 = vmul.f32 %v12089_v39, %v12177_v44  ;;  %v3493_v19 = vmul.f32 %v9443_v58, %v12153_v10  ;;  %12178 = vst [vmem:[#allocation71_spill] sm:$0xff] %v10314_v29 }
 0x244   :  { %v3841_v26 = vmul.f32 %v9083_v22, %v12135_v16  ;;  %v3453_v42 = vadd.f32 %v3445_v11, %v3437_v28  ;;  %v3509_v13 = vmul.f32 %v9501_v56, %v12108_v37  ;;  %v3833_v50 = vadd.f32 %v3825_v62, %v3817_v34  ;;  %6846 = vmatmul.mubr.msk.f32.gmra.mxu1 %vm2536_vm1, %v12179_v7  ;;  %v12180_v11 = vld [vmem:[#allocation80_spill] sm:$0xff]  ;;  %v12181_v7 = vld [vmem:[#allocation55_spill] sm:$0xff] }
 0x245   :  { %v3857_v49 = vmul.f32 %v12086_v59, %v12139_v14  ;;  %v3518_v35 = vadd.f32 %v3510_v15, %v3502_v53  ;;  %v3873_v16 = vmul.f32 %v12106_v41, %v9726_v9  ;;  %v3889_v17 = vmul.f32 %v9208_v8, %v9780_v36  ;;  %6848 = vmatprep.mubr.msk.f32.mxu1 %vm2536_vm1, %v12180_v11 }
 0x246   :  { %v2035_v1 = vadd.f32 %v6704_v5, %v9071_v33  ;;  %v3469_v28 = vadd.f32 %v3461_v38, %v3453_v42  ;;  %v3849_v34 = vadd.f32 %v3841_v26, %v3833_v50  ;;  %v2295_v62 = vadd.f32 %v6734_v54, %v9071_v33  ;;  %6800 = vmatmul.mubr.msk.f32.gmra.mxu0 %vm2536_vm1, %v10314_v29  ;;  %v10345_v26 = vld [vmem:[%s11818_s5] sm:$0xff] }
 0x247   :  { %v3492_v61 = vmul.f32 %v12085_v21, %v12161_v27  ;;  %6874 = vmatprep.subr.mxu0 %v3518_v35  ;;  %v3905_v15 = vmul.f32 %v9275_v57, %v12181_v7  ;;  %v3816_v5 = vmul.f32 %v12104_v47, %v12020_v45  ;;  %v3824_v38 = vmul.f32 %v12069_v18, %v12145_v25 }
 0x248   :  { %v10336_v53 = vmax.f32 %v2035_v1, 0.0  ;;  %12182 = vst [vmem:[#allocation47_spill] sm:$0xff] %v10345_v26  ;;  %6882 = vmatprep.mubr.msk.f32.mxu0 %vm2536_vm1, %v10345_v26  ;;  %6875 = vmatpush3.msra.mxu0 %v3518_v35  ;;  %v3485_v54 = vadd.f32 %v3477_v20, %v3469_v28  ;;  %v3865_v42 = vadd.f32 %v3857_v49, %v3849_v34  ;;  %v2307_v50 = vmax.f32 %v2295_v62, 0.0  ;;  %v12183_v28 = vld [vmem:[#allocation50_spill] sm:$0xff]  ;;  %v2007_v34 = vpop.f32.mrf.mxu0  ;;  %v2267_v62 = vpop.f32.mrf.mxu1 }
 0x249   :  { %v3508_v1 = vmul.f32 %v9472_v31, %v12139_v14  ;;  %6849 = vmatmul.mubr.msk.f32.gmra.mxu1 %vm2536_vm1, %v10000_v40  ;;  %v3921_v11 = vmul.f32 %v12085_v21, %v9755_v32  ;;  %v3832_v36 = vadd.f32 %v3824_v38, %v3816_v5  ;;  %v3840_v29 = vmul.f32 %v9091_v51, %v12151_v4 }
 0x24a   :  { %v3856_v26 = vmul.f32 %v12090_v55, %v12153_v10  ;;  %6851 = vmatprep.mubr.msk.f32.mxu1 %vm2536_vm1, %v10017_v0  ;;  %v3501_v35 = vadd.f32 %v3493_v19, %v3485_v54  ;;  %v3881_v20 = vadd.f32 %v3873_v16, %v3865_v42  ;;  %v3937_v49 = vmul.f32 %v9472_v31, %v12146_v12  ;;  %v12187_v12 = vld [vmem:[#allocation66_spill] sm:$0xff] }
 0x24b   :  { %v3500_v40 = vadd.f32 %v3492_v61, %v12183_v28  ;;  %v10366_v5 = vmul.f32 %v9208_v8, %v10336_v53  ;;  %v10369_v4 = vmul.f32 %v12085_v21, %v2307_v50  ;;  %v3848_v38 = vadd.f32 %v3840_v29, %v3832_v36  ;;  %v12186_v61 = vld [vmem:[#allocation69_spill] sm:$0xff]  ;;  %v12189_v29 = vld [vmem:[#allocation56_spill] sm:$0xff] }
 0x24c   :  { %v3872_v0 = vmul.f32 %v12016_v46, %v12108_v37  ;;  %v3517_v19 = vadd.f32 %v3509_v13, %v3501_v35  ;;  %v3897_v16 = vadd.f32 %v3889_v17, %v3881_v20  ;;  %v10374_v54 = vmul.f32 %v9472_v31, %v2307_v50  ;;  %v12190_v13 = vld [vmem:[#allocation58_spill] sm:$0xff]  ;;  %v12191_v20 = vld [vmem:[#allocation61_spill] sm:$0xff] }
 0x24d   :  { %12184 = vst [vmem:[#allocation74_spill] sm:$0xff] %v10366_v5  ;;  %v3516_v42 = vadd.f32 %v3508_v1, %v3500_v40  ;;  %6852 = vmatmul.mubr.msk.f32.gmra.mxu1 %vm2536_vm1, %v12186_v61  ;;  %v3864_v28 = vadd.f32 %v3856_v26, %v3848_v38  ;;  %v3888_v5 = vmul.f32 %v12152_v3, %v12187_v12  ;;  %v12193_v61 = vld [vmem:[#allocation21_spill] sm:$0xff] }
 0x24e   :  { %12185 = vst [vmem:[#allocation29_spill] sm:$0xff] %v10374_v54  ;;  %v2034_v6 = vadd.f32 %v2007_v34, %v9073_v52  ;;  %v10382_v36 = vadd.f32 %v2267_v62, %v9073_v52  ;;  %6854 = vmatprep.mubr.msk.f32.mxu1 %vm2536_vm1, %v12189_v29  ;;  %6876 = vmatprep.subr.mxu0 %v3517_v19  ;;  %v12200_v54 = vld [vmem:[#allocation17_spill] sm:$0xff] }
 0x24f   :  { %v3913_v17 = vadd.f32 %v3905_v15, %v3897_v16  ;;  %v3904_v50 = vmul.f32 %v12089_v39, %v12190_v13  ;;  %v3395_v1 = vmul.f32 %v12069_v18, %v12165_v24  ;;  %v3411_v26 = vmul.f32 %v9091_v51, %v12136_v2  ;;  %6877 = vmatpush3.msra.mxu0 %v3517_v19  ;;  %v12192_v15 = vld [vmem:[#allocation70_spill] sm:$0xff] }
 0x250   :  { %12188 = vst [vmem:[#allocation25_spill] sm:$0xff] %v10382_v36  ;;  %v3880_v35 = vadd.f32 %v3872_v0, %v3864_v28  ;;  %v3920_v40 = vmul.f32 %v9443_v58, %v12191_v20  ;;  %v10394_v34 = vmax.f32 %v2034_v6, 0.0  ;;  %v11954_v62 = vmax.f32 %v10382_v36, 0.0  ;;  %6878 = vmatprep.subr.mxu0 %v3516_v42 }
 0x251   :  { %v3929_v38 = vadd.f32 %v3921_v11, %v3913_v17  ;;  %v3936_v16 = vmul.f32 %v9501_v56, %v12192_v15  ;;  %v3403_v29 = vadd.f32 %v3395_v1, %v12193_v61  ;;  %v3443_v24 = vmul.f32 %v12016_v46, %v12174_v30  ;;  %6879 = vmatpush3.msra.mxu0 %v3516_v42  ;;  %v12194_v42 = vld [vmem:[#allocation59_spill] sm:$0xff] }
 0x252   :  { %v3896_v2 = vadd.f32 %v3888_v5, %v3880_v35  ;;  %v3459_v0 = vmul.f32 %v12152_v3, %v12020_v45  ;;  %v3491_v6 = vmul.f32 %v9443_v58, %v12177_v44  ;;  %v10408_v11 = vmul.f32 %v9501_v56, %v12153_v10  ;;  %v6707_v5 = vpop.f32.mrf.mxu0  ;;  %6855 = vmatmul.mubr.msk.f32.gmra.mxu1 %vm2536_vm1, %v12194_v42  ;;  %v12201_v15 = vld [vmem:[#allocation43_spill] sm:$0xff] }
 0x253   :  { %v3945_v19 = vadd.f32 %v3937_v49, %v3929_v38  ;;  %v3419_v28 = vadd.f32 %v3411_v26, %v3403_v29  ;;  %v3823_v17 = vmul.f32 %v12048_v23, %v12123_v43  ;;  %v3839_v1 = vmul.f32 %v9083_v22, %v12132_v48  ;;  %v6737_v26 = vpop.f32.mrf.mxu1  ;;  %v12197_v38 = vld [vmem:[#allocation64_spill] sm:$0xff]  ;;  %v12198_v48 = vld [vmem:[#allocation26_spill] sm:$0xff] }
 0x254   :  { %v3912_v35 = vadd.f32 %v3904_v50, %v3896_v2  ;;  %v10418_v61 = vmul.f32 %v12152_v3, %v10394_v34  ;;  %v10423_v49 = vmul.f32 %v9443_v58, %v11954_v62  ;;  %v3855_v43 = vmul.f32 %v12086_v59, %v12161_v27  ;;  %6857 = vmatprep.mubr.msk.f32.mxu1 %vm2536_vm1, %v12197_v38  ;;  %v12199_v50 = vld [vmem:[#allocation35_spill] sm:$0xff]  ;;  %v12204_v23 = vld [vmem:[#allocation38_spill] sm:$0xff] }
 0x255   :  { %6934 = vmatprep.subr.mxu1 %v3945_v19  ;;  %v3435_v29 = vadd.f32 %v12198_v48, %v3419_v28  ;;  %v3831_v2 = vadd.f32 %v3823_v17, %v12199_v50  ;;  %v3871_v42 = vmul.f32 %v12106_v41, %v12139_v14  ;;  %v3887_v36 = vmul.f32 %v9208_v8, %v9726_v9  ;;  %v12202_v50 = vld [vmem:[#allocation48_spill] sm:$0xff] }
 0x256   :  { %12195 = vst [vmem:[#allocation73_spill] sm:$0xff] %v10418_v61  ;;  %12196 = vst [vmem:[#allocation23_spill] sm:$0xff] %v10423_v49  ;;  %6935 = vmatpush3.msra.mxu1 %v3945_v19  ;;  %v3928_v62 = vadd.f32 %v3920_v40, %v3912_v35  ;;  %v3903_v61 = vmul.f32 %v9275_v57, %v12200_v54  ;;  %v2037_v49 = vadd.f32 %v6707_v5, %v9071_v33  ;;  %v12203_v35 = vld [vmem:[#allocation75_spill] sm:$0xff] }
 0x257   :  { %v4709_v38 = vmul.f32 %v12086_v59, %v12201_v15  ;;  %v3451_v12 = vadd.f32 %v3443_v24, %v3435_v29  ;;  %v3847_v28 = vadd.f32 %v3839_v1, %v3831_v2  ;;  %v4725_v17 = vmul.f32 %v12106_v41, %v10336_v53  ;;  %6858 = vmatmul.mubr.msk.f32.gmra.mxu1 %vm2536_vm1, %v12202_v50 }
 0x258   :  { %v2297_v48 = vadd.f32 %v6737_v26, %v9071_v33  ;;  %v3944_v19 = vadd.f32 %v3936_v16, %v3928_v62  ;;  %v2049_v40 = vmax.f32 %v2037_v49, 0.0  ;;  %v3814_v5 = vmul.f32 %v12104_v47, %v12174_v30  ;;  %6860 = vmatprep.mubr.msk.f32.mxu1 %vm2536_vm1, %v12204_v23  ;;  %v12205_v30 = vld [vmem:[#allocation15_spill] sm:$0xff] }
 0x259   :  { %v4717_v22 = vadd.f32 %v4709_v38, %v12203_v35  ;;  %v3467_v24 = vadd.f32 %v3459_v0, %v3451_v12  ;;  %v3863_v1 = vadd.f32 %v3855_v43, %v3847_v28  ;;  %v3822_v2 = vmul.f32 %v12069_v18, %v12020_v45  ;;  %v2017_v43 = vpop.f32.mrf.mxu0 }
 0x25a   :  { %v2309_v29 = vmax.f32 %v2297_v48, 0.0  ;;  %6936 = vmatprep.subr.mxu1 %v3944_v19  ;;  %v3919_v33 = vmul.f32 %v12085_v21, %v12181_v7  ;;  %v4741_v16 = vmul.f32 %v9208_v8, %v2049_v40  ;;  %v3838_v49 = vmul.f32 %v9091_v51, %v12145_v25 }
 0x25b   :  { %v4733_v62 = vadd.f32 %v4725_v17, %v4717_v22  ;;  %6937 = vmatpush3.msra.mxu1 %v3944_v19  ;;  %v3483_v26 = vadd.f32 %v12205_v30, %v3467_v24  ;;  %v3879_v38 = vadd.f32 %v3871_v42, %v3863_v1  ;;  %v3935_v12 = vmul.f32 %v9472_v31, %v9755_v32  ;;  %v2277_v19 = vpop.f32.mrf.mxu1  ;;  %v12207_v24 = vld [vmem:[#allocation20_spill] sm:$0xff] }
 0x25c   :  { %v3830_v0 = vadd.f32 %v3822_v2, %v3814_v5  ;;  %v10461_v45 = vmul.f32 %v9472_v31, %v2049_v40  ;;  %v10464_v22 = vmul.f32 %v9472_v31, %v2309_v29  ;;  %v3854_v17 = vmul.f32 %v12090_v55, %v12177_v44  ;;  %6861 = vmatmul.mubr.msk.f32.gmra.mxu1 %vm2536_vm1, %v10245_v60  ;;  %v12206_v40 = vld [vmem:[#allocation14_spill] sm:$0xff]  ;;  %v12223_v60 = vld [vmem:[#allocation9_spill] sm:$0xff] }
 0x25d   :  { %v4749_v28 = vadd.f32 %v4741_v16, %v4733_v62  ;;  %v3499_v25 = vadd.f32 %v3491_v6, %v3483_v26  ;;  %v3895_v42 = vadd.f32 %v3887_v36, %v3879_v38  ;;  %v3870_v50 = vmul.f32 %v12016_v46, %v12153_v10  ;;  %6863 = vmatprep.mubr.msk.f32.mxu1 %vm2536_vm1, %v10262_v63  ;;  %v12208_v62 = vld [vmem:[#allocation27_spill] sm:$0xff]  ;;  %v12220_v63 = vld [vmem:[#allocation5_spill] sm:$0xff] }
 0x25e   :  { %v3846_v48 = vadd.f32 %v3838_v49, %v3830_v0  ;;  %v3886_v5 = vmul.f32 %v12152_v3, %v12108_v37  ;;  %v3902_v1 = vmul.f32 %v12089_v39, %v12207_v24  ;;  %v2036_v29 = vadd.f32 %v2017_v43, %v9073_v52  ;;  %v12209_v0 = vld [vmem:[#allocation71_spill] sm:$0xff] }
 0x25f   :  { %v4765_v35 = vadd.f32 %v12206_v40, %v4749_v28  ;;  %v3515_v36 = vadd.f32 %v10408_v11, %v3499_v25  ;;  %v3911_v6 = vadd.f32 %v3903_v61, %v3895_v42  ;;  %v4708_v16 = vmul.f32 %v12090_v55, %v12208_v62  ;;  %v12210_v61 = vld [vmem:[#allocation76_spill] sm:$0xff] }
 0x260   :  { %v3862_v2 = vadd.f32 %v3854_v17, %v3846_v48  ;;  %v2048_v49 = vmax.f32 %v2036_v29, 0.0  ;;  %v4724_v30 = vmul.f32 %v12016_v46, %v10394_v34  ;;  %v2296_v26 = vadd.f32 %v2277_v19, %v9073_v52  ;;  %6864 = vmatmul.mubr.msk.f32.gmra.mxu1 %vm2536_vm1, %v12209_v0  ;;  %v12211_v48 = vld [vmem:[#allocation13_spill] sm:$0xff]  ;;  %v12212_v19 = vld [vmem:[#allocation47_spill] sm:$0xff] }
 0x261   :  { %v3869_v38 = vmul.f32 %v12106_v41, %v12161_v27  ;;  %6880 = vmatprep.subr.mxu0 %v3515_v36  ;;  %v3927_v43 = vadd.f32 %v3919_v33, %v3911_v6  ;;  %v4716_v28 = vadd.f32 %v4708_v16, %v12210_v61  ;;  %v3885_v17 = vmul.f32 %v9208_v8, %v12139_v14 }
 0x262   :  { %v3878_v11 = vadd.f32 %v3870_v50, %v3862_v2  ;;  %6881 = vmatpush3.msra.mxu0 %v3515_v36  ;;  %v3918_v25 = vmul.f32 %v9443_v58, %v12190_v13  ;;  %v4740_v52 = vmul.f32 %v12152_v3, %v2048_v49  ;;  %v2308_v42 = vmax.f32 %v2296_v26, 0.0  ;;  %6946 = vmatprep.mubr.msk.f32.mxu1 %vm2536_vm1, %v12212_v19  ;;  %v10504_v36 = vld [vmem:[%s11818_s5 + $0x8] sm:$0xff] }
 0x263   :  { %v3877_v27 = vadd.f32 %v3869_v38, %v12211_v48  ;;  %v3943_v40 = vadd.f32 %v3935_v12, %v3927_v43  ;;  %v3934_v50 = vmul.f32 %v9501_v56, %v12191_v20  ;;  %v4732_v29 = vadd.f32 %v4724_v30, %v4716_v28  ;;  %6883 = vmatmul.mubr.msk.f32.vlgmr.msra.gmra.mxu0 %vm2536_vm1, %v10504_v36  ;;  %v12213_v43 = vld [vmem:[#allocation36_spill] sm:$0xff] }
 0x264   :  { %v3894_v33 = vadd.f32 %v3886_v5, %v3878_v11  ;;  %v4363_v6 = vmul.f32 %v9501_v56, %v2048_v49  ;;  %v3917_v16 = vmul.f32 %v12085_v21, %v12200_v54  ;;  %v3868_v12 = vmul.f32 %v12016_v46, %v12177_v44  ;;  %v10516_v5 = vld [vmem:[%s11818_s5 + $0x10] sm:$0xff]  ;;  %v12214_v28 = vld [vmem:[#allocation24_spill] sm:$0xff] }
 0x265   :  { %v3893_v2 = vadd.f32 %v3885_v17, %v3877_v27  ;;  %6885 = vmatprep.mubr.msk.f32.mxu0 %vm2536_vm1, %v10516_v5  ;;  %6938 = vmatprep.subr.mxu1 %v3943_v40  ;;  %v4748_v26 = vadd.f32 %v4740_v52, %v4732_v29  ;;  %v10521_v49 = vmul.f32 %v9501_v56, %v2308_v42 }
 0x266   :  { %v3910_v30 = vadd.f32 %v3902_v1, %v3894_v33  ;;  %v3884_v38 = vmul.f32 %v12152_v3, %v12153_v10  ;;  %6939 = vmatpush3.msra.mxu1 %v3943_v40  ;;  %v3933_v61 = vmul.f32 %v9472_v31, %v12181_v7  ;;  %v3876_v17 = vadd.f32 %v3868_v12, %v12214_v28  ;;  %v10539_v40 = vld [vmem:[%s11818_s5 + $0x18] sm:$0xff] }
 0x267   :  { %v3909_v11 = vadd.f32 %v12213_v43, %v3893_v2  ;;  %v4332_v48 = vmul.f32 %v9275_v57, %v12201_v15  ;;  %v3916_v1 = vmul.f32 %v9443_v58, %v12207_v24  ;;  %v4348_v52 = vmul.f32 %v12085_v21, %v10336_v53  ;;  %6886 = vmatmul.mubr.msk.f32.gmra.mxu0 %vm2536_vm1, %v10539_v40  ;;  %v12215_v2 = vld [vmem:[#allocation79_spill] sm:$0xff] }
 0x268   :  { %v3926_v27 = vadd.f32 %v3918_v25, %v3910_v30  ;;  %v4781_v42 = vadd.f32 %v10369_v4, %v4765_v35  ;;  %v3892_v29 = vadd.f32 %v3884_v38, %v3876_v17  ;;  %v4331_v12 = vmul.f32 %v12089_v39, %v12208_v62  ;;  %v10549_v30 = vld [vmem:[%s11818_s5 + $0x20] sm:$0xff] }
 0x269   :  { %v3925_v33 = vadd.f32 %v3917_v16, %v3909_v11  ;;  %v4340_v25 = vadd.f32 %v4332_v48, %v12215_v2  ;;  %12216 = vst [vmem:[#allocation77_spill] sm:$0xff] %v10549_v30  ;;  %6888 = vmatprep.mubr.msk.f32.mxu0 %vm2536_vm1, %v10549_v30  ;;  %v12217_v35 = vld [vmem:[#allocation28_spill] sm:$0xff]  ;;  %v3932_v16 = vmul.f32 %v9501_v56, %v12190_v13  ;;  %v12218_v11 = vld [vmem:[#allocation42_spill] sm:$0xff] }
 0x26a   :  { %v3942_v4 = vadd.f32 %v3934_v50, %v3926_v27  ;;  %v4764_v43 = vadd.f32 %v12217_v35, %v4748_v26  ;;  %v4347_v38 = vmul.f32 %v9443_v58, %v10394_v34  ;;  %v3908_v28 = vadd.f32 %v12218_v11, %v3892_v29  ;;  %v12219_v2 = vld [vmem:[#allocation32_spill] sm:$0xff]  ;;  %v12221_v26 = vld [vmem:[#allocation6_spill] sm:$0xff]  ;;  %v12222_v35 = vld [vmem:[#allocation63_spill] sm:$0xff] }
 0x26b   :  { %v4356_v17 = vadd.f32 %v4348_v52, %v4340_v25  ;;  %v4797_v48 = vadd.f32 %v10464_v22, %v4781_v42  ;;  %v4339_v19 = vadd.f32 %v4331_v12, %v12219_v2  ;;  %v3941_v0 = vadd.f32 %v3933_v61, %v3925_v33  ;;  %v12224_v33 = vld [vmem:[#allocation65_spill] sm:$0xff]  ;;  %v12226_v2 = vld [vmem:[#allocation39_spill] sm:$0xff] }
 0x26c   :  { %6940 = vmatprep.subr.mxu1 %v3942_v4  ;;  %v4242_v50 = vmul.f32 %v12220_v63, %v12139_v14  ;;  %v4250_v27 = vmul.f32 %v12221_v26, %v9726_v9  ;;  %v4266_v23 = vmul.f32 %v12223_v60, %v12222_v35  ;;  %v3924_v30 = vadd.f32 %v3916_v1, %v3908_v28  ;;  %v12225_v12 = vld [vmem:[#allocation53_spill] sm:$0xff] }
 0x26d   :  { %6941 = vmatpush3.msra.mxu1 %v3942_v4  ;;  %v4372_v29 = vadd.f32 %v10461_v45, %v4356_v17  ;;  %v4355_v52 = vadd.f32 %v4347_v38, %v4339_v19  ;;  %v4282_v22 = vmul.f32 %v12086_v59, %v12181_v7  ;;  %v4298_v61 = vmul.f32 %v12106_v41, %v9755_v32 }
 0x26e   :  { %6942 = vmatprep.subr.mxu1 %v3941_v0  ;;  %v4258_v42 = vadd.f32 %v4250_v27, %v4242_v50  ;;  %v4314_v25 = vmul.f32 %v9208_v8, %v12224_v33  ;;  %v4330_v11 = vmul.f32 %v9275_v57, %v12225_v12  ;;  %v10577_v4 = vmax.f32 %v12226_v2, 0.0  ;;  %v12227_v50 = vld [vmem:[#allocation66_spill] sm:$0xff] }
 0x26f   :  { %6943 = vmatpush3.msra.mxu1 %v3941_v0  ;;  %v3940_v45 = vadd.f32 %v3932_v16, %v3924_v30  ;;  %6994 = vmatprep.subr.mxu0 %v4372_v29  ;;  %v4371_v19 = vadd.f32 %v4363_v6, %v4355_v52  ;;  %v4346_v1 = vmul.f32 %v12085_v21, %v12201_v15  ;;  %v12228_v27 = vld [vmem:[#allocation70_spill] sm:$0xff] }
 0x270   :  { %6995 = vmatpush3.msra.mxu0 %v4372_v29  ;;  %v4274_v38 = vadd.f32 %v4266_v23, %v4258_v42  ;;  %v4241_v28 = vmul.f32 %v12104_v47, %v12153_v10  ;;  %v4249_v17 = vmul.f32 %v12069_v18, %v12108_v37  ;;  %v4265_v57 = vmul.f32 %v9091_v51, %v12227_v50 }
 0x271   :  { %6944 = vmatprep.subr.mxu1 %v3940_v45  ;;  %6996 = vmatprep.subr.mxu0 %v4371_v19  ;;  %v4362_v0 = vmul.f32 %v9472_v31, %v10336_v53  ;;  %v4281_v6 = vmul.f32 %v12090_v55, %v12190_v13  ;;  %v4297_v23 = vmul.f32 %v12016_v46, %v12191_v20 }
 0x272   :  { %6945 = vmatpush3.msra.mxu1 %v3940_v45  ;;  %6997 = vmatpush3.msra.mxu0 %v4371_v19  ;;  %v4290_v30 = vadd.f32 %v4282_v22, %v4274_v38  ;;  %v4257_v16 = vadd.f32 %v4249_v17, %v4241_v28  ;;  %v4313_v35 = vmul.f32 %v12152_v3, %v12228_v27  ;;  %v12229_v19 = vld [vmem:[#allocation34_spill] sm:$0xff] }
 0x273   :  { %7058 = vmatprep.subr.mxu1 %v4797_v48  ;;  %v4329_v29 = vmul.f32 %v12089_v39, %v10577_v4  ;;  %6947 = vmatmul.mubr.msk.f32.vlgmr.msra.gmra.mxu1 %vm2536_vm1, %v10504_v36  ;;  %v4248_v53 = vmul.f32 %v12221_v26, %v12139_v14  ;;  %v4264_v52 = vmul.f32 %v12223_v60, %v9726_v9 }
 0x274   :  { %v4306_v42 = vadd.f32 %v4298_v61, %v4290_v30  ;;  %v4273_v2 = vadd.f32 %v4265_v57, %v4257_v16  ;;  %v4345_v22 = vmul.f32 %v9443_v58, %v12208_v62  ;;  %v4361_v45 = vmul.f32 %v9501_v56, %v10394_v34  ;;  %7059 = vmatpush3.msra.mxu1 %v4797_v48  ;;  %v10617_v61 = vld [vmem:[%s11818_s5 + $0x28] sm:$0xff] }
 0x275   :  { %v4256_v39 = vadd.f32 %v4248_v53, %v12229_v19  ;;  %v4280_v38 = vmul.f32 %v12086_v59, %v12200_v54  ;;  %v4296_v14 = vmul.f32 %v12106_v41, %v12181_v7  ;;  %v4312_v9 = vmul.f32 %v9208_v8, %v9755_v32  ;;  %6889 = vmatmul.mubr.msk.f32.gmra.mxu0 %vm2536_vm1, %v10617_v61  ;;  %v12230_v54 = vld [vmem:[#allocation23_spill] sm:$0xff] }
 0x276   :  { %v4322_v34 = vadd.f32 %v4314_v25, %v4306_v42  ;;  %v4289_v48 = vadd.f32 %v4281_v6, %v4273_v2  ;;  %v4344_v28 = vmul.f32 %v12085_v21, %v12225_v12  ;;  %v4780_v17 = vadd.f32 %v12230_v54, %v4764_v43  ;;  %6949 = vmatprep.mubr.msk.f32.mxu1 %vm2536_vm1, %v10516_v5 }
 0x277   :  { %v4272_v50 = vadd.f32 %v4264_v52, %v4256_v39  ;;  %v4239_v57 = vmul.f32 %v12104_v47, %v12177_v44  ;;  %v4247_v30 = vmul.f32 %v12069_v18, %v12153_v10  ;;  %v4263_v16 = vmul.f32 %v9091_v51, %v12108_v37  ;;  %6950 = vmatmul.mubr.msk.f32.gmra.mxu1 %vm2536_vm1, %v10539_v40  ;;  %v10640_v44 = vld [vmem:[%s11818_s5 + $0x30] sm:$0xff] }
 0x278   :  { %v4338_v25 = vadd.f32 %v4330_v11, %v4322_v34  ;;  %v4305_v6 = vadd.f32 %v4297_v23, %v4289_v48  ;;  %v4360_v43 = vmul.f32 %v9472_v31, %v12201_v15  ;;  %v4796_v53 = vadd.f32 %v10521_v49, %v4780_v17  ;;  %6891 = vmatprep.mubr.msk.f32.mxu0 %vm2536_vm1, %v10640_v44  ;;  %v10651_v49 = vld [vmem:[%s11818_s5 + $0x38] sm:$0xff]  ;;  %v12231_v17 = vld [vmem:[#allocation77_spill] sm:$0xff] }
 0x279   :  { %v4288_v10 = vadd.f32 %v4280_v38, %v4272_v50  ;;  %v4255_v37 = vadd.f32 %v4247_v30, %v4239_v57  ;;  %v4279_v52 = vmul.f32 %v12090_v55, %v12207_v24  ;;  %v4295_v11 = vmul.f32 %v12016_v46, %v12190_v13  ;;  %6892 = vmatmul.mubr.msk.f32.gmra.mxu0 %vm2536_vm1, %v10651_v49  ;;  %v12232_v50 = vld [vmem:[#allocation10_spill] sm:$0xff] }
 0x27a   :  { %v4354_v23 = vadd.f32 %v4346_v1, %v4338_v25  ;;  %v4321_v42 = vadd.f32 %v4313_v35, %v4305_v6  ;;  %7060 = vmatprep.subr.mxu1 %v4796_v53  ;;  %v4311_v2 = vmul.f32 %v12152_v3, %v12191_v20  ;;  %v4667_v24 = vmul.f32 %v12220_v63, %v12181_v7  ;;  %v12234_v30 = vld [vmem:[#allocation18_spill] sm:$0xff] }
 0x27b   :  { %v4304_v19 = vadd.f32 %v4296_v14, %v4288_v10  ;;  %7061 = vmatpush3.msra.mxu1 %v4796_v53  ;;  %v4271_v39 = vadd.f32 %v4263_v16, %v4255_v37  ;;  %v4675_v38 = vmul.f32 %v12221_v26, %v9755_v32  ;;  %v4691_v34 = vmul.f32 %v12223_v60, %v12224_v33 }
 0x27c   :  { %v4370_v48 = vadd.f32 %v4362_v0, %v4354_v23  ;;  %v4337_v54 = vadd.f32 %v4329_v29, %v4321_v42  ;;  %v4707_v1 = vmul.f32 %v12086_v59, %v12225_v12  ;;  %v4723_v35 = vmul.f32 %v12106_v41, %v12201_v15  ;;  %6952 = vmatprep.mubr.msk.f32.mxu1 %vm2536_vm1, %v12231_v17  ;;  %v12233_v0 = vld [vmem:[#allocation7_spill] sm:$0xff] }
 0x27d   :  { %v4320_v63 = vadd.f32 %v4312_v9, %v4304_v19  ;;  %v4287_v7 = vadd.f32 %v4279_v52, %v4271_v39  ;;  %v4683_v14 = vadd.f32 %v4675_v38, %v4667_v24  ;;  %v4342_v32 = vmul.f32 %v12085_v21, %v12232_v50  ;;  %6953 = vmatmul.mubr.msk.f32.gmra.mxu1 %vm2536_vm1, %v10617_v61  ;;  %v12235_v52 = vld [vmem:[#allocation37_spill] sm:$0xff]  ;;  %v12236_v24 = vld [vmem:[#allocation19_spill] sm:$0xff]  ;;  %v12240_v50 = vld [vmem:[#allocation62_spill] sm:$0xff] }
 0x27e   :  { %6998 = vmatprep.subr.mxu0 %v4370_v48  ;;  %v4353_v60 = vadd.f32 %v4345_v22, %v4337_v54  ;;  %v4358_v59 = vmul.f32 %v9472_v31, %v12225_v12  ;;  %v4666_v26 = vmul.f32 %v12104_v47, %v12190_v13  ;;  %v4674_v33 = vmul.f32 %v12069_v18, %v12191_v20  ;;  %v10688_v47 = vld [vmem:[%s11818_s5 + $0x40] sm:$0xff] }
 0x27f   :  { %6999 = vmatpush3.msra.mxu0 %v4370_v48  ;;  %v4336_v29 = vadd.f32 %v12233_v0, %v4320_v63  ;;  %v4303_v9 = vadd.f32 %v4295_v11, %v4287_v7  ;;  %v4699_v57 = vadd.f32 %v4691_v34, %v4683_v14  ;;  %v4350_v16 = vadd.f32 %v4342_v32, %v12234_v30  ;;  %v12237_v34 = vld [vmem:[#allocation74_spill] sm:$0xff]  ;;  %v12238_v54 = vld [vmem:[#allocation12_spill] sm:$0xff] }
 0x280   :  { %v4369_v25 = vadd.f32 %v4361_v45, %v4353_v60  ;;  %v4682_v6 = vadd.f32 %v4674_v33, %v4666_v26  ;;  %v4690_v22 = vmul.f32 %v9091_v51, %v12228_v27  ;;  %v4706_v53 = vmul.f32 %v12090_v55, %v10577_v4  ;;  %6894 = vmatprep.mubr.msk.f32.mxu0 %vm2536_vm1, %v10688_v47  ;;  %v10697_v51 = vld [vmem:[%s11818_s5 + $0x48] sm:$0xff]  ;;  %v12242_v0 = vld [vmem:[#allocation60_spill] sm:$0xff] }
 0x281   :  { %v4352_v18 = vadd.f32 %v4344_v28, %v4336_v29  ;;  %v4319_v13 = vadd.f32 %v4311_v2, %v4303_v9  ;;  %v4343_v20 = vmul.f32 %v9443_v58, %v10577_v4  ;;  %v4715_v45 = vadd.f32 %v4707_v1, %v4699_v57  ;;  %6895 = vmatmul.mubr.msk.f32.gmra.mxu0 %vm2536_vm1, %v10697_v51  ;;  %v12239_v63 = vld [vmem:[#allocation22_spill] sm:$0xff]  ;;  %v10742_v29 = vld [vmem:[%s11818_s5 + $0x58] sm:$0xff] }
 0x282   :  { %7000 = vmatprep.subr.mxu0 %v4369_v25  ;;  %v4359_v55 = vmul.f32 %v9501_v56, %v12208_v62  ;;  %v4366_v27 = vadd.f32 %v4358_v59, %v4350_v16  ;;  %v4698_v10 = vadd.f32 %v4690_v22, %v4682_v6  ;;  %v4722_v28 = vmul.f32 %v12016_v46, %v12208_v62  ;;  %v12241_v59 = vld [vmem:[#allocation73_spill] sm:$0xff]  ;;  %v12243_v9 = vld [vmem:[#allocation72_spill] sm:$0xff] }
 0x283   :  { %7001 = vmatpush3.msra.mxu0 %v4369_v25  ;;  %v4368_v37 = vadd.f32 %v4360_v43, %v4352_v18  ;;  %v4335_v11 = vadd.f32 %v12235_v52, %v4319_v13  ;;  %v4731_v23 = vadd.f32 %v4723_v35, %v4715_v45  ;;  %v4721_v42 = vmul.f32 %v12106_v41, %v12225_v12  ;;  %v12244_v30 = vld [vmem:[#allocation16_spill] sm:$0xff]  ;;  %v12245_v25 = vld [vmem:[#allocation31_spill] sm:$0xff]  ;;  %v12246_v22 = vld [vmem:[#allocation57_spill] sm:$0xff] }
 0x284   :  { %v4714_v2 = vadd.f32 %v4706_v53, %v4698_v10  ;;  %v4341_v19 = vmul.f32 %v9443_v58, %v12236_v24  ;;  %v4737_v39 = vmul.f32 %v9208_v8, %v12201_v15  ;;  %v4720_v38 = vmul.f32 %v12016_v46, %v10577_v4  ;;  %6955 = vmatprep.mubr.msk.f32.mxu1 %vm2536_vm1, %v10640_v44  ;;  %v12248_v18 = vld [vmem:[#allocation33_spill] sm:$0xff]  ;;  %v12254_v24 = vld [vmem:[#allocation40_spill] sm:$0xff] }
 0x285   :  { %7002 = vmatprep.subr.mxu0 %v4368_v37  ;;  %v4351_v43 = vadd.f32 %v4343_v20, %v4335_v11  ;;  %v4747_v48 = vadd.f32 %v12237_v34, %v4731_v23  ;;  %v4729_v1 = vadd.f32 %v4721_v42, %v12238_v54  ;;  %v4736_v41 = vmul.f32 %v12152_v3, %v12208_v62  ;;  %v10731_v62 = vld [vmem:[%s11818_s5 + $0x50] sm:$0xff]  ;;  %v12249_v20 = vld [vmem:[#allocation45_spill] sm:$0xff]  ;;  %v12258_v54 = vld [vmem:[#allocation68_spill] sm:$0xff] }
 0x286   :  { %7003 = vmatpush3.msra.mxu0 %v4368_v37  ;;  %v4730_v35 = vadd.f32 %v4722_v28, %v4714_v2  ;;  %v4357_v15 = vmul.f32 %v9501_v56, %v10577_v4  ;;  %v4728_v7 = vadd.f32 %v4720_v38, %v12239_v63  ;;  %v4735_v46 = vmul.f32 %v9208_v8, %v12225_v12  ;;  %v12251_v28 = vld [vmem:[#allocation29_spill] sm:$0xff] }
 0x287   :  { %v4367_v14 = vadd.f32 %v4359_v55, %v4351_v43  ;;  %v4763_v32 = vadd.f32 %v12240_v50, %v4747_v48  ;;  %v4745_v60 = vadd.f32 %v4737_v39, %v4729_v1  ;;  %6956 = vmatmul.mubr.msk.f32.gmra.mxu1 %vm2536_vm1, %v10651_v49  ;;  %6897 = vmatprep.mubr.msk.f32.mxu0 %vm2536_vm1, %v10731_v62  ;;  %v12250_v55 = vld [vmem:[#allocation46_spill] sm:$0xff]  ;;  %v12252_v11 = vld [vmem:[#allocation25_spill] sm:$0xff]  ;;  %v12255_v39 = vld [vmem:[#allocation52_spill] sm:$0xff] }
 0x288   :  { %v4746_v26 = vadd.f32 %v12241_v59, %v4730_v35  ;;  %v4744_v33 = vadd.f32 %v4736_v41, %v4728_v7  ;;  %v4743_v8 = vadd.f32 %v4735_v46, %v12242_v0  ;;  %v4734_v12 = vmul.f32 %v12152_v3, %v10577_v4  ;;  %6898 = vmatmul.mubr.msk.f32.gmra.mxu0 %vm2536_vm1, %v10742_v29  ;;  %v12247_v4 = vld [vmem:[#allocation67_spill] sm:$0xff] }
 0x289   :  { %7004 = vmatprep.subr.mxu0 %v4367_v14  ;;  %v4779_v57 = vadd.f32 %v12243_v9, %v4763_v32  ;;  %v4349_v16 = vadd.f32 %v4341_v19, %v12244_v30  ;;  %v4761_v6 = vadd.f32 %v12245_v25, %v4745_v60  ;;  %6958 = vmatprep.mubr.msk.f32.mxu1 %vm2536_vm1, %v10688_v47  ;;  %v12253_v23 = vmax.f32 %v12252_v11, 0.0  ;;  %v12256_v43 = vld [vmem:[#allocation11_spill] sm:$0xff] }
 0x28a   :  { %v4770_v3 = vmul.f32 %v9443_v58, %v12246_v22  ;;  %7005 = vmatpush3.msra.mxu0 %v4367_v14  ;;  %v4762_v53 = vadd.f32 %v12247_v4, %v4746_v26  ;;  %v4760_v13 = vadd.f32 %v12248_v18, %v4744_v33  ;;  %v4742_v45 = vadd.f32 %v4734_v12, %v12249_v20  ;;  %v10778_v14 = vld [vmem:[%s11818_s5 + $0x60] sm:$0xff]  ;;  %v10796_v60 = vld [vmem:[%s11818_s5 + $0x70] sm:$0xff]  ;;  %v10811_v9 = vld [vmem:[%s11818_s5 + $0x78] sm:$0xff] }
 0x28b   :  { %v4768_v10 = vmul.f32 %v9443_v58, %v12250_v55  ;;  %v4795_v37 = vadd.f32 %v12251_v28, %v4779_v57  ;;  %7006 = vmatprep.subr.mxu0 %v4366_v27  ;;  %v4365_v52 = vadd.f32 %v4357_v15, %v4349_v16  ;;  %6959 = vmatmul.mubr.msk.f32.gmra.mxu1 %vm2536_vm1, %v10697_v51  ;;  %v12257_v34 = vmax.f32 %v12256_v43, 0.0  ;;  %v12259_v15 = vld [vmem:[#allocation41_spill] sm:$0xff]  ;;  %v12262_v59 = vld [vmem:[#allocation51_spill] sm:$0xff] }
 0x28c   :  { %v4786_v42 = vmul.f32 %v9501_v56, %v12253_v23  ;;  %v4778_v2 = vadd.f32 %v4770_v3, %v4762_v53  ;;  %7007 = vmatpush3.msra.mxu0 %v4366_v27  ;;  %v4777_v19 = vadd.f32 %v12254_v24, %v4761_v6  ;;  %v4759_v38 = vadd.f32 %v12255_v39, %v4743_v8  ;;  %v12260_v27 = vld [vmem:[#allocation54_spill] sm:$0xff]  ;;  %v10849_v25 = vld [vmem:[%s11818_s5 + $0x98] sm:$0xff]  ;;  %v10856_v6 = vld [vmem:[%s11818_s5 + $0xa0] sm:$0xff] }
 0x28d   :  { %v4767_v48 = vmul.f32 %v12085_v21, %v12257_v34  ;;  %v4785_v1 = vmul.f32 %v9472_v31, %v12258_v54  ;;  %7062 = vmatprep.subr.mxu1 %v4795_v37  ;;  %7008 = vmatprep.subr.mxu0 %v4365_v52  ;;  %v4776_v35 = vadd.f32 %v4768_v10, %v4760_v13  ;;  %v12261_v7 = vmax.f32 %v12260_v27, 0.0  ;;  %v10829_v57 = vld [vmem:[%s11818_s5 + $0x88] sm:$0xff]  ;;  %v10836_v30 = vld [vmem:[%s11818_s5 + $0x90] sm:$0xff]  ;;  %v10885_v4 = vld [vmem:[%s11818_s5 + $0xb8] sm:$0xff]  ;;  %v11078_v34 = vpop.permute.xlu1 %2895 }
 0x28e   :  { %7063 = vmatpush3.msra.mxu1 %v4795_v37  ;;  %v4794_v41 = vadd.f32 %v4786_v42, %v4778_v2  ;;  %7009 = vmatpush3.msra.mxu0 %v4365_v52  ;;  %v4758_v63 = vadd.f32 %v12259_v15, %v4742_v45  ;;  %v4784_v21 = vmul.f32 %v9501_v56, %v12246_v22  ;;  %v7311_v16 = vmov 0.0   ;;  %v10867_v22 = vld [vmem:[%s11818_s5 + $0xa8] sm:$0xff]  ;;  %v10874_v3 = vld [vmem:[%s11818_s5 + $0xb0] sm:$0xff]  ;;  %v10892_v53 = vld [vmem:[%s11818_s5 + $0xc0] sm:$0xff] }
 0x28f   :  { %v4766_v46 = vmul.f32 %v9443_v58, %v12261_v7  ;;  %6900 = vmatprep.mubr.msk.f32.mxu0 %vm2536_vm1, %v10778_v14  ;;  %6961 = vmatprep.mubr.msk.f32.mxu1 %vm2536_vm1, %v10731_v62  ;;  %v4793_v50 = vadd.f32 %v4785_v1, %v4777_v19  ;;  %v4775_v32 = vadd.f32 %v4767_v48, %v4759_v38  ;;  %v10789_v58 = vld [vmem:[%s11818_s5 + $0x68] sm:$0xff]  ;;  %v10910_v13 = vld [vmem:[%s11818_s5 + $0xd0] sm:$0xff]  ;;  %v10921_v20 = vld [vmem:[%s11818_s5 + $0xd8] sm:$0xff] }
 0x290   :  { %7064 = vmatprep.subr.mxu1 %v4794_v41  ;;  %6901 = vmatmul.mubr.msk.f32.gmra.mxu0 %vm2536_vm1, %v10789_v58  ;;  %v4783_v26 = vmul.f32 %v9472_v31, %v12262_v59  ;;  %v4792_v33 = vadd.f32 %v4784_v21, %v4776_v35  ;;  %v4782_v8 = vmul.f32 %v9501_v56, %v12250_v55  ;;  %v10818_v31 = vld [vmem:[%s11818_s5 + $0x80] sm:$0xff]  ;;  %v10903_v18 = vld [vmem:[%s11818_s5 + $0xc8] sm:$0xff]  ;;  %v12266_v37 = vld [vmem:[#allocation71_spill] sm:$0xff] }
 0x291   :  { %7065 = vmatpush3.msra.mxu1 %v4794_v41  ;;  %6903 = vmatprep.mubr.msk.f32.mxu0 %vm2536_vm1, %v10796_v60  ;;  %v4774_v0 = vadd.f32 %v4766_v46, %v4758_v63  ;;  %v12263_v45 = vld [vmem:[#allocation38_spill] sm:$0xff]  ;;  %v12264_v55 = vld [vmem:[#allocation8_spill] sm:$0xff]  ;;  %v12265_v10 = vld [vmem:[#allocation49_spill] sm:$0xff]  ;;  %v11102_v15 = vpop.permute.xlu1 %2885  ;;  %v11104_v63 = vpop.permute.xlu0 %2890 }
 0x292   :  { %7066 = vmatprep.subr.mxu1 %v4793_v50  ;;  %6962 = vmatmul.mubr.msk.f32.gmra.mxu1 %vm2536_vm1, %v10742_v29  ;;  %v4791_v12 = vadd.f32 %v4783_v26, %v4775_v32  ;;  %v10940_v28 = vld [vmem:[%s11818_s5 + $0xe0] sm:$0xff]  ;;  %v12267_v52 = vld [vmem:[#allocation47_spill] sm:$0xff]  ;;  %v7285_v32 = vld [vmem:[%s11818_s5 + $0xe8] sm:$0xff] }
 0x293   :  { %7067 = vmatpush3.msra.mxu1 %v4793_v50  ;;  %6964 = vmatprep.mubr.msk.f32.mxu1 %vm2536_vm1, %v10778_v14  ;;  %v4790_v56 = vadd.f32 %v4782_v8, %v4774_v0  ;;  %v7286_v59 = vld [vmem:[%s11818_s5 + $0xf0] sm:$0xff]  ;;  %v7287_v8 = vld [vmem:[%s11818_s5 + $0xf8] sm:$0xff] }
 0x294   :  { %7068 = vmatprep.subr.mxu1 %v4792_v33  ;;  %6904 = vmatmul.mubr.msk.f32.gmra.mxu0 %vm2536_vm1, %v10811_v9 }
 0x295   :  { %7069 = vmatpush3.msra.mxu1 %v4792_v33  ;;  %6906 = vmatprep.mubr.msk.f32.mxu0 %vm2536_vm1, %v10818_v31  ;;  %v11122_v21 = vpop.permute.xlu1 %2875  ;;  %v11124_v50 = vpop.permute.xlu0 %2880 }
 0x296   :  { %7070 = vmatprep.subr.mxu1 %v4791_v12  ;;  %6965 = vmatmul.mubr.msk.f32.gmra.mxu1 %vm2536_vm1, %v10789_v58 }
 0x297   :  { %7071 = vmatpush3.msra.mxu1 %v4791_v12  ;;  %6967 = vmatprep.mubr.msk.f32.mxu1 %vm2536_vm1, %v10796_v60 }
 0x298   :  { %7072 = vmatprep.subr.mxu1 %v4790_v56  ;;  %6907 = vmatmul.mubr.msk.f32.gmra.mxu0 %vm2536_vm1, %v10829_v57 }
 0x299   :  { %7073 = vmatpush3.msra.mxu1 %v4790_v56  ;;  %6909 = vmatprep.mubr.msk.f32.mxu0 %vm2536_vm1, %v10836_v30  ;;  %v11162_v56 = vpop.permute.xlu1 %2865 }
 0x29a   :  { %6968 = vmatmul.mubr.msk.f32.gmra.mxu1 %vm2536_vm1, %v10811_v9  ;;  %7141 = vmatprep.subr.mxu1 %v7311_v16 }
 0x29b   :  { %6970 = vmatprep.mubr.msk.f32.mxu1 %vm2536_vm1, %v10818_v31  ;;  %7122 = vmatprep.subr.mxu0 %v7311_v16 }
 0x29c   :  { %6910 = vmatmul.mubr.msk.f32.gmra.mxu0 %vm2536_vm1, %v10849_v25 }
 0x29d   :  { %6912 = vmatprep.mubr.msk.f32.mxu0 %vm2536_vm1, %v10856_v6 }
 0x29e   :  { %6971 = vmatmul.mubr.msk.f32.gmra.mxu1 %vm2536_vm1, %v10829_v57 }
 0x29f   :  { %6973 = vmatprep.mubr.msk.f32.mxu1 %vm2536_vm1, %v10836_v30 }
 0x2a0   :  { %6913 = vmatmul.mubr.msk.f32.gmra.mxu0 %vm2536_vm1, %v10867_v22 }
 0x2a1   :  { %6915 = vmatprep.mubr.msk.f32.mxu0 %vm2536_vm1, %v10874_v3 }
 0x2a2   :  { %6974 = vmatmul.mubr.msk.f32.gmra.mxu1 %vm2536_vm1, %v10849_v25 }
 0x2a3   :  { %6976 = vmatprep.mubr.msk.f32.mxu1 %vm2536_vm1, %v10856_v6 }
 0x2a4   :  { %6916 = vmatmul.mubr.msk.f32.gmra.mxu0 %vm2536_vm1, %v10885_v4 }
 0x2a5   :  { %6918 = vmatprep.mubr.msk.f32.mxu0 %vm2536_vm1, %v10892_v53 }
 0x2a6   :  { %6977 = vmatmul.mubr.msk.f32.gmra.mxu1 %vm2536_vm1, %v10867_v22 }
 0x2a7   :  { %6979 = vmatprep.mubr.msk.f32.mxu1 %vm2536_vm1, %v10874_v3 }
 0x2a8   :  { %6919 = vmatmul.mubr.msk.f32.gmra.mxu0 %vm2536_vm1, %v10903_v18 }
 0x2a9   :  { %6921 = vmatprep.mubr.msk.f32.mxu0 %vm2536_vm1, %v10910_v13 }
 0x2aa   :  { %6980 = vmatmul.mubr.msk.f32.gmra.mxu1 %vm2536_vm1, %v10885_v4 }
 0x2ab   :  { %6982 = vmatprep.mubr.msk.f32.mxu1 %vm2536_vm1, %v10892_v53 }
 0x2ac   :  { %6922 = vmatmul.mubr.msk.f32.gmra.mxu0 %vm2536_vm1, %v10921_v20 }
 0x2ad   :  { %6924 = vmatprep.mubr.msk.f32.mxu0 %vm2536_vm1, %v12263_v45 }
 0x2ae   :  { %6983 = vmatmul.mubr.msk.f32.gmra.mxu1 %vm2536_vm1, %v10903_v18 }
 0x2af   :  { %6985 = vmatprep.mubr.msk.f32.mxu1 %vm2536_vm1, %v10910_v13 }
 0x2b0   :  { %6925 = vmatmul.mubr.msk.f32.gmra.mxu0 %vm2536_vm1, %v12264_v55 }
 0x2b1   :  { %6927 = vmatprep.mubr.msk.f32.mxu0 %vm2536_vm1, %v12265_v10 }
 0x2b2   :  { %6986 = vmatmul.mubr.msk.f32.gmra.mxu1 %vm2536_vm1, %v10921_v20 }
 0x2b3   :  { %6988 = vmatprep.mubr.msk.f32.mxu1 %vm2536_vm1, %v10940_v28  ;;  %v10960_v11 = vpop.f32.mrf.mxu0 }
 0x2b4   :  { %6928 = vmatmul.mubr.msk.f32.gmra.mxu0 %vm2536_vm1, %v12266_v37 }
 0x2b5   :  { %7010 = vmatprep.mubr.msk.f32.mxu0 %vm2536_vm1, %v12267_v52  ;;  %v10966_v23 = vpop.f32.mrf.mxu0 }
 0x2b6   :  { %6989 = vmatmul.mubr.msk.f32.gmra.mxu1 %vm2536_vm1, %v12264_v55 }
 0x2b7   :  { %6991 = vmatprep.mubr.msk.f32.mxu1 %vm2536_vm1, %v12265_v10 }
 0x2b8   :  { %7011 = vmatmul.mubr.msk.f32.vlgmr.msra.gmra.mxu0 %vm2536_vm1, %v10504_v36  ;;  %v10972_v42 = vpop.f32.mrf.mxu0 }
 0x2b9   :  { %7013 = vmatprep.mubr.msk.f32.mxu0 %vm2536_vm1, %v10516_v5  ;;  %v11146_v33 = vadd.f32 %v10972_v42, %v11122_v21 }
 0x2ba   :  { %6992 = vmatmul.mubr.msk.f32.gmra.mxu1 %vm2536_vm1, %v12266_v37  ;;  %v10978_v2 = vpop.f32.mrf.mxu0 }
 0x2bb   :  { %7074 = vmatprep.mubr.msk.f32.mxu1 %vm2536_vm1, %v12267_v52 }
 0x2bc   :  { %7014 = vmatmul.mubr.msk.f32.gmra.mxu0 %vm2536_vm1, %v10539_v40 }
 0x2bd   :  { %7016 = vmatprep.mubr.msk.f32.mxu0 %vm2536_vm1, %v12231_v17 }
 0x2be   :  { %7075 = vmatmul.mubr.msk.f32.vlgmr.msra.gmra.mxu1 %vm2536_vm1, %v10504_v36  ;;  %v10984_v36 = vpop.f32.mrf.mxu0 }
 0x2bf   :  { %7077 = vmatprep.mubr.msk.f32.mxu1 %vm2536_vm1, %v10516_v5  ;;  %v11150_v0 = vadd.f32 %v10984_v36, %v11102_v15 }
 0x2c0   :  { %7017 = vmatmul.mubr.msk.f32.gmra.mxu0 %vm2536_vm1, %v10617_v61  ;;  %v10990_v5 = vpop.f32.mrf.mxu0 }
 0x2c1   :  { %7019 = vmatprep.mubr.msk.f32.mxu0 %vm2536_vm1, %v10640_v44  ;;  %v11158_v12 = vadd.f32 %v11124_v50, %v10990_v5 }
 0x2c2   :  { %7078 = vmatmul.mubr.msk.f32.gmra.mxu1 %vm2536_vm1, %v10539_v40  ;;  %v10996_v40 = vpop.f32.mrf.mxu0 }
 0x2c3   :  { %7080 = vmatprep.mubr.msk.f32.mxu1 %vm2536_vm1, %v12231_v17 }
 0x2c4   :  { %7020 = vmatmul.mubr.msk.f32.gmra.mxu0 %vm2536_vm1, %v10651_v49  ;;  %v11002_v17 = vpop.f32.mrf.mxu0 }
 0x2c5   :  { %7022 = vmatprep.mubr.msk.f32.mxu0 %vm2536_vm1, %v10688_v47 }
 0x2c6   :  { %7081 = vmatmul.mubr.msk.f32.gmra.mxu1 %vm2536_vm1, %v10617_v61  ;;  %v11008_v61 = vpop.f32.mrf.mxu0 }
 0x2c7   :  { %7083 = vmatprep.mubr.msk.f32.mxu1 %vm2536_vm1, %v10640_v44  ;;  %v11198_v42 = vadd.f32 %v11008_v61, %v11162_v56 }
 0x2c8   :  { %7023 = vmatmul.mubr.msk.f32.gmra.mxu0 %vm2536_vm1, %v10697_v51  ;;  %v11014_v44 = vpop.f32.mrf.mxu0 }
 0x2c9   :  { %7025 = vmatprep.mubr.msk.f32.mxu0 %vm2536_vm1, %v10731_v62 }
 0x2ca   :  { %7084 = vmatmul.mubr.msk.f32.gmra.mxu1 %vm2536_vm1, %v10651_v49  ;;  %v11020_v49 = vpop.f32.mrf.mxu0 }
 0x2cb   :  { %7086 = vmatprep.mubr.msk.f32.mxu1 %vm2536_vm1, %v10688_v47  ;;  %v11206_v5 = vadd.f32 %v11020_v49, %v11122_v21 }
 0x2cc   :  { %7026 = vmatmul.mubr.msk.f32.gmra.mxu0 %vm2536_vm1, %v10742_v29  ;;  %v11026_v47 = vpop.f32.mrf.mxu0 }
 0x2cd   :  { %7028 = vmatprep.mubr.msk.f32.mxu0 %vm2536_vm1, %v10778_v14 }
 0x2ce   :  { %7087 = vmatmul.mubr.msk.f32.gmra.mxu1 %vm2536_vm1, %v10697_v51  ;;  %v11032_v51 = vpop.f32.mrf.mxu0 }
 0x2cf   :  { %7089 = vmatprep.mubr.msk.f32.mxu1 %vm2536_vm1, %v10731_v62 }
 0x2d0   :  { %7029 = vmatmul.mubr.msk.f32.gmra.mxu0 %vm2536_vm1, %v10789_v58  ;;  %v11038_v62 = vpop.f32.mrf.mxu0 }
 0x2d1   :  { %7031 = vmatprep.mubr.msk.f32.mxu0 %vm2536_vm1, %v10796_v60  ;;  %v2910_v55 = vadd.f32 %v11124_v50, %v11038_v62 }
 0x2d2   :  { %7090 = vmatmul.mubr.msk.f32.gmra.mxu1 %vm2536_vm1, %v10742_v29  ;;  %v11046_v29 = vpop.f32.mrf.mxu0 }
 0x2d3   :  { %7092 = vmatprep.mubr.msk.f32.mxu1 %vm2536_vm1, %v10778_v14 }
 0x2d4   :  { %7032 = vmatmul.mubr.msk.f32.gmra.mxu0 %vm2536_vm1, %v10811_v9  ;;  %v11056_v24 = vpop.f32.mrf.mxu0 }
 0x2d5   :  { %7034 = vmatprep.mubr.msk.f32.mxu0 %vm2536_vm1, %v10818_v31  ;;  %v2912_v10 = vadd.f32 %v11104_v63, %v11056_v24 }
 0x2d6   :  { %7093 = vmatmul.mubr.msk.f32.gmra.mxu1 %vm2536_vm1, %v10789_v58  ;;  %v11070_v38 = vpop.f32.mrf.mxu0 }
 0x2d7   :  { %7095 = vmatprep.mubr.msk.f32.mxu1 %vm2536_vm1, %v10796_v60  ;;  %v11060_v19 = vpop.f32.mrf.mxu1 }
 0x2d8   :  { %7035 = vmatmul.mubr.msk.f32.gmra.mxu0 %vm2536_vm1, %v10829_v57  ;;  %v11086_v54 = vpop.f32.mrf.mxu0 }
 0x2d9   :  { %7037 = vmatprep.mubr.msk.f32.mxu0 %vm2536_vm1, %v10836_v30  ;;  %v11066_v39 = vpop.f32.mrf.mxu1 }
 0x2da   :  { %7096 = vmatmul.mubr.msk.f32.gmra.mxu1 %vm2536_vm1, %v10811_v9 }
 0x2db   :  { %7098 = vmatprep.mubr.msk.f32.mxu1 %vm2536_vm1, %v10818_v31  ;;  %v11074_v43 = vpop.f32.mrf.mxu1  ;;  %v11100_v35 = vpop.f32.mrf.mxu0 }
 0x2dc   :  { %7038 = vmatmul.mubr.msk.f32.gmra.mxu0 %vm2536_vm1, %v10849_v25 }
 0x2dd   :  { %7040 = vmatprep.mubr.msk.f32.mxu0 %vm2536_vm1, %v10856_v6  ;;  %v11082_v48 = vpop.f32.mrf.mxu1  ;;  %v11114_v46 = vpop.f32.mrf.mxu0 }
 0x2de   :  { %7099 = vmatmul.mubr.msk.f32.gmra.mxu1 %vm2536_vm1, %v10829_v57  ;;  %v2905_v57 = vadd.f32 %v10996_v40, %v11078_v34 }
 0x2df   :  { %7101 = vmatprep.mubr.msk.f32.mxu1 %vm2536_vm1, %v10836_v30  ;;  %v11134_v60 = vpop.f32.mrf.mxu0  ;;  %v2904_v30 = vadd.f32 %v11104_v63, %v11002_v17 }
 0x2e0   :  { %7041 = vmatmul.mubr.msk.f32.gmra.mxu0 %vm2536_vm1, %v10867_v22  ;;  %v11090_v1 = vpop.f32.mrf.mxu1  ;;  %v2937_v52 = vmax.f32 %v2905_v57, 0.0 }
 0x2e1   :  { %7043 = vmatprep.mubr.msk.f32.mxu0 %vm2536_vm1, %v10874_v3  ;;  %v11160_v31 = vpop.f32.mrf.mxu0  ;;  %v3328_v36 = vadd.f32 %v11090_v1, %v11102_v15 }
 0x2e2   :  { %7102 = vmatmul.mubr.msk.f32.gmra.mxu1 %vm2536_vm1, %v10849_v25  ;;  %v11096_v41 = vpop.f32.mrf.mxu1  ;;  %v11170_v25 = vpop.permute.xlu0 %2870 }
 0x2e3   :  { %7104 = vmatprep.mubr.msk.f32.mxu1 %vm2536_vm1, %v10856_v6  ;;  %v11175_v6 = vadd.f32 %v10960_v11, %v11162_v56  ;;  %v2936_v11 = vmax.f32 %v2904_v30, 0.0  ;;  %v11211_v62 = vadd.f32 %v11170_v25, %v11026_v47  ;;  %v3327_v49 = vadd.f32 %v11096_v41, %v11124_v50 }
 0x2e4   :  { %7044 = vmatmul.mubr.msk.f32.gmra.mxu0 %vm2536_vm1, %v10885_v4  ;;  %v3326_v30 = vadd.f32 %v11074_v43, %v11122_v21 }
 0x2e5   :  { %7046 = vmatprep.mubr.msk.f32.mxu0 %vm2536_vm1, %v10892_v53  ;;  %v6829_v27 = vpop.f32.mrf.mxu1 }
 0x2e6   :  { %7105 = vmatmul.mubr.msk.f32.gmra.mxu1 %vm2536_vm1, %v10867_v22  ;;  %v2913_v22 = vadd.f32 %v11046_v29, %v11078_v34  ;;  %v3330_v45 = vadd.f32 %v6829_v27, %v11078_v34  ;;  %v11194_v37 = vpop.f32.mrf.mxu0  ;;  %v2942_v27 = vmax.f32 %v2910_v55, 0.0 }
 0x2e7   :  { %7107 = vmatprep.mubr.msk.f32.mxu1 %vm2536_vm1, %v10874_v3  ;;  %v3194_v7 = vpop.f32.mrf.mxu1 }
 0x2e8   :  { %7047 = vmatmul.mubr.msk.f32.gmra.mxu0 %vm2536_vm1, %v10903_v18  ;;  %v3329_v40 = vadd.f32 %v3194_v7, %v11104_v63  ;;  %v2945_v17 = vmax.f32 %v2913_v22, 0.0  ;;  %v3362_v1 = vmax.f32 %v3330_v45, 0.0  ;;  %v2944_v7 = vmax.f32 %v2912_v10, 0.0 }
 0x2e9   :  { %7049 = vmatprep.mubr.msk.f32.mxu0 %vm2536_vm1, %v10910_v13  ;;  %v11120_v14 = vpop.f32.mrf.mxu1  ;;  %v3360_v22 = vmax.f32 %v3328_v36, 0.0 }
 0x2ea   :  { %7108 = vmatmul.mubr.msk.f32.gmra.mxu1 %vm2536_vm1, %v10885_v4  ;;  %v2933_v4 = vmax.f32 %v11146_v33, 0.0 }
 0x2eb   :  { %7110 = vmatprep.mubr.msk.f32.mxu1 %vm2536_vm1, %v10892_v53  ;;  %v11132_v58 = vpop.f32.mrf.mxu1  ;;  %v11183_v53 = vadd.f32 %v11170_v25, %v10978_v2 }
 0x2ec   :  { %7050 = vmatmul.mubr.msk.f32.gmra.mxu0 %vm2536_vm1, %v10921_v20 }
 0x2ed   :  { %7052 = vmatprep.mubr.msk.f32.mxu0 %vm2536_vm1, %v10940_v28 }
 0x2ee   :  { %7111 = vmatmul.mubr.msk.f32.gmra.mxu1 %vm2536_vm1, %v10903_v18  ;;  %v6835_v26 = vpop.f32.mrf.mxu1  ;;  %v2935_v18 = vmax.f32 %v11150_v0, 0.0 }
 0x2ef   :  { %7113 = vmatprep.mubr.msk.f32.mxu1 %vm2536_vm1, %v10910_v13  ;;  %v2911_v13 = vadd.f32 %v11032_v51, %v11102_v15  ;;  %v3334_v47 = vadd.f32 %v6835_v26, %v11122_v21  ;;  %v3325_v26 = vadd.f32 %v11082_v48, %v11170_v25 }
 0x2f0   :  { %7053 = vmatmul.mubr.msk.f32.gmra.mxu0 %vm2536_vm1, %v7285_v32  ;;  %v3214_v9 = vpop.f32.mrf.mxu1 }
 0x2f1   :  { %7055 = vmatprep.mubr.msk.f32.mxu0 %vm2536_vm1, %v7286_v59  ;;  %v2943_v61 = vmax.f32 %v2911_v13, 0.0  ;;  %v5094_v13 = vmax.f32 %v2937_v52, %v2945_v17  ;;  %v3333_v41 = vadd.f32 %v3214_v9, %v11170_v25  ;;  %v3366_v43 = vmax.f32 %v3334_v47, 0.0  ;;  %v11234_v9 = vpop.permute.xlu0 %2860 }
 0x2f2   :  { %7114 = vmatmul.mubr.msk.f32.gmra.mxu1 %vm2536_vm1, %v10921_v20  ;;  %v2934_v20 = vmax.f32 %v11158_v12, 0.0  ;;  %v3324_v17 = vadd.f32 %v11060_v19, %v11162_v56  ;;  %v2940_v19 = vmax.f32 %v11211_v62, 0.0 }
 0x2f3   :  { %7116 = vmatprep.mubr.msk.f32.mxu1 %vm2536_vm1, %v10940_v28  ;;  %v6838_v3 = vpop.f32.mrf.mxu1  ;;  %v5092_v48 = vmax.f32 %v2935_v18, %v2943_v61 }
 0x2f4   :  { %7056 = vmatmul.mubr.msk.f32.gmra.mxu0 %vm2536_vm1, %v7287_v8  ;;  %v3336_v2 = vadd.f32 %v6838_v3, %v11102_v15  ;;  %v3361_v3 = vmax.f32 %v3329_v40, 0.0  ;;  %v5091_v18 = vmax.f32 %v2934_v20, %v2942_v27  ;;  %v3356_v62 = vmax.f32 %v3324_v17, 0.0 }
 0x2f5   :  { %7138 = vmatprep.mubr.msk.f32.mxu0 %vm7312_vm2, %v7311_v16  ;;  %v3224_v28 = vpop.f32.mrf.mxu1 }
 0x2f6   :  { %7117 = vmatmul.mubr.msk.f32.gmra.mxu1 %vm2536_vm1, %v7285_v32  ;;  %v3335_v29 = vadd.f32 %v3224_v28, %v11124_v50  ;;  %v3368_v0 = vmax.f32 %v3336_v2, 0.0  ;;  %v3359_v2 = vmax.f32 %v3327_v49, 0.0 }
 0x2f7   :  { %7119 = vmatprep.mubr.msk.f32.mxu1 %vm2536_vm1, %v7286_v59  ;;  %v6841_v51 = vpop.f32.mrf.mxu1  ;;  %v11219_v59 = vpop.f32.mrf.mxu0 }
 0x2f8   :  { %v3338_v24 = vadd.f32 %v6841_v51, %v11078_v34  ;;  %v3367_v45 = vmax.f32 %v3335_v29, 0.0  ;;  %v3332_v51 = vadd.f32 %v11120_v14, %v11162_v56  ;;  %v5100_v36 = vmax.f32 %v3360_v22, %v3368_v0 }
 0x2f9   :  { %v3234_v32 = vpop.f32.mrf.mxu1  ;;  %v3358_v29 = vmax.f32 %v3326_v30, 0.0  ;;  %v3331_v14 = vadd.f32 %v11132_v58, %v11234_v9  ;;  %v3323_v0 = vadd.f32 %v11066_v39, %v11234_v9  ;;  %v3357_v58 = vmax.f32 %v3325_v26, 0.0 }
 0x2fa   :  { %7120 = vmatmul.mubr.msk.f32.gmra.mxu1 %vm2536_vm1, %v7287_v8  ;;  %v3370_v8 = vmax.f32 %v3338_v24, 0.0  ;;  %v3337_v57 = vadd.f32 %v3234_v32, %v11104_v63  ;;  %v5093_v24 = vmax.f32 %v2936_v11, %v2944_v7  ;;  %v11232_v32 = vpop.f32.mrf.mxu0  ;;  %v3365_v11 = vmax.f32 %v3333_v41, 0.0 }
 0x2fb   :  { %7157 = vmatprep.mubr.msk.f32.mxu1 %vm7312_vm2, %v7311_v16  ;;  %v5099_v7 = vmax.f32 %v3359_v2, %v3367_v45  ;;  %v3364_v61 = vmax.f32 %v3332_v51, 0.0  ;;  %v5108_v30 = vmax.f32 %v5092_v48, %v5100_v36  ;;  %v2898_v39 = vadd.f32 %v11234_v9, %v10966_v23 }
 0x2fc   :  { %v5102_v55 = vmax.f32 %v3362_v1, %v3370_v8  ;;  %v3369_v10 = vmax.f32 %v3337_v57, 0.0  ;;  %v2941_v1 = vmax.f32 %v11206_v5, 0.0  ;;  %v2906_v8 = vadd.f32 %v11234_v9, %v11014_v44  ;;  %v11251_v5 = vpop.f32.mrf.mxu0 }
 0x2fd   :  { %v11226_v28 = vpop.f32.mrf.mxu1  ;;  %v5098_v57 = vmax.f32 %v3358_v29, %v3366_v43  ;;  %v2932_v22 = vmax.f32 %v11183_v53, 0.0  ;;  %v2939_v44 = vmax.f32 %v11198_v42, 0.0  ;;  %v3363_v27 = vmax.f32 %v3331_v14, 0.0  ;;  %v114_v29 = vld [vmem:[%s11820_s7] sm:$0xf] }
 0x2fe   :  { %v5110_v52 = vmax.f32 %v5094_v13, %v5102_v55  ;;  %v5101_v40 = vmax.f32 %v3361_v3, %v3369_v10  ;;  %v5090_v12 = vmax.f32 %v2933_v4, %v2941_v1  ;;  %v5097_v3 = vmax.f32 %v3357_v58, %v3365_v11  ;;  %v6795_v53 = vpop.f32.mrf.mxu0 }
 0x2ff   :  { %v11239_v49 = vpop.f32.mrf.mxu1  ;;  %v5107_v13 = vmax.f32 %v5091_v18, %v5099_v7  ;;  %v2931_v41 = vmax.f32 %v11175_v6, 0.0  ;;  %v2938_v45 = vmax.f32 %v2906_v8, 0.0  ;;  %v3355_v42 = vmax.f32 %v3323_v0, 0.0 }
 0x300   :  { %v5109_v47 = vmax.f32 %v5093_v24, %v5101_v40  ;;  %7142 = vmatpush3.msra.mxu1 %v5110_v52  ;;  %v5089_v33 = vmax.f32 %v2932_v22, %v2940_v19  ;;  %v5096_v4 = vmax.f32 %v3356_v62, %v3364_v61  ;;  %v5106_v55 = vmax.f32 %v5090_v12, %v5098_v57  ;;  %v2829_v43 = vpop.f32.mrf.mxu0 }
 0x301   :  { %7143 = vmatprep.subr.mxu1 %v7311_v16  ;;  %v2930_v26 = vmax.f32 %v2898_v39, 0.0  ;;  %v5088_v2 = vmax.f32 %v2931_v41, %v2939_v44  ;;  %v5095_v51 = vmax.f32 %v3355_v42, %v3363_v27  ;;  %v11281_v8 = vadd.f32 %v11100_v35, %v11122_v21 }
 0x302   :  { %7144 = vmatpush3.msra.mxu1 %v5109_v47  ;;  %v5105_v24 = vmax.f32 %v5089_v33, %v5097_v3  ;;  %v6798_v48 = vpop.f32.mrf.mxu0  ;;  %v2919_v19 = vadd.f32 %v11134_v60, %v11102_v15  ;;  %v11287_v58 = vadd.f32 %v11124_v50, %v11160_v31  ;;  %v2921_v61 = vadd.f32 %v11194_v37, %v11078_v34 }
 0x303   :  { %7145 = vmatprep.subr.mxu1 %v7311_v16  ;;  %v5087_v36 = vmax.f32 %v2930_v26, %v2938_v45  ;;  %v5104_v52 = vmax.f32 %v5088_v2, %v5096_v4  ;;  %v2920_v57 = vadd.f32 %v11104_v63, %v11219_v59  ;;  %v11295_v39 = vadd.f32 %v11070_v38, %v11162_v56 }
 0x304   :  { %v11259_v20 = vpop.f32.mrf.mxu1  ;;  %7146 = vmatpush3.msra.mxu1 %v5108_v30  ;;  %v2839_v11 = vpop.f32.mrf.mxu0  ;;  %v2949_v60 = vmax.f32 %v11281_v8, 0.0  ;;  %v11301_v31 = vadd.f32 %v11170_v25, %v11114_v46  ;;  %v2951_v44 = vmax.f32 %v2919_v19, 0.0  ;;  %v2927_v37 = vadd.f32 %v6798_v48, %v11102_v15 }
 0x305   :  { %7147 = vmatprep.subr.mxu1 %v7311_v16  ;;  %v5103_v17 = vmax.f32 %v5087_v36, %v5095_v51  ;;  %v2950_v12 = vmax.f32 %v11287_v58, 0.0  ;;  %v2926_v62 = vadd.f32 %v11124_v50, %v2839_v11  ;;  %v2953_v3 = vmax.f32 %v2921_v61, 0.0 }
 0x306   :  { %v11263_v23 = vpop.f32.mrf.mxu1  ;;  %7148 = vmatpush3.msra.mxu1 %v5107_v13  ;;  %v6801_v0 = vpop.f32.mrf.mxu0  ;;  %v2952_v13 = vmax.f32 %v2920_v57, 0.0  ;;  %v11310_v41 = vadd.f32 %v11232_v32, %v11162_v56  ;;  %v2925_v42 = vadd.f32 %v6795_v53, %v11122_v21  ;;  %v11317_v26 = vadd.f32 %v11170_v25, %v2829_v43 }
 0x307   :  { %7149 = vmatprep.subr.mxu1 %v7311_v16  ;;  %v2929_v35 = vadd.f32 %v6801_v0, %v11078_v34  ;;  %v2959_v2 = vmax.f32 %v2927_v37, 0.0  ;;  %v3342_v43 = vadd.f32 %v11259_v20, %v11122_v21 }
 0x308   :  { %7150 = vmatpush3.msra.mxu1 %v5106_v55  ;;  %v2849_v30 = vpop.f32.mrf.mxu0 }
 0x309   :  { %v6850_v10 = vpop.f32.mrf.mxu1  ;;  %7151 = vmatprep.subr.mxu1 %v7311_v16  ;;  %v2928_v38 = vadd.f32 %v11104_v63, %v2849_v30  ;;  %v2961_v4 = vmax.f32 %v2929_v35, 0.0 }
 0x30a   :  { %7152 = vmatpush3.msra.mxu1 %v5105_v24  ;;  %v3344_v45 = vadd.f32 %v6850_v10, %v11102_v15 }
 0x30b   :  { %v3264_v6 = vpop.f32.mrf.mxu1  ;;  %7153 = vmatprep.subr.mxu1 %v7311_v16  ;;  %v5118_v0 = vmax.f32 %v2953_v3, %v2961_v4  ;;  %v2957_v3 = vmax.f32 %v2925_v42, 0.0 }
 0x30c   :  { %7154 = vmatpush3.msra.mxu1 %v5104_v52  ;;  %v3343_v32 = vadd.f32 %v3264_v6, %v11124_v50  ;;  %v2958_v52 = vmax.f32 %v2926_v62, 0.0  ;;  %v3376_v48 = vmax.f32 %v3344_v45, 0.0 }
 0x30d   :  { %v6853_v40 = vpop.f32.mrf.mxu1  ;;  %7155 = vmatprep.subr.mxu1 %v7311_v16 }
 0x30e   :  { %7156 = vmatpush3.msra.mxu1 %v5103_v17  ;;  %v3346_v59 = vadd.f32 %v6853_v40, %v11078_v34  ;;  %v2960_v40 = vmax.f32 %v2928_v38, 0.0  ;;  %v3375_v30 = vmax.f32 %v3343_v32, 0.0  ;;  %v3340_v38 = vadd.f32 %v11226_v28, %v11162_v56 }
 0x30f   :  { %v3274_v1 = vpop.f32.mrf.mxu1  ;;  %7179 = vmatprep.subr.mxu1 %v7311_v16  ;;  %7158 = vmatmul.mubr.msk.f32.vlgmr.msra.gmra.mxu1 %vm2536_vm1, %v114_v29  ;;  %v2956_v28 = vmax.f32 %v11317_v26, 0.0 }
 0x310   :  { %7195 = vmatprep.mubr.msk.f32.mxu1 %vm7312_vm2, %v7311_v16  ;;  %v3345_v33 = vadd.f32 %v3274_v1, %v11104_v63  ;;  %v3378_v36 = vmax.f32 %v3346_v59, 0.0 }
 0x312   :  { %v6856_v14 = vpop.f32.mrf.mxu1  ;;  %v3377_v11 = vmax.f32 %v3345_v33, 0.0 }
 0x313   :  { %v3348_v35 = vadd.f32 %v6856_v14, %v11162_v56  ;;  %v3339_v14 = vadd.f32 %v11239_v49, %v11234_v9  ;;  %v2955_v49 = vmax.f32 %v11310_v41, 0.0 }
 0x314   :  { %v11277_v7 = vpop.f32.mrf.mxu1 }
 0x315   :  { %v3347_v45 = vadd.f32 %v11277_v7, %v11234_v9  ;;  %v3380_v42 = vmax.f32 %v3348_v35, 0.0  ;;  %v2914_v7 = vadd.f32 %v11234_v9, %v11086_v54  ;;  %v3371_v54 = vmax.f32 %v3339_v14, 0.0 }
 0x317   :  { %v6859_v47 = vpop.f32.mrf.mxu1  ;;  %v3379_v26 = vmax.f32 %v3347_v45, 0.0 }
 0x318   :  { %v3350_v53 = vadd.f32 %v6859_v47, %v11122_v21  ;;  %v3341_v47 = vadd.f32 %v11263_v23, %v11170_v25 }
 0x319   :  { %v3294_v18 = vpop.f32.mrf.mxu1 }
 0x31a   :  { %v3349_v6 = vadd.f32 %v3294_v18, %v11170_v25  ;;  %v3382_v37 = vmax.f32 %v3350_v53, 0.0  ;;  %v5116_v18 = vmax.f32 %v2951_v44, %v2959_v2  ;;  %v3373_v44 = vmax.f32 %v3341_v47, 0.0 }
 0x31c   :  { %v6862_v22 = vpop.f32.mrf.mxu1  ;;  %v3381_v23 = vmax.f32 %v3349_v6, 0.0 }
 0x31d   :  { %v3352_v46 = vadd.f32 %v6862_v22, %v11102_v15  ;;  %v5117_v22 = vmax.f32 %v2952_v13, %v2960_v40  ;;  %v2922_v13 = vadd.f32 %v11234_v9, %v11251_v5  ;;  %v5114_v5 = vmax.f32 %v2949_v60, %v2957_v3 }
 0x31e   :  { %v3304_v27 = vpop.f32.mrf.mxu1  ;;  %v2947_v40 = vmax.f32 %v11295_v39, 0.0  ;;  %v2946_v60 = vmax.f32 %v2914_v7, 0.0 }
 0x31f   :  { %v3351_v51 = vadd.f32 %v3304_v27, %v11124_v50  ;;  %v3384_v17 = vmax.f32 %v3352_v46, 0.0  ;;  %v3374_v27 = vmax.f32 %v3342_v43, 0.0 }
 0x320   :  { %v6865_v55 = vpop.f32.mrf.mxu1 }
 0x321   :  { %v3354_v24 = vadd.f32 %v6865_v55, %v11078_v34  ;;  %v3383_v58 = vmax.f32 %v3351_v51, 0.0  ;;  %v5124_v59 = vmax.f32 %v3376_v48, %v3384_v17  ;;  %v5115_v55 = vmax.f32 %v2950_v12, %v2958_v52 }
 0x322   :  { %v3314_v10 = vpop.f32.mrf.mxu1  ;;  %v5122_v2 = vmax.f32 %v3374_v27, %v3382_v37  ;;  %v3372_v12 = vmax.f32 %v3340_v38, 0.0  ;;  %v5112_v17 = vmax.f32 %v2947_v40, %v2955_v49 }
 0x323   :  { %v3386_v29 = vmax.f32 %v3354_v24, 0.0  ;;  %v3353_v1 = vadd.f32 %v3314_v10, %v11104_v63  ;;  %v11326_v19 = vpop.f32.mrf.mxu0  ;;  %v5123_v33 = vmax.f32 %v3375_v30, %v3383_v58  ;;  %v5132_v51 = vmax.f32 %v5116_v18, %v5124_v59  ;;  %v115_v58 = vld [vmem:[%s11820_s7 + $0x4] sm:$0xf] }
 0x324   :  { %v2948_v24 = vmax.f32 %v11301_v31, 0.0  ;;  %v2954_v10 = vmax.f32 %v2922_v13, 0.0  ;;  %v5120_v53 = vmax.f32 %v3372_v12, %v3380_v42  ;;  %v5130_v41 = vmax.f32 %v5114_v5, %v5122_v2 }
 0x325   :  { %v5126_v61 = vmax.f32 %v3378_v36, %v3386_v29  ;;  %v3385_v57 = vmax.f32 %v3353_v1, 0.0  ;;  %v11334_v46 = vpop.f32.mrf.mxu0  ;;  %v5121_v36 = vmax.f32 %v3373_v44, %v3381_v23  ;;  %v5131_v52 = vmax.f32 %v5115_v55, %v5123_v33 }
 0x326   :  { %v5113_v31 = vmax.f32 %v2948_v24, %v2956_v28  ;;  %v5119_v29 = vmax.f32 %v3371_v54, %v3379_v26  ;;  %v5111_v39 = vmax.f32 %v2946_v60, %v2954_v10  ;;  %v5128_v48 = vmax.f32 %v5112_v17, %v5120_v53 }
 0x327   :  { %v5134_v20 = vmax.f32 %v5118_v0, %v5126_v61  ;;  %v5125_v62 = vmax.f32 %v3377_v11, %v3385_v57  ;;  %v6887_v32 = vpop.f32.mrf.mxu0  ;;  %v11383_v42 = vadd.f32 %v11326_v19, %v11162_v56 }
 0x328   :  { %v5129_v1 = vmax.f32 %v5113_v31, %v5121_v36  ;;  %v5127_v6 = vmax.f32 %v5111_v39, %v5119_v29  ;;  %v11373_v33 = vadd.f32 %v6887_v32, %v11122_v21 }
 0x329   :  { %v5133_v4 = vmax.f32 %v5117_v22, %v5125_v62  ;;  %7123 = vmatpush3.msra.mxu0 %v5134_v20  ;;  %v3599_v8 = vpop.f32.mrf.mxu0 }
 0x32a   :  { %7124 = vmatprep.subr.mxu0 %v7311_v16  ;;  %v3783_v2 = vmax.f32 %v11373_v33, 0.0  ;;  %v11389_v5 = vadd.f32 %v3599_v8, %v11170_v25 }
 0x32b   :  { %7125 = vmatpush3.msra.mxu0 %v5133_v4 }
 0x32c   :  { %7126 = vmatprep.subr.mxu0 %v7311_v16 }
 0x32d   :  { %7127 = vmatpush3.msra.mxu0 %v5132_v51 }
 0x32e   :  { %7128 = vmatprep.subr.mxu0 %v7311_v16 }
 0x32f   :  { %7129 = vmatpush3.msra.mxu0 %v5131_v52 }
 0x330   :  { %7130 = vmatprep.subr.mxu0 %v7311_v16 }
 0x331   :  { %7131 = vmatpush3.msra.mxu0 %v5130_v41 }
 0x332   :  { %7132 = vmatprep.subr.mxu0 %v7311_v16 }
 0x333   :  { %v6948_v43 = vpop.f32.mrf.mxu1  ;;  %7133 = vmatpush3.msra.mxu0 %v5129_v1 }
 0x334   :  { %7134 = vmatprep.subr.mxu0 %v7311_v16  ;;  %v11392_v32 = vadd.f32 %v6948_v43, %v11162_v56 }
 0x335   :  { %v6890_v11 = vpop.f32.mrf.mxu0  ;;  %v11355_v0 = vpop.f32.mrf.mxu1  ;;  %7135 = vmatpush3.msra.mxu0 %v5128_v48 }
 0x336   :  { %7136 = vmatprep.subr.mxu0 %v7311_v16  ;;  %v11376_v13 = vadd.f32 %v6890_v11, %v11102_v15 }
 0x337   :  { %v3609_v61 = vpop.f32.mrf.mxu0  ;;  %v6951_v57 = vpop.f32.mrf.mxu1  ;;  %7137 = vmatpush3.msra.mxu0 %v5127_v6 }
 0x338   :  { %7160 = vmatprep.subr.mxu0 %v7311_v16  ;;  %7139 = vmatmul.mubr.msk.f32.vlgmr.msra.gmra.mxu0 %vm2536_vm1, %v115_v58  ;;  %v11379_v44 = vadd.f32 %v3609_v61, %v11124_v50  ;;  %v3785_v19 = vmax.f32 %v11376_v13, 0.0  ;;  %v11398_v36 = vadd.f32 %v6951_v57, %v11122_v21 }
 0x339   :  { %v6893_v47 = vpop.f32.mrf.mxu0  ;;  %7176 = vmatprep.mubr.msk.f32.mxu0 %vm7312_vm2, %v7311_v16  ;;  %v4024_v30 = vpop.f32.mrf.mxu1 }
 0x33a   :  { %v3755_v51 = vadd.f32 %v6893_v47, %v11078_v34  ;;  %v3784_v31 = vmax.f32 %v11379_v44, 0.0  ;;  %v11406_v53 = vadd.f32 %v4024_v30, %v11170_v25 }
 0x33b   :  { %v3619_v35 = vpop.f32.mrf.mxu0 }
 0x33c   :  { %v3754_v7 = vadd.f32 %v3619_v35, %v11104_v63  ;;  %v3787_v60 = vmax.f32 %v3755_v51, 0.0 }
 0x33d   :  { %v6954_v22 = vpop.f32.mrf.mxu1 }
 0x33e   :  { %v4178_v12 = vadd.f32 %v6954_v22, %v11102_v15  ;;  %v3786_v17 = vmax.f32 %v3754_v7, 0.0 }
 0x33f   :  { %v4034_v59 = vpop.f32.mrf.mxu1 }
 0x340   :  { %v4177_v52 = vadd.f32 %v4034_v59, %v11124_v50  ;;  %v4210_v48 = vmax.f32 %v4178_v12, 0.0 }
 0x341   :  { %v11366_v37 = vpop.f32.mrf.mxu0 }
 0x342   :  { %v4209_v61 = vmax.f32 %v4177_v52, 0.0 }
 0x343   :  { %v11368_v20 = vpop.f32.mrf.mxu0 }
 0x347   :  { %v6957_v62 = vpop.f32.mrf.mxu1 }
 0x348   :  { %v6899_v38 = vpop.f32.mrf.mxu0  ;;  %v4180_v40 = vadd.f32 %v6957_v62, %v11078_v34 }
 0x349   :  { %v4044_v27 = vpop.f32.mrf.mxu1  ;;  %v3759_v13 = vadd.f32 %v6899_v38, %v11122_v21 }
 0x34a   :  { %v3639_v18 = vpop.f32.mrf.mxu0  ;;  %v4179_v29 = vadd.f32 %v4044_v27, %v11104_v63  ;;  %v4212_v57 = vmax.f32 %v4180_v40, 0.0 }
 0x34b   :  { %v6960_v3 = vpop.f32.mrf.mxu1  ;;  %v3758_v52 = vadd.f32 %v3639_v18, %v11170_v25 }
 0x34c   :  { %v4182_v40 = vadd.f32 %v6960_v3, %v11162_v56 }
 0x34d   :  { %v11370_v45 = vpop.f32.mrf.mxu1 }
 0x34e   :  { %v4181_v18 = vadd.f32 %v11370_v45, %v11234_v9 }
 0x350   :  { %v6902_v23 = vpop.f32.mrf.mxu0  ;;  %v4213_v44 = vmax.f32 %v4181_v18, 0.0  ;;  %v116_v18 = vld [vmem:[%s11820_s7 + $0x8] sm:$0xf] }
 0x351   :  { %v3761_v1 = vadd.f32 %v6902_v23, %v11102_v15 }
 0x352   :  { %v3649_v4 = vpop.f32.mrf.mxu0  ;;  %v6963_v14 = vpop.f32.mrf.mxu1 }
 0x353   :  { %v3760_v47 = vadd.f32 %v3649_v4, %v11124_v50  ;;  %v4184_v30 = vadd.f32 %v6963_v14, %v11122_v21  ;;  %v3793_v51 = vmax.f32 %v3761_v1, 0.0 }
 0x354   :  { %v6905_v28 = vpop.f32.mrf.mxu0  ;;  %v4064_v55 = vpop.f32.mrf.mxu1 }
 0x355   :  { %v3763_v26 = vadd.f32 %v6905_v28, %v11078_v34  ;;  %v4211_v28 = vmax.f32 %v4179_v29, 0.0  ;;  %v4183_v7 = vadd.f32 %v4064_v55, %v11170_v25 }
 0x356   :  { %v3659_v24 = vpop.f32.mrf.mxu0  ;;  %v6966_v49 = vpop.f32.mrf.mxu1 }
 0x357   :  { %v3762_v41 = vadd.f32 %v3659_v24, %v11104_v63  ;;  %v4186_v8 = vadd.f32 %v6966_v49, %v11102_v15  ;;  %v3795_v11 = vmax.f32 %v3763_v26, 0.0 }
 0x358   :  { %v11402_v10 = vpop.f32.mrf.mxu0  ;;  %v4074_v54 = vpop.f32.mrf.mxu1 }
 0x359   :  { %v4185_v6 = vadd.f32 %v4074_v54, %v11124_v50  ;;  %v3794_v59 = vmax.f32 %v3762_v41, 0.0  ;;  %v4218_v62 = vmax.f32 %v4186_v8, 0.0  ;;  %v5288_v4 = vmax.f32 %v3787_v60, %v3795_v11 }
 0x35a   :  { %v11412_v43 = vpop.f32.mrf.mxu0  ;;  %v6969_v39 = vpop.f32.mrf.mxu1  ;;  %v3792_v54 = vmax.f32 %v3760_v47, 0.0  ;;  %v4216_v41 = vmax.f32 %v4184_v30, 0.0  ;;  %v3757_v60 = vadd.f32 %v11366_v37, %v11162_v56  ;;  %v3791_v11 = vmax.f32 %v3759_v13, 0.0 }
 0x35b   :  { %v4188_v58 = vadd.f32 %v6969_v39, %v11078_v34  ;;  %v4217_v14 = vmax.f32 %v4185_v6, 0.0  ;;  %v5287_v29 = vmax.f32 %v3786_v17, %v3794_v59  ;;  %v5294_v55 = vmax.f32 %v4210_v48, %v4218_v62 }
 0x35c   :  { %v11418_v35 = vpop.f32.mrf.mxu0  ;;  %v4084_v22 = vpop.f32.mrf.mxu1  ;;  %v4215_v47 = vmax.f32 %v4183_v7, 0.0  ;;  %v4173_v48 = vadd.f32 %v11355_v0, %v11234_v9  ;;  %v3756_v37 = vadd.f32 %v11368_v20, %v11234_v9  ;;  %v3748_v0 = vadd.f32 %v11334_v46, %v11234_v9 }
 0x35d   :  { %v4220_v27 = vmax.f32 %v4188_v58, 0.0  ;;  %v4187_v23 = vadd.f32 %v4084_v22, %v11104_v63  ;;  %v4208_v58 = vmax.f32 %v11398_v36, 0.0  ;;  %v5293_v30 = vmax.f32 %v4209_v61, %v4217_v14 }
 0x35e   :  { %v11423_v24 = vpop.f32.mrf.mxu0  ;;  %v11425_v49 = vpop.f32.mrf.mxu1  ;;  %v4207_v36 = vmax.f32 %v11406_v53, 0.0  ;;  %v3790_v22 = vmax.f32 %v3758_v52, 0.0  ;;  %v5285_v61 = vmax.f32 %v3784_v31, %v3792_v54  ;;  %v3782_v53 = vmax.f32 %v11389_v5, 0.0 }
 0x35f   :  { %v5296_v12 = vmax.f32 %v4212_v57, %v4220_v27  ;;  %v4219_v26 = vmax.f32 %v4187_v23, 0.0  ;;  %v5286_v57 = vmax.f32 %v3785_v19, %v3793_v51  ;;  %v4214_v19 = vmax.f32 %v4182_v40, 0.0 }
 0x360   :  { %v11429_v8 = vpop.f32.mrf.mxu0  ;;  %v11431_v38 = vpop.f32.mrf.mxu1  ;;  %v5292_v62 = vmax.f32 %v4208_v58, %v4216_v41  ;;  %v4206_v20 = vmax.f32 %v11392_v32, 0.0  ;;  %v3789_v23 = vmax.f32 %v3757_v60, 0.0  ;;  %v5284_v51 = vmax.f32 %v3783_v2, %v3791_v11 }
 0x361   :  { %v5304_v1 = vmax.f32 %v5288_v4, %v5296_v12  ;;  %v5295_v39 = vmax.f32 %v4211_v28, %v4219_v26  ;;  %v5302_v27 = vmax.f32 %v5286_v57, %v5294_v55  ;;  %v5291_v31 = vmax.f32 %v4207_v36, %v4215_v47 }
 0x362   :  { %v11438_v3 = vpop.f32.mrf.mxu0  ;;  %v11440_v6 = vpop.f32.mrf.mxu1  ;;  %v5301_v7 = vmax.f32 %v5285_v61, %v5293_v30  ;;  %v3781_v4 = vmax.f32 %v11383_v42, 0.0  ;;  %v4205_v14 = vmax.f32 %v4173_v48, 0.0  ;;  %v3788_v32 = vmax.f32 %v3756_v37, 0.0 }
 0x363   :  { %v5303_v17 = vmax.f32 %v5287_v29, %v5295_v39  ;;  %7161 = vmatpush3.msra.mxu0 %v5304_v1  ;;  %v5283_v12 = vmax.f32 %v3782_v53, %v3790_v22  ;;  %v5290_v26 = vmax.f32 %v4206_v20, %v4214_v19  ;;  %v5300_v52 = vmax.f32 %v5284_v51, %v5292_v62 }
 0x364   :  { %v11447_v59 = vpop.f32.mrf.mxu0  ;;  %v11449_v45 = vpop.f32.mrf.mxu1  ;;  %7162 = vmatprep.subr.mxu0 %v7311_v16  ;;  %v3780_v2 = vmax.f32 %v3748_v0, 0.0  ;;  %v5282_v54 = vmax.f32 %v3781_v4, %v3789_v23  ;;  %v5289_v41 = vmax.f32 %v4205_v14, %v4213_v44  ;;  %v11484_v30 = vadd.f32 %v11418_v35, %v11122_v21 }
 0x365   :  { %7163 = vmatpush3.msra.mxu0 %v5303_v17  ;;  %v5299_v42 = vmax.f32 %v5283_v12, %v5291_v31  ;;  %v11492_v36 = vadd.f32 %v11429_v8, %v11102_v15  ;;  %v11496_v19 = vadd.f32 %v11438_v3, %v11124_v50  ;;  %v11500_v35 = vadd.f32 %v11402_v10, %v11162_v56 }
 0x366   :  { %v3699_v13 = vpop.f32.mrf.mxu0  ;;  %v6978_v28 = vpop.f32.mrf.mxu1  ;;  %7164 = vmatprep.subr.mxu0 %v7311_v16  ;;  %v5281_v1 = vmax.f32 %v3780_v2, %v3788_v32  ;;  %v5298_v39 = vmax.f32 %v5282_v54, %v5290_v26  ;;  %v3799_v61 = vmax.f32 %v11484_v30, 0.0  ;;  %v3771_v62 = vadd.f32 %v11447_v59, %v11078_v34 }
 0x367   :  { %7165 = vmatpush3.msra.mxu0 %v5302_v27  ;;  %v3770_v27 = vadd.f32 %v3699_v13, %v11104_v63  ;;  %v11508_v53 = vadd.f32 %v11423_v24, %v11170_v25  ;;  %v11512_v3 = vadd.f32 %v11425_v49, %v11162_v56  ;;  %v4194_v10 = vadd.f32 %v6978_v28, %v11102_v15 }
 0x368   :  { %v11462_v46 = vpop.f32.mrf.mxu0  ;;  %v4114_v5 = vpop.f32.mrf.mxu1  ;;  %7166 = vmatprep.subr.mxu0 %v7311_v16  ;;  %v5297_v11 = vmax.f32 %v5281_v1, %v5289_v41  ;;  %v3801_v23 = vmax.f32 %v11492_v36, 0.0  ;;  %v11519_v59 = vadd.f32 %v11440_v6, %v11122_v21  ;;  %v3800_v49 = vmax.f32 %v11496_v19, 0.0 }
 0x369   :  { %7167 = vmatpush3.msra.mxu0 %v5301_v7  ;;  %v4193_v13 = vadd.f32 %v4114_v5, %v11124_v50  ;;  %v11528_v28 = vadd.f32 %v11449_v45, %v11170_v25  ;;  %v3803_v4 = vmax.f32 %v3771_v62, 0.0  ;;  %v3802_v6 = vmax.f32 %v3770_v27, 0.0 }
 0x36a   :  { %v11465_v40 = vpop.f32.mrf.mxu0  ;;  %v6981_v33 = vpop.f32.mrf.mxu1  ;;  %7168 = vmatprep.subr.mxu0 %v7311_v16  ;;  %v4226_v26 = vmax.f32 %v4194_v10, 0.0 }
 0x36b   :  { %7169 = vmatpush3.msra.mxu0 %v5300_v52  ;;  %v4196_v51 = vadd.f32 %v6981_v33, %v11078_v34  ;;  %v4225_v2 = vmax.f32 %v4193_v13, 0.0 }
 0x36c   :  { %v11468_v29 = vpop.f32.mrf.mxu0  ;;  %v4124_v55 = vpop.f32.mrf.mxu1  ;;  %7170 = vmatprep.subr.mxu0 %v7311_v16 }
 0x36d   :  { %7171 = vmatpush3.msra.mxu0 %v5299_v42  ;;  %v4195_v14 = vadd.f32 %v4124_v55, %v11104_v63  ;;  %v4228_v54 = vmax.f32 %v4196_v51, 0.0  ;;  %v3775_v36 = vadd.f32 %v11468_v29, %v11122_v21 }
 0x36e   :  { %v11471_v58 = vpop.f32.mrf.mxu0  ;;  %v11473_v60 = vpop.f32.mrf.mxu1  ;;  %7172 = vmatprep.subr.mxu0 %v7311_v16 }
 0x36f   :  { %7173 = vmatpush3.msra.mxu0 %v5298_v39  ;;  %v3774_v13 = vadd.f32 %v11471_v58, %v11170_v25  ;;  %v4198_v51 = vadd.f32 %v11473_v60, %v11162_v56 }
 0x370   :  { %v6926_v57 = vpop.f32.mrf.mxu0  ;;  %v11479_v47 = vpop.f32.mrf.mxu1  ;;  %7174 = vmatprep.subr.mxu0 %v7311_v16 }
 0x371   :  { %7175 = vmatpush3.msra.mxu0 %v5297_v11  ;;  %v3777_v5 = vadd.f32 %v6926_v57, %v11102_v15  ;;  %v4197_v58 = vadd.f32 %v11479_v47, %v11234_v9 }
 0x372   :  { %v3729_v17 = vpop.f32.mrf.mxu0  ;;  %v6987_v48 = vpop.f32.mrf.mxu1  ;;  %7198 = vmatprep.subr.mxu0 %v7311_v16  ;;  %7177 = vmatmul.mubr.msk.f32.vlgmr.msra.gmra.mxu0 %vm2536_vm1, %v116_v18 }
 0x373   :  { %7214 = vmatprep.mubr.msk.f32.mxu0 %vm7312_vm2, %v7311_v16  ;;  %v3776_v41 = vadd.f32 %v3729_v17, %v11124_v50  ;;  %v4200_v42 = vadd.f32 %v6987_v48, %v11122_v21  ;;  %v3809_v62 = vmax.f32 %v3777_v5, 0.0  ;;  %v4229_v19 = vmax.f32 %v4197_v58, 0.0  ;;  %v117_v58 = vld [vmem:[%s11820_s7 + $0xc] sm:$0xf] }
 0x374   :  { %v6929_v37 = vpop.f32.mrf.mxu0  ;;  %v4144_v22 = vpop.f32.mrf.mxu1 }
 0x375   :  { %v3779_v20 = vadd.f32 %v6929_v37, %v11078_v34  ;;  %v4227_v37 = vmax.f32 %v4195_v14, 0.0  ;;  %v4199_v27 = vadd.f32 %v4144_v22, %v11170_v25  ;;  %v4232_v29 = vmax.f32 %v4200_v42, 0.0 }
 0x376   :  { %v3739_v0 = vpop.f32.mrf.mxu0  ;;  %v6990_v8 = vpop.f32.mrf.mxu1 }
 0x377   :  { %v3778_v31 = vadd.f32 %v3739_v0, %v11104_v63  ;;  %v4202_v7 = vadd.f32 %v6990_v8, %v11102_v15  ;;  %v3811_v52 = vmax.f32 %v3779_v20, 0.0 }
 0x378   :  { %v4154_v24 = vpop.f32.mrf.mxu1  ;;  %v11523_v44 = vpop.f32.mrf.mxu0 }
 0x379   :  { %v4201_v33 = vadd.f32 %v4154_v24, %v11124_v50  ;;  %v3810_v55 = vmax.f32 %v3778_v31, 0.0  ;;  %v4234_v11 = vmax.f32 %v4202_v7, 0.0  ;;  %v5386_v48 = vmax.f32 %v3803_v4, %v3811_v52 }
 0x37a   :  { %v6993_v32 = vpop.f32.mrf.mxu1  ;;  %v11534_v12 = vpop.f32.mrf.mxu0  ;;  %v3808_v24 = vmax.f32 %v3776_v41, 0.0  ;;  %v4224_v4 = vmax.f32 %v11519_v59, 0.0  ;;  %v3773_v52 = vadd.f32 %v11462_v46, %v11162_v56  ;;  %v4231_v41 = vmax.f32 %v4199_v27, 0.0 }
 0x37b   :  { %v4204_v45 = vadd.f32 %v6993_v32, %v11078_v34  ;;  %v4233_v8 = vmax.f32 %v4201_v33, 0.0  ;;  %v5385_v22 = vmax.f32 %v3802_v6, %v3810_v55  ;;  %v5392_v14 = vmax.f32 %v4226_v26, %v4234_v11 }
 0x37c   :  { %v4164_v1 = vpop.f32.mrf.mxu1  ;;  %v11540_v39 = vpop.f32.mrf.mxu0  ;;  %v3807_v33 = vmax.f32 %v3775_v36, 0.0  ;;  %v4189_v26 = vadd.f32 %v11431_v38, %v11234_v9  ;;  %v4223_v59 = vmax.f32 %v11528_v28, 0.0  ;;  %v3772_v46 = vadd.f32 %v11465_v40, %v11234_v9 }
 0x37d   :  { %v4236_v18 = vmax.f32 %v4204_v45, 0.0  ;;  %v4203_v57 = vadd.f32 %v4164_v1, %v11104_v63  ;;  %v5391_v42 = vmax.f32 %v4225_v2, %v4233_v8  ;;  %v3806_v1 = vmax.f32 %v3774_v13, 0.0 }
 0x37e   :  { %v11546_v0 = vpop.f32.mrf.mxu0  ;;  %v11548_v17 = vpop.f32.mrf.mxu1  ;;  %v5383_v2 = vmax.f32 %v3800_v49, %v3808_v24  ;;  %v5390_v11 = vmax.f32 %v4224_v4, %v4232_v29  ;;  %v3764_v38 = vadd.f32 %v11412_v43, %v11234_v9  ;;  %v3798_v28 = vmax.f32 %v11508_v53, 0.0 }
 0x37f   :  { %v5394_v10 = vmax.f32 %v4228_v54, %v4236_v18  ;;  %v4235_v20 = vmax.f32 %v4203_v57, 0.0  ;;  %v5384_v54 = vmax.f32 %v3801_v23, %v3809_v62  ;;  %v4230_v23 = vmax.f32 %v4198_v51, 0.0 }
 0x380   :  { %v11554_v31 = vpop.f32.mrf.mxu0  ;;  %v11556_v7 = vpop.f32.mrf.mxu1  ;;  %v4222_v40 = vmax.f32 %v11512_v3, 0.0  ;;  %v3805_v57 = vmax.f32 %v3773_v52, 0.0  ;;  %v5382_v62 = vmax.f32 %v3799_v61, %v3807_v33  ;;  %v5389_v49 = vmax.f32 %v4223_v59, %v4231_v41 }
 0x381   :  { %v5402_v5 = vmax.f32 %v5386_v48, %v5394_v10  ;;  %v5393_v32 = vmax.f32 %v4227_v37, %v4235_v20  ;;  %v5400_v18 = vmax.f32 %v5384_v54, %v5392_v14  ;;  %v5399_v27 = vmax.f32 %v5383_v2, %v5391_v42 }
 0x382   :  { %v11563_v60 = vpop.f32.mrf.mxu0  ;;  %v11565_v45 = vpop.f32.mrf.mxu1  ;;  %v3797_v48 = vmax.f32 %v11500_v35, 0.0  ;;  %v4221_v8 = vmax.f32 %v4189_v26, 0.0  ;;  %v3804_v3 = vmax.f32 %v3772_v46, 0.0  ;;  %v5381_v10 = vmax.f32 %v3798_v28, %v3806_v1 }
 0x383   :  { %v5401_v6 = vmax.f32 %v5385_v22, %v5393_v32  ;;  %7180 = vmatpush3.msra.mxu1 %v5402_v5  ;;  %v5388_v20 = vmax.f32 %v4222_v40, %v4230_v23  ;;  %v5398_v13 = vmax.f32 %v5382_v62, %v5390_v11  ;;  %v3796_v61 = vmax.f32 %v3764_v38, 0.0 }
 0x384   :  { %v11572_v55 = vpop.f32.mrf.mxu0  ;;  %v11574_v47 = vpop.f32.mrf.mxu1  ;;  %7181 = vmatprep.subr.mxu1 %v7311_v16  ;;  %v5380_v24 = vmax.f32 %v3797_v48, %v3805_v57  ;;  %v5387_v29 = vmax.f32 %v4221_v8, %v4229_v19  ;;  %v5397_v35 = vmax.f32 %v5381_v10, %v5389_v49  ;;  %v11613_v26 = vadd.f32 %v11540_v39, %v11122_v21 }
 0x385   :  { %7182 = vmatpush3.msra.mxu1 %v5401_v6  ;;  %v5379_v5 = vmax.f32 %v3796_v61, %v3804_v3  ;;  %v11617_v1 = vadd.f32 %v11554_v31, %v11102_v15  ;;  %v11621_v23 = vadd.f32 %v11563_v60, %v11124_v50  ;;  %v11629_v39 = vadd.f32 %v11546_v0, %v11170_v25 }
 0x386   :  { %v4469_v36 = vpop.f32.mrf.mxu0  ;;  %v7082_v37 = vpop.f32.mrf.mxu1  ;;  %7183 = vmatprep.subr.mxu1 %v7311_v16  ;;  %v5396_v32 = vmax.f32 %v5380_v24, %v5388_v20  ;;  %v4605_v38 = vadd.f32 %v11572_v55, %v11078_v34  ;;  %v4633_v28 = vmax.f32 %v11613_v26, 0.0  ;;  %v11637_v60 = vadd.f32 %v11548_v17, %v11162_v56 }
 0x387   :  { %7184 = vmatpush3.msra.mxu1 %v5400_v18  ;;  %v5395_v33 = vmax.f32 %v5379_v5, %v5387_v29  ;;  %v11625_v18 = vadd.f32 %v11523_v44, %v11162_v56  ;;  %v4604_v31 = vadd.f32 %v4469_v36, %v11104_v63  ;;  %v5028_v40 = vadd.f32 %v7082_v37, %v11102_v15 }
 0x388   :  { %v11587_v43 = vpop.f32.mrf.mxu0  ;;  %v4884_v53 = vpop.f32.mrf.mxu1  ;;  %7185 = vmatprep.subr.mxu1 %v7311_v16  ;;  %v4635_v0 = vmax.f32 %v11617_v1, 0.0  ;;  %v4634_v49 = vmax.f32 %v11621_v23, 0.0  ;;  %v11650_v17 = vadd.f32 %v11565_v45, %v11122_v21  ;;  %v11654_v37 = vadd.f32 %v11574_v47, %v11170_v25 }
 0x389   :  { %7186 = vmatpush3.msra.mxu1 %v5399_v27  ;;  %v5027_v19 = vadd.f32 %v4884_v53, %v11124_v50  ;;  %v4637_v53 = vmax.f32 %v4605_v38, 0.0  ;;  %v4636_v3 = vmax.f32 %v4604_v31, 0.0 }
 0x38a   :  { %v11590_v51 = vpop.f32.mrf.mxu0  ;;  %v7085_v30 = vpop.f32.mrf.mxu1  ;;  %7187 = vmatprep.subr.mxu1 %v7311_v16 }
 0x38b   :  { %7188 = vmatpush3.msra.mxu1 %v5398_v13  ;;  %v5030_v55 = vadd.f32 %v7085_v30, %v11078_v34  ;;  %v5060_v13 = vmax.f32 %v5028_v40, 0.0  ;;  %v5059_v29 = vmax.f32 %v5027_v19, 0.0 }
 0x38c   :  { %v11593_v22 = vpop.f32.mrf.mxu0  ;;  %v4894_v14 = vpop.f32.mrf.mxu1  ;;  %7189 = vmatprep.subr.mxu1 %v7311_v16 }
 0x38d   :  { %7190 = vmatpush3.msra.mxu1 %v5397_v35  ;;  %v5029_v10 = vadd.f32 %v4894_v14, %v11104_v63  ;;  %v5062_v35 = vmax.f32 %v5030_v55, 0.0 }
 0x38e   :  { %v11596_v4 = vpop.f32.mrf.mxu0  ;;  %v11598_v52 = vpop.f32.mrf.mxu1  ;;  %7191 = vmatprep.subr.mxu1 %v7311_v16 }
 0x38f   :  { %7192 = vmatpush3.msra.mxu1 %v5396_v32  ;;  %v4608_v55 = vadd.f32 %v11596_v4, %v11170_v25 }
 0x390   :  { %v7030_v54 = vpop.f32.mrf.mxu0  ;;  %v11604_v41 = vpop.f32.mrf.mxu1  ;;  %7193 = vmatprep.subr.mxu1 %v7311_v16 }
 0x391   :  { %7194 = vmatpush3.msra.mxu1 %v5395_v33  ;;  %v4611_v20 = vadd.f32 %v7030_v54, %v11102_v15 }
 0x392   :  { %v4499_v42 = vpop.f32.mrf.mxu0  ;;  %v7091_v6 = vpop.f32.mrf.mxu1  ;;  %7196 = vmatmul.mubr.msk.f32.vlgmr.msra.gmra.mxu1 %vm2536_vm1, %v117_v58  ;;  %7217 = vmatprep.subr.mxu1 %v7311_v16 }
 0x393   :  { %7233 = vmatprep.mubr.msk.f32.mxu1 %vm7312_vm2, %v7311_v16  ;;  %v4610_v33 = vadd.f32 %v4499_v42, %v11124_v50  ;;  %v5034_v14 = vadd.f32 %v7091_v6, %v11122_v21  ;;  %v4643_v38 = vmax.f32 %v4611_v20, 0.0 }
 0x394   :  { %v7033_v59 = vpop.f32.mrf.mxu0  ;;  %v4914_v46 = vpop.f32.mrf.mxu1 }
 0x395   :  { %v4613_v44 = vadd.f32 %v7033_v59, %v11078_v34 }
 0x396   :  { %v4509_v2 = vpop.f32.mrf.mxu0  ;;  %v7094_v11 = vpop.f32.mrf.mxu1 }
 0x397   :  { %v4612_v36 = vadd.f32 %v4509_v2, %v11104_v63  ;;  %v5036_v27 = vadd.f32 %v7094_v11, %v11102_v15  ;;  %v4645_v30 = vmax.f32 %v4613_v44, 0.0  ;;  %v4609_v2 = vadd.f32 %v11593_v22, %v11122_v21 }
 0x398   :  { %v11641_v57 = vpop.f32.mrf.mxu0  ;;  %v4924_v62 = vpop.f32.mrf.mxu1  ;;  %v5061_v11 = vmax.f32 %v5029_v10, 0.0  ;;  %v5033_v44 = vadd.f32 %v4914_v46, %v11170_v25  ;;  %v5066_v10 = vmax.f32 %v5034_v14, 0.0  ;;  %v4640_v14 = vmax.f32 %v4608_v55, 0.0 }
 0x399   :  { %v5035_v45 = vadd.f32 %v4924_v62, %v11124_v50  ;;  %v4644_v5 = vmax.f32 %v4612_v36, 0.0  ;;  %v5068_v58 = vmax.f32 %v5036_v27, 0.0  ;;  %v5484_v40 = vmax.f32 %v4637_v53, %v4645_v30 }
 0x39a   :  { %v11657_v48 = vpop.f32.mrf.mxu0  ;;  %v7097_v8 = vpop.f32.mrf.mxu1  ;;  %v5032_v36 = vadd.f32 %v11598_v52, %v11162_v56  ;;  %v5031_v52 = vadd.f32 %v11604_v41, %v11234_v9 }
 0x39b   :  { %v5038_v61 = vadd.f32 %v7097_v8, %v11078_v34  ;;  %v5067_v62 = vmax.f32 %v5035_v45, 0.0  ;;  %v5483_v27 = vmax.f32 %v4636_v3, %v4644_v5  ;;  %v4642_v8 = vmax.f32 %v4610_v33, 0.0 }
 0x39c   :  { %v11663_v24 = vpop.f32.mrf.mxu0  ;;  %v4934_v47 = vpop.f32.mrf.mxu1  ;;  %v5490_v20 = vmax.f32 %v5060_v13, %v5068_v58  ;;  %v5058_v45 = vmax.f32 %v11650_v17, 0.0  ;;  %v5065_v3 = vmax.f32 %v5033_v44, 0.0  ;;  %v5023_v33 = vadd.f32 %v11556_v7, %v11234_v9 }
 0x39d   :  { %v5037_v32 = vadd.f32 %v4934_v47, %v11104_v63  ;;  %v5070_v54 = vmax.f32 %v5038_v61, 0.0  ;;  %v4607_v61 = vadd.f32 %v11587_v43, %v11162_v56  ;;  %v4641_v47 = vmax.f32 %v4609_v2, 0.0 }
 0x39e   :  { %v11668_v59 = vpop.f32.mrf.mxu0  ;;  %v11670_v1 = vpop.f32.mrf.mxu1  ;;  %v5489_v5 = vmax.f32 %v5059_v29, %v5067_v62  ;;  %v5057_v17 = vmax.f32 %v11654_v37, 0.0  ;;  %v4606_v43 = vadd.f32 %v11590_v51, %v11234_v9  ;;  %v5481_v41 = vmax.f32 %v4634_v49, %v4642_v8 }
 0x39f   :  { %v5069_v31 = vmax.f32 %v5037_v32, 0.0  ;;  %v5492_v19 = vmax.f32 %v5062_v35, %v5070_v54  ;;  %v5482_v35 = vmax.f32 %v4635_v0, %v4643_v38  ;;  %v5064_v0 = vmax.f32 %v5032_v36, 0.0 }
 0x3a0   :  { %v11675_v42 = vpop.f32.mrf.mxu0  ;;  %v11677_v6 = vpop.f32.mrf.mxu1  ;;  %v5488_v29 = vmax.f32 %v5058_v45, %v5066_v10  ;;  %v4598_v7 = vadd.f32 %v11534_v12, %v11234_v9  ;;  %v4632_v37 = vmax.f32 %v11629_v39, 0.0  ;;  %v4639_v51 = vmax.f32 %v4607_v61, 0.0 }
 0x3a1   :  { %v5491_v22 = vmax.f32 %v5061_v11, %v5069_v31  ;;  %v5500_v53 = vmax.f32 %v5484_v40, %v5492_v19  ;;  %v5498_v58 = vmax.f32 %v5482_v35, %v5490_v20  ;;  %v5056_v11 = vmax.f32 %v11637_v60, 0.0 }
 0x3a2   :  { %v11683_v30 = vpop.f32.mrf.mxu0  ;;  %v11685_v46 = vpop.f32.mrf.mxu1  ;;  %v5480_v38 = vmax.f32 %v4633_v28, %v4641_v47  ;;  %v5063_v23 = vmax.f32 %v5031_v52, 0.0  ;;  %v5487_v49 = vmax.f32 %v5057_v17, %v5065_v3  ;;  %v5497_v31 = vmax.f32 %v5481_v41, %v5489_v5  ;;  %v118_v52 = vld [vmem:[%s11820_s7 + $0x10] sm:$0xf] }
 0x3a3   :  { %v5499_v4 = vmax.f32 %v5483_v27, %v5491_v22  ;;  %7199 = vmatpush3.msra.mxu0 %v5500_v53  ;;  %v4631_v62 = vmax.f32 %v11625_v18, 0.0  ;;  %v5055_v12 = vmax.f32 %v5023_v33, 0.0  ;;  %v4638_v39 = vmax.f32 %v4606_v43, 0.0 }
 0x3a4   :  { %v11692_v13 = vpop.f32.mrf.mxu0  ;;  %v11694_v32 = vpop.f32.mrf.mxu1  ;;  %7200 = vmatprep.subr.mxu0 %v7311_v16  ;;  %v5479_v60 = vmax.f32 %v4632_v37, %v4640_v14  ;;  %v5486_v19 = vmax.f32 %v5056_v11, %v5064_v0  ;;  %v5496_v55 = vmax.f32 %v5480_v38, %v5488_v29  ;;  %v4630_v28 = vmax.f32 %v4598_v7, 0.0 }
 0x3a5   :  { %7201 = vmatpush3.msra.mxu0 %v5499_v4  ;;  %v5478_v27 = vmax.f32 %v4631_v62, %v4639_v51  ;;  %v5485_v22 = vmax.f32 %v5055_v12, %v5063_v23  ;;  %v11732_v3 = vadd.f32 %v11663_v24, %v11122_v21  ;;  %v4619_v17 = vadd.f32 %v11675_v42, %v11102_v15 }
 0x3a6   :  { %v4549_v54 = vpop.f32.mrf.mxu0  ;;  %v7106_v2 = vpop.f32.mrf.mxu1  ;;  %7202 = vmatprep.subr.mxu0 %v7311_v16  ;;  %v5495_v8 = vmax.f32 %v5479_v60, %v5487_v49  ;;  %v5477_v20 = vmax.f32 %v4630_v28, %v4638_v39  ;;  %v11739_v0 = vadd.f32 %v11683_v30, %v11124_v50  ;;  %v11743_v41 = vadd.f32 %v11641_v57, %v11162_v56 }
 0x3a7   :  { %7203 = vmatpush3.msra.mxu0 %v5498_v58  ;;  %v5494_v53 = vmax.f32 %v5478_v27, %v5486_v19  ;;  %v4649_v24 = vmax.f32 %v11732_v3, 0.0  ;;  %v4621_v29 = vadd.f32 %v11692_v13, %v11078_v34  ;;  %v4620_v58 = vadd.f32 %v4549_v54, %v11104_v63 }
 0x3a8   :  { %v11711_v40 = vpop.f32.mrf.mxu0  ;;  %v4964_v44 = vpop.f32.mrf.mxu1  ;;  %7204 = vmatprep.subr.mxu0 %v7311_v16  ;;  %v5493_v47 = vmax.f32 %v5477_v20, %v5485_v22  ;;  %v11751_v42 = vadd.f32 %v11668_v59, %v11170_v25  ;;  %v11755_v30 = vadd.f32 %v11670_v1, %v11162_v56  ;;  %v5044_v57 = vadd.f32 %v7106_v2, %v11102_v15 }
 0x3a9   :  { %7205 = vmatpush3.msra.mxu0 %v5497_v31  ;;  %v4651_v51 = vmax.f32 %v4619_v17, 0.0  ;;  %v5042_v13 = vadd.f32 %v11685_v46, %v11122_v21  ;;  %v5043_v54 = vadd.f32 %v4964_v44, %v11124_v50  ;;  %v4650_v59 = vmax.f32 %v11739_v0, 0.0 }
 0x3aa   :  { %v11715_v36 = vpop.f32.mrf.mxu0  ;;  %v7109_v26 = vpop.f32.mrf.mxu1  ;;  %7206 = vmatprep.subr.mxu0 %v7311_v16  ;;  %v11766_v49 = vadd.f32 %v11694_v32, %v11170_v25  ;;  %v4653_v31 = vmax.f32 %v4621_v29, 0.0  ;;  %v4652_v62 = vmax.f32 %v4620_v58, 0.0  ;;  %v5076_v39 = vmax.f32 %v5044_v57, 0.0 }
 0x3ab   :  { %7207 = vmatpush3.msra.mxu0 %v5496_v55  ;;  %v5046_v38 = vadd.f32 %v7109_v26, %v11078_v34  ;;  %v5075_v26 = vmax.f32 %v5043_v54, 0.0 }
 0x3ac   :  { %v7051_v10 = vpop.f32.mrf.mxu0  ;;  %v4974_v18 = vpop.f32.mrf.mxu1  ;;  %7208 = vmatprep.subr.mxu0 %v7311_v16 }
 0x3ad   :  { %7209 = vmatpush3.msra.mxu0 %v5495_v8  ;;  %v5045_v12 = vadd.f32 %v4974_v18, %v11104_v63  ;;  %v5078_v32 = vmax.f32 %v5046_v38, 0.0  ;;  %v5073_v38 = vmax.f32 %v11766_v49, 0.0 }
 0x3ae   :  { %v11719_v45 = vpop.f32.mrf.mxu0  ;;  %v11721_v61 = vpop.f32.mrf.mxu1  ;;  %7210 = vmatprep.subr.mxu0 %v7311_v16 }
 0x3af   :  { %7211 = vmatpush3.msra.mxu0 %v5494_v53 }
 0x3b0   :  { %v7054_v4 = vpop.f32.mrf.mxu0  ;;  %v11724_v35 = vpop.f32.mrf.mxu1  ;;  %7212 = vmatprep.subr.mxu0 %v7311_v16 }
 0x3b1   :  { %7213 = vmatpush3.msra.mxu0 %v5493_v47  ;;  %v4627_v46 = vadd.f32 %v7054_v4, %v11102_v15  ;;  %v5077_v47 = vmax.f32 %v5045_v12, 0.0  ;;  %v5047_v57 = vadd.f32 %v11724_v35, %v11234_v9 }
 0x3b2   :  { %v4579_v5 = vpop.f32.mrf.mxu0  ;;  %v7115_v33 = vpop.f32.mrf.mxu1  ;;  %7215 = vmatmul.mubr.msk.f32.vlgmr.msra.gmra.mxu0 %vm2536_vm1, %v118_v52 }
 0x3b3   :  { %v4626_v28 = vadd.f32 %v4579_v5, %v11124_v50  ;;  %v5050_v27 = vadd.f32 %v7115_v33, %v11122_v21  ;;  %v4659_v4 = vmax.f32 %v4627_v46, 0.0  ;;  %v5048_v5 = vadd.f32 %v11721_v61, %v11162_v56 }
 0x3b4   :  { %v7057_v43 = vpop.f32.mrf.mxu0  ;;  %v4994_v14 = vpop.f32.mrf.mxu1  ;;  %v5039_v61 = vadd.f32 %v11677_v6, %v11234_v9  ;;  %v5072_v6 = vmax.f32 %v11755_v30, 0.0  ;;  %v5079_v49 = vmax.f32 %v5047_v57, 0.0 }
 0x3b5   :  { %v4629_v11 = vadd.f32 %v7057_v43, %v11078_v34  ;;  %v5049_v52 = vadd.f32 %v4994_v14, %v11170_v25  ;;  %v4658_v33 = vmax.f32 %v4626_v28, 0.0  ;;  %v5082_v29 = vmax.f32 %v5050_v27, 0.0 }
 0x3b6   :  { %v4589_v7 = vpop.f32.mrf.mxu0  ;;  %v7118_v37 = vpop.f32.mrf.mxu1  ;;  %v4623_v14 = vadd.f32 %v11711_v40, %v11162_v56  ;;  %v5080_v56 = vmax.f32 %v5048_v5, 0.0  ;;  %v5071_v46 = vmax.f32 %v5039_v61, 0.0 }
 0x3b7   :  { %v4628_v1 = vadd.f32 %v4589_v7, %v11104_v63  ;;  %v5052_v2 = vadd.f32 %v7118_v37, %v11102_v15  ;;  %v4661_v60 = vmax.f32 %v4629_v11, 0.0  ;;  %v4625_v15 = vadd.f32 %v7051_v10, %v11122_v21 }
 0x3b8   :  { %v5004_v23 = vpop.f32.mrf.mxu1  ;;  %v5074_v10 = vmax.f32 %v5042_v13, 0.0  ;;  %v5580_v11 = vmax.f32 %v4651_v51, %v4659_v4  ;;  %v5081_v54 = vmax.f32 %v5049_v52, 0.0  ;;  %v4622_v13 = vadd.f32 %v11715_v36, %v11234_v9 }
 0x3b9   :  { %v5051_v19 = vadd.f32 %v5004_v23, %v11124_v50  ;;  %v4660_v8 = vmax.f32 %v4628_v1, 0.0  ;;  %v5084_v20 = vmax.f32 %v5052_v2, 0.0  ;;  %v5582_v17 = vmax.f32 %v4653_v31, %v4661_v60 }
 0x3ba   :  { %v7121_v44 = vpop.f32.mrf.mxu1  ;;  %v4624_v50 = vadd.f32 %v11719_v45, %v11170_v25  ;;  %v4657_v37 = vmax.f32 %v4625_v15, 0.0  ;;  %v5579_v40 = vmax.f32 %v4650_v59, %v4658_v33  ;;  %v5586_v1 = vmax.f32 %v5074_v10, %v5082_v29 }
 0x3bb   :  { %v5054_v55 = vadd.f32 %v7121_v44, %v11078_v34  ;;  %v5083_v34 = vmax.f32 %v5051_v19, 0.0  ;;  %v5581_v58 = vmax.f32 %v4652_v62, %v4660_v8  ;;  %v4614_v51 = vadd.f32 %v11657_v48, %v11234_v9 }
 0x3bc   :  { %v5014_v22 = vpop.f32.mrf.mxu1  ;;  %v4656_v23 = vmax.f32 %v4624_v50, 0.0  ;;  %v4648_v2 = vmax.f32 %v11751_v42, 0.0  ;;  %v4655_v31 = vmax.f32 %v4623_v14, 0.0  ;;  %v5578_v36 = vmax.f32 %v4649_v24, %v4657_v37 }
 0x3bd   :  { %v5086_v53 = vmax.f32 %v5054_v55, 0.0  ;;  %v5053_v18 = vadd.f32 %v5014_v22, %v11104_v63  ;;  %v5588_v63 = vmax.f32 %v5076_v39, %v5084_v20  ;;  %v5587_v25 = vmax.f32 %v5075_v26, %v5083_v34  ;;  %v119_v55 = vld [vmem:[%s11820_s7 + $0x14] sm:$0xf]  ;;  %s7313_s7 = smov [#allocation2]  }
 0x3be   :  { %v5585_v62 = vmax.f32 %v5073_v38, %v5081_v54  ;;  %v4647_v59 = vmax.f32 %v11743_v41, 0.0  ;;  %v4654_v9 = vmax.f32 %v4622_v13, 0.0  ;;  %v5577_v48 = vmax.f32 %v4648_v2, %v4656_v23  ;;  %s5686_s3 = sshll.u32 %s7313_s7, 4  ;;  %s5687_s3 = int_to_ptr.vmem [resolvable:$true] %s5686_s3 }
 0x3bf   :  { %v5590_v43 = vmax.f32 %v5078_v32, %v5086_v53  ;;  %v5085_v0 = vmax.f32 %v5053_v18, 0.0  ;;  %v5596_v35 = vmax.f32 %v5580_v11, %v5588_v63  ;;  %v5595_v12 = vmax.f32 %v5579_v40, %v5587_v25  ;;  %s7288_s0 = scalar_lea.vmem %s5687_s3, 64  ;;  %p7293_p1 = scmp.lt.s32.totalorder %s5687_s3, %s5687_s3 }
 0x3c0   :  { %v5584_v42 = vmax.f32 %v5072_v6, %v5080_v56  ;;  %v5594_v44 = vmax.f32 %v5578_v36, %v5586_v1  ;;  %v4646_v30 = vmax.f32 %v4614_v51, 0.0  ;;  %v5576_v39 = vmax.f32 %v4647_v59, %v4655_v31  ;;  %p7289_p0 = scmp.ne.s32.totalorder %s5687_s3, %s7288_s0  ;;  %p7294_p2 = scmp.lt.s32.totalorder %s7288_s0, %s7288_s0 }
 0x3c1   :  { %v5598_v7 = vmax.f32 %v5582_v17, %v5590_v43  ;;  %v5589_v21 = vmax.f32 %v5077_v47, %v5085_v0  ;;  %v5583_v3 = vmax.f32 %v5071_v46, %v5079_v49  ;;  %v5593_v24 = vmax.f32 %v5577_v48, %v5585_v62  ;;  %v5676_v43 = vpop.permute.xlu1 %5675 }
 0x3c2   :  { %v5575_v60 = vmax.f32 %v4646_v30, %v4654_v9  ;;  %v5592_v19 = vmax.f32 %v5576_v39, %v5584_v42  ;;  %p7295_p3 = por %p7294_p2, %p7293_p1 }
 0x3c3   :  { %v5597_v45 = vmax.f32 %v5581_v58, %v5589_v21  ;;  %7218 = vmatpush3.msra.mxu1 %v5598_v7 }
 0x3c4   :  { %7219 = vmatprep.subr.mxu1 %v7311_v16  ;;  %v5591_v41 = vmax.f32 %v5575_v60, %v5583_v3  ;;  %p7296_p4 = pnand %p7295_p3, %p7289_p0 }
 0x3c5   :  { %7220 = vmatpush3.msra.mxu1 %v5597_v45 }
 0x3c6   :  { %7221 = vmatprep.subr.mxu1 %v7311_v16 }
 0x3c7   :  { %7222 = vmatpush3.msra.mxu1 %v5596_v35 }
 0x3c8   :  { %7223 = vmatprep.subr.mxu1 %v7311_v16 }
 0x3c9   :  { %7224 = vmatpush3.msra.mxu1 %v5595_v12 }
 0x3ca   :  { %7225 = vmatprep.subr.mxu1 %v7311_v16 }
 0x3cb   :  { %7226 = vmatpush3.msra.mxu1 %v5594_v44 }
 0x3cc   :  { %7227 = vmatprep.subr.mxu1 %v7311_v16 }
 0x3cd   :  { %7228 = vmatpush3.msra.mxu1 %v5593_v24 }
 0x3ce   :  { %7229 = vmatprep.subr.mxu1 %v7311_v16 }
 0x3cf   :  { %7230 = vmatpush3.msra.mxu1 %v5592_v19  ;;  %v5277_v26 = vpop.f32.mrf.mxu1 }
 0x3d0   :  { %7231 = vmatprep.subr.mxu1 %v7311_v16 }
 0x3d1   :  { %7232 = vmatpush3.msra.mxu1 %v5591_v41  ;;  %v7159_v32 = vpop.f32.mrf.mxu1 }
 0x3d2   :  { %7234 = vmatmul.mubr.msk.f32.vlgmr.msra.gmra.mxu1 %vm2536_vm1, %v119_v55 }
 0x3f8   :  { %v5204_v28 = vpop.f32.mrf.mxu0 }
 0x3f9   :  { %v5278_v27 = vadd.f32 %v5277_v26, %v5204_v28 }
 0x3fa   :  { %v7140_v22 = vpop.f32.mrf.mxu0 }
 0x432   :  { %v5374_v8 = vpop.f32.mrf.mxu0 }
 0x433   :  { %v5378_v20 = vadd.f32 %v5374_v8, %v5278_v27 }
 0x434   :  { %v7178_v53 = vpop.f32.mrf.mxu0 }
 0x452   :  { %v5472_v18 = vpop.f32.mrf.mxu1 }
 0x453   :  { %v5476_v52 = vadd.f32 %v5472_v18, %v5378_v20 }
 0x454   :  { %v7197_v15 = vpop.f32.mrf.mxu1 }
 0x472   :  { %v5570_v47 = vpop.f32.mrf.mxu0 }
 0x473   :  { %v5574_v17 = vadd.f32 %v5570_v47, %v5476_v52 }
 0x474   :  { %v7216_v4 = vpop.f32.mrf.mxu0 }
 0x492   :  { %v5668_v34 = vpop.f32.mrf.mxu1 }
 0x493   :  { %v5672_v16 = vadd.f32 %v5668_v34, %v5574_v17 }
 0x494   :  { %v7235_v0 = vpop.f32.mrf.mxu1 }
 0x495   :  { %v5678_v50 = vadd.f32 %v5676_v43, %v5672_v16 }
 0x497   :  { %5679 = vst [vmem:[#allocation2] sm:$0xf] %v5678_v50 }
 0x498   :  { %7299 = shalt.err (!%p7296_p4)
}
 0x499   :  { %5689 = dma.vmem_to_hbm [thread:$0]  %s5687_s3, 64, %s11822_s9, [#allocation3]  }
 0x49a   :  { %7308 = dma.done.wait [#allocation3], 64  }
 0x49b   :  { %7309 = vsyncadd [#allocation3], 4294967232 }
 0x49c   :  { %5693 = vsyncpa [#allocation3], 1 }

</bundles_post_ra>
